<compile_context>
chip_gen: v7x
topology: tpu7x:2x2x1
jax: 0.10.0
libtpu: 0.0.40
codegen_flags: <defaults>
</compile_context>

<pallas_src>
import jax
import jax.numpy as jnp
from jax import lax
from jax.experimental import pallas as pl
from jax.experimental.pallas import tpu as pltpu

EPS = 1e-5


def _bn_rows(h, gamma, beta, n):
    """BatchNorm over axis 0 (batch stats, biased var), single-pass statistics."""
    inv_n = 1.0 / float(n)
    mean = jnp.sum(h, axis=0, keepdims=True) * inv_n
    var = jnp.sum(h * h, axis=0, keepdims=True) * inv_n - mean * mean
    scale = gamma * lax.rsqrt(var + EPS)
    shift = beta - mean * scale
    return h * scale + shift


# ----------------------------------------------------------------------------
# Fused kernel: conv+ReLU+BN2d -> NCHW flatten -> fc1/tanh/BN -> fc2/tanh/BN -> fc3
# ----------------------------------------------------------------------------
def behaviour_kernel(x_ref, wk_ref, bc_ref, g1_ref, be1_ref,
                     w1_ref, b1_ref, g2_ref, be2_ref,
                     w2_ref, b2_ref, g3_ref, be3_ref,
                     w3_ref, b3_ref, o_ref, feat_ref):
    B = x_ref.shape[0]
    H = x_ref.shape[1] - 2
    W = x_ref.shape[2] - 2
    Cin = x_ref.shape[3]
    Cout = wk_ref.shape[2]
    HW = H * W

    # ---- conv1 (3x3, stride 1, pad 1) as 9 accumulating MXU matmuls per batch ----
    ys = []
    s1 = jnp.zeros((1, Cout), jnp.float32)
    s2 = jnp.zeros((1, Cout), jnp.float32)
    for b in range(B):
        acc = jnp.zeros((HW, Cout), jnp.float32)
        for t in range(9):
            ky, kx = t // 3, t % 3
            xk = x_ref[b, ky:ky + H, kx:kx + W, :]          # (H, W, Cin)
            acc = acc + jnp.dot(xk.reshape(HW, Cin), wk_ref[t],
                                preferred_element_type=jnp.float32)
        yb = jnp.maximum(acc + bc_ref[...], 0.0)            # bias + ReLU
        s1 = s1 + jnp.sum(yb, axis=0, keepdims=True)        # BN2d stats, one pass
        s2 = s2 + jnp.sum(yb * yb, axis=0, keepdims=True)
        ys.append(yb)

    inv_n = 1.0 / float(B * HW)
    mean = s1 * inv_n
    var = s2 * inv_n - mean * mean
    scale = g1_ref[...] * lax.rsqrt(var + EPS)
    shift = be1_ref[...] - mean * scale

    # ---- NCHW flatten on-chip: feat[b, c*HW + hw] = yb[hw, c] ----
    # Transpose each (HW, Cout) tile via an MXU identity matmul (A @ B^T form),
    # then store the rows channel-major into the VMEM scratch.
    rr = lax.broadcasted_iota(jnp.int32, (Cout, Cout), 0)
    cc = lax.broadcasted_iota(jnp.int32, (Cout, Cout), 1)
    eye = (rr == cc).astype(jnp.float32)
    for b in range(B):
        yb = ys[b] * scale + shift                          # BN2d applied
        ybT = lax.dot_general(eye, yb, (((1,), (1,)), ((), ())),
                              preferred_element_type=jnp.float32)   # (Cout, HW)
        for ch in range(Cout):
            feat_ref[b:b + 1, ch * HW:(ch + 1) * HW] = ybT[ch:ch + 1, :]

    feat = feat_ref[...]                                    # (B, Cout*H*W)

    # ---- fc1 -> tanh -> BN1d -> fc2 -> tanh -> BN1d -> fc3 ----
    h = jnp.tanh(jnp.dot(feat, w1_ref[...],
                         preferred_element_type=jnp.float32) + b1_ref[...])
    h = _bn_rows(h, g2_ref[...], be2_ref[...], B)
    h = jnp.tanh(jnp.dot(h, w2_ref[...],
                         preferred_element_type=jnp.float32) + b2_ref[...])
    h = _bn_rows(h, g3_ref[...], be3_ref[...], B)
    o_ref[...] = jnp.dot(h, w3_ref[...],
                         preferred_element_type=jnp.float32) + b3_ref[...]


# ----------------------------------------------------------------------------
# Wrapper (glue): layout plumbing only, all compute lives in the kernel.
# ----------------------------------------------------------------------------
def behaviour_forward(x, params):
    """x: (B, 128, 16, 16) float32 (PyTorch NCHW).  Returns (B, 2)."""
    B, Cin, H, W = x.shape
    Cout = params["conv_w"].shape[0]
    n_out = params["fc3_w"].shape[0]

    # NCHW -> NHWC + 1-pixel spatial pad (~B*18*18*128*4 bytes, no im2col blowup).
    xpad = jnp.pad(jnp.transpose(x, (0, 2, 3, 1)),
                   ((0, 0), (1, 1), (1, 1), (0, 0)))        # (B, H+2, W+2, Cin)
    # Per-tap conv weights: (ky, kx, Cin, Cout) flattened over the 9 taps.
    wk = jnp.transpose(params["conv_w"], (2, 3, 1, 0)).reshape(9, Cin, Cout)
    row = lambda v: v.reshape(1, -1)

    args = (
        xpad, wk, row(params["conv_b"]),
        row(params["bn1_g"]), row(params["bn1_b"]),
        jnp.transpose(params["fc1_w"]), row(params["fc1_b"]),
        row(params["bn2_g"]), row(params["bn2_b"]),
        jnp.transpose(params["fc2_w"]), row(params["fc2_b"]),
        row(params["bn3_g"]), row(params["bn3_b"]),
        jnp.transpose(params["fc3_w"]), row(params["fc3_b"]),
    )

    return pl.pallas_call(
        behaviour_kernel,
        out_shape=jax.ShapeDtypeStruct((B, n_out), jnp.float32),
        in_specs=[pl.BlockSpec(memory_space=pltpu.MemorySpace.VMEM)
                  for _ in args],
        out_specs=pl.BlockSpec(memory_space=pltpu.MemorySpace.VMEM),
        scratch_shapes=[pltpu.VMEM((B, Cout * H * W), jnp.float32)],
    )(*args)


# ----------------------------------------------------------------------------
# Pure-JAX reference (independent math path) for correctness checking.
# ----------------------------------------------------------------------------
def behaviour_forward_ref(x, p):
    hp = lax.Precision.HIGHEST
    y = lax.conv_general_dilated(
        x, p["conv_w"], window_strides=(1, 1), padding=((1, 1), (1, 1)),
        dimension_numbers=("NCHW", "OIHW", "NCHW"), precision=hp)
    y = y + p["conv_b"].reshape(1, -1, 1, 1)
    y = jnp.maximum(y, 0.0)
    m = y.mean(axis=(0, 2, 3), keepdims=True)
    v = ((y - m) ** 2).mean(axis=(0, 2, 3), keepdims=True)
    y = (y - m) / jnp.sqrt(v + EPS) * p["bn1_g"].reshape(1, -1, 1, 1) \
        + p["bn1_b"].reshape(1, -1, 1, 1)
    f = y.reshape(y.shape[0], -1)                           # NCHW flatten

    def bn(h, g, be):
        m = h.mean(0, keepdims=True)
        v = ((h - m) ** 2).mean(0, keepdims=True)
        return (h - m) / jnp.sqrt(v + EPS) * g + be

    h1 = bn(jnp.tanh(jnp.dot(f, p["fc1_w"].T, precision=hp) + p["fc1_b"]),
            p["bn2_g"], p["bn2_b"])
    h2 = bn(jnp.tanh(jnp.dot(h1, p["fc2_w"].T, precision=hp) + p["fc2_b"]),
            p["bn3_g"], p["bn3_b"])
    return jnp.dot(h2, p["fc3_w"].T, precision=hp) + p["fc3_b"]


def init_params(key):
    ks = jax.random.split(key, 14)
    f32 = jnp.float32
    p = {}
    # conv1: Conv2d(128, 16, 3, padding=1)
    p["conv_w"] = jax.random.normal(ks[0], (16, 128, 3, 3), f32) * 0.02
    p["conv_b"] = jax.random.normal(ks[1], (16,), f32) * 0.02
    p["bn1_g"] = 1.0 + 0.1 * jax.random.normal(ks[2], (16,), f32)
    p["bn1_b"] = 0.1 * jax.random.normal(ks[3], (16,), f32)
    # fc1: Linear(16*16*16, 128)
    p["fc1_w"] = jax.random.normal(ks[4], (128, 4096), f32) * 0.02
    p["fc1_b"] = jax.random.normal(ks[5], (128,), f32) * 0.02
    p["bn2_g"] = 1.0 + 0.1 * jax.random.normal(ks[6], (128,), f32)
    p["bn2_b"] = 0.1 * jax.random.normal(ks[7], (128,), f32)
    # fc2: Linear(128, 64)
    p["fc2_w"] = jax.random.normal(ks[8], (64, 128), f32) * 0.05
    p["fc2_b"] = jax.random.normal(ks[9], (64,), f32) * 0.05
    p["bn3_g"] = 1.0 + 0.1 * jax.random.normal(ks[10], (64,), f32)
    p["bn3_b"] = 0.1 * jax.random.normal(ks[11], (64,), f32)
    # fc3: Linear(64, 2)
    p["fc3_w"] = jax.random.normal(ks[12], (2, 64), f32) * 0.05
    p["fc3_b"] = jax.random.normal(ks[13], (2,), f32) * 0.05
    return p


if __name__ == "__main__":
    key = jax.random.PRNGKey(0)
    kx_, kp = jax.random.split(key)
    params = init_params(kp)

    # conv1 takes 128 channels and fc1 expects 16*16*16 features => 16x16 spatial.
    x = jax.random.normal(kx_, (2, 128, 16, 16), jnp.float32)

    out = jax.block_until_ready(jax.jit(behaviour_forward)(x, params))
    ref = behaviour_forward_ref(x, params)

    assert out.shape == (2, 2)
    assert jnp.allclose(out, ref, atol=1e-3, rtol=1e-3), (out, ref)

    print("KERNEL_OK")
</pallas_src>

<mosaic_0001>
module attributes {stable_mosaic.version = 11 : i64} {
  func.func @behaviour_kernel(%arg0: memref<2x18x18x128xf32, #tpu.memory_space<vmem>>, %arg1: memref<9x128x16xf32, #tpu.memory_space<vmem>>, %arg2: memref<1x16xf32, #tpu.memory_space<vmem>>, %arg3: memref<1x16xf32, #tpu.memory_space<vmem>>, %arg4: memref<1x16xf32, #tpu.memory_space<vmem>>, %arg5: memref<4096x128xf32, #tpu.memory_space<vmem>>, %arg6: memref<1x128xf32, #tpu.memory_space<vmem>>, %arg7: memref<1x128xf32, #tpu.memory_space<vmem>>, %arg8: memref<1x128xf32, #tpu.memory_space<vmem>>, %arg9: memref<128x64xf32, #tpu.memory_space<vmem>>, %arg10: memref<1x64xf32, #tpu.memory_space<vmem>>, %arg11: memref<1x64xf32, #tpu.memory_space<vmem>>, %arg12: memref<1x64xf32, #tpu.memory_space<vmem>>, %arg13: memref<64x2xf32, #tpu.memory_space<vmem>>, %arg14: memref<1x2xf32, #tpu.memory_space<vmem>>, %arg15: memref<2x2xf32, #tpu.memory_space<vmem>>, %arg16: memref<2x4096xf32, #tpu.memory_space<vmem>>) attributes {dimension_semantics = [], scalar_prefetch = 0 : i64, scratch_operands = 1 : i64, tpu.core_type = #tpu.core_type<tc>} {
    %cst = arith.constant 0.000000e+00 : f32
    %0 = vector.broadcast %cst : f32 to vector<1x16xf32>
    %cst_0 = arith.constant 0.000000e+00 : f32
    %1 = vector.broadcast %cst_0 : f32 to vector<1x16xf32>
    %cst_1 = arith.constant 0.000000e+00 : f32
    %2 = vector.broadcast %cst_1 : f32 to vector<256x16xf32>
    %c0 = arith.constant 0 : index
    %c0_2 = arith.constant 0 : index
    %c0_3 = arith.constant 0 : index
    %c0_4 = arith.constant 0 : index
    %3 = vector.load %arg0[%c0, %c0_2, %c0_3, %c0_4] : memref<2x18x18x128xf32, #tpu.memory_space<vmem>>, vector<1x16x16x128xf32>
    %4 = vector.shape_cast %3 : vector<1x16x16x128xf32> to vector<16x16x128xf32>
    %5 = vector.shape_cast %4 : vector<16x16x128xf32> to vector<256x128xf32>
    %c0_5 = arith.constant 0 : index
    %c0_6 = arith.constant 0 : index
    %c0_7 = arith.constant 0 : index
    %6 = vector.load %arg1[%c0_5, %c0_6, %c0_7] : memref<9x128x16xf32, #tpu.memory_space<vmem>>, vector<1x128x16xf32>
    %7 = vector.shape_cast %6 : vector<1x128x16xf32> to vector<128x16xf32>
    %cst_8 = arith.constant dense<0.000000e+00> : vector<256x16xf32>
    %8 = tpu.matmul %5, %7, %cst_8 {dimension_numbers = #tpu.dot_dimension_numbers<[1], [0], [0], [1], [0, 0, 1, 1], [], []>} : vector<256x128xf32>, vector<128x16xf32>, vector<256x16xf32> -> vector<256x16xf32>
    %9 = arith.addf %2, %8 : vector<256x16xf32>
    %c0_9 = arith.constant 0 : index
    %c0_10 = arith.constant 0 : index
    %c1 = arith.constant 1 : index
    %c0_11 = arith.constant 0 : index
    %10 = vector.load %arg0[%c0_9, %c0_10, %c1, %c0_11] : memref<2x18x18x128xf32, #tpu.memory_space<vmem>>, vector<1x16x16x128xf32>
    %11 = vector.shape_cast %10 : vector<1x16x16x128xf32> to vector<16x16x128xf32>
    %12 = vector.shape_cast %11 : vector<16x16x128xf32> to vector<256x128xf32>
    %c1_12 = arith.constant 1 : index
    %c0_13 = arith.constant 0 : index
    %c0_14 = arith.constant 0 : index
    %13 = vector.load %arg1[%c1_12, %c0_13, %c0_14] : memref<9x128x16xf32, #tpu.memory_space<vmem>>, vector<1x128x16xf32>
    %14 = vector.shape_cast %13 : vector<1x128x16xf32> to vector<128x16xf32>
    %cst_15 = arith.constant dense<0.000000e+00> : vector<256x16xf32>
    %15 = tpu.matmul %12, %14, %cst_15 {dimension_numbers = #tpu.dot_dimension_numbers<[1], [0], [0], [1], [0, 0, 1, 1], [], []>} : vector<256x128xf32>, vector<128x16xf32>, vector<256x16xf32> -> vector<256x16xf32>
    %16 = arith.addf %9, %15 : vector<256x16xf32>
    %c0_16 = arith.constant 0 : index
    %c0_17 = arith.constant 0 : index
    %c2 = arith.constant 2 : index
    %c0_18 = arith.constant 0 : index
    %17 = vector.load %arg0[%c0_16, %c0_17, %c2, %c0_18] : memref<2x18x18x128xf32, #tpu.memory_space<vmem>>, vector<1x16x16x128xf32>
    %18 = vector.shape_cast %17 : vector<1x16x16x128xf32> to vector<16x16x128xf32>
    %19 = vector.shape_cast %18 : vector<16x16x128xf32> to vector<256x128xf32>
    %c2_19 = arith.constant 2 : index
    %c0_20 = arith.constant 0 : index
    %c0_21 = arith.constant 0 : index
    %20 = vector.load %arg1[%c2_19, %c0_20, %c0_21] : memref<9x128x16xf32, #tpu.memory_space<vmem>>, vector<1x128x16xf32>
    %21 = vector.shape_cast %20 : vector<1x128x16xf32> to vector<128x16xf32>
    %cst_22 = arith.constant dense<0.000000e+00> : vector<256x16xf32>
    %22 = tpu.matmul %19, %21, %cst_22 {dimension_numbers = #tpu.dot_dimension_numbers<[1], [0], [0], [1], [0, 0, 1, 1], [], []>} : vector<256x128xf32>, vector<128x16xf32>, vector<256x16xf32> -> vector<256x16xf32>
    %23 = arith.addf %16, %22 : vector<256x16xf32>
    %c0_23 = arith.constant 0 : index
    %c1_24 = arith.constant 1 : index
    %c0_25 = arith.constant 0 : index
    %c0_26 = arith.constant 0 : index
    %24 = vector.load %arg0[%c0_23, %c1_24, %c0_25, %c0_26] : memref<2x18x18x128xf32, #tpu.memory_space<vmem>>, vector<1x16x16x128xf32>
    %25 = vector.shape_cast %24 : vector<1x16x16x128xf32> to vector<16x16x128xf32>
    %26 = vector.shape_cast %25 : vector<16x16x128xf32> to vector<256x128xf32>
    %c3 = arith.constant 3 : index
    %c0_27 = arith.constant 0 : index
    %c0_28 = arith.constant 0 : index
    %27 = vector.load %arg1[%c3, %c0_27, %c0_28] : memref<9x128x16xf32, #tpu.memory_space<vmem>>, vector<1x128x16xf32>
    %28 = vector.shape_cast %27 : vector<1x128x16xf32> to vector<128x16xf32>
    %cst_29 = arith.constant dense<0.000000e+00> : vector<256x16xf32>
    %29 = tpu.matmul %26, %28, %cst_29 {dimension_numbers = #tpu.dot_dimension_numbers<[1], [0], [0], [1], [0, 0, 1, 1], [], []>} : vector<256x128xf32>, vector<128x16xf32>, vector<256x16xf32> -> vector<256x16xf32>
    %30 = arith.addf %23, %29 : vector<256x16xf32>
    %c0_30 = arith.constant 0 : index
    %c1_31 = arith.constant 1 : index
    %c1_32 = arith.constant 1 : index
    %c0_33 = arith.constant 0 : index
    %31 = vector.load %arg0[%c0_30, %c1_31, %c1_32, %c0_33] : memref<2x18x18x128xf32, #tpu.memory_space<vmem>>, vector<1x16x16x128xf32>
    %32 = vector.shape_cast %31 : vector<1x16x16x128xf32> to vector<16x16x128xf32>
    %33 = vector.shape_cast %32 : vector<16x16x128xf32> to vector<256x128xf32>
    %c4 = arith.constant 4 : index
    %c0_34 = arith.constant 0 : index
    %c0_35 = arith.constant 0 : index
    %34 = vector.load %arg1[%c4, %c0_34, %c0_35] : memref<9x128x16xf32, #tpu.memory_space<vmem>>, vector<1x128x16xf32>
    %35 = vector.shape_cast %34 : vector<1x128x16xf32> to vector<128x16xf32>
    %cst_36 = arith.constant dense<0.000000e+00> : vector<256x16xf32>
    %36 = tpu.matmul %33, %35, %cst_36 {dimension_numbers = #tpu.dot_dimension_numbers<[1], [0], [0], [1], [0, 0, 1, 1], [], []>} : vector<256x128xf32>, vector<128x16xf32>, vector<256x16xf32> -> vector<256x16xf32>
    %37 = arith.addf %30, %36 : vector<256x16xf32>
    %c0_37 = arith.constant 0 : index
    %c1_38 = arith.constant 1 : index
    %c2_39 = arith.constant 2 : index
    %c0_40 = arith.constant 0 : index
    %38 = vector.load %arg0[%c0_37, %c1_38, %c2_39, %c0_40] : memref<2x18x18x128xf32, #tpu.memory_space<vmem>>, vector<1x16x16x128xf32>
    %39 = vector.shape_cast %38 : vector<1x16x16x128xf32> to vector<16x16x128xf32>
    %40 = vector.shape_cast %39 : vector<16x16x128xf32> to vector<256x128xf32>
    %c5 = arith.constant 5 : index
    %c0_41 = arith.constant 0 : index
    %c0_42 = arith.constant 0 : index
    %41 = vector.load %arg1[%c5, %c0_41, %c0_42] : memref<9x128x16xf32, #tpu.memory_space<vmem>>, vector<1x128x16xf32>
    %42 = vector.shape_cast %41 : vector<1x128x16xf32> to vector<128x16xf32>
    %cst_43 = arith.constant dense<0.000000e+00> : vector<256x16xf32>
    %43 = tpu.matmul %40, %42, %cst_43 {dimension_numbers = #tpu.dot_dimension_numbers<[1], [0], [0], [1], [0, 0, 1, 1], [], []>} : vector<256x128xf32>, vector<128x16xf32>, vector<256x16xf32> -> vector<256x16xf32>
    %44 = arith.addf %37, %43 : vector<256x16xf32>
    %c0_44 = arith.constant 0 : index
    %c2_45 = arith.constant 2 : index
    %c0_46 = arith.constant 0 : index
    %c0_47 = arith.constant 0 : index
    %45 = vector.load %arg0[%c0_44, %c2_45, %c0_46, %c0_47] : memref<2x18x18x128xf32, #tpu.memory_space<vmem>>, vector<1x16x16x128xf32>
    %46 = vector.shape_cast %45 : vector<1x16x16x128xf32> to vector<16x16x128xf32>
    %47 = vector.shape_cast %46 : vector<16x16x128xf32> to vector<256x128xf32>
    %c6 = arith.constant 6 : index
    %c0_48 = arith.constant 0 : index
    %c0_49 = arith.constant 0 : index
    %48 = vector.load %arg1[%c6, %c0_48, %c0_49] : memref<9x128x16xf32, #tpu.memory_space<vmem>>, vector<1x128x16xf32>
    %49 = vector.shape_cast %48 : vector<1x128x16xf32> to vector<128x16xf32>
    %cst_50 = arith.constant dense<0.000000e+00> : vector<256x16xf32>
    %50 = tpu.matmul %47, %49, %cst_50 {dimension_numbers = #tpu.dot_dimension_numbers<[1], [0], [0], [1], [0, 0, 1, 1], [], []>} : vector<256x128xf32>, vector<128x16xf32>, vector<256x16xf32> -> vector<256x16xf32>
    %51 = arith.addf %44, %50 : vector<256x16xf32>
    %c0_51 = arith.constant 0 : index
    %c2_52 = arith.constant 2 : index
    %c1_53 = arith.constant 1 : index
    %c0_54 = arith.constant 0 : index
    %52 = vector.load %arg0[%c0_51, %c2_52, %c1_53, %c0_54] : memref<2x18x18x128xf32, #tpu.memory_space<vmem>>, vector<1x16x16x128xf32>
    %53 = vector.shape_cast %52 : vector<1x16x16x128xf32> to vector<16x16x128xf32>
    %54 = vector.shape_cast %53 : vector<16x16x128xf32> to vector<256x128xf32>
    %c7 = arith.constant 7 : index
    %c0_55 = arith.constant 0 : index
    %c0_56 = arith.constant 0 : index
    %55 = vector.load %arg1[%c7, %c0_55, %c0_56] : memref<9x128x16xf32, #tpu.memory_space<vmem>>, vector<1x128x16xf32>
    %56 = vector.shape_cast %55 : vector<1x128x16xf32> to vector<128x16xf32>
    %cst_57 = arith.constant dense<0.000000e+00> : vector<256x16xf32>
    %57 = tpu.matmul %54, %56, %cst_57 {dimension_numbers = #tpu.dot_dimension_numbers<[1], [0], [0], [1], [0, 0, 1, 1], [], []>} : vector<256x128xf32>, vector<128x16xf32>, vector<256x16xf32> -> vector<256x16xf32>
    %58 = arith.addf %51, %57 : vector<256x16xf32>
    %c0_58 = arith.constant 0 : index
    %c2_59 = arith.constant 2 : index
    %c2_60 = arith.constant 2 : index
    %c0_61 = arith.constant 0 : index
    %59 = vector.load %arg0[%c0_58, %c2_59, %c2_60, %c0_61] : memref<2x18x18x128xf32, #tpu.memory_space<vmem>>, vector<1x16x16x128xf32>
    %60 = vector.shape_cast %59 : vector<1x16x16x128xf32> to vector<16x16x128xf32>
    %61 = vector.shape_cast %60 : vector<16x16x128xf32> to vector<256x128xf32>
    %c8 = arith.constant 8 : index
    %c0_62 = arith.constant 0 : index
    %c0_63 = arith.constant 0 : index
    %62 = vector.load %arg1[%c8, %c0_62, %c0_63] : memref<9x128x16xf32, #tpu.memory_space<vmem>>, vector<1x128x16xf32>
    %63 = vector.shape_cast %62 : vector<1x128x16xf32> to vector<128x16xf32>
    %cst_64 = arith.constant dense<0.000000e+00> : vector<256x16xf32>
    %64 = tpu.matmul %61, %63, %cst_64 {dimension_numbers = #tpu.dot_dimension_numbers<[1], [0], [0], [1], [0, 0, 1, 1], [], []>} : vector<256x128xf32>, vector<128x16xf32>, vector<256x16xf32> -> vector<256x16xf32>
    %65 = arith.addf %58, %64 : vector<256x16xf32>
    %c0_65 = arith.constant 0 : index
    %c0_66 = arith.constant 0 : index
    %66 = vector.load %arg2[%c0_65, %c0_66] : memref<1x16xf32, #tpu.memory_space<vmem>>, vector<1x16xf32>
    %67 = vector.broadcast %66 : vector<1x16xf32> to vector<256x16xf32>
    %68 = arith.addf %65, %67 : vector<256x16xf32>
    %cst_67 = arith.constant 0.000000e+00 : f32
    %69 = vector.broadcast %cst_67 : f32 to vector<256x16xf32>
    %70 = arith.maximumf %68, %69 : vector<256x16xf32>
    %cst_68 = arith.constant dense<0.000000e+00> : vector<16xf32>
    %71 = vector.multi_reduction <add>, %70, %cst_68 [0] : vector<256x16xf32> to vector<16xf32>
    %72 = vector.shape_cast %71 : vector<16xf32> to vector<1x16xf32>
    %73 = arith.addf %0, %72 : vector<1x16xf32>
    %74 = arith.mulf %70, %70 : vector<256x16xf32>
    %cst_69 = arith.constant dense<0.000000e+00> : vector<16xf32>
    %75 = vector.multi_reduction <add>, %74, %cst_69 [0] : vector<256x16xf32> to vector<16xf32>
    %76 = vector.shape_cast %75 : vector<16xf32> to vector<1x16xf32>
    %77 = arith.addf %1, %76 : vector<1x16xf32>
    %cst_70 = arith.constant 0.000000e+00 : f32
    %78 = vector.broadcast %cst_70 : f32 to vector<256x16xf32>
    %c1_71 = arith.constant 1 : index
    %c0_72 = arith.constant 0 : index
    %c0_73 = arith.constant 0 : index
    %c0_74 = arith.constant 0 : index
    %79 = vector.load %arg0[%c1_71, %c0_72, %c0_73, %c0_74] : memref<2x18x18x128xf32, #tpu.memory_space<vmem>>, vector<1x16x16x128xf32>
    %80 = vector.shape_cast %79 : vector<1x16x16x128xf32> to vector<16x16x128xf32>
    %81 = vector.shape_cast %80 : vector<16x16x128xf32> to vector<256x128xf32>
    %c0_75 = arith.constant 0 : index
    %c0_76 = arith.constant 0 : index
    %c0_77 = arith.constant 0 : index
    %82 = vector.load %arg1[%c0_75, %c0_76, %c0_77] : memref<9x128x16xf32, #tpu.memory_space<vmem>>, vector<1x128x16xf32>
    %83 = vector.shape_cast %82 : vector<1x128x16xf32> to vector<128x16xf32>
    %cst_78 = arith.constant dense<0.000000e+00> : vector<256x16xf32>
    %84 = tpu.matmul %81, %83, %cst_78 {dimension_numbers = #tpu.dot_dimension_numbers<[1], [0], [0], [1], [0, 0, 1, 1], [], []>} : vector<256x128xf32>, vector<128x16xf32>, vector<256x16xf32> -> vector<256x16xf32>
    %85 = arith.addf %78, %84 : vector<256x16xf32>
    %c1_79 = arith.constant 1 : index
    %c0_80 = arith.constant 0 : index
    %c1_81 = arith.constant 1 : index
    %c0_82 = arith.constant 0 : index
    %86 = vector.load %arg0[%c1_79, %c0_80, %c1_81, %c0_82] : memref<2x18x18x128xf32, #tpu.memory_space<vmem>>, vector<1x16x16x128xf32>
    %87 = vector.shape_cast %86 : vector<1x16x16x128xf32> to vector<16x16x128xf32>
    %88 = vector.shape_cast %87 : vector<16x16x128xf32> to vector<256x128xf32>
    %c1_83 = arith.constant 1 : index
    %c0_84 = arith.constant 0 : index
    %c0_85 = arith.constant 0 : index
    %89 = vector.load %arg1[%c1_83, %c0_84, %c0_85] : memref<9x128x16xf32, #tpu.memory_space<vmem>>, vector<1x128x16xf32>
    %90 = vector.shape_cast %89 : vector<1x128x16xf32> to vector<128x16xf32>
    %cst_86 = arith.constant dense<0.000000e+00> : vector<256x16xf32>
    %91 = tpu.matmul %88, %90, %cst_86 {dimension_numbers = #tpu.dot_dimension_numbers<[1], [0], [0], [1], [0, 0, 1, 1], [], []>} : vector<256x128xf32>, vector<128x16xf32>, vector<256x16xf32> -> vector<256x16xf32>
    %92 = arith.addf %85, %91 : vector<256x16xf32>
    %c1_87 = arith.constant 1 : index
    %c0_88 = arith.constant 0 : index
    %c2_89 = arith.constant 2 : index
    %c0_90 = arith.constant 0 : index
    %93 = vector.load %arg0[%c1_87, %c0_88, %c2_89, %c0_90] : memref<2x18x18x128xf32, #tpu.memory_space<vmem>>, vector<1x16x16x128xf32>
    %94 = vector.shape_cast %93 : vector<1x16x16x128xf32> to vector<16x16x128xf32>
    %95 = vector.shape_cast %94 : vector<16x16x128xf32> to vector<256x128xf32>
    %c2_91 = arith.constant 2 : index
    %c0_92 = arith.constant 0 : index
    %c0_93 = arith.constant 0 : index
    %96 = vector.load %arg1[%c2_91, %c0_92, %c0_93] : memref<9x128x16xf32, #tpu.memory_space<vmem>>, vector<1x128x16xf32>
    %97 = vector.shape_cast %96 : vector<1x128x16xf32> to vector<128x16xf32>
    %cst_94 = arith.constant dense<0.000000e+00> : vector<256x16xf32>
    %98 = tpu.matmul %95, %97, %cst_94 {dimension_numbers = #tpu.dot_dimension_numbers<[1], [0], [0], [1], [0, 0, 1, 1], [], []>} : vector<256x128xf32>, vector<128x16xf32>, vector<256x16xf32> -> vector<256x16xf32>
    %99 = arith.addf %92, %98 : vector<256x16xf32>
    %c1_95 = arith.constant 1 : index
    %c1_96 = arith.constant 1 : index
    %c0_97 = arith.constant 0 : index
    %c0_98 = arith.constant 0 : index
    %100 = vector.load %arg0[%c1_95, %c1_96, %c0_97, %c0_98] : memref<2x18x18x128xf32, #tpu.memory_space<vmem>>, vector<1x16x16x128xf32>
    %101 = vector.shape_cast %100 : vector<1x16x16x128xf32> to vector<16x16x128xf32>
    %102 = vector.shape_cast %101 : vector<16x16x128xf32> to vector<256x128xf32>
    %c3_99 = arith.constant 3 : index
    %c0_100 = arith.constant 0 : index
    %c0_101 = arith.constant 0 : index
    %103 = vector.load %arg1[%c3_99, %c0_100, %c0_101] : memref<9x128x16xf32, #tpu.memory_space<vmem>>, vector<1x128x16xf32>
    %104 = vector.shape_cast %103 : vector<1x128x16xf32> to vector<128x16xf32>
    %cst_102 = arith.constant dense<0.000000e+00> : vector<256x16xf32>
    %105 = tpu.matmul %102, %104, %cst_102 {dimension_numbers = #tpu.dot_dimension_numbers<[1], [0], [0], [1], [0, 0, 1, 1], [], []>} : vector<256x128xf32>, vector<128x16xf32>, vector<256x16xf32> -> vector<256x16xf32>
    %106 = arith.addf %99, %105 : vector<256x16xf32>
    %c1_103 = arith.constant 1 : index
    %c1_104 = arith.constant 1 : index
    %c1_105 = arith.constant 1 : index
    %c0_106 = arith.constant 0 : index
    %107 = vector.load %arg0[%c1_103, %c1_104, %c1_105, %c0_106] : memref<2x18x18x128xf32, #tpu.memory_space<vmem>>, vector<1x16x16x128xf32>
    %108 = vector.shape_cast %107 : vector<1x16x16x128xf32> to vector<16x16x128xf32>
    %109 = vector.shape_cast %108 : vector<16x16x128xf32> to vector<256x128xf32>
    %c4_107 = arith.constant 4 : index
    %c0_108 = arith.constant 0 : index
    %c0_109 = arith.constant 0 : index
    %110 = vector.load %arg1[%c4_107, %c0_108, %c0_109] : memref<9x128x16xf32, #tpu.memory_space<vmem>>, vector<1x128x16xf32>
    %111 = vector.shape_cast %110 : vector<1x128x16xf32> to vector<128x16xf32>
    %cst_110 = arith.constant dense<0.000000e+00> : vector<256x16xf32>
    %112 = tpu.matmul %109, %111, %cst_110 {dimension_numbers = #tpu.dot_dimension_numbers<[1], [0], [0], [1], [0, 0, 1, 1], [], []>} : vector<256x128xf32>, vector<128x16xf32>, vector<256x16xf32> -> vector<256x16xf32>
    %113 = arith.addf %106, %112 : vector<256x16xf32>
    %c1_111 = arith.constant 1 : index
    %c1_112 = arith.constant 1 : index
    %c2_113 = arith.constant 2 : index
    %c0_114 = arith.constant 0 : index
    %114 = vector.load %arg0[%c1_111, %c1_112, %c2_113, %c0_114] : memref<2x18x18x128xf32, #tpu.memory_space<vmem>>, vector<1x16x16x128xf32>
    %115 = vector.shape_cast %114 : vector<1x16x16x128xf32> to vector<16x16x128xf32>
    %116 = vector.shape_cast %115 : vector<16x16x128xf32> to vector<256x128xf32>
    %c5_115 = arith.constant 5 : index
    %c0_116 = arith.constant 0 : index
    %c0_117 = arith.constant 0 : index
    %117 = vector.load %arg1[%c5_115, %c0_116, %c0_117] : memref<9x128x16xf32, #tpu.memory_space<vmem>>, vector<1x128x16xf32>
    %118 = vector.shape_cast %117 : vector<1x128x16xf32> to vector<128x16xf32>
    %cst_118 = arith.constant dense<0.000000e+00> : vector<256x16xf32>
    %119 = tpu.matmul %116, %118, %cst_118 {dimension_numbers = #tpu.dot_dimension_numbers<[1], [0], [0], [1], [0, 0, 1, 1], [], []>} : vector<256x128xf32>, vector<128x16xf32>, vector<256x16xf32> -> vector<256x16xf32>
    %120 = arith.addf %113, %119 : vector<256x16xf32>
    %c1_119 = arith.constant 1 : index
    %c2_120 = arith.constant 2 : index
    %c0_121 = arith.constant 0 : index
    %c0_122 = arith.constant 0 : index
    %121 = vector.load %arg0[%c1_119, %c2_120, %c0_121, %c0_122] : memref<2x18x18x128xf32, #tpu.memory_space<vmem>>, vector<1x16x16x128xf32>
    %122 = vector.shape_cast %121 : vector<1x16x16x128xf32> to vector<16x16x128xf32>
    %123 = vector.shape_cast %122 : vector<16x16x128xf32> to vector<256x128xf32>
    %c6_123 = arith.constant 6 : index
    %c0_124 = arith.constant 0 : index
    %c0_125 = arith.constant 0 : index
    %124 = vector.load %arg1[%c6_123, %c0_124, %c0_125] : memref<9x128x16xf32, #tpu.memory_space<vmem>>, vector<1x128x16xf32>
    %125 = vector.shape_cast %124 : vector<1x128x16xf32> to vector<128x16xf32>
    %cst_126 = arith.constant dense<0.000000e+00> : vector<256x16xf32>
    %126 = tpu.matmul %123, %125, %cst_126 {dimension_numbers = #tpu.dot_dimension_numbers<[1], [0], [0], [1], [0, 0, 1, 1], [], []>} : vector<256x128xf32>, vector<128x16xf32>, vector<256x16xf32> -> vector<256x16xf32>
    %127 = arith.addf %120, %126 : vector<256x16xf32>
    %c1_127 = arith.constant 1 : index
    %c2_128 = arith.constant 2 : index
    %c1_129 = arith.constant 1 : index
    %c0_130 = arith.constant 0 : index
    %128 = vector.load %arg0[%c1_127, %c2_128, %c1_129, %c0_130] : memref<2x18x18x128xf32, #tpu.memory_space<vmem>>, vector<1x16x16x128xf32>
    %129 = vector.shape_cast %128 : vector<1x16x16x128xf32> to vector<16x16x128xf32>
    %130 = vector.shape_cast %129 : vector<16x16x128xf32> to vector<256x128xf32>
    %c7_131 = arith.constant 7 : index
    %c0_132 = arith.constant 0 : index
    %c0_133 = arith.constant 0 : index
    %131 = vector.load %arg1[%c7_131, %c0_132, %c0_133] : memref<9x128x16xf32, #tpu.memory_space<vmem>>, vector<1x128x16xf32>
    %132 = vector.shape_cast %131 : vector<1x128x16xf32> to vector<128x16xf32>
    %cst_134 = arith.constant dense<0.000000e+00> : vector<256x16xf32>
    %133 = tpu.matmul %130, %132, %cst_134 {dimension_numbers = #tpu.dot_dimension_numbers<[1], [0], [0], [1], [0, 0, 1, 1], [], []>} : vector<256x128xf32>, vector<128x16xf32>, vector<256x16xf32> -> vector<256x16xf32>
    %134 = arith.addf %127, %133 : vector<256x16xf32>
    %c1_135 = arith.constant 1 : index
    %c2_136 = arith.constant 2 : index
    %c2_137 = arith.constant 2 : index
    %c0_138 = arith.constant 0 : index
    %135 = vector.load %arg0[%c1_135, %c2_136, %c2_137, %c0_138] : memref<2x18x18x128xf32, #tpu.memory_space<vmem>>, vector<1x16x16x128xf32>
    %136 = vector.shape_cast %135 : vector<1x16x16x128xf32> to vector<16x16x128xf32>
    %137 = vector.shape_cast %136 : vector<16x16x128xf32> to vector<256x128xf32>
    %c8_139 = arith.constant 8 : index
    %c0_140 = arith.constant 0 : index
    %c0_141 = arith.constant 0 : index
    %138 = vector.load %arg1[%c8_139, %c0_140, %c0_141] : memref<9x128x16xf32, #tpu.memory_space<vmem>>, vector<1x128x16xf32>
    %139 = vector.shape_cast %138 : vector<1x128x16xf32> to vector<128x16xf32>
    %cst_142 = arith.constant dense<0.000000e+00> : vector<256x16xf32>
    %140 = tpu.matmul %137, %139, %cst_142 {dimension_numbers = #tpu.dot_dimension_numbers<[1], [0], [0], [1], [0, 0, 1, 1], [], []>} : vector<256x128xf32>, vector<128x16xf32>, vector<256x16xf32> -> vector<256x16xf32>
    %141 = arith.addf %134, %140 : vector<256x16xf32>
    %c0_143 = arith.constant 0 : index
    %c0_144 = arith.constant 0 : index
    %142 = vector.load %arg2[%c0_143, %c0_144] : memref<1x16xf32, #tpu.memory_space<vmem>>, vector<1x16xf32>
    %143 = vector.broadcast %142 : vector<1x16xf32> to vector<256x16xf32>
    %144 = arith.addf %141, %143 : vector<256x16xf32>
    %cst_145 = arith.constant 0.000000e+00 : f32
    %145 = vector.broadcast %cst_145 : f32 to vector<256x16xf32>
    %146 = arith.maximumf %144, %145 : vector<256x16xf32>
    %cst_146 = arith.constant dense<0.000000e+00> : vector<16xf32>
    %147 = vector.multi_reduction <add>, %146, %cst_146 [0] : vector<256x16xf32> to vector<16xf32>
    %148 = vector.shape_cast %147 : vector<16xf32> to vector<1x16xf32>
    %149 = arith.addf %73, %148 : vector<1x16xf32>
    %150 = arith.mulf %146, %146 : vector<256x16xf32>
    %cst_147 = arith.constant dense<0.000000e+00> : vector<16xf32>
    %151 = vector.multi_reduction <add>, %150, %cst_147 [0] : vector<256x16xf32> to vector<16xf32>
    %152 = vector.shape_cast %151 : vector<16xf32> to vector<1x16xf32>
    %153 = arith.addf %77, %152 : vector<1x16xf32>
    %cst_148 = arith.constant 0.001953125 : f32
    %154 = vector.broadcast %cst_148 : f32 to vector<1x16xf32>
    %155 = arith.mulf %149, %154 : vector<1x16xf32>
    %cst_149 = arith.constant 0.001953125 : f32
    %156 = vector.broadcast %cst_149 : f32 to vector<1x16xf32>
    %157 = arith.mulf %153, %156 : vector<1x16xf32>
    %158 = arith.mulf %155, %155 : vector<1x16xf32>
    %159 = arith.subf %157, %158 : vector<1x16xf32>
    %c0_150 = arith.constant 0 : index
    %c0_151 = arith.constant 0 : index
    %160 = vector.load %arg3[%c0_150, %c0_151] : memref<1x16xf32, #tpu.memory_space<vmem>>, vector<1x16xf32>
    %cst_152 = arith.constant 9.99999974E-6 : f32
    %161 = vector.broadcast %cst_152 : f32 to vector<1x16xf32>
    %162 = arith.addf %159, %161 : vector<1x16xf32>
    %163 = math.rsqrt %162 : vector<1x16xf32>
    %164 = arith.mulf %160, %163 : vector<1x16xf32>
    %c0_153 = arith.constant 0 : index
    %c0_154 = arith.constant 0 : index
    %165 = vector.load %arg4[%c0_153, %c0_154] : memref<1x16xf32, #tpu.memory_space<vmem>>, vector<1x16xf32>
    %166 = arith.mulf %155, %164 : vector<1x16xf32>
    %167 = arith.subf %165, %166 : vector<1x16xf32>
    %168 = tpu.iota {dimensions = array<i32: 0>} : vector<16x16xi32>
    %169 = tpu.iota {dimensions = array<i32: 1>} : vector<16x16xi32>
    %170 = arith.cmpi eq, %168, %169 : vector<16x16xi32>
    %171 = arith.extui %170 : vector<16x16xi1> to vector<16x16xi32>
    %172 = arith.sitofp %171 : vector<16x16xi32> to vector<16x16xf32>
    %173 = vector.broadcast %164 : vector<1x16xf32> to vector<256x16xf32>
    %174 = arith.mulf %70, %173 : vector<256x16xf32>
    %175 = vector.broadcast %167 : vector<1x16xf32> to vector<256x16xf32>
    %176 = arith.addf %174, %175 : vector<256x16xf32>
    %cst_155 = arith.constant dense<0.000000e+00> : vector<16x256xf32>
    %177 = tpu.matmul %172, %176, %cst_155 {dimension_numbers = #tpu.dot_dimension_numbers<[1], [1], [0], [0], [0, 0, 1, 0], [], []>} : vector<16x16xf32>, vector<256x16xf32>, vector<16x256xf32> -> vector<16x256xf32>
    %178 = vector.extract_strided_slice %177 {offsets = [0, 0], sizes = [1, 256], strides = [1, 1]} : vector<16x256xf32> to vector<1x256xf32>
    %c0_156 = arith.constant 0 : index
    %c0_157 = arith.constant 0 : index
    %179 = vector.load %arg16[%c0_156, %c0_157] : memref<2x4096xf32, #tpu.memory_space<vmem>>, vector<1x256xf32>
    tpu.vector_store %arg16[%c0_156, %c0_157], %178 {strides = array<i32>} : memref<2x4096xf32, #tpu.memory_space<vmem>>, vector<1x256xf32>,
    %180 = vector.extract_strided_slice %177 {offsets = [1, 0], sizes = [1, 256], strides = [1, 1]} : vector<16x256xf32> to vector<1x256xf32>
    %c0_158 = arith.constant 0 : index
    %c256 = arith.constant 256 : index
    %181 = vector.load %arg16[%c0_158, %c256] : memref<2x4096xf32, #tpu.memory_space<vmem>>, vector<1x256xf32>
    tpu.vector_store %arg16[%c0_158, %c256], %180 {strides = array<i32>} : memref<2x4096xf32, #tpu.memory_space<vmem>>, vector<1x256xf32>,
    %182 = vector.extract_strided_slice %177 {offsets = [2, 0], sizes = [1, 256], strides = [1, 1]} : vector<16x256xf32> to vector<1x256xf32>
    %c0_159 = arith.constant 0 : index
    %c512 = arith.constant 512 : index
    %183 = vector.load %arg16[%c0_159, %c512] : memref<2x4096xf32, #tpu.memory_space<vmem>>, vector<1x256xf32>
    tpu.vector_store %arg16[%c0_159, %c512], %182 {strides = array<i32>} : memref<2x4096xf32, #tpu.memory_space<vmem>>, vector<1x256xf32>,
    %184 = vector.extract_strided_slice %177 {offsets = [3, 0], sizes = [1, 256], strides = [1, 1]} : vector<16x256xf32> to vector<1x256xf32>
    %c0_160 = arith.constant 0 : index
    %c768 = arith.constant 768 : index
    %185 = vector.load %arg16[%c0_160, %c768] : memref<2x4096xf32, #tpu.memory_space<vmem>>, vector<1x256xf32>
    tpu.vector_store %arg16[%c0_160, %c768], %184 {strides = array<i32>} : memref<2x4096xf32, #tpu.memory_space<vmem>>, vector<1x256xf32>,
    %186 = vector.extract_strided_slice %177 {offsets = [4, 0], sizes = [1, 256], strides = [1, 1]} : vector<16x256xf32> to vector<1x256xf32>
    %c0_161 = arith.constant 0 : index
    %c1024 = arith.constant 1024 : index
    %187 = vector.load %arg16[%c0_161, %c1024] : memref<2x4096xf32, #tpu.memory_space<vmem>>, vector<1x256xf32>
    tpu.vector_store %arg16[%c0_161, %c1024], %186 {strides = array<i32>} : memref<2x4096xf32, #tpu.memory_space<vmem>>, vector<1x256xf32>,
    %188 = vector.extract_strided_slice %177 {offsets = [5, 0], sizes = [1, 256], strides = [1, 1]} : vector<16x256xf32> to vector<1x256xf32>
    %c0_162 = arith.constant 0 : index
    %c1280 = arith.constant 1280 : index
    %189 = vector.load %arg16[%c0_162, %c1280] : memref<2x4096xf32, #tpu.memory_space<vmem>>, vector<1x256xf32>
    tpu.vector_store %arg16[%c0_162, %c1280], %188 {strides = array<i32>} : memref<2x4096xf32, #tpu.memory_space<vmem>>, vector<1x256xf32>,
    %190 = vector.extract_strided_slice %177 {offsets = [6, 0], sizes = [1, 256], strides = [1, 1]} : vector<16x256xf32> to vector<1x256xf32>
    %c0_163 = arith.constant 0 : index
    %c1536 = arith.constant 1536 : index
    %191 = vector.load %arg16[%c0_163, %c1536] : memref<2x4096xf32, #tpu.memory_space<vmem>>, vector<1x256xf32>
    tpu.vector_store %arg16[%c0_163, %c1536], %190 {strides = array<i32>} : memref<2x4096xf32, #tpu.memory_space<vmem>>, vector<1x256xf32>,
    %192 = vector.extract_strided_slice %177 {offsets = [7, 0], sizes = [1, 256], strides = [1, 1]} : vector<16x256xf32> to vector<1x256xf32>
    %c0_164 = arith.constant 0 : index
    %c1792 = arith.constant 1792 : index
    %193 = vector.load %arg16[%c0_164, %c1792] : memref<2x4096xf32, #tpu.memory_space<vmem>>, vector<1x256xf32>
    tpu.vector_store %arg16[%c0_164, %c1792], %192 {strides = array<i32>} : memref<2x4096xf32, #tpu.memory_space<vmem>>, vector<1x256xf32>,
    %194 = vector.extract_strided_slice %177 {offsets = [8, 0], sizes = [1, 256], strides = [1, 1]} : vector<16x256xf32> to vector<1x256xf32>
    %c0_165 = arith.constant 0 : index
    %c2048 = arith.constant 2048 : index
    %195 = vector.load %arg16[%c0_165, %c2048] : memref<2x4096xf32, #tpu.memory_space<vmem>>, vector<1x256xf32>
    tpu.vector_store %arg16[%c0_165, %c2048], %194 {strides = array<i32>} : memref<2x4096xf32, #tpu.memory_space<vmem>>, vector<1x256xf32>,
    %196 = vector.extract_strided_slice %177 {offsets = [9, 0], sizes = [1, 256], strides = [1, 1]} : vector<16x256xf32> to vector<1x256xf32>
    %c0_166 = arith.constant 0 : index
    %c2304 = arith.constant 2304 : index
    %197 = vector.load %arg16[%c0_166, %c2304] : memref<2x4096xf32, #tpu.memory_space<vmem>>, vector<1x256xf32>
    tpu.vector_store %arg16[%c0_166, %c2304], %196 {strides = array<i32>} : memref<2x4096xf32, #tpu.memory_space<vmem>>, vector<1x256xf32>,
    %198 = vector.extract_strided_slice %177 {offsets = [10, 0], sizes = [1, 256], strides = [1, 1]} : vector<16x256xf32> to vector<1x256xf32>
    %c0_167 = arith.constant 0 : index
    %c2560 = arith.constant 2560 : index
    %199 = vector.load %arg16[%c0_167, %c2560] : memref<2x4096xf32, #tpu.memory_space<vmem>>, vector<1x256xf32>
    tpu.vector_store %arg16[%c0_167, %c2560], %198 {strides = array<i32>} : memref<2x4096xf32, #tpu.memory_space<vmem>>, vector<1x256xf32>,
    %200 = vector.extract_strided_slice %177 {offsets = [11, 0], sizes = [1, 256], strides = [1, 1]} : vector<16x256xf32> to vector<1x256xf32>
    %c0_168 = arith.constant 0 : index
    %c2816 = arith.constant 2816 : index
    %201 = vector.load %arg16[%c0_168, %c2816] : memref<2x4096xf32, #tpu.memory_space<vmem>>, vector<1x256xf32>
    tpu.vector_store %arg16[%c0_168, %c2816], %200 {strides = array<i32>} : memref<2x4096xf32, #tpu.memory_space<vmem>>, vector<1x256xf32>,
    %202 = vector.extract_strided_slice %177 {offsets = [12, 0], sizes = [1, 256], strides = [1, 1]} : vector<16x256xf32> to vector<1x256xf32>
    %c0_169 = arith.constant 0 : index
    %c3072 = arith.constant 3072 : index
    %203 = vector.load %arg16[%c0_169, %c3072] : memref<2x4096xf32, #tpu.memory_space<vmem>>, vector<1x256xf32>
    tpu.vector_store %arg16[%c0_169, %c3072], %202 {strides = array<i32>} : memref<2x4096xf32, #tpu.memory_space<vmem>>, vector<1x256xf32>,
    %204 = vector.extract_strided_slice %177 {offsets = [13, 0], sizes = [1, 256], strides = [1, 1]} : vector<16x256xf32> to vector<1x256xf32>
    %c0_170 = arith.constant 0 : index
    %c3328 = arith.constant 3328 : index
    %205 = vector.load %arg16[%c0_170, %c3328] : memref<2x4096xf32, #tpu.memory_space<vmem>>, vector<1x256xf32>
    tpu.vector_store %arg16[%c0_170, %c3328], %204 {strides = array<i32>} : memref<2x4096xf32, #tpu.memory_space<vmem>>, vector<1x256xf32>,
    %206 = vector.extract_strided_slice %177 {offsets = [14, 0], sizes = [1, 256], strides = [1, 1]} : vector<16x256xf32> to vector<1x256xf32>
    %c0_171 = arith.constant 0 : index
    %c3584 = arith.constant 3584 : index
    %207 = vector.load %arg16[%c0_171, %c3584] : memref<2x4096xf32, #tpu.memory_space<vmem>>, vector<1x256xf32>
    tpu.vector_store %arg16[%c0_171, %c3584], %206 {strides = array<i32>} : memref<2x4096xf32, #tpu.memory_space<vmem>>, vector<1x256xf32>,
    %208 = vector.extract_strided_slice %177 {offsets = [15, 0], sizes = [1, 256], strides = [1, 1]} : vector<16x256xf32> to vector<1x256xf32>
    %c0_172 = arith.constant 0 : index
    %c3840 = arith.constant 3840 : index
    %209 = vector.load %arg16[%c0_172, %c3840] : memref<2x4096xf32, #tpu.memory_space<vmem>>, vector<1x256xf32>
    tpu.vector_store %arg16[%c0_172, %c3840], %208 {strides = array<i32>} : memref<2x4096xf32, #tpu.memory_space<vmem>>, vector<1x256xf32>,
    %210 = vector.broadcast %164 : vector<1x16xf32> to vector<256x16xf32>
    %211 = arith.mulf %146, %210 : vector<256x16xf32>
    %212 = vector.broadcast %167 : vector<1x16xf32> to vector<256x16xf32>
    %213 = arith.addf %211, %212 : vector<256x16xf32>
    %cst_173 = arith.constant dense<0.000000e+00> : vector<16x256xf32>
    %214 = tpu.matmul %172, %213, %cst_173 {dimension_numbers = #tpu.dot_dimension_numbers<[1], [1], [0], [0], [0, 0, 1, 0], [], []>} : vector<16x16xf32>, vector<256x16xf32>, vector<16x256xf32> -> vector<16x256xf32>
    %215 = vector.extract_strided_slice %214 {offsets = [0, 0], sizes = [1, 256], strides = [1, 1]} : vector<16x256xf32> to vector<1x256xf32>
    %c1_174 = arith.constant 1 : index
    %c0_175 = arith.constant 0 : index
    %216 = vector.load %arg16[%c1_174, %c0_175] : memref<2x4096xf32, #tpu.memory_space<vmem>>, vector<1x256xf32>
    tpu.vector_store %arg16[%c1_174, %c0_175], %215 {strides = array<i32>} : memref<2x4096xf32, #tpu.memory_space<vmem>>, vector<1x256xf32>,
    %217 = vector.extract_strided_slice %214 {offsets = [1, 0], sizes = [1, 256], strides = [1, 1]} : vector<16x256xf32> to vector<1x256xf32>
    %c1_176 = arith.constant 1 : index
    %c256_177 = arith.constant 256 : index
    %218 = vector.load %arg16[%c1_176, %c256_177] : memref<2x4096xf32, #tpu.memory_space<vmem>>, vector<1x256xf32>
    tpu.vector_store %arg16[%c1_176, %c256_177], %217 {strides = array<i32>} : memref<2x4096xf32, #tpu.memory_space<vmem>>, vector<1x256xf32>,
    %219 = vector.extract_strided_slice %214 {offsets = [2, 0], sizes = [1, 256], strides = [1, 1]} : vector<16x256xf32> to vector<1x256xf32>
    %c1_178 = arith.constant 1 : index
    %c512_179 = arith.constant 512 : index
    %220 = vector.load %arg16[%c1_178, %c512_179] : memref<2x4096xf32, #tpu.memory_space<vmem>>, vector<1x256xf32>
    tpu.vector_store %arg16[%c1_178, %c512_179], %219 {strides = array<i32>} : memref<2x4096xf32, #tpu.memory_space<vmem>>, vector<1x256xf32>,
    %221 = vector.extract_strided_slice %214 {offsets = [3, 0], sizes = [1, 256], strides = [1, 1]} : vector<16x256xf32> to vector<1x256xf32>
    %c1_180 = arith.constant 1 : index
    %c768_181 = arith.constant 768 : index
    %222 = vector.load %arg16[%c1_180, %c768_181] : memref<2x4096xf32, #tpu.memory_space<vmem>>, vector<1x256xf32>
    tpu.vector_store %arg16[%c1_180, %c768_181], %221 {strides = array<i32>} : memref<2x4096xf32, #tpu.memory_space<vmem>>, vector<1x256xf32>,
    %223 = vector.extract_strided_slice %214 {offsets = [4, 0], sizes = [1, 256], strides = [1, 1]} : vector<16x256xf32> to vector<1x256xf32>
    %c1_182 = arith.constant 1 : index
    %c1024_183 = arith.constant 1024 : index
    %224 = vector.load %arg16[%c1_182, %c1024_183] : memref<2x4096xf32, #tpu.memory_space<vmem>>, vector<1x256xf32>
    tpu.vector_store %arg16[%c1_182, %c1024_183], %223 {strides = array<i32>} : memref<2x4096xf32, #tpu.memory_space<vmem>>, vector<1x256xf32>,
    %225 = vector.extract_strided_slice %214 {offsets = [5, 0], sizes = [1, 256], strides = [1, 1]} : vector<16x256xf32> to vector<1x256xf32>
    %c1_184 = arith.constant 1 : index
    %c1280_185 = arith.constant 1280 : index
    %226 = vector.load %arg16[%c1_184, %c1280_185] : memref<2x4096xf32, #tpu.memory_space<vmem>>, vector<1x256xf32>
    tpu.vector_store %arg16[%c1_184, %c1280_185], %225 {strides = array<i32>} : memref<2x4096xf32, #tpu.memory_space<vmem>>, vector<1x256xf32>,
    %227 = vector.extract_strided_slice %214 {offsets = [6, 0], sizes = [1, 256], strides = [1, 1]} : vector<16x256xf32> to vector<1x256xf32>
    %c1_186 = arith.constant 1 : index
    %c1536_187 = arith.constant 1536 : index
    %228 = vector.load %arg16[%c1_186, %c1536_187] : memref<2x4096xf32, #tpu.memory_space<vmem>>, vector<1x256xf32>
    tpu.vector_store %arg16[%c1_186, %c1536_187], %227 {strides = array<i32>} : memref<2x4096xf32, #tpu.memory_space<vmem>>, vector<1x256xf32>,
    %229 = vector.extract_strided_slice %214 {offsets = [7, 0], sizes = [1, 256], strides = [1, 1]} : vector<16x256xf32> to vector<1x256xf32>
    %c1_188 = arith.constant 1 : index
    %c1792_189 = arith.constant 1792 : index
    %230 = vector.load %arg16[%c1_188, %c1792_189] : memref<2x4096xf32, #tpu.memory_space<vmem>>, vector<1x256xf32>
    tpu.vector_store %arg16[%c1_188, %c1792_189], %229 {strides = array<i32>} : memref<2x4096xf32, #tpu.memory_space<vmem>>, vector<1x256xf32>,
    %231 = vector.extract_strided_slice %214 {offsets = [8, 0], sizes = [1, 256], strides = [1, 1]} : vector<16x256xf32> to vector<1x256xf32>
    %c1_190 = arith.constant 1 : index
    %c2048_191 = arith.constant 2048 : index
    %232 = vector.load %arg16[%c1_190, %c2048_191] : memref<2x4096xf32, #tpu.memory_space<vmem>>, vector<1x256xf32>
    tpu.vector_store %arg16[%c1_190, %c2048_191], %231 {strides = array<i32>} : memref<2x4096xf32, #tpu.memory_space<vmem>>, vector<1x256xf32>,
    %233 = vector.extract_strided_slice %214 {offsets = [9, 0], sizes = [1, 256], strides = [1, 1]} : vector<16x256xf32> to vector<1x256xf32>
    %c1_192 = arith.constant 1 : index
    %c2304_193 = arith.constant 2304 : index
    %234 = vector.load %arg16[%c1_192, %c2304_193] : memref<2x4096xf32, #tpu.memory_space<vmem>>, vector<1x256xf32>
    tpu.vector_store %arg16[%c1_192, %c2304_193], %233 {strides = array<i32>} : memref<2x4096xf32, #tpu.memory_space<vmem>>, vector<1x256xf32>,
    %235 = vector.extract_strided_slice %214 {offsets = [10, 0], sizes = [1, 256], strides = [1, 1]} : vector<16x256xf32> to vector<1x256xf32>
    %c1_194 = arith.constant 1 : index
    %c2560_195 = arith.constant 2560 : index
    %236 = vector.load %arg16[%c1_194, %c2560_195] : memref<2x4096xf32, #tpu.memory_space<vmem>>, vector<1x256xf32>
    tpu.vector_store %arg16[%c1_194, %c2560_195], %235 {strides = array<i32>} : memref<2x4096xf32, #tpu.memory_space<vmem>>, vector<1x256xf32>,
    %237 = vector.extract_strided_slice %214 {offsets = [11, 0], sizes = [1, 256], strides = [1, 1]} : vector<16x256xf32> to vector<1x256xf32>
    %c1_196 = arith.constant 1 : index
    %c2816_197 = arith.constant 2816 : index
    %238 = vector.load %arg16[%c1_196, %c2816_197] : memref<2x4096xf32, #tpu.memory_space<vmem>>, vector<1x256xf32>
    tpu.vector_store %arg16[%c1_196, %c2816_197], %237 {strides = array<i32>} : memref<2x4096xf32, #tpu.memory_space<vmem>>, vector<1x256xf32>,
    %239 = vector.extract_strided_slice %214 {offsets = [12, 0], sizes = [1, 256], strides = [1, 1]} : vector<16x256xf32> to vector<1x256xf32>
    %c1_198 = arith.constant 1 : index
    %c3072_199 = arith.constant 3072 : index
    %240 = vector.load %arg16[%c1_198, %c3072_199] : memref<2x4096xf32, #tpu.memory_space<vmem>>, vector<1x256xf32>
    tpu.vector_store %arg16[%c1_198, %c3072_199], %239 {strides = array<i32>} : memref<2x4096xf32, #tpu.memory_space<vmem>>, vector<1x256xf32>,
    %241 = vector.extract_strided_slice %214 {offsets = [13, 0], sizes = [1, 256], strides = [1, 1]} : vector<16x256xf32> to vector<1x256xf32>
    %c1_200 = arith.constant 1 : index
    %c3328_201 = arith.constant 3328 : index
    %242 = vector.load %arg16[%c1_200, %c3328_201] : memref<2x4096xf32, #tpu.memory_space<vmem>>, vector<1x256xf32>
    tpu.vector_store %arg16[%c1_200, %c3328_201], %241 {strides = array<i32>} : memref<2x4096xf32, #tpu.memory_space<vmem>>, vector<1x256xf32>,
    %243 = vector.extract_strided_slice %214 {offsets = [14, 0], sizes = [1, 256], strides = [1, 1]} : vector<16x256xf32> to vector<1x256xf32>
    %c1_202 = arith.constant 1 : index
    %c3584_203 = arith.constant 3584 : index
    %244 = vector.load %arg16[%c1_202, %c3584_203] : memref<2x4096xf32, #tpu.memory_space<vmem>>, vector<1x256xf32>
    tpu.vector_store %arg16[%c1_202, %c3584_203], %243 {strides = array<i32>} : memref<2x4096xf32, #tpu.memory_space<vmem>>, vector<1x256xf32>,
    %245 = vector.extract_strided_slice %214 {offsets = [15, 0], sizes = [1, 256], strides = [1, 1]} : vector<16x256xf32> to vector<1x256xf32>
    %c1_204 = arith.constant 1 : index
    %c3840_205 = arith.constant 3840 : index
    %246 = vector.load %arg16[%c1_204, %c3840_205] : memref<2x4096xf32, #tpu.memory_space<vmem>>, vector<1x256xf32>
    tpu.vector_store %arg16[%c1_204, %c3840_205], %245 {strides = array<i32>} : memref<2x4096xf32, #tpu.memory_space<vmem>>, vector<1x256xf32>,
    %c0_206 = arith.constant 0 : index
    %c0_207 = arith.constant 0 : index
    %247 = vector.load %arg16[%c0_206, %c0_207] : memref<2x4096xf32, #tpu.memory_space<vmem>>, vector<2x4096xf32>
    %c0_208 = arith.constant 0 : index
    %c0_209 = arith.constant 0 : index
    %248 = vector.load %arg5[%c0_208, %c0_209] : memref<4096x128xf32, #tpu.memory_space<vmem>>, vector<4096x128xf32>
    %cst_210 = arith.constant dense<0.000000e+00> : vector<2x128xf32>
    %249 = tpu.matmul %247, %248, %cst_210 {dimension_numbers = #tpu.dot_dimension_numbers<[1], [0], [0], [1], [0, 0, 1, 1], [], []>} : vector<2x4096xf32>, vector<4096x128xf32>, vector<2x128xf32> -> vector<2x128xf32>
    %c0_211 = arith.constant 0 : index
    %c0_212 = arith.constant 0 : index
    %250 = vector.load %arg6[%c0_211, %c0_212] : memref<1x128xf32, #tpu.memory_space<vmem>>, vector<1x128xf32>
    %251 = vector.broadcast %250 : vector<1x128xf32> to vector<2x128xf32>
    %252 = arith.addf %249, %251 : vector<2x128xf32>
    %253 = math.tanh %252 : vector<2x128xf32>
    %c0_213 = arith.constant 0 : index
    %c0_214 = arith.constant 0 : index
    %254 = vector.load %arg7[%c0_213, %c0_214] : memref<1x128xf32, #tpu.memory_space<vmem>>, vector<1x128xf32>
    %c0_215 = arith.constant 0 : index
    %c0_216 = arith.constant 0 : index
    %255 = vector.load %arg8[%c0_215, %c0_216] : memref<1x128xf32, #tpu.memory_space<vmem>>, vector<1x128xf32>
    %cst_217 = arith.constant dense<0.000000e+00> : vector<128xf32>
    %256 = vector.multi_reduction <add>, %253, %cst_217 [0] : vector<2x128xf32> to vector<128xf32>
    %257 = vector.shape_cast %256 : vector<128xf32> to vector<1x128xf32>
    %cst_218 = arith.constant 5.000000e-01 : f32
    %258 = vector.broadcast %cst_218 : f32 to vector<1x128xf32>
    %259 = arith.mulf %257, %258 : vector<1x128xf32>
    %260 = arith.mulf %253, %253 : vector<2x128xf32>
    %cst_219 = arith.constant dense<0.000000e+00> : vector<128xf32>
    %261 = vector.multi_reduction <add>, %260, %cst_219 [0] : vector<2x128xf32> to vector<128xf32>
    %262 = vector.shape_cast %261 : vector<128xf32> to vector<1x128xf32>
    %cst_220 = arith.constant 5.000000e-01 : f32
    %263 = vector.broadcast %cst_220 : f32 to vector<1x128xf32>
    %264 = arith.mulf %262, %263 : vector<1x128xf32>
    %265 = arith.mulf %259, %259 : vector<1x128xf32>
    %266 = arith.subf %264, %265 : vector<1x128xf32>
    %cst_221 = arith.constant 9.99999974E-6 : f32
    %267 = vector.broadcast %cst_221 : f32 to vector<1x128xf32>
    %268 = arith.addf %266, %267 : vector<1x128xf32>
    %269 = math.rsqrt %268 : vector<1x128xf32>
    %270 = arith.mulf %254, %269 : vector<1x128xf32>
    %271 = arith.mulf %259, %270 : vector<1x128xf32>
    %272 = arith.subf %255, %271 : vector<1x128xf32>
    %273 = vector.broadcast %270 : vector<1x128xf32> to vector<2x128xf32>
    %274 = arith.mulf %253, %273 : vector<2x128xf32>
    %275 = vector.broadcast %272 : vector<1x128xf32> to vector<2x128xf32>
    %276 = arith.addf %274, %275 : vector<2x128xf32>
    %c0_222 = arith.constant 0 : index
    %c0_223 = arith.constant 0 : index
    %277 = vector.load %arg9[%c0_222, %c0_223] : memref<128x64xf32, #tpu.memory_space<vmem>>, vector<128x64xf32>
    %cst_224 = arith.constant dense<0.000000e+00> : vector<2x64xf32>
    %278 = tpu.matmul %276, %277, %cst_224 {dimension_numbers = #tpu.dot_dimension_numbers<[1], [0], [0], [1], [0, 0, 1, 1], [], []>} : vector<2x128xf32>, vector<128x64xf32>, vector<2x64xf32> -> vector<2x64xf32>
    %c0_225 = arith.constant 0 : index
    %c0_226 = arith.constant 0 : index
    %279 = vector.load %arg10[%c0_225, %c0_226] : memref<1x64xf32, #tpu.memory_space<vmem>>, vector<1x64xf32>
    %280 = vector.broadcast %279 : vector<1x64xf32> to vector<2x64xf32>
    %281 = arith.addf %278, %280 : vector<2x64xf32>
    %282 = math.tanh %281 : vector<2x64xf32>
    %c0_227 = arith.constant 0 : index
    %c0_228 = arith.constant 0 : index
    %283 = vector.load %arg11[%c0_227, %c0_228] : memref<1x64xf32, #tpu.memory_space<vmem>>, vector<1x64xf32>
    %c0_229 = arith.constant 0 : index
    %c0_230 = arith.constant 0 : index
    %284 = vector.load %arg12[%c0_229, %c0_230] : memref<1x64xf32, #tpu.memory_space<vmem>>, vector<1x64xf32>
    %cst_231 = arith.constant dense<0.000000e+00> : vector<64xf32>
    %285 = vector.multi_reduction <add>, %282, %cst_231 [0] : vector<2x64xf32> to vector<64xf32>
    %286 = vector.shape_cast %285 : vector<64xf32> to vector<1x64xf32>
    %cst_232 = arith.constant 5.000000e-01 : f32
    %287 = vector.broadcast %cst_232 : f32 to vector<1x64xf32>
    %288 = arith.mulf %286, %287 : vector<1x64xf32>
    %289 = arith.mulf %282, %282 : vector<2x64xf32>
    %cst_233 = arith.constant dense<0.000000e+00> : vector<64xf32>
    %290 = vector.multi_reduction <add>, %289, %cst_233 [0] : vector<2x64xf32> to vector<64xf32>
    %291 = vector.shape_cast %290 : vector<64xf32> to vector<1x64xf32>
    %cst_234 = arith.constant 5.000000e-01 : f32
    %292 = vector.broadcast %cst_234 : f32 to vector<1x64xf32>
    %293 = arith.mulf %291, %292 : vector<1x64xf32>
    %294 = arith.mulf %288, %288 : vector<1x64xf32>
    %295 = arith.subf %293, %294 : vector<1x64xf32>
    %cst_235 = arith.constant 9.99999974E-6 : f32
    %296 = vector.broadcast %cst_235 : f32 to vector<1x64xf32>
    %297 = arith.addf %295, %296 : vector<1x64xf32>
    %298 = math.rsqrt %297 : vector<1x64xf32>
    %299 = arith.mulf %283, %298 : vector<1x64xf32>
    %300 = arith.mulf %288, %299 : vector<1x64xf32>
    %301 = arith.subf %284, %300 : vector<1x64xf32>
    %302 = vector.broadcast %299 : vector<1x64xf32> to vector<2x64xf32>
    %303 = arith.mulf %282, %302 : vector<2x64xf32>
    %304 = vector.broadcast %301 : vector<1x64xf32> to vector<2x64xf32>
    %305 = arith.addf %303, %304 : vector<2x64xf32>
    %c0_236 = arith.constant 0 : index
    %c0_237 = arith.constant 0 : index
    %306 = vector.load %arg13[%c0_236, %c0_237] : memref<64x2xf32, #tpu.memory_space<vmem>>, vector<64x2xf32>
    %cst_238 = arith.constant dense<0.000000e+00> : vector<2x2xf32>
    %307 = tpu.matmul %305, %306, %cst_238 {dimension_numbers = #tpu.dot_dimension_numbers<[1], [0], [0], [1], [0, 0, 1, 1], [], []>} : vector<2x64xf32>, vector<64x2xf32>, vector<2x2xf32> -> vector<2x2xf32>
    %c0_239 = arith.constant 0 : index
    %c0_240 = arith.constant 0 : index
    %308 = vector.load %arg14[%c0_239, %c0_240] : memref<1x2xf32, #tpu.memory_space<vmem>>, vector<1x2xf32>
    %309 = vector.broadcast %308 : vector<1x2xf32> to vector<2x2xf32>
    %310 = arith.addf %307, %309 : vector<2x2xf32>
    %c0_241 = arith.constant 0 : index
    %c0_242 = arith.constant 0 : index
    %311 = vector.load %arg15[%c0_241, %c0_242] : memref<2x2xf32, #tpu.memory_space<vmem>>, vector<2x2xf32>
    tpu.vector_store %arg15[%c0_241, %c0_242], %310 {strides = array<i32>} : memref<2x2xf32, #tpu.memory_space<vmem>>, vector<2x2xf32>,
    return
  }
}

</mosaic_0001>

<bundles_post_ra>
// kernel: behaviour_forward.1
= control target key start
LH: loop header
LB: loop body
LE: loop exit
PB: predicated region body
PF: predicated region fallthrough
CT: control target
= control target key end

     0   :  { %s19664_s0 = inlined_call_operand.vmem [shape: f32[2,18,18,128], index: 0, kind: input, shape index: {}]   ;;  %s19665_s1 = inlined_call_operand.vmem [shape: f32[9,128,16], index: 1, kind: input, shape index: {}]   ;;  %s19666_s2 = inlined_call_operand.vmem [shape: f32[1,16], index: 2, kind: input, shape index: {}]   ;;  %s19667_s3 = inlined_call_operand.vmem [shape: f32[1,16], index: 3, kind: input, shape index: {}]   ;;  %s19668_s4 = inlined_call_operand.vmem [shape: f32[1,16], index: 4, kind: input, shape index: {}]   ;;  %s19669_s5 = inlined_call_operand.vmem [shape: f32[4096,128], index: 5, kind: input, shape index: {}]   ;;  %s19670_s6 = inlined_call_operand.vmem [shape: f32[1,128], index: 6, kind: input, shape index: {}]   ;;  %s19671_s7 = inlined_call_operand.vmem [shape: f32[1,128], index: 7, kind: input, shape index: {}]   ;;  %s19672_s8 = inlined_call_operand.vmem [shape: f32[1,128], index: 8, kind: input, shape index: {}]   ;;  %s19673_s9 = inlined_call_operand.vmem [shape: f32[128,64], index: 9, kind: input, shape index: {}]   ;;  %s19674_s10 = inlined_call_operand.vmem [shape: f32[1,64], index: 10, kind: input, shape index: {}]   ;;  %s19675_s11 = inlined_call_operand.vmem [shape: f32[1,64], index: 11, kind: input, shape index: {}]   ;;  %s19676_s12 = inlined_call_operand.vmem [shape: f32[1,64], index: 12, kind: input, shape index: {}]   ;;  %s19677_s13 = inlined_call_operand.vmem [shape: f32[64,2], index: 13, kind: input, shape index: {}]   ;;  %s19678_s14 = inlined_call_operand.vmem [shape: f32[1,2], index: 14, kind: input, shape index: {}]   ;;  %s19679_s15 = inlined_call_operand.hbm [shape: f32[2,2], index: 15, kind: output, shape index: {}]  }
   0x1   :  { %v8688_v0 = vld [vmem:[%s19665_s1 + $0x80] sm:$0xff]  ;;  %v8689_v1 = vld [vmem:[%s19665_s1 + $0x88] sm:$0xff]  ;;  %v8690_v2 = vld [vmem:[%s19665_s1 + $0x90] sm:$0xff] }
   0x2   :  { %v12387_v3 = vpack.c.bf16 %v8689_v1, %v8688_v0  ;;  %v8691_v4 = vld [vmem:[%s19665_s1 + $0x98] sm:$0xff]  ;;  %v8692_v6 = vld [vmem:[%s19665_s1 + $0xa0] sm:$0xff]  ;;  %v8693_v7 = vld [vmem:[%s19665_s1 + $0xa8] sm:$0xff] }
   0x3   :  { %v12391_v5 = vpack.c.bf16 %v8691_v4, %v8690_v2  ;;  %v12395_v8 = vpack.c.bf16 %v8693_v7, %v8692_v6  ;;  %v99_v9 = vld [vmem:[%s19664_s0 + $0x1] sm:$0xff]  ;;  %v9041_v10 = vld [vmem:[%s19664_s0 + $0x1b1] sm:$0xff]  ;;  %v100_v31 = vld [vmem:[%s19664_s0 + $0x9] sm:$0xff] }
   0x4   :  { %12388 = vmatprep.subr.bf16.mxu0 %v12387_v3  ;;  %12676 = vmatprep.subr.bf16.mxu1 %v12387_v3  ;;  %v8694_v11 = vld [vmem:[%s19665_s1 + $0xb0] sm:$0xff]  ;;  %v8695_v12 = vld [vmem:[%s19665_s1 + $0xb8] sm:$0xff]  ;;  %v8696_v14 = vld [vmem:[%s19665_s1 + $0xc0] sm:$0xff] }
   0x5   :  { %12390 = vmatpush3.bf16.msra.mxu0 %v12387_v3  ;;  %12678 = vmatpush3.bf16.msra.mxu1 %v12387_v3  ;;  %v12399_v13 = vpack.c.bf16 %v8695_v12, %v8694_v11  ;;  %v8697_v15 = vld [vmem:[%s19665_s1 + $0xc8] sm:$0xff]  ;;  %v8698_v17 = vld [vmem:[%s19665_s1 + $0xd0] sm:$0xff]  ;;  %v8699_v18 = vld [vmem:[%s19665_s1 + $0xd8] sm:$0xff] }
   0x6   :  { %12392 = vmatprep.subr.bf16.mxu0 %v12391_v5  ;;  %12680 = vmatprep.subr.bf16.mxu1 %v12391_v5  ;;  %v12403_v16 = vpack.c.bf16 %v8697_v15, %v8696_v14  ;;  %v12407_v19 = vpack.c.bf16 %v8699_v18, %v8698_v17  ;;  %v8700_v20 = vld [vmem:[%s19665_s1 + $0xe0] sm:$0xff]  ;;  %v8701_v21 = vld [vmem:[%s19665_s1 + $0xe8] sm:$0xff]  ;;  %v8702_v23 = vld [vmem:[%s19665_s1 + $0xf0] sm:$0xff] }
   0x7   :  { %10925 = vmatprep.mubr.f32.mxu0 %v99_v9  ;;  %11645 = vmatprep.mubr.f32.mxu1 %v9041_v10  ;;  %v12411_v22 = vpack.c.bf16 %v8701_v21, %v8700_v20  ;;  %v8703_v24 = vld [vmem:[%s19665_s1 + $0xf8] sm:$0xff]  ;;  %v83_v26 = vld [vmem:[%s19665_s1] sm:$0xff]  ;;  %v84_v27 = vld [vmem:[%s19665_s1 + $0x8] sm:$0xff] }
   0x8   :  { %v12415_v25 = vpack.c.bf16 %v8703_v24, %v8702_v23  ;;  %v12419_v28 = vpack.c.bf16 %v84_v27, %v83_v26  ;;  %v85_v29 = vld [vmem:[%s19665_s1 + $0x10] sm:$0xff]  ;;  %v86_v30 = vld [vmem:[%s19665_s1 + $0x18] sm:$0xff]  ;;  %v87_v36 = vld [vmem:[%s19665_s1 + $0x20] sm:$0xff] }
   0x9   :  { %12394 = vmatpush3.bf16.msra.mxu0 %v12391_v5  ;;  %12682 = vmatpush3.bf16.msra.mxu1 %v12391_v5  ;;  %v9042_v32 = vld [vmem:[%s19664_s0 + $0x1b9] sm:$0xff]  ;;  %v9043_v34 = vld [vmem:[%s19664_s0 + $0x1c9] sm:$0xff]  ;;  %v12423_v35 = vpack.c.bf16 %v86_v30, %v85_v29  ;;  %v102_v38 = vld [vmem:[%s19664_s0 + $0x21] sm:$0xff] }
   0xa   :  { %12396 = vmatprep.subr.bf16.mxu0 %v12395_v8  ;;  %12684 = vmatprep.subr.bf16.mxu1 %v12395_v8  ;;  %v101_v33 = vld [vmem:[%s19664_s0 + $0x19] sm:$0xff]  ;;  %v88_v37 = vld [vmem:[%s19665_s1 + $0x28] sm:$0xff]  ;;  %v9044_v39 = vld [vmem:[%s19664_s0 + $0x1d1] sm:$0xff] }
   0xb   :  { %v103_v40 = vld [vmem:[%s19664_s0 + $0x31] sm:$0xff]  ;;  %v9045_v41 = vld [vmem:[%s19664_s0 + $0x1e1] sm:$0xff]  ;;  %v12427_v42 = vpack.c.bf16 %v88_v37, %v87_v36  ;;  %v104_v45 = vld [vmem:[%s19664_s0 + $0x39] sm:$0xff] }
   0xc   :  { %v89_v43 = vld [vmem:[%s19665_s1 + $0x30] sm:$0xff]  ;;  %v90_v44 = vld [vmem:[%s19665_s1 + $0x38] sm:$0xff]  ;;  %v91_v50 = vld [vmem:[%s19665_s1 + $0x40] sm:$0xff] }
   0xd   :  { %12398 = vmatpush3.bf16.msra.mxu0 %v12395_v8  ;;  %12686 = vmatpush3.bf16.msra.mxu1 %v12395_v8  ;;  %v9046_v46 = vld [vmem:[%s19664_s0 + $0x1e9] sm:$0xff]  ;;  %v9047_v48 = vld [vmem:[%s19664_s0 + $0x1f9] sm:$0xff]  ;;  %v12431_v49 = vpack.c.bf16 %v90_v44, %v89_v43  ;;  %v106_v52 = vld [vmem:[%s19664_s0 + $0x51] sm:$0xff] }
   0xe   :  { %12400 = vmatprep.subr.bf16.mxu0 %v12399_v13  ;;  %12688 = vmatprep.subr.bf16.mxu1 %v12399_v13  ;;  %v105_v47 = vld [vmem:[%s19664_s0 + $0x49] sm:$0xff]  ;;  %v9048_v53 = vld [vmem:[%s19664_s0 + $0x201] sm:$0xff]  ;;  %v9049_v55 = vld [vmem:[%s19664_s0 + $0x211] sm:$0xff] }
   0xf   :  { %v92_v51 = vld [vmem:[%s19665_s1 + $0x48] sm:$0xff]  ;;  %v93_v57 = vld [vmem:[%s19665_s1 + $0x50] sm:$0xff]  ;;  %v94_v58 = vld [vmem:[%s19665_s1 + $0x58] sm:$0xff] }
  0x10   :  { %v107_v54 = vld [vmem:[%s19664_s0 + $0x61] sm:$0xff]  ;;  %v12435_v56 = vpack.c.bf16 %v92_v51, %v91_v50  ;;  %v108_v59 = vld [vmem:[%s19664_s0 + $0x69] sm:$0xff]  ;;  %v9050_v60 = vld [vmem:[%s19664_s0 + $0x219] sm:$0xff]  ;;  %v12439_v63 = vpack.c.bf16 %v94_v58, %v93_v57 }
  0x11   :  { %12402 = vmatpush3.bf16.msra.mxu0 %v12399_v13  ;;  %12690 = vmatpush3.bf16.msra.mxu1 %v12399_v13  ;;  %v109_v61 = vld [vmem:[%s19664_s0 + $0x79] sm:$0xff]  ;;  %v9051_v62 = vld [vmem:[%s19664_s0 + $0x229] sm:$0xff]  ;;  %v110_v2 = vld [vmem:[%s19664_s0 + $0x81] sm:$0xff] }
  0x12   :  { %12404 = vmatprep.subr.bf16.mxu0 %v12403_v16  ;;  %12692 = vmatprep.subr.bf16.mxu1 %v12403_v16  ;;  %v95_v0 = vld [vmem:[%s19665_s1 + $0x60] sm:$0xff]  ;;  %v96_v1 = vld [vmem:[%s19665_s1 + $0x68] sm:$0xff]  ;;  %v9052_v3 = vld [vmem:[%s19664_s0 + $0x231] sm:$0xff] }
  0x13   :  { %v111_v4 = vld [vmem:[%s19664_s0 + $0x91] sm:$0xff]  ;;  %v9053_v5 = vld [vmem:[%s19664_s0 + $0x241] sm:$0xff]  ;;  %v12443_v6 = vpack.c.bf16 %v96_v1, %v95_v0  ;;  %v112_v9 = vld [vmem:[%s19664_s0 + $0x99] sm:$0xff] }
  0x14   :  { %v97_v7 = vld [vmem:[%s19665_s1 + $0x70] sm:$0xff]  ;;  %v98_v8 = vld [vmem:[%s19665_s1 + $0x78] sm:$0xff]  ;;  %v8704_v14 = vld [vmem:[%s19665_s1 + $0x100] sm:$0xff] }
  0x15   :  { %12406 = vmatpush3.bf16.msra.mxu0 %v12403_v16  ;;  %12694 = vmatpush3.bf16.msra.mxu1 %v12403_v16  ;;  %v9054_v10 = vld [vmem:[%s19664_s0 + $0x249] sm:$0xff]  ;;  %v9055_v12 = vld [vmem:[%s19664_s0 + $0x259] sm:$0xff]  ;;  %v12447_v13 = vpack.c.bf16 %v98_v8, %v97_v7  ;;  %v114_v16 = vld [vmem:[%s19664_s0 + $0xb1] sm:$0xff] }
  0x16   :  { %12408 = vmatprep.subr.bf16.mxu0 %v12407_v19  ;;  %12696 = vmatprep.subr.bf16.mxu1 %v12407_v19  ;;  %v113_v11 = vld [vmem:[%s19664_s0 + $0xa9] sm:$0xff]  ;;  %v9056_v17 = vld [vmem:[%s19664_s0 + $0x261] sm:$0xff]  ;;  %v117_v23 = vld [vmem:[%s19664_s0 + $0xd9] sm:$0xff] }
  0x17   :  { %v8705_v15 = vld [vmem:[%s19665_s1 + $0x108] sm:$0xff]  ;;  %v9060_v26 = vld [vmem:[%s19664_s0 + $0x291] sm:$0xff]  ;;  %v120_v29 = vld [vmem:[%s19664_s0 + $0xf9] sm:$0xff] }
  0x18   :  { %v115_v18 = vld [vmem:[%s19664_s0 + $0xc1] sm:$0xff]  ;;  %v14457_v20 = vpack.c.bf16 %v8705_v15, %v8704_v14  ;;  %v116_v21 = vld [vmem:[%s19664_s0 + $0xc9] sm:$0xff]  ;;  %v119_v27 = vld [vmem:[%s19664_s0 + $0xf1] sm:$0xff] }
  0x19   :  { %12410 = vmatpush3.bf16.msra.mxu0 %v12407_v19  ;;  %12698 = vmatpush3.bf16.msra.mxu1 %v12407_v19  ;;  %v9057_v19 = vld [vmem:[%s19664_s0 + $0x271] sm:$0xff]  ;;  %v9059_v24 = vld [vmem:[%s19664_s0 + $0x289] sm:$0xff] }
  0x1a   :  { %12412 = vmatprep.subr.bf16.mxu0 %v12411_v22  ;;  %12700 = vmatprep.subr.bf16.mxu1 %v12411_v22  ;;  %v9062_v30 = vld [vmem:[%s19664_s0 + $0x2a9] sm:$0xff]  ;;  %v9065_v36 = vld [vmem:[%s19664_s0 + $0x2d1] sm:$0xff] }
  0x1d   :  { %12414 = vmatpush3.bf16.msra.mxu0 %v12411_v22  ;;  %12702 = vmatpush3.bf16.msra.mxu1 %v12411_v22  ;;  %v9058_v22 = vld [vmem:[%s19664_s0 + $0x279] sm:$0xff] }
  0x1e   :  { %12416 = vmatprep.subr.bf16.mxu0 %v12415_v25  ;;  %12704 = vmatprep.subr.bf16.mxu1 %v12415_v25 }
  0x21   :  { %12418 = vmatpush3.bf16.msra.mxu0 %v12415_v25  ;;  %12706 = vmatpush3.bf16.msra.mxu1 %v12415_v25  ;;  %v118_v25 = vld [vmem:[%s19664_s0 + $0xe1] sm:$0xff] }
  0x22   :  { %12420 = vmatprep.subr.bf16.mxu0 %v12419_v28  ;;  %12708 = vmatprep.subr.bf16.mxu1 %v12419_v28 }
  0x24   :  { %10926 = vmatmul.mubr.f32.vlgmr.msra.gmra.mrb[0].mxu0 %v100_v31  ;;  %11646 = vmatmul.mubr.f32.vlgmr.msra.gmra.mrb[0].mxu1 %v9042_v32  ;;  %v121_v31 = vld [vmem:[%s19664_s0 + $0x109] sm:$0xff]  ;;  %v9063_v32 = vld [vmem:[%s19664_s0 + $0x2b9] sm:$0xff] }
  0x25   :  { %12422 = vmatpush3.bf16.msra.mxu0 %v12419_v28  ;;  %12710 = vmatpush3.bf16.msra.mxu1 %v12419_v28  ;;  %v9061_v28 = vld [vmem:[%s19664_s0 + $0x2a1] sm:$0xff] }
  0x26   :  { %10928 = vmatprep.mubr.f32.mxu0 %v101_v33  ;;  %11648 = vmatprep.mubr.f32.mxu1 %v9043_v34  ;;  %v122_v33 = vld [vmem:[%s19664_s0 + $0x111] sm:$0xff]  ;;  %v9064_v34 = vld [vmem:[%s19664_s0 + $0x2c1] sm:$0xff] }
  0x27   :  { %12424 = vmatprep.subr.bf16.mxu0 %v12423_v35  ;;  %12712 = vmatprep.subr.bf16.mxu1 %v12423_v35 }
  0x28   :  { %10929 = vmatmul.mubr.f32.gmra.mrb[2].mxu0 %v102_v38  ;;  %11649 = vmatmul.mubr.f32.gmra.mrb[2].mxu1 %v9044_v39 }
  0x29   :  { %10931 = vmatprep.mubr.f32.mxu0 %v103_v40  ;;  %11651 = vmatprep.mubr.f32.mxu1 %v9045_v41 }
  0x2a   :  { %12426 = vmatpush3.bf16.msra.mxu0 %v12423_v35  ;;  %12714 = vmatpush3.bf16.msra.mxu1 %v12423_v35  ;;  %v123_v35 = vld [vmem:[%s19664_s0 + $0x121] sm:$0xff] }
  0x2b   :  { %12428 = vmatprep.subr.bf16.mxu0 %v12427_v42  ;;  %12716 = vmatprep.subr.bf16.mxu1 %v12427_v42 }
  0x2c   :  { %10932 = vmatmul.mubr.f32.gmra.mrb[4].mxu0 %v104_v45  ;;  %11652 = vmatmul.mubr.f32.gmra.mrb[4].mxu1 %v9046_v46 }
  0x2d   :  { %10934 = vmatprep.mubr.f32.mxu0 %v105_v47  ;;  %11654 = vmatprep.mubr.f32.mxu1 %v9047_v48 }
  0x2e   :  { %12430 = vmatpush3.bf16.msra.mxu0 %v12427_v42  ;;  %12718 = vmatpush3.bf16.msra.mxu1 %v12427_v42 }
  0x2f   :  { %12432 = vmatprep.subr.bf16.mxu0 %v12431_v49  ;;  %12720 = vmatprep.subr.bf16.mxu1 %v12431_v49 }
  0x30   :  { %10935 = vmatmul.mubr.f32.gmra.mrb[6].mxu0 %v106_v52  ;;  %11655 = vmatmul.mubr.f32.gmra.mrb[6].mxu1 %v9048_v53 }
  0x31   :  { %10937 = vmatprep.mubr.f32.mxu0 %v107_v54  ;;  %11657 = vmatprep.mubr.f32.mxu1 %v9049_v55 }
  0x32   :  { %12434 = vmatpush3.bf16.msra.mxu0 %v12431_v49  ;;  %12722 = vmatpush3.bf16.msra.mxu1 %v12431_v49 }
  0x33   :  { %12436 = vmatprep.subr.bf16.mxu0 %v12435_v56  ;;  %12724 = vmatprep.subr.bf16.mxu1 %v12435_v56 }
  0x34   :  { %10938 = vmatmul.mubr.f32.gmra.mrb[8].mxu0 %v108_v59  ;;  %11658 = vmatmul.mubr.f32.gmra.mrb[8].mxu1 %v9050_v60 }
  0x35   :  { %10940 = vmatprep.mubr.f32.mxu0 %v109_v61  ;;  %11660 = vmatprep.mubr.f32.mxu1 %v9051_v62 }
  0x36   :  { %12438 = vmatpush3.bf16.msra.mxu0 %v12435_v56  ;;  %12726 = vmatpush3.bf16.msra.mxu1 %v12435_v56 }
  0x37   :  { %12440 = vmatprep.subr.bf16.mxu0 %v12439_v63  ;;  %12728 = vmatprep.subr.bf16.mxu1 %v12439_v63 }
  0x38   :  { %10941 = vmatmul.mubr.f32.gmra.mrb[10].mxu0 %v110_v2  ;;  %11661 = vmatmul.mubr.f32.gmra.mrb[10].mxu1 %v9052_v3 }
  0x39   :  { %10943 = vmatprep.mubr.f32.mxu0 %v111_v4  ;;  %11663 = vmatprep.mubr.f32.mxu1 %v9053_v5 }
  0x3a   :  { %12442 = vmatpush3.bf16.msra.mxu0 %v12439_v63  ;;  %12730 = vmatpush3.bf16.msra.mxu1 %v12439_v63 }
  0x3b   :  { %12444 = vmatprep.subr.bf16.mxu0 %v12443_v6  ;;  %12732 = vmatprep.subr.bf16.mxu1 %v12443_v6 }
  0x3c   :  { %10944 = vmatmul.mubr.f32.gmra.mrb[12].mxu0 %v112_v9  ;;  %11664 = vmatmul.mubr.f32.gmra.mrb[12].mxu1 %v9054_v10 }
  0x3d   :  { %10946 = vmatprep.mubr.f32.mxu0 %v113_v11  ;;  %11666 = vmatprep.mubr.f32.mxu1 %v9055_v12 }
  0x3e   :  { %12446 = vmatpush3.bf16.msra.mxu0 %v12443_v6  ;;  %12734 = vmatpush3.bf16.msra.mxu1 %v12443_v6 }
  0x3f   :  { %12448 = vmatprep.subr.bf16.mxu0 %v12447_v13  ;;  %12736 = vmatprep.subr.bf16.mxu1 %v12447_v13 }
  0x40   :  { %10947 = vmatmul.mubr.f32.gmra.mrb[14].mxu0 %v114_v16  ;;  %11667 = vmatmul.mubr.f32.gmra.mrb[14].mxu1 %v9056_v17 }
  0x41   :  { %10949 = vmatprep.mubr.f32.mxu0 %v115_v18  ;;  %11669 = vmatprep.mubr.f32.mxu1 %v9057_v19 }
  0x42   :  { %12450 = vmatpush3.bf16.msra.mxu0 %v12447_v13  ;;  %12738 = vmatpush3.bf16.msra.mxu1 %v12447_v13 }
  0x43   :  { %12452 = vmatprep.subr.bf16.mxu0 %v14457_v20  ;;  %12740 = vmatprep.subr.bf16.mxu1 %v14457_v20 }
  0x44   :  { %10950 = vmatmul.mubr.f32.gmra.mrb[16].mxu0 %v116_v21  ;;  %11670 = vmatmul.mubr.f32.gmra.mrb[16].mxu1 %v9058_v22 }
  0x45   :  { %10952 = vmatprep.mubr.f32.mxu0 %v117_v23  ;;  %11672 = vmatprep.mubr.f32.mxu1 %v9059_v24 }
  0x48   :  { %10953 = vmatmul.mubr.f32.gmra.mrb[18].mxu0 %v118_v25  ;;  %11673 = vmatmul.mubr.f32.gmra.mrb[18].mxu1 %v9060_v26 }
  0x49   :  { %10955 = vmatprep.mubr.f32.mxu0 %v119_v27  ;;  %11675 = vmatprep.mubr.f32.mxu1 %v9061_v28 }
  0x4c   :  { %10956 = vmatmul.mubr.f32.gmra.mrb[20].mxu0 %v120_v29  ;;  %11676 = vmatmul.mubr.f32.gmra.mrb[20].mxu1 %v9062_v30 }
  0x4d   :  { %10958 = vmatprep.mubr.f32.mxu0 %v121_v31  ;;  %11678 = vmatprep.mubr.f32.mxu1 %v9063_v32 }
  0x4e   :  { %20 = vsyncpa [#allocation4], 0  ;;  %v124_v37 = vld [vmem:[%s19664_s0 + $0x129] sm:$0xff]  ;;  %v9066_v38 = vld [vmem:[%s19664_s0 + $0x2d9] sm:$0xff]  ;;  %vm2813_vm0 = vcmask 130048   ;;  %vm14171_vm5 = vmmov 0  }
  0x4f   :  { %v125_v39 = vld [vmem:[%s19664_s0 + $0x139] sm:$0xff]  ;;  %v9067_v40 = vld [vmem:[%s19664_s0 + $0x2e9] sm:$0xff]  ;;  %v126_v41 = vld [vmem:[%s19664_s0 + $0x141] sm:$0xff]  ;;  %vm8409_vm6 = vcmask 1041408   ;;  %vm8544_vm7 = vcmask 517120   ;;  %vm8598_vm8 = vcmask 523264  }
  0x50   :  { %10959 = vmatmul.mubr.f32.gmra.mrb[22].mxu0 %v122_v33  ;;  %11679 = vmatmul.mubr.f32.gmra.mrb[22].mxu1 %v9064_v34  ;;  %v9068_v42 = vld [vmem:[%s19664_s0 + $0x2f1] sm:$0xff]  ;;  %v9069_v44 = vld [vmem:[%s19664_s0 + $0x301] sm:$0xff]  ;;  %v128_v45 = vld [vmem:[%s19664_s0 + $0x159] sm:$0xff]  ;;  %vm8672_vm9 = vcmask 9216  }
  0x51   :  { %10961 = vmatprep.mubr.f32.mxu0 %v123_v35  ;;  %11681 = vmatprep.mubr.f32.mxu1 %v9065_v36  ;;  %v127_v43 = vld [vmem:[%s19664_s0 + $0x151] sm:$0xff]  ;;  %v9070_v46 = vld [vmem:[%s19664_s0 + $0x309] sm:$0xff]  ;;  %v9071_v48 = vld [vmem:[%s19664_s0 + $0x319] sm:$0xff] }
  0x52   :  { %v129_v47 = vld [vmem:[%s19664_s0 + $0x169] sm:$0xff]  ;;  %v130_v49 = vld [vmem:[%s19664_s0 + $0x171] sm:$0xff]  ;;  %v9072_v50 = vld [vmem:[%s19664_s0 + $0x321] sm:$0xff] }
  0x53   :  { %v51_v51 = vld [vmem:[%s19664_s0] sm:$0xff]  ;;  %v9009_v52 = vld [vmem:[%s19664_s0 + $0x1b0] sm:$0xff]  ;;  %v8707_v54 = vld [vmem:[%s19665_s1 + $0x118] sm:$0xff] }
  0x54   :  { %10962 = vmatmul.mubr.f32.gmra.mrb[24].mxu0 %v124_v37  ;;  %11682 = vmatmul.mubr.f32.gmra.mrb[24].mxu1 %v9066_v38  ;;  %v8706_v53 = vld [vmem:[%s19665_s1 + $0x110] sm:$0xff]  ;;  %v52_v55 = vld [vmem:[%s19664_s0 + $0x8] sm:$0xff]  ;;  %v9010_v56 = vld [vmem:[%s19664_s0 + $0x1b8] sm:$0xff] }
  0x55   :  { %10964 = vmatprep.mubr.f32.mxu0 %v125_v39  ;;  %11684 = vmatprep.mubr.f32.mxu1 %v9067_v40  ;;  %v14572_v57 = vld [vmem:[%s19664_s0 + $0x18] sm:$0xff]  ;;  %v14577_v58 = vld [vmem:[%s19664_s0 + $0x1c8] sm:$0xff]  ;;  %v12455_v59 = vpack.c.bf16 %v8707_v54, %v8706_v53  ;;  %v8708_v60 = vld [vmem:[%s19665_s1 + $0x120] sm:$0xff] }
  0x56   :  { %v8709_v61 = vld [vmem:[%s19665_s1 + $0x128] sm:$0xff]  ;;  %v14590_v62 = vld [vmem:[%s19664_s0 + $0x20] sm:$0xff]  ;;  %v14595_v63 = vld [vmem:[%s19664_s0 + $0x1d0] sm:$0xff] }
  0x57   :  { %v14602_v0 = vld [vmem:[%s19664_s0 + $0x30] sm:$0xff]  ;;  %v14607_v1 = vld [vmem:[%s19664_s0 + $0x1e0] sm:$0xff]  ;;  %v12459_v2 = vpack.c.bf16 %v8709_v61, %v8708_v60  ;;  %v8711_v4 = vld [vmem:[%s19665_s1 + $0x138] sm:$0xff] }
  0x58   :  { %10965 = vmatmul.mubr.f32.gmra.mrb[26].mxu0 %v126_v41  ;;  %11685 = vmatmul.mubr.f32.gmra.mrb[26].mxu1 %v9068_v42  ;;  %v8710_v3 = vld [vmem:[%s19665_s1 + $0x130] sm:$0xff]  ;;  %v14622_v5 = vld [vmem:[%s19664_s0 + $0x38] sm:$0xff]  ;;  %v14627_v6 = vld [vmem:[%s19664_s0 + $0x1e8] sm:$0xff] }
  0x59   :  { %10967 = vmatprep.mubr.f32.mxu0 %v127_v43  ;;  %11687 = vmatprep.mubr.f32.mxu1 %v9069_v44  ;;  %v14632_v7 = vld [vmem:[%s19664_s0 + $0x48] sm:$0xff]  ;;  %v14637_v8 = vld [vmem:[%s19664_s0 + $0x1f8] sm:$0xff]  ;;  %v12463_v9 = vpack.c.bf16 %v8711_v4, %v8710_v3  ;;  %v8712_v10 = vld [vmem:[%s19665_s1 + $0x140] sm:$0xff] }
  0x5a   :  { %v8713_v11 = vld [vmem:[%s19665_s1 + $0x148] sm:$0xff]  ;;  %v14652_v12 = vld [vmem:[%s19664_s0 + $0x50] sm:$0xff]  ;;  %v14657_v13 = vld [vmem:[%s19664_s0 + $0x200] sm:$0xff] }
  0x5b   :  { %v14662_v14 = vld [vmem:[%s19664_s0 + $0x60] sm:$0xff]  ;;  %v14667_v15 = vld [vmem:[%s19664_s0 + $0x210] sm:$0xff]  ;;  %v12467_v16 = vpack.c.bf16 %v8713_v11, %v8712_v10  ;;  %v8715_v18 = vld [vmem:[%s19665_s1 + $0x158] sm:$0xff] }
  0x5c   :  { %10968 = vmatmul.mubr.f32.gmra.mrb[28].mxu0 %v128_v45  ;;  %11688 = vmatmul.mubr.f32.gmra.mrb[28].mxu1 %v9070_v46  ;;  %v8714_v17 = vld [vmem:[%s19665_s1 + $0x150] sm:$0xff]  ;;  %v14682_v19 = vld [vmem:[%s19664_s0 + $0x68] sm:$0xff]  ;;  %v14692_v21 = vld [vmem:[%s19664_s0 + $0x78] sm:$0xff] }
  0x5d   :  { %10970 = vmatprep.mubr.f32.mxu0 %v129_v47  ;;  %11690 = vmatprep.mubr.f32.mxu1 %v9071_v48  ;;  %v14697_v22 = vld [vmem:[%s19664_s0 + $0x228] sm:$0xff]  ;;  %v12471_v23 = vpack.c.bf16 %v8715_v18, %v8714_v17  ;;  %v8716_v24 = vld [vmem:[%s19665_s1 + $0x160] sm:$0xff]  ;;  %v14717_v27 = vld [vmem:[%s19664_s0 + $0x230] sm:$0xff] }
  0x5e   :  { %v8717_v25 = vld [vmem:[%s19665_s1 + $0x168] sm:$0xff]  ;;  %v14712_v26 = vld [vmem:[%s19664_s0 + $0x80] sm:$0xff]  ;;  %v14722_v28 = vld [vmem:[%s19664_s0 + $0x90] sm:$0xff] }
  0x5f   :  { %v14727_v29 = vld [vmem:[%s19664_s0 + $0x240] sm:$0xff]  ;;  %v12475_v30 = vpack.c.bf16 %v8717_v25, %v8716_v24  ;;  %v8718_v31 = vld [vmem:[%s19665_s1 + $0x170] sm:$0xff]  ;;  %v8719_v32 = vld [vmem:[%s19665_s1 + $0x178] sm:$0xff] }
  0x60   :  { %10971 = vmatmul.mubr.f32.gmra.mrb[30].mxu0 %v130_v49  ;;  %11691 = vmatmul.mubr.f32.gmra.mrb[30].mxu1 %v9072_v50  ;;  %v14742_v33 = vld [vmem:[%s19664_s0 + $0x98] sm:$0xff]  ;;  %v14747_v34 = vld [vmem:[%s19664_s0 + $0x248] sm:$0xff]  ;;  %v12479_v37 = vpack.c.bf16 %v8719_v32, %v8718_v31  ;;  %v8752_v38 = vld [vmem:[%s19665_s1 + $0x180] sm:$0xff] }
  0x61   :  { %11005 = vmatprep.mubr.f32.mxu0 %v51_v51  ;;  %11725 = vmatprep.mubr.f32.mxu1 %v9009_v52  ;;  %v14752_v35 = vld [vmem:[%s19664_s0 + $0xa8] sm:$0xff]  ;;  %v14757_v36 = vld [vmem:[%s19664_s0 + $0x258] sm:$0xff]  ;;  %v14772_v40 = vld [vmem:[%s19664_s0 + $0xb0] sm:$0xff] }
  0x62   :  { %v8753_v39 = vld [vmem:[%s19665_s1 + $0x188] sm:$0xff]  ;;  %v14777_v41 = vld [vmem:[%s19664_s0 + $0x260] sm:$0xff]  ;;  %v14787_v43 = vld [vmem:[%s19664_s0 + $0x270] sm:$0xff] }
  0x63   :  { %v14782_v42 = vld [vmem:[%s19664_s0 + $0xc0] sm:$0xff]  ;;  %v14789_v44 = vpack.c.bf16 %v8753_v39, %v8752_v38  ;;  %v14798_v45 = vld [vmem:[%s19664_s0 + $0xc8] sm:$0xff]  ;;  %v14803_v46 = vld [vmem:[%s19664_s0 + $0x278] sm:$0xff] }
  0x64   :  { %11006 = vmatmul.mubr.f32.vlgmr.msra.gmra.mrb[0].mxu0 %v52_v55  ;;  %11726 = vmatmul.mubr.f32.vlgmr.msra.gmra.mrb[0].mxu1 %v9010_v56  ;;  %v14808_v47 = vld [vmem:[%s19664_s0 + $0xd8] sm:$0xff]  ;;  %v14813_v48 = vld [vmem:[%s19664_s0 + $0x288] sm:$0xff]  ;;  %v14824_v49 = vld [vmem:[%s19664_s0 + $0xe0] sm:$0xff] }
  0x65   :  { %12454 = vmatpush3.bf16.msra.mxu0 %v14457_v20  ;;  %12742 = vmatpush3.bf16.msra.mxu1 %v14457_v20  ;;  %v14687_v20 = vld [vmem:[%s19664_s0 + $0x218] sm:$0xff]  ;;  %v14829_v50 = vld [vmem:[%s19664_s0 + $0x290] sm:$0xff]  ;;  %v14839_v52 = vld [vmem:[%s19664_s0 + $0x2a0] sm:$0xff] }
  0x66   :  { %11008 = vmatprep.mubr.f32.mxu0 %v14572_v57  ;;  %11728 = vmatprep.mubr.f32.mxu1 %v14577_v58  ;;  %v14834_v51 = vld [vmem:[%s19664_s0 + $0xf0] sm:$0xff]  ;;  %v14848_v53 = vld [vmem:[%s19664_s0 + $0xf8] sm:$0xff]  ;;  %v14853_v54 = vld [vmem:[%s19664_s0 + $0x2a8] sm:$0xff] }
  0x67   :  { %12456 = vmatprep.subr.bf16.mxu0 %v12455_v59  ;;  %12744 = vmatprep.subr.bf16.mxu1 %v12455_v59  ;;  %v14858_v55 = vld [vmem:[%s19664_s0 + $0x108] sm:$0xff]  ;;  %v14863_v56 = vld [vmem:[%s19664_s0 + $0x2b8] sm:$0xff]  ;;  %v14877_v60 = vld [vmem:[%s19664_s0 + $0x2c0] sm:$0xff] }
  0x68   :  { %11009 = vmatmul.mubr.f32.gmra.mrb[2].mxu0 %v14590_v62  ;;  %11729 = vmatmul.mubr.f32.gmra.mrb[2].mxu1 %v14595_v63  ;;  %v14882_v61 = vld [vmem:[%s19664_s0 + $0x120] sm:$0xff]  ;;  %v14896_v3 = vld [vmem:[%s19664_s0 + $0x128] sm:$0xff]  ;;  %v14901_v4 = vld [vmem:[%s19664_s0 + $0x2d8] sm:$0xff] }
  0x69   :  { %11011 = vmatprep.mubr.f32.mxu0 %v14602_v0  ;;  %11731 = vmatprep.mubr.f32.mxu1 %v14607_v1  ;;  %v14911_v10 = vld [vmem:[%s19664_s0 + $0x2e8] sm:$0xff]  ;;  %v14920_v11 = vld [vmem:[%s19664_s0 + $0x140] sm:$0xff]  ;;  %v14930_v17 = vld [vmem:[%s19664_s0 + $0x150] sm:$0xff] }
  0x6a   :  { %12458 = vmatpush3.bf16.msra.mxu0 %v12455_v59  ;;  %12746 = vmatpush3.bf16.msra.mxu1 %v12455_v59  ;;  %v14872_v59 = vld [vmem:[%s19664_s0 + $0x110] sm:$0xff]  ;;  %19731 = vst [vmem:[#allocation6_spill] sm:$0xff] %v14930_v17  ;;  %v14935_v18 = vld [vmem:[%s19664_s0 + $0x300] sm:$0xff]  ;;  %v14949_v24 = vld [vmem:[%s19664_s0 + $0x308] sm:$0xff] }
  0x6b   :  { %12460 = vmatprep.subr.bf16.mxu0 %v12459_v2  ;;  %12748 = vmatprep.subr.bf16.mxu1 %v12459_v2  ;;  %19732 = vst [vmem:[#allocation7_spill] sm:$0xff] %v14935_v18  ;;  %19734 = vst [vmem:[#allocation9_spill] sm:$0xff] %v14949_v24  ;;  %v14954_v25 = vld [vmem:[%s19664_s0 + $0x168] sm:$0xff]  ;;  %v14968_v31 = vld [vmem:[%s19664_s0 + $0x170] sm:$0xff] }
  0x6c   :  { %11012 = vmatmul.mubr.f32.gmra.mrb[4].mxu0 %v14622_v5  ;;  %11732 = vmatmul.mubr.f32.gmra.mrb[4].mxu1 %v14627_v6  ;;  %19735 = vst [vmem:[#allocation10_spill] sm:$0xff] %v14954_v25  ;;  %19737 = vst [vmem:[#allocation12_spill] sm:$0xff] %v14968_v31  ;;  %v14973_v32 = vld [vmem:[%s19664_s0 + $0x320] sm:$0xff]  ;;  %v9073_v38 = vld [vmem:[%s19664_s0 + $0x1b2] sm:$0xff] }
  0x6d   :  { %11014 = vmatprep.mubr.f32.mxu0 %v14632_v7  ;;  %11734 = vmatprep.mubr.f32.mxu1 %v14637_v8  ;;  %19738 = vst [vmem:[#allocation13_spill] sm:$0xff] %v14973_v32  ;;  %v8754_v39 = vld [vmem:[%s19665_s1 + $0x190] sm:$0xff]  ;;  %vm17587_vm2 = vmpackc.low %vm2813_vm0, %vm2813_vm0 }
  0x6e   :  { %12462 = vmatpush3.bf16.msra.mxu0 %v12459_v2  ;;  %12750 = vmatpush3.bf16.msra.mxu1 %v12459_v2  ;;  %v14887_v2 = vld [vmem:[%s19664_s0 + $0x2d0] sm:$0xff] }
  0x6f   :  { %12464 = vmatprep.subr.bf16.mxu0 %v12463_v9  ;;  %12752 = vmatprep.subr.bf16.mxu1 %v12463_v9 }
  0x70   :  { %11015 = vmatmul.mubr.f32.gmra.mrb[6].mxu0 %v14652_v12  ;;  %11735 = vmatmul.mubr.f32.gmra.mrb[6].mxu1 %v14657_v13 }
  0x71   :  { %11017 = vmatprep.mubr.f32.mxu0 %v14662_v14  ;;  %11737 = vmatprep.mubr.f32.mxu1 %v14667_v15 }
  0x72   :  { %12466 = vmatpush3.bf16.msra.mxu0 %v12463_v9  ;;  %12754 = vmatpush3.bf16.msra.mxu1 %v12463_v9  ;;  %v14906_v9 = vld [vmem:[%s19664_s0 + $0x138] sm:$0xff] }
  0x73   :  { %12468 = vmatprep.subr.bf16.mxu0 %v12467_v16  ;;  %12756 = vmatprep.subr.bf16.mxu1 %v12467_v16 }
  0x74   :  { %11018 = vmatmul.mubr.f32.gmra.mrb[8].mxu0 %v14682_v19  ;;  %11738 = vmatmul.mubr.f32.gmra.mrb[8].mxu1 %v14687_v20 }
  0x75   :  { %11020 = vmatprep.mubr.f32.mxu0 %v14692_v21  ;;  %11740 = vmatprep.mubr.f32.mxu1 %v14697_v22 }
  0x76   :  { %12470 = vmatpush3.bf16.msra.mxu0 %v12467_v16  ;;  %12758 = vmatpush3.bf16.msra.mxu1 %v12467_v16  ;;  %v14925_v16 = vld [vmem:[%s19664_s0 + $0x2f0] sm:$0xff] }
  0x77   :  { %12472 = vmatprep.subr.bf16.mxu0 %v12471_v23  ;;  %12760 = vmatprep.subr.bf16.mxu1 %v12471_v23 }
  0x78   :  { %11021 = vmatmul.mubr.f32.gmra.mrb[10].mxu0 %v14712_v26  ;;  %11741 = vmatmul.mubr.f32.gmra.mrb[10].mxu1 %v14717_v27 }
  0x79   :  { %11023 = vmatprep.mubr.f32.mxu0 %v14722_v28  ;;  %11743 = vmatprep.mubr.f32.mxu1 %v14727_v29 }
  0x7a   :  { %12474 = vmatpush3.bf16.msra.mxu0 %v12471_v23  ;;  %12762 = vmatpush3.bf16.msra.mxu1 %v12471_v23  ;;  %v14944_v23 = vld [vmem:[%s19664_s0 + $0x158] sm:$0xff] }
  0x7b   :  { %12476 = vmatprep.subr.bf16.mxu0 %v12475_v30  ;;  %12764 = vmatprep.subr.bf16.mxu1 %v12475_v30  ;;  %19733 = vst [vmem:[#allocation8_spill] sm:$0xff] %v14944_v23 }
  0x7c   :  { %11024 = vmatmul.mubr.f32.gmra.mrb[12].mxu0 %v14742_v33  ;;  %11744 = vmatmul.mubr.f32.gmra.mrb[12].mxu1 %v14747_v34 }
  0x7d   :  { %11026 = vmatprep.mubr.f32.mxu0 %v14752_v35  ;;  %11746 = vmatprep.mubr.f32.mxu1 %v14757_v36 }
  0x7e   :  { %12478 = vmatpush3.bf16.msra.mxu0 %v12475_v30  ;;  %12766 = vmatpush3.bf16.msra.mxu1 %v12475_v30  ;;  %v14959_v30 = vld [vmem:[%s19664_s0 + $0x318] sm:$0xff] }
  0x7f   :  { %12480 = vmatprep.subr.bf16.mxu0 %v12479_v37  ;;  %12768 = vmatprep.subr.bf16.mxu1 %v12479_v37  ;;  %19736 = vst [vmem:[#allocation11_spill] sm:$0xff] %v14959_v30 }
  0x80   :  { %11027 = vmatmul.mubr.f32.gmra.mrb[14].mxu0 %v14772_v40  ;;  %11747 = vmatmul.mubr.f32.gmra.mrb[14].mxu1 %v14777_v41 }
  0x81   :  { %11029 = vmatprep.mubr.f32.mxu0 %v14782_v42  ;;  %11749 = vmatprep.mubr.f32.mxu1 %v14787_v43 }
  0x82   :  { %12482 = vmatpush3.bf16.msra.mxu0 %v12479_v37  ;;  %12770 = vmatpush3.bf16.msra.mxu1 %v12479_v37  ;;  %v598_v37 = vld [vmem:[%s19664_s0 + $0x2] sm:$0xff] }
  0x83   :  { %12484 = vmatprep.subr.bf16.mxu0 %v14789_v44  ;;  %12772 = vmatprep.subr.bf16.mxu1 %v14789_v44 }
  0x84   :  { %11030 = vmatmul.mubr.f32.gmra.mrb[16].mxu0 %v14798_v45  ;;  %11750 = vmatmul.mubr.f32.gmra.mrb[16].mxu1 %v14803_v46 }
  0x85   :  { %11032 = vmatprep.mubr.f32.mxu0 %v14808_v47  ;;  %11752 = vmatprep.mubr.f32.mxu1 %v14813_v48 }
  0x88   :  { %11033 = vmatmul.mubr.f32.gmra.mrb[18].mxu0 %v14824_v49  ;;  %11753 = vmatmul.mubr.f32.gmra.mrb[18].mxu1 %v14829_v50 }
  0x89   :  { %11035 = vmatprep.mubr.f32.mxu0 %v14834_v51  ;;  %11755 = vmatprep.mubr.f32.mxu1 %v14839_v52 }
  0x8c   :  { %11036 = vmatmul.mubr.f32.gmra.mrb[20].mxu0 %v14848_v53  ;;  %11756 = vmatmul.mubr.f32.gmra.mrb[20].mxu1 %v14853_v54 }
  0x8d   :  { %11038 = vmatprep.mubr.f32.mxu0 %v14858_v55  ;;  %11758 = vmatprep.mubr.f32.mxu1 %v14863_v56 }
  0x90   :  { %11039 = vmatmul.mubr.f32.gmra.mrb[22].mxu0 %v14872_v59  ;;  %11759 = vmatmul.mubr.f32.gmra.mrb[22].mxu1 %v14877_v60 }
  0x91   :  { %11041 = vmatprep.mubr.f32.mxu0 %v14882_v61  ;;  %11761 = vmatprep.mubr.f32.mxu1 %v14887_v2 }
  0x94   :  { %11042 = vmatmul.mubr.f32.gmra.mrb[24].mxu0 %v14896_v3  ;;  %11762 = vmatmul.mubr.f32.gmra.mrb[24].mxu1 %v14901_v4 }
  0x95   :  { %11044 = vmatprep.mubr.f32.mxu0 %v14906_v9  ;;  %11764 = vmatprep.mubr.f32.mxu1 %v14911_v10 }
  0x98   :  { %11045 = vmatmul.mubr.f32.gmra.mrb[26].mxu0 %v14920_v11  ;;  %11765 = vmatmul.mubr.f32.gmra.mrb[26].mxu1 %v14925_v16 }
  0x99   :  { %11047 = vmatprep.mubr.f32.mxu0 %v14930_v17  ;;  %11767 = vmatprep.mubr.f32.mxu1 %v14935_v18  ;;  %v601_v18 = vld [vmem:[%s19664_s0 + $0x22] sm:$0xff]  ;;  %v607_v17 = vld [vmem:[%s19664_s0 + $0x6a] sm:$0xff] }
  0x9c   :  { %11048 = vmatmul.mubr.f32.gmra.mrb[28].mxu0 %v14944_v23  ;;  %11768 = vmatmul.mubr.f32.gmra.mrb[28].mxu1 %v14949_v24  ;;  %v9075_v24 = vld [vmem:[%s19664_s0 + $0x1ca] sm:$0xff] }
  0x9d   :  { %11050 = vmatprep.mubr.f32.mxu0 %v14954_v25  ;;  %11770 = vmatprep.mubr.f32.mxu1 %v14959_v30  ;;  %v8755_v30 = vld [vmem:[%s19665_s1 + $0x198] sm:$0xff]  ;;  %v599_v25 = vld [vmem:[%s19664_s0 + $0xa] sm:$0xff] }
  0x9e   :  { %v12487_v23 = vpack.c.bf16 %v8755_v30, %v8754_v39  ;;  %v602_v30 = vld [vmem:[%s19664_s0 + $0x32] sm:$0xff] }
  0x9f   :  { %v8758_v39 = vld [vmem:[%s19665_s1 + $0x1b0] sm:$0xff] }
  0xa0   :  { %11051 = vmatmul.mubr.f32.gmra.mrb[30].mxu0 %v14968_v31  ;;  %11771 = vmatmul.mubr.f32.gmra.mrb[30].mxu1 %v14973_v32  ;;  %v9074_v31 = vld [vmem:[%s19664_s0 + $0x1ba] sm:$0xff] }
  0xa1   :  { %11085 = vmatprep.mubr.f32.mxu0 %v598_v37  ;;  %11805 = vmatprep.mubr.f32.mxu1 %v9073_v38  ;;  %v600_v32 = vld [vmem:[%s19664_s0 + $0x1a] sm:$0xff]  ;;  %v8757_v38 = vld [vmem:[%s19665_s1 + $0x1a8] sm:$0xff] }
  0xa2   :  { %v8756_v37 = vld [vmem:[%s19665_s1 + $0x1a0] sm:$0xff] }
  0xa4   :  { %11086 = vmatmul.mubr.f32.vlgmr.msra.gmra.mrb[0].mxu0 %v599_v25  ;;  %11806 = vmatmul.mubr.f32.vlgmr.msra.gmra.mrb[0].mxu1 %v9074_v31  ;;  %v9076_v25 = vld [vmem:[%s19664_s0 + $0x1d2] sm:$0xff]  ;;  %v9077_v31 = vld [vmem:[%s19664_s0 + $0x1e2] sm:$0xff] }
  0xa5   :  { %12486 = vmatpush3.bf16.msra.mxu0 %v14789_v44  ;;  %12774 = vmatpush3.bf16.msra.mxu1 %v14789_v44  ;;  %v12491_v44 = vpack.c.bf16 %v8757_v38, %v8756_v37  ;;  %v9078_v37 = vld [vmem:[%s19664_s0 + $0x1ea] sm:$0xff]  ;;  %v9079_v38 = vld [vmem:[%s19664_s0 + $0x1fa] sm:$0xff] }
  0xa6   :  { %11088 = vmatprep.mubr.f32.mxu0 %v600_v32  ;;  %11808 = vmatprep.mubr.f32.mxu1 %v9075_v24  ;;  %v8759_v24 = vld [vmem:[%s19665_s1 + $0x1b8] sm:$0xff] }
  0xa7   :  { %12488 = vmatprep.subr.bf16.mxu0 %v12487_v23  ;;  %12776 = vmatprep.subr.bf16.mxu1 %v12487_v23  ;;  %v603_v32 = vld [vmem:[%s19664_s0 + $0x3a] sm:$0xff] }
  0xa8   :  { %11089 = vmatmul.mubr.f32.gmra.mrb[2].mxu0 %v601_v18  ;;  %11809 = vmatmul.mubr.f32.gmra.mrb[2].mxu1 %v9076_v25  ;;  %v604_v18 = vld [vmem:[%s19664_s0 + $0x4a] sm:$0xff]  ;;  %v12495_v25 = vpack.c.bf16 %v8759_v24, %v8758_v39  ;;  %v9080_v39 = vld [vmem:[%s19664_s0 + $0x202] sm:$0xff] }
  0xa9   :  { %11091 = vmatprep.mubr.f32.mxu0 %v602_v30  ;;  %11811 = vmatprep.mubr.f32.mxu1 %v9077_v31  ;;  %v8760_v30 = vld [vmem:[%s19665_s1 + $0x1c0] sm:$0xff]  ;;  %v605_v31 = vld [vmem:[%s19664_s0 + $0x52] sm:$0xff] }
  0xaa   :  { %12490 = vmatpush3.bf16.msra.mxu0 %v12487_v23  ;;  %12778 = vmatpush3.bf16.msra.mxu1 %v12487_v23  ;;  %v8761_v23 = vld [vmem:[%s19665_s1 + $0x1c8] sm:$0xff] }
  0xab   :  { %12492 = vmatprep.subr.bf16.mxu0 %v12491_v44  ;;  %12780 = vmatprep.subr.bf16.mxu1 %v12491_v44  ;;  %v606_v24 = vld [vmem:[%s19664_s0 + $0x62] sm:$0xff] }
  0xac   :  { %11092 = vmatmul.mubr.f32.gmra.mrb[4].mxu0 %v603_v32  ;;  %11812 = vmatmul.mubr.f32.gmra.mrb[4].mxu1 %v9078_v37  ;;  %v9081_v32 = vld [vmem:[%s19664_s0 + $0x212] sm:$0xff]  ;;  %v12499_v37 = vpack.c.bf16 %v8761_v23, %v8760_v30  ;;  %v608_v30 = vld [vmem:[%s19664_s0 + $0x7a] sm:$0xff]  ;;  %v9083_v23 = vld [vmem:[%s19664_s0 + $0x22a] sm:$0xff] }
  0xad   :  { %11094 = vmatprep.mubr.f32.mxu0 %v604_v18  ;;  %11814 = vmatprep.mubr.f32.mxu1 %v9079_v38  ;;  %v8762_v18 = vld [vmem:[%s19665_s1 + $0x1d0] sm:$0xff]  ;;  %v8763_v38 = vld [vmem:[%s19665_s1 + $0x1d8] sm:$0xff] }
  0xae   :  { %12494 = vmatpush3.bf16.msra.mxu0 %v12491_v44  ;;  %12782 = vmatpush3.bf16.msra.mxu1 %v12491_v44  ;;  %v9082_v44 = vld [vmem:[%s19664_s0 + $0x21a] sm:$0xff] }
  0xaf   :  { %12496 = vmatprep.subr.bf16.mxu0 %v12495_v25  ;;  %12784 = vmatprep.subr.bf16.mxu1 %v12495_v25 }
  0xb0   :  { %11095 = vmatmul.mubr.f32.gmra.mrb[6].mxu0 %v605_v31  ;;  %11815 = vmatmul.mubr.f32.gmra.mrb[6].mxu1 %v9080_v39  ;;  %v12503_v31 = vpack.c.bf16 %v8763_v38, %v8762_v18  ;;  %v8764_v39 = vld [vmem:[%s19665_s1 + $0x1e0] sm:$0xff] }
  0xb1   :  { %11097 = vmatprep.mubr.f32.mxu0 %v606_v24  ;;  %11817 = vmatprep.mubr.f32.mxu1 %v9081_v32  ;;  %v8765_v24 = vld [vmem:[%s19665_s1 + $0x1e8] sm:$0xff] }
  0xb2   :  { %12498 = vmatpush3.bf16.msra.mxu0 %v12495_v25  ;;  %12786 = vmatpush3.bf16.msra.mxu1 %v12495_v25  ;;  %v609_v32 = vld [vmem:[%s19664_s0 + $0x82] sm:$0xff]  ;;  %v9084_v25 = vld [vmem:[%s19664_s0 + $0x232] sm:$0xff]  ;;  %v12507_v38 = vpack.c.bf16 %v8765_v24, %v8764_v39  ;;  %v612_v39 = vld [vmem:[%s19664_s0 + $0xaa] sm:$0xff] }
  0xb3   :  { %12500 = vmatprep.subr.bf16.mxu0 %v12499_v37  ;;  %12788 = vmatprep.subr.bf16.mxu1 %v12499_v37  ;;  %v9085_v18 = vld [vmem:[%s19664_s0 + $0x242] sm:$0xff]  ;;  %v9087_v24 = vld [vmem:[%s19664_s0 + $0x25a] sm:$0xff] }
  0xb4   :  { %11098 = vmatmul.mubr.f32.gmra.mrb[8].mxu0 %v607_v17  ;;  %11818 = vmatmul.mubr.f32.gmra.mrb[8].mxu1 %v9082_v44  ;;  %v610_v17 = vld [vmem:[%s19664_s0 + $0x92] sm:$0xff] }
  0xb5   :  { %11100 = vmatprep.mubr.f32.mxu0 %v608_v30  ;;  %11820 = vmatprep.mubr.f32.mxu1 %v9083_v23  ;;  %v8766_v44 = vld [vmem:[%s19665_s1 + $0x1f0] sm:$0xff]  ;;  %v8767_v30 = vld [vmem:[%s19665_s1 + $0x1f8] sm:$0xff] }
  0xb6   :  { %12502 = vmatpush3.bf16.msra.mxu0 %v12499_v37  ;;  %12790 = vmatpush3.bf16.msra.mxu1 %v12499_v37  ;;  %v611_v23 = vld [vmem:[%s19664_s0 + $0x9a] sm:$0xff]  ;;  %v9086_v37 = vld [vmem:[%s19664_s0 + $0x24a] sm:$0xff] }
  0xb7   :  { %12504 = vmatprep.subr.bf16.mxu0 %v12503_v31  ;;  %12792 = vmatprep.subr.bf16.mxu1 %v12503_v31 }
  0xb8   :  { %11101 = vmatmul.mubr.f32.gmra.mrb[10].mxu0 %v609_v32  ;;  %11821 = vmatmul.mubr.f32.gmra.mrb[10].mxu1 %v9084_v25  ;;  %v12511_v32 = vpack.c.bf16 %v8767_v30, %v8766_v44  ;;  %v8800_v25 = vld [vmem:[%s19665_s1 + $0x200] sm:$0xff]  ;;  %v9089_v30 = vld [vmem:[%s19664_s0 + $0x272] sm:$0xff] }
  0xb9   :  { %11103 = vmatprep.mubr.f32.mxu0 %v610_v17  ;;  %11823 = vmatprep.mubr.f32.mxu1 %v9085_v18  ;;  %v8801_v17 = vld [vmem:[%s19665_s1 + $0x208] sm:$0xff]  ;;  %v613_v18 = vld [vmem:[%s19664_s0 + $0xb2] sm:$0xff] }
  0xba   :  { %12506 = vmatpush3.bf16.msra.mxu0 %v12503_v31  ;;  %12794 = vmatpush3.bf16.msra.mxu1 %v12503_v31  ;;  %v9088_v31 = vld [vmem:[%s19664_s0 + $0x262] sm:$0xff] }
  0xbb   :  { %12508 = vmatprep.subr.bf16.mxu0 %v12507_v38  ;;  %12796 = vmatprep.subr.bf16.mxu1 %v12507_v38  ;;  %v614_v44 = vld [vmem:[%s19664_s0 + $0xc2] sm:$0xff] }
  0xbc   :  { %11104 = vmatmul.mubr.f32.gmra.mrb[12].mxu0 %v611_v23  ;;  %11824 = vmatmul.mubr.f32.gmra.mrb[12].mxu1 %v9086_v37  ;;  %v15129_v23 = vpack.c.bf16 %v8801_v17, %v8800_v25  ;;  %v615_v37 = vld [vmem:[%s19664_s0 + $0xca] sm:$0xff]  ;;  %v617_v25 = vld [vmem:[%s19664_s0 + $0xe2] sm:$0xff]  ;;  %v9092_v17 = vld [vmem:[%s19664_s0 + $0x292] sm:$0xff] }
  0xbd   :  { %11106 = vmatprep.mubr.f32.mxu0 %v612_v39  ;;  %11826 = vmatprep.mubr.f32.mxu1 %v9087_v24  ;;  %v9090_v39 = vld [vmem:[%s19664_s0 + $0x27a] sm:$0xff]  ;;  %v9091_v24 = vld [vmem:[%s19664_s0 + $0x28a] sm:$0xff] }
  0xbe   :  { %12510 = vmatpush3.bf16.msra.mxu0 %v12507_v38  ;;  %12798 = vmatpush3.bf16.msra.mxu1 %v12507_v38  ;;  %v616_v38 = vld [vmem:[%s19664_s0 + $0xda] sm:$0xff] }
  0xbf   :  { %12512 = vmatprep.subr.bf16.mxu0 %v12511_v32  ;;  %12800 = vmatprep.subr.bf16.mxu1 %v12511_v32 }
  0xc0   :  { %11107 = vmatmul.mubr.f32.gmra.mrb[14].mxu0 %v613_v18  ;;  %11827 = vmatmul.mubr.f32.gmra.mrb[14].mxu1 %v9088_v31  ;;  %v9093_v18 = vld [vmem:[%s19664_s0 + $0x2a2] sm:$0xff]  ;;  %v619_v31 = vld [vmem:[%s19664_s0 + $0xfa] sm:$0xff] }
  0xc1   :  { %11109 = vmatprep.mubr.f32.mxu0 %v614_v44  ;;  %11829 = vmatprep.mubr.f32.mxu1 %v9089_v30  ;;  %v9094_v44 = vld [vmem:[%s19664_s0 + $0x2aa] sm:$0xff] }
  0xc2   :  { %12514 = vmatpush3.bf16.msra.mxu0 %v12511_v32  ;;  %12802 = vmatpush3.bf16.msra.mxu1 %v12511_v32  ;;  %v618_v32 = vld [vmem:[%s19664_s0 + $0xf2] sm:$0xff]  ;;  %v620_v30 = vld [vmem:[%s19664_s0 + $0x10a] sm:$0xff] }
  0xc3   :  { %12516 = vmatprep.subr.bf16.mxu0 %v15129_v23  ;;  %12804 = vmatprep.subr.bf16.mxu1 %v15129_v23 }
  0xc4   :  { %11110 = vmatmul.mubr.f32.gmra.mrb[16].mxu0 %v615_v37  ;;  %11830 = vmatmul.mubr.f32.gmra.mrb[16].mxu1 %v9090_v39  ;;  %v9095_v37 = vld [vmem:[%s19664_s0 + $0x2ba] sm:$0xff]  ;;  %v621_v39 = vld [vmem:[%s19664_s0 + $0x112] sm:$0xff] }
  0xc5   :  { %11112 = vmatprep.mubr.f32.mxu0 %v616_v38  ;;  %11832 = vmatprep.mubr.f32.mxu1 %v9091_v24  ;;  %v9096_v38 = vld [vmem:[%s19664_s0 + $0x2c2] sm:$0xff] }
  0xc6   :  { %v622_v24 = vld [vmem:[%s19664_s0 + $0x122] sm:$0xff] }
  0xc8   :  { %11113 = vmatmul.mubr.f32.gmra.mrb[18].mxu0 %v617_v25  ;;  %11833 = vmatmul.mubr.f32.gmra.mrb[18].mxu1 %v9092_v17  ;;  %v9097_v25 = vld [vmem:[%s19664_s0 + $0x2d2] sm:$0xff]  ;;  %v623_v17 = vld [vmem:[%s19664_s0 + $0x12a] sm:$0xff] }
  0xc9   :  { %11115 = vmatprep.mubr.f32.mxu0 %v618_v32  ;;  %11835 = vmatprep.mubr.f32.mxu1 %v9093_v18  ;;  %v9098_v32 = vld [vmem:[%s19664_s0 + $0x2da] sm:$0xff] }
  0xca   :  { %v624_v18 = vld [vmem:[%s19664_s0 + $0x13a] sm:$0xff] }
  0xcc   :  { %11116 = vmatmul.mubr.f32.gmra.mrb[20].mxu0 %v619_v31  ;;  %11836 = vmatmul.mubr.f32.gmra.mrb[20].mxu1 %v9094_v44  ;;  %v9099_v31 = vld [vmem:[%s19664_s0 + $0x2ea] sm:$0xff]  ;;  %v625_v44 = vld [vmem:[%s19664_s0 + $0x142] sm:$0xff] }
  0xcd   :  { %11118 = vmatprep.mubr.f32.mxu0 %v620_v30  ;;  %11838 = vmatprep.mubr.f32.mxu1 %v9095_v37  ;;  %v9100_v30 = vld [vmem:[%s19664_s0 + $0x2f2] sm:$0xff] }
  0xce   :  { %v626_v37 = vld [vmem:[%s19664_s0 + $0x152] sm:$0xff] }
  0xd0   :  { %11119 = vmatmul.mubr.f32.gmra.mrb[22].mxu0 %v621_v39  ;;  %11839 = vmatmul.mubr.f32.gmra.mrb[22].mxu1 %v9096_v38  ;;  %v9101_v39 = vld [vmem:[%s19664_s0 + $0x302] sm:$0xff]  ;;  %v627_v38 = vld [vmem:[%s19664_s0 + $0x15a] sm:$0xff] }
  0xd1   :  { %11121 = vmatprep.mubr.f32.mxu0 %v622_v24  ;;  %11841 = vmatprep.mubr.f32.mxu1 %v9097_v25  ;;  %v9102_v24 = vld [vmem:[%s19664_s0 + $0x30a] sm:$0xff] }
  0xd2   :  { %v628_v25 = vld [vmem:[%s19664_s0 + $0x16a] sm:$0xff] }
  0xd4   :  { %11122 = vmatmul.mubr.f32.gmra.mrb[24].mxu0 %v623_v17  ;;  %11842 = vmatmul.mubr.f32.gmra.mrb[24].mxu1 %v9098_v32  ;;  %v9103_v17 = vld [vmem:[%s19664_s0 + $0x31a] sm:$0xff]  ;;  %v629_v32 = vld [vmem:[%s19664_s0 + $0x172] sm:$0xff] }
  0xd5   :  { %11124 = vmatprep.mubr.f32.mxu0 %v624_v18  ;;  %11844 = vmatprep.mubr.f32.mxu1 %v9099_v31  ;;  %v9104_v18 = vld [vmem:[%s19664_s0 + $0x322] sm:$0xff]  ;;  %v8802_v31 = vld [vmem:[%s19665_s1 + $0x210] sm:$0xff] }
  0xd8   :  { %11125 = vmatmul.mubr.f32.gmra.mrb[26].mxu0 %v625_v44  ;;  %11845 = vmatmul.mubr.f32.gmra.mrb[26].mxu1 %v9100_v30  ;;  %v8803_v44 = vld [vmem:[%s19665_s1 + $0x218] sm:$0xff] }
  0xd9   :  { %11127 = vmatprep.mubr.f32.mxu0 %v626_v37  ;;  %11847 = vmatprep.mubr.f32.mxu1 %v9101_v39  ;;  %v12519_v30 = vpack.c.bf16 %v8803_v44, %v8802_v31  ;;  %v8804_v37 = vld [vmem:[%s19665_s1 + $0x220] sm:$0xff]  ;;  %v8805_v39 = vld [vmem:[%s19665_s1 + $0x228] sm:$0xff] }
  0xda   :  { %v9145_v31 = vld [vmem:[%s19664_s0 + $0x229] sm:$0xff] }
  0xdc   :  { %11128 = vmatmul.mubr.f32.gmra.mrb[28].mxu0 %v627_v38  ;;  %11848 = vmatmul.mubr.f32.gmra.mrb[28].mxu1 %v9102_v24  ;;  %v8856_v24 = vld [vmem:[%s19665_s1 + $0x2c0] sm:$0xff] }
  0xdd   :  { %11130 = vmatprep.mubr.f32.mxu0 %v628_v25  ;;  %11850 = vmatprep.mubr.f32.mxu1 %v9103_v17  ;;  %v8857_v25 = vld [vmem:[%s19665_s1 + $0x2c8] sm:$0xff] }
  0xde   :  { %v8775_v17 = vld [vmem:[%s19664_s0 + $0x69] sm:$0xff]  ;;  %v12563_v44 = vpack.c.bf16 %v8857_v25, %v8856_v24  ;;  %v9168_v24 = vld [vmem:[%s19664_s0 + $0x339] sm:$0xff] }
  0xdf   :  { %v8816_v25 = vld [vmem:[%s19664_s0 + $0x1a] sm:$0xff] }
  0xe0   :  { %11131 = vmatmul.mubr.f32.gmra.mrb[30].mxu0 %v629_v32  ;;  %11851 = vmatmul.mubr.f32.gmra.mrb[30].mxu1 %v9104_v18  ;;  %v9144_v32 = vld [vmem:[%s19664_s0 + $0x219] sm:$0xff] }
  0xe1   :  { %11165 = vmatprep.mubr.f32.mxu0 %v14572_v57  ;;  %11885 = vmatprep.mubr.f32.mxu1 %v14577_v58  ;;  %v12523_v57 = vpack.c.bf16 %v8805_v39, %v8804_v37  ;;  %v8806_v58 = vld [vmem:[%s19665_s1 + $0x230] sm:$0xff]  ;;  %v8776_v18 = vld [vmem:[%s19664_s0 + $0x79] sm:$0xff]  ;;  %v8777_v39 = vld [vmem:[%s19664_s0 + $0x81] sm:$0xff] }
  0xe2   :  { %v8859_v37 = vld [vmem:[%s19665_s1 + $0x2d8] sm:$0xff] }
  0xe4   :  { %11166 = vmatmul.mubr.f32.vlgmr.msra.gmra.mrb[0].mxu0 %v14590_v62  ;;  %11886 = vmatmul.mubr.f32.vlgmr.msra.gmra.mrb[0].mxu1 %v14595_v63  ;;  %v8807_v62 = vld [vmem:[%s19665_s1 + $0x238] sm:$0xff] }
  0xe5   :  { %12518 = vmatpush3.bf16.msra.mxu0 %v15129_v23  ;;  %12806 = vmatpush3.bf16.msra.mxu1 %v15129_v23  ;;  %v12527_v63 = vpack.c.bf16 %v8807_v62, %v8806_v58  ;;  %v9143_v23 = vld [vmem:[%s19664_s0 + $0x211] sm:$0xff]  ;;  %v9147_v62 = vld [vmem:[%s19664_s0 + $0x241] sm:$0xff] }
  0xe6   :  { %11168 = vmatprep.mubr.f32.mxu0 %v14602_v0  ;;  %11888 = vmatprep.mubr.f32.mxu1 %v14607_v1  ;;  %v8808_v0 = vld [vmem:[%s19665_s1 + $0x240] sm:$0xff]  ;;  %v8809_v1 = vld [vmem:[%s19665_s1 + $0x248] sm:$0xff]  ;;  %v8778_v58 = vld [vmem:[%s19664_s0 + $0x91] sm:$0xff] }
  0xe7   :  { %12520 = vmatprep.subr.bf16.mxu0 %v12519_v30  ;;  %12808 = vmatprep.subr.bf16.mxu1 %v12519_v30 }
  0xe8   :  { %11169 = vmatmul.mubr.f32.gmra.mrb[2].mxu0 %v14622_v5  ;;  %11889 = vmatmul.mubr.f32.gmra.mrb[2].mxu1 %v14627_v6  ;;  %v12531_v5 = vpack.c.bf16 %v8809_v1, %v8808_v0  ;;  %v8810_v6 = vld [vmem:[%s19665_s1 + $0x250] sm:$0xff]  ;;  %v8860_v0 = vld [vmem:[%s19665_s1 + $0x2e0] sm:$0xff]  ;;  %v8861_v1 = vld [vmem:[%s19665_s1 + $0x2e8] sm:$0xff] }
  0xe9   :  { %11171 = vmatprep.mubr.f32.mxu0 %v14632_v7  ;;  %11891 = vmatprep.mubr.f32.mxu1 %v14637_v8  ;;  %v8811_v7 = vld [vmem:[%s19665_s1 + $0x258] sm:$0xff] }
  0xea   :  { %12522 = vmatpush3.bf16.msra.mxu0 %v12519_v30  ;;  %12810 = vmatpush3.bf16.msra.mxu1 %v12519_v30  ;;  %v12535_v8 = vpack.c.bf16 %v8811_v7, %v8810_v6  ;;  %v8858_v30 = vld [vmem:[%s19665_s1 + $0x2d0] sm:$0xff] }
  0xeb   :  { %12524 = vmatprep.subr.bf16.mxu0 %v12523_v57  ;;  %12812 = vmatprep.subr.bf16.mxu1 %v12523_v57  ;;  %v9148_v6 = vld [vmem:[%s19664_s0 + $0x249] sm:$0xff] }
  0xec   :  { %11172 = vmatmul.mubr.f32.gmra.mrb[4].mxu0 %v14652_v12  ;;  %11892 = vmatmul.mubr.f32.gmra.mrb[4].mxu1 %v14657_v13  ;;  %v8812_v12 = vld [vmem:[%s19665_s1 + $0x260] sm:$0xff]  ;;  %v8813_v13 = vld [vmem:[%s19665_s1 + $0x268] sm:$0xff] }
  0xed   :  { %11174 = vmatprep.mubr.f32.mxu0 %v14662_v14  ;;  %11894 = vmatprep.mubr.f32.mxu1 %v14667_v15  ;;  %v12539_v14 = vpack.c.bf16 %v8813_v13, %v8812_v12  ;;  %v8814_v15 = vld [vmem:[%s19665_s1 + $0x270] sm:$0xff]  ;;  %v12571_v12 = vpack.c.bf16 %v8861_v1, %v8860_v0  ;;  %v9173_v1 = vld [vmem:[%s19664_s0 + $0x1fa] sm:$0xff] }
  0xee   :  { %12526 = vmatpush3.bf16.msra.mxu0 %v12523_v57  ;;  %12814 = vmatpush3.bf16.msra.mxu1 %v12523_v57  ;;  %v9146_v57 = vld [vmem:[%s19664_s0 + $0x231] sm:$0xff]  ;;  %v8780_v7 = vld [vmem:[%s19664_s0 + $0xa9] sm:$0xff] }
  0xef   :  { %12528 = vmatprep.subr.bf16.mxu0 %v12527_v63  ;;  %12816 = vmatprep.subr.bf16.mxu1 %v12527_v63  ;;  %v8862_v13 = vld [vmem:[%s19665_s1 + $0x2f0] sm:$0xff] }
  0xf0   :  { %11175 = vmatmul.mubr.f32.gmra.mrb[6].mxu0 %v14682_v19  ;;  %11895 = vmatmul.mubr.f32.gmra.mrb[6].mxu1 %v14687_v20  ;;  %v8815_v19 = vld [vmem:[%s19665_s1 + $0x278] sm:$0xff]  ;;  %v8820_v0 = vld [vmem:[%s19664_s0 + $0x4a] sm:$0xff] }
  0xf1   :  { %11177 = vmatprep.mubr.f32.mxu0 %v14692_v21  ;;  %11897 = vmatprep.mubr.f32.mxu1 %v14697_v22  ;;  %v12543_v20 = vpack.c.bf16 %v8815_v19, %v8814_v15  ;;  %v8848_v21 = vld [vmem:[%s19665_s1 + $0x280] sm:$0xff]  ;;  %v8849_v22 = vld [vmem:[%s19665_s1 + $0x288] sm:$0xff]  ;;  %v8781_v15 = vld [vmem:[%s19664_s0 + $0xb1] sm:$0xff] }
  0xf2   :  { %12530 = vmatpush3.bf16.msra.mxu0 %v12527_v63  ;;  %12818 = vmatpush3.bf16.msra.mxu1 %v12527_v63  ;;  %v12567_v63 = vpack.c.bf16 %v8859_v37, %v8858_v30  ;;  %v9150_v19 = vld [vmem:[%s19664_s0 + $0x261] sm:$0xff]  ;;  %v8818_v30 = vld [vmem:[%s19664_s0 + $0x32] sm:$0xff] }
  0xf3   :  { %12532 = vmatprep.subr.bf16.mxu0 %v12531_v5  ;;  %12820 = vmatprep.subr.bf16.mxu1 %v12531_v5  ;;  %v9171_v37 = vld [vmem:[%s19664_s0 + $0x1e2] sm:$0xff] }
  0xf4   :  { %11178 = vmatmul.mubr.f32.gmra.mrb[8].mxu0 %v14712_v26  ;;  %11898 = vmatmul.mubr.f32.gmra.mrb[8].mxu1 %v14717_v27  ;;  %v12547_v26 = vpack.c.bf16 %v8849_v22, %v8848_v21  ;;  %v19739_v27 = vld [vmem:[#allocation6_spill] sm:$0xff]  ;;  %v9151_v21 = vld [vmem:[%s19664_s0 + $0x271] sm:$0xff] }
  0xf5   :  { %11180 = vmatprep.mubr.f32.mxu0 %v14722_v28  ;;  %11900 = vmatprep.mubr.f32.mxu1 %v14727_v29  ;;  %v19740_v28 = vld [vmem:[#allocation7_spill] sm:$0xff]  ;;  %v19741_v29 = vld [vmem:[#allocation8_spill] sm:$0xff] }
  0xf6   :  { %12534 = vmatpush3.bf16.msra.mxu0 %v12531_v5  ;;  %12822 = vmatpush3.bf16.msra.mxu1 %v12531_v5  ;;  %v8779_v5 = vld [vmem:[%s19664_s0 + $0x99] sm:$0xff] }
  0xf7   :  { %12536 = vmatprep.subr.bf16.mxu0 %v12535_v8  ;;  %12824 = vmatprep.subr.bf16.mxu1 %v12535_v8 }
  0xf8   :  { %11181 = vmatmul.mubr.f32.gmra.mrb[10].mxu0 %v14742_v33  ;;  %11901 = vmatmul.mubr.f32.gmra.mrb[10].mxu1 %v14747_v34  ;;  %v19742_v33 = vld [vmem:[#allocation9_spill] sm:$0xff]  ;;  %v19743_v34 = vld [vmem:[#allocation10_spill] sm:$0xff] }
  0xf9   :  { %11183 = vmatprep.mubr.f32.mxu0 %v14752_v35  ;;  %11903 = vmatprep.mubr.f32.mxu1 %v14757_v36  ;;  %v19744_v35 = vld [vmem:[#allocation11_spill] sm:$0xff]  ;;  %v8750_v36 = vld [vmem:[%s19664_s0 + $0x180] sm:$0xff] }
  0xfa   :  { %12538 = vmatpush3.bf16.msra.mxu0 %v12535_v8  ;;  %12826 = vmatpush3.bf16.msra.mxu1 %v12535_v8  ;;  %v9149_v8 = vld [vmem:[%s19664_s0 + $0x259] sm:$0xff] }
  0xfb   :  { %12540 = vmatprep.subr.bf16.mxu0 %v12539_v14  ;;  %12828 = vmatprep.subr.bf16.mxu1 %v12539_v14 }
  0xfc   :  { %11184 = vmatmul.mubr.f32.gmra.mrb[12].mxu0 %v14772_v40  ;;  %11904 = vmatmul.mubr.f32.gmra.mrb[12].mxu1 %v14777_v41  ;;  %v9135_v40 = vld [vmem:[%s19664_s0 + $0x330] sm:$0xff] }
  0xfd   :  { %11186 = vmatprep.mubr.f32.mxu0 %v14782_v42  ;;  %11906 = vmatprep.mubr.f32.mxu1 %v14787_v43  ;;  %v19745_v41 = vld [vmem:[#allocation12_spill] sm:$0xff]  ;;  %v19746_v42 = vld [vmem:[#allocation13_spill] sm:$0xff]  ;;  %v8751_v43 = vld [vmem:[%s19664_s0 + $0x188] sm:$0xff] }
  0xfe   :  { %12542 = vmatpush3.bf16.msra.mxu0 %v12539_v14  ;;  %12830 = vmatpush3.bf16.msra.mxu1 %v12539_v14  ;;  %v8863_v14 = vld [vmem:[%s19665_s1 + $0x2f8] sm:$0xff] }
  0xff   :  { %12544 = vmatprep.subr.bf16.mxu0 %v12543_v20  ;;  %12832 = vmatprep.subr.bf16.mxu1 %v12543_v20  ;;  %v12575_v22 = vpack.c.bf16 %v8863_v14, %v8862_v13  ;;  %v8822_v13 = vld [vmem:[%s19664_s0 + $0x62] sm:$0xff]  ;;  %v9175_v14 = vld [vmem:[%s19664_s0 + $0x212] sm:$0xff] }
 0x100   :  { %11187 = vmatmul.mubr.f32.gmra.mrb[14].mxu0 %v14798_v45  ;;  %11907 = vmatmul.mubr.f32.gmra.mrb[14].mxu1 %v14803_v46  ;;  %v9136_v45 = vld [vmem:[%s19664_s0 + $0x338] sm:$0xff] }
 0x101   :  { %11189 = vmatprep.mubr.f32.mxu0 %v14808_v47  ;;  %11909 = vmatprep.mubr.f32.mxu1 %v14813_v48  ;;  %v8768_v46 = vld [vmem:[%s19664_s0 + $0x19] sm:$0xff]  ;;  %v9137_v47 = vld [vmem:[%s19664_s0 + $0x1c9] sm:$0xff] }
 0x102   :  { %12546 = vmatpush3.bf16.msra.mxu0 %v12543_v20  ;;  %12834 = vmatpush3.bf16.msra.mxu1 %v12543_v20  ;;  %v8850_v48 = vld [vmem:[%s19665_s1 + $0x290] sm:$0xff]  ;;  %v8782_v20 = vld [vmem:[%s19664_s0 + $0xc1] sm:$0xff] }
 0x103   :  { %12548 = vmatprep.subr.bf16.mxu0 %v12547_v26  ;;  %12836 = vmatprep.subr.bf16.mxu1 %v12547_v26 }
 0x104   :  { %11190 = vmatmul.mubr.f32.gmra.mrb[16].mxu0 %v14824_v49  ;;  %11910 = vmatmul.mubr.f32.gmra.mrb[16].mxu1 %v14829_v50  ;;  %v8851_v49 = vld [vmem:[%s19665_s1 + $0x298] sm:$0xff]  ;;  %v8769_v50 = vld [vmem:[%s19664_s0 + $0x21] sm:$0xff] }
 0x105   :  { %11192 = vmatprep.mubr.f32.mxu0 %v14834_v51  ;;  %11912 = vmatprep.mubr.f32.mxu1 %v14839_v52  ;;  %v9138_v51 = vld [vmem:[%s19664_s0 + $0x1d1] sm:$0xff] }
 0x106   :  { %v8770_v52 = vld [vmem:[%s19664_s0 + $0x31] sm:$0xff] }
 0x108   :  { %11193 = vmatmul.mubr.f32.gmra.mrb[18].mxu0 %v14848_v53  ;;  %11913 = vmatmul.mubr.f32.gmra.mrb[18].mxu1 %v14853_v54  ;;  %v9139_v53 = vld [vmem:[%s19664_s0 + $0x1e1] sm:$0xff]  ;;  %v12551_v54 = vpack.c.bf16 %v8851_v49, %v8850_v48  ;;  %v8789_v48 = vld [vmem:[%s19664_s0 + $0x111] sm:$0xff] }
 0x109   :  { %11195 = vmatprep.mubr.f32.mxu0 %v14858_v55  ;;  %11915 = vmatprep.mubr.f32.mxu1 %v14863_v56  ;;  %v8852_v55 = vld [vmem:[%s19665_s1 + $0x2a0] sm:$0xff]  ;;  %v8853_v56 = vld [vmem:[%s19665_s1 + $0x2a8] sm:$0xff] }
 0x10a   :  { %v9158_v49 = vld [vmem:[%s19664_s0 + $0x2c1] sm:$0xff] }
 0x10c   :  { %11196 = vmatmul.mubr.f32.gmra.mrb[20].mxu0 %v14872_v59  ;;  %11916 = vmatmul.mubr.f32.gmra.mrb[20].mxu1 %v14877_v60  ;;  %v8771_v59 = vld [vmem:[%s19664_s0 + $0x39] sm:$0xff]  ;;  %v9140_v60 = vld [vmem:[%s19664_s0 + $0x1e9] sm:$0xff] }
 0x10d   :  { %11198 = vmatprep.mubr.f32.mxu0 %v14882_v61  ;;  %11918 = vmatprep.mubr.f32.mxu1 %v14887_v2  ;;  %v8772_v61 = vld [vmem:[%s19664_s0 + $0x49] sm:$0xff]  ;;  %v9141_v2 = vld [vmem:[%s19664_s0 + $0x1f9] sm:$0xff] }
 0x110   :  { %11199 = vmatmul.mubr.f32.gmra.mrb[22].mxu0 %v14896_v3  ;;  %11919 = vmatmul.mubr.f32.gmra.mrb[22].mxu1 %v14901_v4  ;;  %v12555_v3 = vpack.c.bf16 %v8853_v56, %v8852_v55  ;;  %v8854_v4 = vld [vmem:[%s19665_s1 + $0x2b0] sm:$0xff]  ;;  %v8793_v56 = vld [vmem:[%s19664_s0 + $0x141] sm:$0xff] }
 0x111   :  { %11201 = vmatprep.mubr.f32.mxu0 %v14906_v9  ;;  %11921 = vmatprep.mubr.f32.mxu1 %v14911_v10  ;;  %v8855_v9 = vld [vmem:[%s19665_s1 + $0x2b8] sm:$0xff]  ;;  %v9161_v55 = vld [vmem:[%s19664_s0 + $0x2e9] sm:$0xff] }
 0x112   :  { %v8773_v10 = vld [vmem:[%s19664_s0 + $0x51] sm:$0xff]  ;;  %v12559_v38 = vpack.c.bf16 %v8855_v9, %v8854_v4  ;;  %v8796_v4 = vld [vmem:[%s19664_s0 + $0x169] sm:$0xff]  ;;  %v9165_v9 = vld [vmem:[%s19664_s0 + $0x319] sm:$0xff] }
 0x114   :  { %11202 = vmatmul.mubr.f32.gmra.mrb[24].mxu0 %v14920_v11  ;;  %11922 = vmatmul.mubr.f32.gmra.mrb[24].mxu1 %v14925_v16  ;;  %v9142_v11 = vld [vmem:[%s19664_s0 + $0x201] sm:$0xff] }
 0x115   :  { %11204 = vmatprep.mubr.f32.mxu0 %v19739_v27  ;;  %11924 = vmatprep.mubr.f32.mxu1 %v19740_v28  ;;  %v8774_v16 = vld [vmem:[%s19664_s0 + $0x61] sm:$0xff]  ;;  %v8783_v28 = vld [vmem:[%s19664_s0 + $0xc9] sm:$0xff] }
 0x116   :  { %v8897_v27 = vld [vmem:[%s19665_s1 + $0x308] sm:$0xff] }
 0x118   :  { %11205 = vmatmul.mubr.f32.gmra.mrb[26].mxu0 %v19741_v29  ;;  %11925 = vmatmul.mubr.f32.gmra.mrb[26].mxu1 %v19742_v33  ;;  %v9152_v29 = vld [vmem:[%s19664_s0 + $0x279] sm:$0xff] }
 0x119   :  { %11207 = vmatprep.mubr.f32.mxu0 %v19743_v34  ;;  %11927 = vmatprep.mubr.f32.mxu1 %v19744_v35  ;;  %v8784_v33 = vld [vmem:[%s19664_s0 + $0xd9] sm:$0xff]  ;;  %v9153_v34 = vld [vmem:[%s19664_s0 + $0x289] sm:$0xff] }
 0x11c   :  { %11208 = vmatmul.mubr.f32.gmra.mrb[28].mxu0 %v19745_v41  ;;  %11928 = vmatmul.mubr.f32.gmra.mrb[28].mxu1 %v19746_v42  ;;  %v8786_v41 = vld [vmem:[%s19664_s0 + $0xf1] sm:$0xff]  ;;  %v9155_v42 = vld [vmem:[%s19664_s0 + $0x2a1] sm:$0xff] }
 0x11d   :  { %11210 = vmatprep.mubr.f32.mxu0 %v8750_v36  ;;  %11930 = vmatprep.mubr.f32.mxu1 %v9135_v40  ;;  %v8785_v36 = vld [vmem:[%s19664_s0 + $0xe1] sm:$0xff]  ;;  %v9154_v40 = vld [vmem:[%s19664_s0 + $0x291] sm:$0xff] }
 0x120   :  { %11211 = vmatmul.mubr.f32.gmra.mrb[30].mxu0 %v8751_v43  ;;  %11931 = vmatmul.mubr.f32.gmra.mrb[30].mxu1 %v9136_v45  ;;  %v8787_v43 = vld [vmem:[%s19664_s0 + $0xf9] sm:$0xff]  ;;  %v9156_v45 = vld [vmem:[%s19664_s0 + $0x2a9] sm:$0xff] }
 0x121   :  { %11245 = vmatprep.mubr.f32.mxu0 %v8768_v46  ;;  %11965 = vmatprep.mubr.f32.mxu1 %v9137_v47  ;;  %v8788_v46 = vld [vmem:[%s19664_s0 + $0x109] sm:$0xff]  ;;  %v9157_v47 = vld [vmem:[%s19664_s0 + $0x2b9] sm:$0xff] }
 0x124   :  { %11246 = vmatmul.mubr.f32.vlgmr.msra.gmra.mrb[0].mxu0 %v8769_v50  ;;  %11966 = vmatmul.mubr.f32.vlgmr.msra.gmra.mrb[0].mxu1 %v9138_v51  ;;  %v8790_v50 = vld [vmem:[%s19664_s0 + $0x121] sm:$0xff]  ;;  %v9159_v51 = vld [vmem:[%s19664_s0 + $0x2d1] sm:$0xff] }
 0x125   :  { %12550 = vmatpush3.bf16.msra.mxu0 %v12547_v26  ;;  %12838 = vmatpush3.bf16.msra.mxu1 %v12547_v26  ;;  %v8896_v26 = vld [vmem:[%s19665_s1 + $0x300] sm:$0xff] }
 0x126   :  { %11248 = vmatprep.mubr.f32.mxu0 %v8770_v52  ;;  %11968 = vmatprep.mubr.f32.mxu1 %v9139_v53  ;;  %v15495_v35 = vpack.c.bf16 %v8897_v27, %v8896_v26  ;;  %v8791_v52 = vld [vmem:[%s19664_s0 + $0x129] sm:$0xff]  ;;  %v9160_v53 = vld [vmem:[%s19664_s0 + $0x2d9] sm:$0xff] }
 0x127   :  { %12552 = vmatprep.subr.bf16.mxu0 %v12551_v54  ;;  %12840 = vmatprep.subr.bf16.mxu1 %v12551_v54  ;;  %v8824_v26 = vld [vmem:[%s19664_s0 + $0x7a] sm:$0xff]  ;;  %v9177_v27 = vld [vmem:[%s19664_s0 + $0x22a] sm:$0xff] }
 0x128   :  { %11249 = vmatmul.mubr.f32.gmra.mrb[2].mxu0 %v8771_v59  ;;  %11969 = vmatmul.mubr.f32.gmra.mrb[2].mxu1 %v9140_v60  ;;  %v9162_v59 = vld [vmem:[%s19664_s0 + $0x2f1] sm:$0xff] }
 0x129   :  { %11251 = vmatprep.mubr.f32.mxu0 %v8772_v61  ;;  %11971 = vmatprep.mubr.f32.mxu1 %v9141_v2  ;;  %v8794_v60 = vld [vmem:[%s19664_s0 + $0x151] sm:$0xff]  ;;  %v9163_v61 = vld [vmem:[%s19664_s0 + $0x301] sm:$0xff]  ;;  %v8795_v2 = vld [vmem:[%s19664_s0 + $0x159] sm:$0xff] }
 0x12a   :  { %12554 = vmatpush3.bf16.msra.mxu0 %v12551_v54  ;;  %12842 = vmatpush3.bf16.msra.mxu1 %v12551_v54  ;;  %v8792_v54 = vld [vmem:[%s19664_s0 + $0x139] sm:$0xff] }
 0x12b   :  { %12556 = vmatprep.subr.bf16.mxu0 %v12555_v3  ;;  %12844 = vmatprep.subr.bf16.mxu1 %v12555_v3 }
 0x12c   :  { %11252 = vmatmul.mubr.f32.gmra.mrb[4].mxu0 %v8773_v10  ;;  %11972 = vmatmul.mubr.f32.gmra.mrb[4].mxu1 %v9142_v11  ;;  %v8797_v10 = vld [vmem:[%s19664_s0 + $0x171] sm:$0xff]  ;;  %v9166_v11 = vld [vmem:[%s19664_s0 + $0x321] sm:$0xff] }
 0x12d   :  { %11254 = vmatprep.mubr.f32.mxu0 %v8774_v16  ;;  %11974 = vmatprep.mubr.f32.mxu1 %v9143_v23  ;;  %v8798_v16 = vld [vmem:[%s19664_s0 + $0x181] sm:$0xff]  ;;  %v9167_v23 = vld [vmem:[%s19664_s0 + $0x331] sm:$0xff] }
 0x12e   :  { %12558 = vmatpush3.bf16.msra.mxu0 %v12555_v3  ;;  %12846 = vmatpush3.bf16.msra.mxu1 %v12555_v3  ;;  %v9164_v3 = vld [vmem:[%s19664_s0 + $0x309] sm:$0xff] }
 0x12f   :  { %12560 = vmatprep.subr.bf16.mxu0 %v12559_v38  ;;  %12848 = vmatprep.subr.bf16.mxu1 %v12559_v38 }
 0x130   :  { %11255 = vmatmul.mubr.f32.gmra.mrb[6].mxu0 %v8775_v17  ;;  %11975 = vmatmul.mubr.f32.gmra.mrb[6].mxu1 %v9144_v32  ;;  %v9169_v17 = vld [vmem:[%s19664_s0 + $0x1ca] sm:$0xff] }
 0x131   :  { %11257 = vmatprep.mubr.f32.mxu0 %v8776_v18  ;;  %11977 = vmatprep.mubr.f32.mxu1 %v9145_v31  ;;  %v8898_v32 = vld [vmem:[%s19665_s1 + $0x310] sm:$0xff]  ;;  %v8899_v18 = vld [vmem:[%s19665_s1 + $0x318] sm:$0xff]  ;;  %v8817_v31 = vld [vmem:[%s19664_s0 + $0x22] sm:$0xff] }
 0x132   :  { %12562 = vmatpush3.bf16.msra.mxu0 %v12559_v38  ;;  %12850 = vmatpush3.bf16.msra.mxu1 %v12559_v38  ;;  %v8799_v38 = vld [vmem:[%s19664_s0 + $0x189] sm:$0xff] }
 0x133   :  { %12564 = vmatprep.subr.bf16.mxu0 %v12563_v44  ;;  %12852 = vmatprep.subr.bf16.mxu1 %v12563_v44 }
 0x134   :  { %11258 = vmatmul.mubr.f32.gmra.mrb[8].mxu0 %v8777_v39  ;;  %11978 = vmatmul.mubr.f32.gmra.mrb[8].mxu1 %v9146_v57  ;;  %v12583_v39 = vpack.c.bf16 %v8899_v18, %v8898_v32  ;;  %v8900_v57 = vld [vmem:[%s19665_s1 + $0x320] sm:$0xff]  ;;  %v15793_v32 = vld [vmem:[%s19664_s0 + $0x112] sm:$0xff] }
 0x135   :  { %11260 = vmatprep.mubr.f32.mxu0 %v8778_v58  ;;  %11980 = vmatprep.mubr.f32.mxu1 %v9147_v62  ;;  %v8901_v58 = vld [vmem:[%s19665_s1 + $0x328] sm:$0xff]  ;;  %v8819_v62 = vld [vmem:[%s19664_s0 + $0x3a] sm:$0xff] }
 0x136   :  { %12566 = vmatpush3.bf16.msra.mxu0 %v12563_v44  ;;  %12854 = vmatpush3.bf16.msra.mxu1 %v12563_v44  ;;  %v9170_v44 = vld [vmem:[%s19664_s0 + $0x1d2] sm:$0xff]  ;;  %v15798_v18 = vld [vmem:[%s19664_s0 + $0x2c2] sm:$0xff] }
 0x137   :  { %12568 = vmatprep.subr.bf16.mxu0 %v12567_v63  ;;  %12856 = vmatprep.subr.bf16.mxu1 %v12567_v63 }
 0x138   :  { %11261 = vmatmul.mubr.f32.gmra.mrb[10].mxu0 %v8779_v5  ;;  %11981 = vmatmul.mubr.f32.gmra.mrb[10].mxu1 %v9148_v6  ;;  %v12587_v5 = vpack.c.bf16 %v8901_v58, %v8900_v57  ;;  %v8902_v6 = vld [vmem:[%s19665_s1 + $0x330] sm:$0xff]  ;;  %v15841_v58 = vld [vmem:[%s19664_s0 + $0x142] sm:$0xff] }
 0x139   :  { %11263 = vmatprep.mubr.f32.mxu0 %v8780_v7  ;;  %11983 = vmatprep.mubr.f32.mxu1 %v9149_v8  ;;  %v8903_v7 = vld [vmem:[%s19665_s1 + $0x338] sm:$0xff]  ;;  %v15832_v57 = vld [vmem:[%s19664_s0 + $0x2ea] sm:$0xff] }
 0x13a   :  { %12570 = vmatpush3.bf16.msra.mxu0 %v12567_v63  ;;  %12858 = vmatpush3.bf16.msra.mxu1 %v12567_v63  ;;  %v9172_v63 = vld [vmem:[%s19664_s0 + $0x1ea] sm:$0xff]  ;;  %v8821_v8 = vld [vmem:[%s19664_s0 + $0x52] sm:$0xff] }
 0x13b   :  { %12572 = vmatprep.subr.bf16.mxu0 %v12571_v12  ;;  %12860 = vmatprep.subr.bf16.mxu1 %v12571_v12 }
 0x13c   :  { %11264 = vmatmul.mubr.f32.gmra.mrb[12].mxu0 %v8781_v15  ;;  %11984 = vmatmul.mubr.f32.gmra.mrb[12].mxu1 %v9150_v19  ;;  %v12591_v15 = vpack.c.bf16 %v8903_v7, %v8902_v6  ;;  %v8904_v19 = vld [vmem:[%s19665_s1 + $0x340] sm:$0xff]  ;;  %v15875_v6 = vld [vmem:[%s19664_s0 + $0x16a] sm:$0xff] }
 0x13d   :  { %11266 = vmatprep.mubr.f32.mxu0 %v8782_v20  ;;  %11986 = vmatprep.mubr.f32.mxu1 %v9151_v21  ;;  %v8905_v20 = vld [vmem:[%s19665_s1 + $0x348] sm:$0xff]  ;;  %v15880_v7 = vld [vmem:[%s19664_s0 + $0x31a] sm:$0xff] }
 0x13e   :  { %12574 = vmatpush3.bf16.msra.mxu0 %v12571_v12  ;;  %12862 = vmatpush3.bf16.msra.mxu1 %v12571_v12  ;;  %v9174_v12 = vld [vmem:[%s19664_s0 + $0x202] sm:$0xff]  ;;  %v8823_v21 = vld [vmem:[%s19664_s0 + $0x6a] sm:$0xff] }
 0x13f   :  { %12576 = vmatprep.subr.bf16.mxu0 %v12575_v22  ;;  %12864 = vmatprep.subr.bf16.mxu1 %v12575_v22 }
 0x140   :  { %11267 = vmatmul.mubr.f32.gmra.mrb[14].mxu0 %v8783_v28  ;;  %11987 = vmatmul.mubr.f32.gmra.mrb[14].mxu1 %v9152_v29  ;;  %v12595_v28 = vpack.c.bf16 %v8905_v20, %v8904_v19  ;;  %v8906_v29 = vld [vmem:[%s19665_s1 + $0x350] sm:$0xff]  ;;  %v15918_v19 = vld [vmem:[%s19664_s0 + $0x33a] sm:$0xff] }
 0x141   :  { %11269 = vmatprep.mubr.f32.mxu0 %v8784_v33  ;;  %11989 = vmatprep.mubr.f32.mxu1 %v9153_v34  ;;  %v8907_v33 = vld [vmem:[%s19665_s1 + $0x358] sm:$0xff]  ;;  %v8825_v34 = vld [vmem:[%s19664_s0 + $0x82] sm:$0xff]  ;;  %v8864_v20 = vld [vmem:[%s19664_s0 + $0x30] sm:$0xff] }
 0x142   :  { %12578 = vmatpush3.bf16.msra.mxu0 %v12575_v22  ;;  %12866 = vmatpush3.bf16.msra.mxu1 %v12575_v22  ;;  %v9176_v22 = vld [vmem:[%s19664_s0 + $0x21a] sm:$0xff] }
 0x143   :  { %12580 = vmatprep.subr.bf16.mxu0 %v15495_v35  ;;  %12868 = vmatprep.subr.bf16.mxu1 %v15495_v35 }
 0x144   :  { %11270 = vmatmul.mubr.f32.gmra.mrb[16].mxu0 %v8785_v36  ;;  %11990 = vmatmul.mubr.f32.gmra.mrb[16].mxu1 %v9154_v40  ;;  %v8826_v36 = vld [vmem:[%s19664_s0 + $0x92] sm:$0xff]  ;;  %v9179_v40 = vld [vmem:[%s19664_s0 + $0x242] sm:$0xff] }
 0x145   :  { %11272 = vmatprep.mubr.f32.mxu0 %v8786_v41  ;;  %11992 = vmatprep.mubr.f32.mxu1 %v9155_v42  ;;  %v12599_v41 = vpack.c.bf16 %v8907_v33, %v8906_v29  ;;  %v8908_v42 = vld [vmem:[%s19665_s1 + $0x360] sm:$0xff]  ;;  %v8866_v29 = vld [vmem:[%s19664_s0 + $0x48] sm:$0xff]  ;;  %v9203_v33 = vld [vmem:[%s19664_s0 + $0x1f8] sm:$0xff] }
 0x148   :  { %11273 = vmatmul.mubr.f32.gmra.mrb[18].mxu0 %v8787_v43  ;;  %11993 = vmatmul.mubr.f32.gmra.mrb[18].mxu1 %v9156_v45  ;;  %v8909_v43 = vld [vmem:[%s19665_s1 + $0x368] sm:$0xff]  ;;  %v8827_v45 = vld [vmem:[%s19664_s0 + $0x9a] sm:$0xff] }
 0x149   :  { %11275 = vmatprep.mubr.f32.mxu0 %v8788_v46  ;;  %11995 = vmatprep.mubr.f32.mxu1 %v9157_v47  ;;  %v9180_v46 = vld [vmem:[%s19664_s0 + $0x24a] sm:$0xff] }
 0x14a   :  { %v8828_v47 = vld [vmem:[%s19664_s0 + $0xaa] sm:$0xff] }
 0x14c   :  { %11276 = vmatmul.mubr.f32.gmra.mrb[20].mxu0 %v8789_v48  ;;  %11996 = vmatmul.mubr.f32.gmra.mrb[20].mxu1 %v9158_v49  ;;  %v9181_v48 = vld [vmem:[%s19664_s0 + $0x25a] sm:$0xff]  ;;  %v12603_v49 = vpack.c.bf16 %v8909_v43, %v8908_v42  ;;  %v9205_v43 = vld [vmem:[%s19664_s0 + $0x210] sm:$0xff] }
 0x14d   :  { %11278 = vmatprep.mubr.f32.mxu0 %v8790_v50  ;;  %11998 = vmatprep.mubr.f32.mxu1 %v9159_v51  ;;  %v8910_v50 = vld [vmem:[%s19665_s1 + $0x370] sm:$0xff]  ;;  %v8911_v51 = vld [vmem:[%s19665_s1 + $0x378] sm:$0xff]  ;;  %v8868_v42 = vld [vmem:[%s19664_s0 + $0x60] sm:$0xff] }
 0x150   :  { %11279 = vmatmul.mubr.f32.gmra.mrb[22].mxu0 %v8791_v52  ;;  %11999 = vmatmul.mubr.f32.gmra.mrb[22].mxu1 %v9160_v53  ;;  %v8829_v52 = vld [vmem:[%s19664_s0 + $0xb2] sm:$0xff]  ;;  %v9182_v53 = vld [vmem:[%s19664_s0 + $0x262] sm:$0xff] }
 0x151   :  { %11281 = vmatprep.mubr.f32.mxu0 %v8792_v54  ;;  %12001 = vmatprep.mubr.f32.mxu1 %v9161_v55  ;;  %v8830_v54 = vld [vmem:[%s19664_s0 + $0xc2] sm:$0xff]  ;;  %v9183_v55 = vld [vmem:[%s19664_s0 + $0x272] sm:$0xff] }
 0x154   :  { %11282 = vmatmul.mubr.f32.gmra.mrb[24].mxu0 %v8793_v56  ;;  %12002 = vmatmul.mubr.f32.gmra.mrb[24].mxu1 %v9162_v59  ;;  %v12607_v56 = vpack.c.bf16 %v8911_v51, %v8910_v50  ;;  %v8944_v59 = vld [vmem:[%s19665_s1 + $0x380] sm:$0xff]  ;;  %v8870_v50 = vld [vmem:[%s19664_s0 + $0x78] sm:$0xff]  ;;  %v9207_v51 = vld [vmem:[%s19664_s0 + $0x228] sm:$0xff] }
 0x155   :  { %11284 = vmatprep.mubr.f32.mxu0 %v8794_v60  ;;  %12004 = vmatprep.mubr.f32.mxu1 %v9163_v61  ;;  %v8945_v60 = vld [vmem:[%s19665_s1 + $0x388] sm:$0xff] }
 0x156   :  { %v8831_v61 = vld [vmem:[%s19664_s0 + $0xca] sm:$0xff] }
 0x158   :  { %11285 = vmatmul.mubr.f32.gmra.mrb[26].mxu0 %v8795_v2  ;;  %12005 = vmatmul.mubr.f32.gmra.mrb[26].mxu1 %v9164_v3  ;;  %v9184_v2 = vld [vmem:[%s19664_s0 + $0x27a] sm:$0xff] }
 0x159   :  { %11287 = vmatprep.mubr.f32.mxu0 %v8796_v4  ;;  %12007 = vmatprep.mubr.f32.mxu1 %v9165_v9  ;;  %v8832_v3 = vld [vmem:[%s19664_s0 + $0xda] sm:$0xff]  ;;  %v9185_v4 = vld [vmem:[%s19664_s0 + $0x28a] sm:$0xff]  ;;  %v15741_v9 = vpack.c.bf16 %v8945_v60, %v8944_v59 }
 0x15a   :  { %v8872_v59 = vld [vmem:[%s19664_s0 + $0x90] sm:$0xff]  ;;  %v9209_v60 = vld [vmem:[%s19664_s0 + $0x240] sm:$0xff] }
 0x15c   :  { %11288 = vmatmul.mubr.f32.gmra.mrb[28].mxu0 %v8797_v10  ;;  %12008 = vmatmul.mubr.f32.gmra.mrb[28].mxu1 %v9166_v11  ;;  %v8833_v10 = vld [vmem:[%s19664_s0 + $0xe2] sm:$0xff]  ;;  %v15749_v11 = vld [vmem:[%s19664_s0 + $0x292] sm:$0xff] }
 0x15d   :  { %11290 = vmatprep.mubr.f32.mxu0 %v8798_v16  ;;  %12010 = vmatprep.mubr.f32.mxu1 %v9167_v23  ;;  %v15754_v16 = vld [vmem:[%s19664_s0 + $0xf2] sm:$0xff]  ;;  %v15759_v23 = vld [vmem:[%s19664_s0 + $0x2a2] sm:$0xff] }
 0x160   :  { %11291 = vmatmul.mubr.f32.gmra.mrb[30].mxu0 %v8799_v38  ;;  %12011 = vmatmul.mubr.f32.gmra.mrb[30].mxu1 %v9168_v24  ;;  %v15769_v38 = vld [vmem:[%s19664_s0 + $0xfa] sm:$0xff]  ;;  %v15774_v24 = vld [vmem:[%s19664_s0 + $0x2aa] sm:$0xff] }
 0x161   :  { %11325 = vmatprep.mubr.f32.mxu0 %v8816_v25  ;;  %12045 = vmatprep.mubr.f32.mxu1 %v9169_v17  ;;  %v15779_v25 = vld [vmem:[%s19664_s0 + $0x10a] sm:$0xff]  ;;  %v15784_v17 = vld [vmem:[%s19664_s0 + $0x2ba] sm:$0xff] }
 0x164   :  { %11326 = vmatmul.mubr.f32.vlgmr.msra.gmra.mrb[0].mxu0 %v8817_v31  ;;  %12046 = vmatmul.mubr.f32.vlgmr.msra.gmra.mrb[0].mxu1 %v9170_v44  ;;  %v15803_v31 = vld [vmem:[%s19664_s0 + $0x122] sm:$0xff]  ;;  %v15808_v44 = vld [vmem:[%s19664_s0 + $0x2d2] sm:$0xff] }
 0x165   :  { %12582 = vmatpush3.bf16.msra.mxu0 %v15495_v35  ;;  %12870 = vmatpush3.bf16.msra.mxu1 %v15495_v35  ;;  %v9178_v35 = vld [vmem:[%s19664_s0 + $0x232] sm:$0xff] }
 0x166   :  { %11328 = vmatprep.mubr.f32.mxu0 %v8818_v30  ;;  %12048 = vmatprep.mubr.f32.mxu1 %v9171_v37  ;;  %v15817_v30 = vld [vmem:[%s19664_s0 + $0x12a] sm:$0xff]  ;;  %v15822_v37 = vld [vmem:[%s19664_s0 + $0x2da] sm:$0xff] }
 0x167   :  { %12584 = vmatprep.subr.bf16.mxu0 %v12583_v39  ;;  %12872 = vmatprep.subr.bf16.mxu1 %v12583_v39 }
 0x168   :  { %11329 = vmatmul.mubr.f32.gmra.mrb[2].mxu0 %v8819_v62  ;;  %12049 = vmatmul.mubr.f32.gmra.mrb[2].mxu1 %v9172_v63  ;;  %v15846_v62 = vld [vmem:[%s19664_s0 + $0x2f2] sm:$0xff] }
 0x169   :  { %11331 = vmatprep.mubr.f32.mxu0 %v8820_v0  ;;  %12051 = vmatprep.mubr.f32.mxu1 %v9173_v1  ;;  %v15851_v63 = vld [vmem:[%s19664_s0 + $0x152] sm:$0xff]  ;;  %v15856_v0 = vld [vmem:[%s19664_s0 + $0x302] sm:$0xff]  ;;  %v15865_v1 = vld [vmem:[%s19664_s0 + $0x15a] sm:$0xff] }
 0x16a   :  { %12586 = vmatpush3.bf16.msra.mxu0 %v12583_v39  ;;  %12874 = vmatpush3.bf16.msra.mxu1 %v12583_v39  ;;  %v15827_v39 = vld [vmem:[%s19664_s0 + $0x13a] sm:$0xff] }
 0x16b   :  { %12588 = vmatprep.subr.bf16.mxu0 %v12587_v5  ;;  %12876 = vmatprep.subr.bf16.mxu1 %v12587_v5 }
 0x16c   :  { %11332 = vmatmul.mubr.f32.gmra.mrb[4].mxu0 %v8821_v8  ;;  %12052 = vmatmul.mubr.f32.gmra.mrb[4].mxu1 %v9174_v12  ;;  %v15889_v8 = vld [vmem:[%s19664_s0 + $0x172] sm:$0xff]  ;;  %v15894_v12 = vld [vmem:[%s19664_s0 + $0x322] sm:$0xff] }
 0x16d   :  { %11334 = vmatprep.mubr.f32.mxu0 %v8822_v13  ;;  %12054 = vmatprep.mubr.f32.mxu1 %v9175_v14  ;;  %v15899_v13 = vld [vmem:[%s19664_s0 + $0x182] sm:$0xff]  ;;  %v15904_v14 = vld [vmem:[%s19664_s0 + $0x332] sm:$0xff] }
 0x16e   :  { %12590 = vmatpush3.bf16.msra.mxu0 %v12587_v5  ;;  %12878 = vmatpush3.bf16.msra.mxu1 %v12587_v5  ;;  %v15870_v5 = vld [vmem:[%s19664_s0 + $0x30a] sm:$0xff] }
 0x16f   :  { %12592 = vmatprep.subr.bf16.mxu0 %v12591_v15  ;;  %12880 = vmatprep.subr.bf16.mxu1 %v12591_v15 }
 0x170   :  { %11335 = vmatmul.mubr.f32.gmra.mrb[6].mxu0 %v8823_v21  ;;  %12055 = vmatmul.mubr.f32.gmra.mrb[6].mxu1 %v9176_v22  ;;  %v9201_v21 = vld [vmem:[%s19664_s0 + $0x1e0] sm:$0xff]  ;;  %v8946_v22 = vld [vmem:[%s19665_s1 + $0x390] sm:$0xff] }
 0x171   :  { %11337 = vmatprep.mubr.f32.mxu0 %v8824_v26  ;;  %12057 = vmatprep.mubr.f32.mxu1 %v9177_v27  ;;  %v8947_v26 = vld [vmem:[%s19665_s1 + $0x398] sm:$0xff] }
 0x172   :  { %12594 = vmatpush3.bf16.msra.mxu0 %v12591_v15  ;;  %12882 = vmatpush3.bf16.msra.mxu1 %v12591_v15  ;;  %v15913_v15 = vld [vmem:[%s19664_s0 + $0x18a] sm:$0xff]  ;;  %v8865_v27 = vld [vmem:[%s19664_s0 + $0x38] sm:$0xff] }
 0x173   :  { %12596 = vmatprep.subr.bf16.mxu0 %v12595_v28  ;;  %12884 = vmatprep.subr.bf16.mxu1 %v12595_v28 }
 0x174   :  { %11338 = vmatmul.mubr.f32.gmra.mrb[8].mxu0 %v8825_v34  ;;  %12058 = vmatmul.mubr.f32.gmra.mrb[8].mxu1 %v9178_v35  ;;  %v12615_v34 = vpack.c.bf16 %v8947_v26, %v8946_v22  ;;  %v8948_v35 = vld [vmem:[%s19665_s1 + $0x3a0] sm:$0xff]  ;;  %v8957_v26 = vld [vmem:[%s19665_s1 + $0x3e8] sm:$0xff] }
 0x175   :  { %11340 = vmatprep.mubr.f32.mxu0 %v8826_v36  ;;  %12060 = vmatprep.mubr.f32.mxu1 %v9179_v40  ;;  %v8949_v36 = vld [vmem:[%s19665_s1 + $0x3a8] sm:$0xff]  ;;  %v8867_v40 = vld [vmem:[%s19664_s0 + $0x50] sm:$0xff]  ;;  %v8956_v22 = vld [vmem:[%s19665_s1 + $0x3e0] sm:$0xff] }
 0x176   :  { %12598 = vmatpush3.bf16.msra.mxu0 %v12595_v28  ;;  %12886 = vmatpush3.bf16.msra.mxu1 %v12595_v28  ;;  %v9202_v28 = vld [vmem:[%s19664_s0 + $0x1e8] sm:$0xff] }
 0x177   :  { %12600 = vmatprep.subr.bf16.mxu0 %v12599_v41  ;;  %12888 = vmatprep.subr.bf16.mxu1 %v12599_v41 }
 0x178   :  { %11341 = vmatmul.mubr.f32.gmra.mrb[10].mxu0 %v8827_v45  ;;  %12061 = vmatmul.mubr.f32.gmra.mrb[10].mxu1 %v9180_v46  ;;  %v12619_v45 = vpack.c.bf16 %v8949_v36, %v8948_v35  ;;  %v8950_v46 = vld [vmem:[%s19665_s1 + $0x3b0] sm:$0xff]  ;;  %v8959_v36 = vld [vmem:[%s19665_s1 + $0x3f8] sm:$0xff] }
 0x179   :  { %11343 = vmatprep.mubr.f32.mxu0 %v8828_v47  ;;  %12063 = vmatprep.mubr.f32.mxu1 %v9181_v48  ;;  %v8951_v47 = vld [vmem:[%s19665_s1 + $0x3b8] sm:$0xff]  ;;  %v8869_v48 = vld [vmem:[%s19664_s0 + $0x68] sm:$0xff]  ;;  %v8958_v35 = vld [vmem:[%s19665_s1 + $0x3f0] sm:$0xff] }
 0x17a   :  { %12602 = vmatpush3.bf16.msra.mxu0 %v12599_v41  ;;  %12890 = vmatpush3.bf16.msra.mxu1 %v12599_v41  ;;  %v9204_v41 = vld [vmem:[%s19664_s0 + $0x200] sm:$0xff] }
 0x17b   :  { %12604 = vmatprep.subr.bf16.mxu0 %v12603_v49  ;;  %12892 = vmatprep.subr.bf16.mxu1 %v12603_v49 }
 0x17c   :  { %11344 = vmatmul.mubr.f32.gmra.mrb[12].mxu0 %v8829_v52  ;;  %12064 = vmatmul.mubr.f32.gmra.mrb[12].mxu1 %v9182_v53  ;;  %v12623_v52 = vpack.c.bf16 %v8951_v47, %v8950_v46  ;;  %v8952_v53 = vld [vmem:[%s19665_s1 + $0x3c0] sm:$0xff]  ;;  %v8993_v47 = vld [vmem:[%s19665_s1 + $0x408] sm:$0xff] }
 0x17d   :  { %11346 = vmatprep.mubr.f32.mxu0 %v8830_v54  ;;  %12066 = vmatprep.mubr.f32.mxu1 %v9183_v55  ;;  %v8953_v54 = vld [vmem:[%s19665_s1 + $0x3c8] sm:$0xff]  ;;  %v8871_v55 = vld [vmem:[%s19664_s0 + $0x80] sm:$0xff] }
 0x17e   :  { %12606 = vmatpush3.bf16.msra.mxu0 %v12603_v49  ;;  %12894 = vmatpush3.bf16.msra.mxu1 %v12603_v49  ;;  %v9206_v49 = vld [vmem:[%s19664_s0 + $0x218] sm:$0xff]  ;;  %v8992_v46 = vld [vmem:[%s19665_s1 + $0x400] sm:$0xff] }
 0x17f   :  { %12608 = vmatprep.subr.bf16.mxu0 %v12607_v56  ;;  %12896 = vmatprep.subr.bf16.mxu1 %v12607_v56 }
 0x180   :  { %11347 = vmatmul.mubr.f32.gmra.mrb[14].mxu0 %v8831_v61  ;;  %12067 = vmatmul.mubr.f32.gmra.mrb[14].mxu1 %v9184_v2  ;;  %v12627_v61 = vpack.c.bf16 %v8953_v54, %v8952_v53  ;;  %v8954_v2 = vld [vmem:[%s19665_s1 + $0x3d0] sm:$0xff]  ;;  %v8881_v53 = vld [vmem:[%s19664_s0 + $0xf8] sm:$0xff]  ;;  %v9218_v54 = vld [vmem:[%s19664_s0 + $0x2a8] sm:$0xff] }
 0x181   :  { %11349 = vmatprep.mubr.f32.mxu0 %v8832_v3  ;;  %12069 = vmatprep.mubr.f32.mxu1 %v9185_v4  ;;  %v8955_v3 = vld [vmem:[%s19665_s1 + $0x3d8] sm:$0xff] }
 0x182   :  { %12610 = vmatpush3.bf16.msra.mxu0 %v12607_v56  ;;  %12898 = vmatpush3.bf16.msra.mxu1 %v12607_v56  ;;  %v9208_v56 = vld [vmem:[%s19664_s0 + $0x230] sm:$0xff]  ;;  %v8873_v4 = vld [vmem:[%s19664_s0 + $0x98] sm:$0xff] }
 0x183   :  { %12612 = vmatprep.subr.bf16.mxu0 %v15741_v9  ;;  %12900 = vmatprep.subr.bf16.mxu1 %v15741_v9 }
 0x184   :  { %11350 = vmatmul.mubr.f32.gmra.mrb[16].mxu0 %v8833_v10  ;;  %12070 = vmatmul.mubr.f32.gmra.mrb[16].mxu1 %v15749_v11  ;;  %v8874_v10 = vld [vmem:[%s19664_s0 + $0xa8] sm:$0xff] }
 0x185   :  { %11352 = vmatprep.mubr.f32.mxu0 %v15754_v16  ;;  %12072 = vmatprep.mubr.f32.mxu1 %v15759_v23 }
 0x188   :  { %11353 = vmatmul.mubr.f32.gmra.mrb[18].mxu0 %v15769_v38  ;;  %12073 = vmatmul.mubr.f32.gmra.mrb[18].mxu1 %v15774_v24 }
 0x189   :  { %11355 = vmatprep.mubr.f32.mxu0 %v15779_v25  ;;  %12075 = vmatprep.mubr.f32.mxu1 %v15784_v17 }
 0x18c   :  { %11356 = vmatmul.mubr.f32.gmra.mrb[20].mxu0 %v15793_v32  ;;  %12076 = vmatmul.mubr.f32.gmra.mrb[20].mxu1 %v15798_v18 }
 0x18d   :  { %11358 = vmatprep.mubr.f32.mxu0 %v15803_v31  ;;  %12078 = vmatprep.mubr.f32.mxu1 %v15808_v44 }
 0x190   :  { %11359 = vmatmul.mubr.f32.gmra.mrb[22].mxu0 %v15817_v30  ;;  %12079 = vmatmul.mubr.f32.gmra.mrb[22].mxu1 %v15822_v37 }
 0x191   :  { %11361 = vmatprep.mubr.f32.mxu0 %v15827_v39  ;;  %12081 = vmatprep.mubr.f32.mxu1 %v15832_v57 }
 0x194   :  { %11362 = vmatmul.mubr.f32.gmra.mrb[24].mxu0 %v15841_v58  ;;  %12082 = vmatmul.mubr.f32.gmra.mrb[24].mxu1 %v15846_v62 }
 0x195   :  { %11364 = vmatprep.mubr.f32.mxu0 %v15851_v63  ;;  %12084 = vmatprep.mubr.f32.mxu1 %v15856_v0 }
 0x198   :  { %11365 = vmatmul.mubr.f32.gmra.mrb[26].mxu0 %v15865_v1  ;;  %12085 = vmatmul.mubr.f32.gmra.mrb[26].mxu1 %v15870_v5 }
 0x199   :  { %11367 = vmatprep.mubr.f32.mxu0 %v15875_v6  ;;  %12087 = vmatprep.mubr.f32.mxu1 %v15880_v7 }
 0x19c   :  { %11368 = vmatmul.mubr.f32.gmra.mrb[28].mxu0 %v15889_v8  ;;  %12088 = vmatmul.mubr.f32.gmra.mrb[28].mxu1 %v15894_v12 }
 0x19d   :  { %11370 = vmatprep.mubr.f32.mxu0 %v15899_v13  ;;  %12090 = vmatprep.mubr.f32.mxu1 %v15904_v14 }
 0x1a0   :  { %11371 = vmatmul.mubr.f32.gmra.mrb[30].mxu0 %v15913_v15  ;;  %12091 = vmatmul.mubr.f32.gmra.mrb[30].mxu1 %v15918_v19 }
 0x1a1   :  { %11405 = vmatprep.mubr.f32.mxu0 %v8864_v20  ;;  %12125 = vmatprep.mubr.f32.mxu1 %v9201_v21  ;;  %v9211_v20 = vld [vmem:[%s19664_s0 + $0x258] sm:$0xff]  ;;  %v12631_v21 = vpack.c.bf16 %v8955_v3, %v8954_v2  ;;  %v9221_v2 = vld [vmem:[%s19664_s0 + $0x2d0] sm:$0xff]  ;;  %v8885_v3 = vld [vmem:[%s19664_s0 + $0x128] sm:$0xff] }
 0x1a4   :  { %11406 = vmatmul.mubr.f32.vlgmr.msra.gmra.mrb[0].mxu0 %v8865_v27  ;;  %12126 = vmatmul.mubr.f32.vlgmr.msra.gmra.mrb[0].mxu1 %v9202_v28  ;;  %v8875_v27 = vld [vmem:[%s19664_s0 + $0xb0] sm:$0xff]  ;;  %v9212_v28 = vld [vmem:[%s19664_s0 + $0x260] sm:$0xff] }
 0x1a5   :  { %12614 = vmatpush3.bf16.msra.mxu0 %v15741_v9  ;;  %12902 = vmatpush3.bf16.msra.mxu1 %v15741_v9  ;;  %v9210_v9 = vld [vmem:[%s19664_s0 + $0x248] sm:$0xff] }
 0x1a6   :  { %11408 = vmatprep.mubr.f32.mxu0 %v8866_v29  ;;  %12128 = vmatprep.mubr.f32.mxu1 %v9203_v33  ;;  %v8876_v29 = vld [vmem:[%s19664_s0 + $0xc0] sm:$0xff]  ;;  %v9213_v33 = vld [vmem:[%s19664_s0 + $0x270] sm:$0xff] }
 0x1a7   :  { %12616 = vmatprep.subr.bf16.mxu0 %v12615_v34  ;;  %12904 = vmatprep.subr.bf16.mxu1 %v12615_v34 }
 0x1a8   :  { %11409 = vmatmul.mubr.f32.gmra.mrb[2].mxu0 %v8867_v40  ;;  %12129 = vmatmul.mubr.f32.gmra.mrb[2].mxu1 %v9204_v41  ;;  %v8877_v40 = vld [vmem:[%s19664_s0 + $0xc8] sm:$0xff]  ;;  %v9214_v41 = vld [vmem:[%s19664_s0 + $0x278] sm:$0xff] }
 0x1a9   :  { %11411 = vmatprep.mubr.f32.mxu0 %v8868_v42  ;;  %12131 = vmatprep.mubr.f32.mxu1 %v9205_v43  ;;  %v8878_v42 = vld [vmem:[%s19664_s0 + $0xd8] sm:$0xff]  ;;  %v9215_v43 = vld [vmem:[%s19664_s0 + $0x288] sm:$0xff] }
 0x1aa   :  { %12618 = vmatpush3.bf16.msra.mxu0 %v12615_v34  ;;  %12906 = vmatpush3.bf16.msra.mxu1 %v12615_v34  ;;  %v12635_v34 = vpack.c.bf16 %v8957_v26, %v8956_v22  ;;  %v8888_v22 = vld [vmem:[%s19664_s0 + $0x150] sm:$0xff]  ;;  %v9225_v26 = vld [vmem:[%s19664_s0 + $0x300] sm:$0xff] }
 0x1ab   :  { %12620 = vmatprep.subr.bf16.mxu0 %v12619_v45  ;;  %12908 = vmatprep.subr.bf16.mxu1 %v12619_v45 }
 0x1ac   :  { %11412 = vmatmul.mubr.f32.gmra.mrb[4].mxu0 %v8869_v48  ;;  %12132 = vmatmul.mubr.f32.gmra.mrb[4].mxu1 %v9206_v49  ;;  %v8879_v48 = vld [vmem:[%s19664_s0 + $0xe0] sm:$0xff]  ;;  %v9216_v49 = vld [vmem:[%s19664_s0 + $0x290] sm:$0xff] }
 0x1ad   :  { %11414 = vmatprep.mubr.f32.mxu0 %v8870_v50  ;;  %12134 = vmatprep.mubr.f32.mxu1 %v9207_v51  ;;  %v8880_v50 = vld [vmem:[%s19664_s0 + $0xf0] sm:$0xff]  ;;  %v9217_v51 = vld [vmem:[%s19664_s0 + $0x2a0] sm:$0xff] }
 0x1ae   :  { %12622 = vmatpush3.bf16.msra.mxu0 %v12619_v45  ;;  %12910 = vmatpush3.bf16.msra.mxu1 %v12619_v45  ;;  %v12639_v45 = vpack.c.bf16 %v8959_v36, %v8958_v35  ;;  %v9228_v35 = vld [vmem:[%s19664_s0 + $0x320] sm:$0xff] }
 0x1af   :  { %12624 = vmatprep.subr.bf16.mxu0 %v12623_v52  ;;  %12912 = vmatprep.subr.bf16.mxu1 %v12623_v52  ;;  %v8892_v36 = vld [vmem:[%s19664_s0 + $0x180] sm:$0xff] }
 0x1b0   :  { %11415 = vmatmul.mubr.f32.gmra.mrb[6].mxu0 %v8871_v55  ;;  %12135 = vmatmul.mubr.f32.gmra.mrb[6].mxu1 %v9208_v56  ;;  %v8882_v55 = vld [vmem:[%s19664_s0 + $0x108] sm:$0xff]  ;;  %v9219_v56 = vld [vmem:[%s19664_s0 + $0x2b8] sm:$0xff] }
 0x1b1   :  { %11417 = vmatprep.mubr.f32.mxu0 %v8872_v59  ;;  %12137 = vmatprep.mubr.f32.mxu1 %v9209_v60  ;;  %v8883_v59 = vld [vmem:[%s19664_s0 + $0x110] sm:$0xff]  ;;  %v9220_v60 = vld [vmem:[%s19664_s0 + $0x2c0] sm:$0xff] }
 0x1b2   :  { %12626 = vmatpush3.bf16.msra.mxu0 %v12623_v52  ;;  %12914 = vmatpush3.bf16.msra.mxu1 %v12623_v52  ;;  %v16074_v52 = vpack.c.bf16 %v8993_v47, %v8992_v46  ;;  %v8895_v46 = vld [vmem:[%s19664_s0 + $0x1a0] sm:$0xff]  ;;  %v9232_v47 = vld [vmem:[%s19664_s0 + $0x350] sm:$0xff] }
 0x1b3   :  { %12628 = vmatprep.subr.bf16.mxu0 %v12627_v61  ;;  %12916 = vmatprep.subr.bf16.mxu1 %v12627_v61 }
 0x1b4   :  { %11418 = vmatmul.mubr.f32.gmra.mrb[8].mxu0 %v8873_v4  ;;  %12138 = vmatmul.mubr.f32.gmra.mrb[8].mxu1 %v9210_v9  ;;  %v9222_v4 = vld [vmem:[%s19664_s0 + $0x2d8] sm:$0xff] }
 0x1b5   :  { %11420 = vmatprep.mubr.f32.mxu0 %v8874_v10  ;;  %12140 = vmatprep.mubr.f32.mxu1 %v9211_v20  ;;  %v8886_v9 = vld [vmem:[%s19664_s0 + $0x138] sm:$0xff]  ;;  %v9223_v10 = vld [vmem:[%s19664_s0 + $0x2e8] sm:$0xff]  ;;  %v8887_v20 = vld [vmem:[%s19664_s0 + $0x140] sm:$0xff] }
 0x1b6   :  { %12630 = vmatpush3.bf16.msra.mxu0 %v12627_v61  ;;  %12918 = vmatpush3.bf16.msra.mxu1 %v12627_v61  ;;  %v8884_v61 = vld [vmem:[%s19664_s0 + $0x120] sm:$0xff] }
 0x1b7   :  { %12632 = vmatprep.subr.bf16.mxu0 %v12631_v21  ;;  %12920 = vmatprep.subr.bf16.mxu1 %v12631_v21 }
 0x1b8   :  { %11421 = vmatmul.mubr.f32.gmra.mrb[10].mxu0 %v8875_v27  ;;  %12141 = vmatmul.mubr.f32.gmra.mrb[10].mxu1 %v9212_v28  ;;  %v8889_v27 = vld [vmem:[%s19664_s0 + $0x158] sm:$0xff]  ;;  %v9226_v28 = vld [vmem:[%s19664_s0 + $0x308] sm:$0xff] }
 0x1b9   :  { %11423 = vmatprep.mubr.f32.mxu0 %v8876_v29  ;;  %12143 = vmatprep.mubr.f32.mxu1 %v9213_v33  ;;  %v8890_v29 = vld [vmem:[%s19664_s0 + $0x168] sm:$0xff]  ;;  %v9227_v33 = vld [vmem:[%s19664_s0 + $0x318] sm:$0xff] }
 0x1ba   :  { %12634 = vmatpush3.bf16.msra.mxu0 %v12631_v21  ;;  %12922 = vmatpush3.bf16.msra.mxu1 %v12631_v21  ;;  %v9224_v21 = vld [vmem:[%s19664_s0 + $0x2f0] sm:$0xff] }
 0x1bb   :  { %12636 = vmatprep.subr.bf16.mxu0 %v12635_v34  ;;  %12924 = vmatprep.subr.bf16.mxu1 %v12635_v34 }
 0x1bc   :  { %11424 = vmatmul.mubr.f32.gmra.mrb[12].mxu0 %v8877_v40  ;;  %12144 = vmatmul.mubr.f32.gmra.mrb[12].mxu1 %v9214_v41  ;;  %v9229_v40 = vld [vmem:[%s19664_s0 + $0x330] sm:$0xff]  ;;  %v8893_v41 = vld [vmem:[%s19664_s0 + $0x188] sm:$0xff] }
 0x1bd   :  { %11426 = vmatprep.mubr.f32.mxu0 %v8878_v42  ;;  %12146 = vmatprep.mubr.f32.mxu1 %v9215_v43  ;;  %v9230_v42 = vld [vmem:[%s19664_s0 + $0x338] sm:$0xff] }
 0x1be   :  { %12638 = vmatpush3.bf16.msra.mxu0 %v12635_v34  ;;  %12926 = vmatpush3.bf16.msra.mxu1 %v12635_v34  ;;  %v8891_v34 = vld [vmem:[%s19664_s0 + $0x170] sm:$0xff]  ;;  %v8894_v43 = vld [vmem:[%s19664_s0 + $0x198] sm:$0xff] }
 0x1bf   :  { %12640 = vmatprep.subr.bf16.mxu0 %v12639_v45  ;;  %12928 = vmatprep.subr.bf16.mxu1 %v12639_v45 }
 0x1c0   :  { %11427 = vmatmul.mubr.f32.gmra.mrb[14].mxu0 %v8879_v48  ;;  %12147 = vmatmul.mubr.f32.gmra.mrb[14].mxu1 %v9216_v49  ;;  %v8912_v48 = vld [vmem:[%s19664_s0 + $0x31] sm:$0xff]  ;;  %v9233_v49 = vld [vmem:[%s19664_s0 + $0x1e1] sm:$0xff] }
 0x1c1   :  { %11429 = vmatprep.mubr.f32.mxu0 %v8880_v50  ;;  %12149 = vmatprep.mubr.f32.mxu1 %v9217_v51  ;;  %v8994_v50 = vld [vmem:[%s19665_s1 + $0x410] sm:$0xff]  ;;  %v8995_v51 = vld [vmem:[%s19665_s1 + $0x418] sm:$0xff] }
 0x1c2   :  { %12642 = vmatpush3.bf16.msra.mxu0 %v12639_v45  ;;  %12930 = vmatpush3.bf16.msra.mxu1 %v12639_v45  ;;  %v9231_v45 = vld [vmem:[%s19664_s0 + $0x348] sm:$0xff] }
 0x1c3   :  { %12644 = vmatprep.subr.bf16.mxu0 %v16074_v52  ;;  %12932 = vmatprep.subr.bf16.mxu1 %v16074_v52 }
 0x1c4   :  { %11430 = vmatmul.mubr.f32.gmra.mrb[16].mxu0 %v8881_v53  ;;  %12150 = vmatmul.mubr.f32.gmra.mrb[16].mxu1 %v9218_v54  ;;  %v8913_v53 = vld [vmem:[%s19664_s0 + $0x39] sm:$0xff]  ;;  %v9234_v54 = vld [vmem:[%s19664_s0 + $0x1e9] sm:$0xff] }
 0x1c5   :  { %11432 = vmatprep.mubr.f32.mxu0 %v8882_v55  ;;  %12152 = vmatprep.mubr.f32.mxu1 %v9219_v56  ;;  %v8914_v55 = vld [vmem:[%s19664_s0 + $0x49] sm:$0xff]  ;;  %v9235_v56 = vld [vmem:[%s19664_s0 + $0x1f9] sm:$0xff] }
 0x1c8   :  { %11433 = vmatmul.mubr.f32.gmra.mrb[18].mxu0 %v8883_v59  ;;  %12153 = vmatmul.mubr.f32.gmra.mrb[18].mxu1 %v9220_v60  ;;  %v12647_v59 = vpack.c.bf16 %v8995_v51, %v8994_v50  ;;  %v8996_v60 = vld [vmem:[%s19665_s1 + $0x420] sm:$0xff]  ;;  %v9005_v51 = vld [vmem:[%s19665_s1 + $0x468] sm:$0xff] }
 0x1c9   :  { %11435 = vmatprep.mubr.f32.mxu0 %v8884_v61  ;;  %12155 = vmatprep.mubr.f32.mxu1 %v9221_v2  ;;  %v8997_v61 = vld [vmem:[%s19665_s1 + $0x428] sm:$0xff]  ;;  %v8915_v2 = vld [vmem:[%s19664_s0 + $0x51] sm:$0xff]  ;;  %v9004_v50 = vld [vmem:[%s19665_s1 + $0x460] sm:$0xff] }
 0x1cc   :  { %11436 = vmatmul.mubr.f32.gmra.mrb[20].mxu0 %v8885_v3  ;;  %12156 = vmatmul.mubr.f32.gmra.mrb[20].mxu1 %v9222_v4  ;;  %v9236_v3 = vld [vmem:[%s19664_s0 + $0x201] sm:$0xff] }
 0x1cd   :  { %11438 = vmatprep.mubr.f32.mxu0 %v8886_v9  ;;  %12158 = vmatprep.mubr.f32.mxu1 %v9223_v10  ;;  %v8916_v4 = vld [vmem:[%s19664_s0 + $0x61] sm:$0xff]  ;;  %v9237_v9 = vld [vmem:[%s19664_s0 + $0x211] sm:$0xff] }
 0x1ce   :  { %v8998_v10 = vld [vmem:[%s19665_s1 + $0x430] sm:$0xff] }
 0x1d0   :  { %11439 = vmatmul.mubr.f32.gmra.mrb[22].mxu0 %v8887_v20  ;;  %12159 = vmatmul.mubr.f32.gmra.mrb[22].mxu1 %v9224_v21  ;;  %v8999_v20 = vld [vmem:[%s19665_s1 + $0x438] sm:$0xff]  ;;  %v8917_v21 = vld [vmem:[%s19664_s0 + $0x69] sm:$0xff] }
 0x1d1   :  { %11441 = vmatprep.mubr.f32.mxu0 %v8888_v22  ;;  %12161 = vmatprep.mubr.f32.mxu1 %v9225_v26  ;;  %v9238_v22 = vld [vmem:[%s19664_s0 + $0x219] sm:$0xff] }
 0x1d2   :  { %v8918_v26 = vld [vmem:[%s19664_s0 + $0x79] sm:$0xff] }
 0x1d4   :  { %11442 = vmatmul.mubr.f32.gmra.mrb[24].mxu0 %v8889_v27  ;;  %12162 = vmatmul.mubr.f32.gmra.mrb[24].mxu1 %v9226_v28  ;;  %v9239_v27 = vld [vmem:[%s19664_s0 + $0x229] sm:$0xff]  ;;  %v12655_v28 = vpack.c.bf16 %v8999_v20, %v8998_v10  ;;  %v8927_v10 = vld [vmem:[%s19664_s0 + $0xe1] sm:$0xff]  ;;  %v9248_v20 = vld [vmem:[%s19664_s0 + $0x291] sm:$0xff] }
 0x1d5   :  { %11444 = vmatprep.mubr.f32.mxu0 %v8890_v29  ;;  %12164 = vmatprep.mubr.f32.mxu1 %v9227_v33  ;;  %v9000_v29 = vld [vmem:[%s19665_s1 + $0x440] sm:$0xff]  ;;  %v9001_v33 = vld [vmem:[%s19665_s1 + $0x448] sm:$0xff] }
 0x1d8   :  { %11445 = vmatmul.mubr.f32.gmra.mrb[26].mxu0 %v8891_v34  ;;  %12165 = vmatmul.mubr.f32.gmra.mrb[26].mxu1 %v9228_v35  ;;  %v8919_v34 = vld [vmem:[%s19664_s0 + $0x81] sm:$0xff]  ;;  %v9240_v35 = vld [vmem:[%s19664_s0 + $0x231] sm:$0xff] }
 0x1d9   :  { %11447 = vmatprep.mubr.f32.mxu0 %v8892_v36  ;;  %12167 = vmatprep.mubr.f32.mxu1 %v9229_v40  ;;  %v8920_v36 = vld [vmem:[%s19664_s0 + $0x91] sm:$0xff]  ;;  %v9241_v40 = vld [vmem:[%s19664_s0 + $0x241] sm:$0xff] }
 0x1dc   :  { %11448 = vmatmul.mubr.f32.gmra.mrb[28].mxu0 %v8893_v41  ;;  %12168 = vmatmul.mubr.f32.gmra.mrb[28].mxu1 %v9230_v42  ;;  %v12659_v41 = vpack.c.bf16 %v9001_v33, %v9000_v29  ;;  %v9002_v42 = vld [vmem:[%s19665_s1 + $0x450] sm:$0xff]  ;;  %v9251_v29 = vld [vmem:[%s19664_s0 + $0x2b9] sm:$0xff] }
 0x1dd   :  { %11450 = vmatprep.mubr.f32.mxu0 %v8894_v43  ;;  %12170 = vmatprep.mubr.f32.mxu1 %v9231_v45  ;;  %v9003_v43 = vld [vmem:[%s19665_s1 + $0x458] sm:$0xff] }
 0x1de   :  { %v8921_v45 = vld [vmem:[%s19664_s0 + $0x99] sm:$0xff]  ;;  %v8931_v33 = vld [vmem:[%s19664_s0 + $0x111] sm:$0xff] }
 0x1e0   :  { %11451 = vmatmul.mubr.f32.gmra.mrb[30].mxu0 %v8895_v46  ;;  %12171 = vmatmul.mubr.f32.gmra.mrb[30].mxu1 %v9232_v47  ;;  %v9242_v46 = vld [vmem:[%s19664_s0 + $0x249] sm:$0xff] }
 0x1e1   :  { %11485 = vmatprep.mubr.f32.mxu0 %v8912_v48  ;;  %12205 = vmatprep.mubr.f32.mxu1 %v9233_v49  ;;  %v8922_v47 = vld [vmem:[%s19664_s0 + $0xa9] sm:$0xff]  ;;  %v9243_v48 = vld [vmem:[%s19664_s0 + $0x259] sm:$0xff]  ;;  %v12663_v49 = vpack.c.bf16 %v9003_v43, %v9002_v42 }
 0x1e2   :  { %v8934_v42 = vld [vmem:[%s19664_s0 + $0x139] sm:$0xff]  ;;  %v9255_v43 = vld [vmem:[%s19664_s0 + $0x2e9] sm:$0xff] }
 0x1e4   :  { %11486 = vmatmul.mubr.f32.vlgmr.msra.gmra.mrb[0].mxu0 %v8913_v53  ;;  %12206 = vmatmul.mubr.f32.vlgmr.msra.gmra.mrb[0].mxu1 %v9234_v54  ;;  %v8923_v53 = vld [vmem:[%s19664_s0 + $0xb1] sm:$0xff]  ;;  %v9244_v54 = vld [vmem:[%s19664_s0 + $0x261] sm:$0xff] }
 0x1e5   :  { %12646 = vmatpush3.bf16.msra.mxu0 %v16074_v52  ;;  %12934 = vmatpush3.bf16.msra.mxu1 %v16074_v52  ;;  %v12651_v52 = vpack.c.bf16 %v8997_v61, %v8996_v60  ;;  %v9006_v60 = vld [vmem:[%s19665_s1 + $0x470] sm:$0xff]  ;;  %v9007_v61 = vld [vmem:[%s19665_s1 + $0x478] sm:$0xff] }
 0x1e6   :  { %11488 = vmatprep.mubr.f32.mxu0 %v8914_v55  ;;  %12208 = vmatprep.mubr.f32.mxu1 %v9235_v56  ;;  %v8924_v55 = vld [vmem:[%s19664_s0 + $0xc1] sm:$0xff]  ;;  %v9245_v56 = vld [vmem:[%s19664_s0 + $0x271] sm:$0xff] }
 0x1e7   :  { %12648 = vmatprep.subr.bf16.mxu0 %v12647_v59  ;;  %12936 = vmatprep.subr.bf16.mxu1 %v12647_v59 }
 0x1e8   :  { %11489 = vmatmul.mubr.f32.gmra.mrb[2].mxu0 %v8915_v2  ;;  %12209 = vmatmul.mubr.f32.gmra.mrb[2].mxu1 %v9236_v3  ;;  %v8925_v2 = vld [vmem:[%s19664_s0 + $0xc9] sm:$0xff]  ;;  %v9246_v3 = vld [vmem:[%s19664_s0 + $0x279] sm:$0xff] }
 0x1e9   :  { %11491 = vmatprep.mubr.f32.mxu0 %v8916_v4  ;;  %12211 = vmatprep.mubr.f32.mxu1 %v9237_v9  ;;  %v8926_v4 = vld [vmem:[%s19664_s0 + $0xd9] sm:$0xff]  ;;  %v9247_v9 = vld [vmem:[%s19664_s0 + $0x289] sm:$0xff] }
 0x1ea   :  { %12650 = vmatpush3.bf16.msra.mxu0 %v12647_v59  ;;  %12938 = vmatpush3.bf16.msra.mxu1 %v12647_v59  ;;  %v12667_v59 = vpack.c.bf16 %v9005_v51, %v9004_v50  ;;  %v9258_v50 = vld [vmem:[%s19664_s0 + $0x309] sm:$0xff] }
 0x1eb   :  { %12652 = vmatprep.subr.bf16.mxu0 %v12651_v52  ;;  %12940 = vmatprep.subr.bf16.mxu1 %v12651_v52  ;;  %v8938_v51 = vld [vmem:[%s19664_s0 + $0x169] sm:$0xff] }
 0x1ec   :  { %11492 = vmatmul.mubr.f32.gmra.mrb[4].mxu0 %v8917_v21  ;;  %12212 = vmatmul.mubr.f32.gmra.mrb[4].mxu1 %v9238_v22  ;;  %v8928_v21 = vld [vmem:[%s19664_s0 + $0xf1] sm:$0xff]  ;;  %v9249_v22 = vld [vmem:[%s19664_s0 + $0x2a1] sm:$0xff] }
 0x1ed   :  { %11494 = vmatprep.mubr.f32.mxu0 %v8918_v26  ;;  %12214 = vmatprep.mubr.f32.mxu1 %v9239_v27  ;;  %v8929_v26 = vld [vmem:[%s19664_s0 + $0xf9] sm:$0xff]  ;;  %v9250_v27 = vld [vmem:[%s19664_s0 + $0x2a9] sm:$0xff] }
 0x1ee   :  { %12654 = vmatpush3.bf16.msra.mxu0 %v12651_v52  ;;  %12942 = vmatpush3.bf16.msra.mxu1 %v12651_v52  ;;  %v12671_v52 = vpack.c.bf16 %v9007_v61, %v9006_v60  ;;  %v8941_v60 = vld [vmem:[%s19664_s0 + $0x189] sm:$0xff]  ;;  %v9262_v61 = vld [vmem:[%s19664_s0 + $0x339] sm:$0xff] }
 0x1ef   :  { %12656 = vmatprep.subr.bf16.mxu0 %v12655_v28  ;;  %12944 = vmatprep.subr.bf16.mxu1 %v12655_v28 }
 0x1f0   :  { %11495 = vmatmul.mubr.f32.gmra.mrb[6].mxu0 %v8919_v34  ;;  %12215 = vmatmul.mubr.f32.gmra.mrb[6].mxu1 %v9240_v35  ;;  %v9252_v34 = vld [vmem:[%s19664_s0 + $0x2c1] sm:$0xff] }
 0x1f1   :  { %11497 = vmatprep.mubr.f32.mxu0 %v8920_v36  ;;  %12217 = vmatprep.mubr.f32.mxu1 %v9241_v40  ;;  %v8932_v35 = vld [vmem:[%s19664_s0 + $0x121] sm:$0xff]  ;;  %v9253_v36 = vld [vmem:[%s19664_s0 + $0x2d1] sm:$0xff]  ;;  %v8933_v40 = vld [vmem:[%s19664_s0 + $0x129] sm:$0xff] }
 0x1f2   :  { %12658 = vmatpush3.bf16.msra.mxu0 %v12655_v28  ;;  %12946 = vmatpush3.bf16.msra.mxu1 %v12655_v28  ;;  %v8930_v28 = vld [vmem:[%s19664_s0 + $0x109] sm:$0xff] }
 0x1f3   :  { %12660 = vmatprep.subr.bf16.mxu0 %v12659_v41  ;;  %12948 = vmatprep.subr.bf16.mxu1 %v12659_v41 }
 0x1f4   :  { %11498 = vmatmul.mubr.f32.gmra.mrb[8].mxu0 %v8921_v45  ;;  %12218 = vmatmul.mubr.f32.gmra.mrb[8].mxu1 %v9242_v46  ;;  %v8935_v45 = vld [vmem:[%s19664_s0 + $0x141] sm:$0xff]  ;;  %v9256_v46 = vld [vmem:[%s19664_s0 + $0x2f1] sm:$0xff] }
 0x1f5   :  { %11500 = vmatprep.mubr.f32.mxu0 %v8922_v47  ;;  %12220 = vmatprep.mubr.f32.mxu1 %v9243_v48  ;;  %v8936_v47 = vld [vmem:[%s19664_s0 + $0x151] sm:$0xff]  ;;  %v9257_v48 = vld [vmem:[%s19664_s0 + $0x301] sm:$0xff] }
 0x1f6   :  { %12662 = vmatpush3.bf16.msra.mxu0 %v12659_v41  ;;  %12950 = vmatpush3.bf16.msra.mxu1 %v12659_v41  ;;  %v9254_v41 = vld [vmem:[%s19664_s0 + $0x2d9] sm:$0xff] }
 0x1f7   :  { %12664 = vmatprep.subr.bf16.mxu0 %v12663_v49  ;;  %12952 = vmatprep.subr.bf16.mxu1 %v12663_v49 }
 0x1f8   :  { %11501 = vmatmul.mubr.f32.gmra.mrb[10].mxu0 %v8923_v53  ;;  %12221 = vmatmul.mubr.f32.gmra.mrb[10].mxu1 %v9244_v54  ;;  %v9259_v53 = vld [vmem:[%s19664_s0 + $0x319] sm:$0xff]  ;;  %v8939_v54 = vld [vmem:[%s19664_s0 + $0x171] sm:$0xff] }
 0x1f9   :  { %11503 = vmatprep.mubr.f32.mxu0 %v8924_v55  ;;  %12223 = vmatprep.mubr.f32.mxu1 %v9245_v56  ;;  %v9260_v55 = vld [vmem:[%s19664_s0 + $0x321] sm:$0xff] }
 0x1fa   :  { %12666 = vmatpush3.bf16.msra.mxu0 %v12663_v49  ;;  %12954 = vmatpush3.bf16.msra.mxu1 %v12663_v49  ;;  %v8937_v49 = vld [vmem:[%s19664_s0 + $0x159] sm:$0xff]  ;;  %v8940_v56 = vld [vmem:[%s19664_s0 + $0x181] sm:$0xff] }
 0x1fb   :  { %12668 = vmatprep.subr.bf16.mxu0 %v12667_v59  ;;  %12956 = vmatprep.subr.bf16.mxu1 %v12667_v59 }
 0x1fc   :  { %11504 = vmatmul.mubr.f32.gmra.mrb[12].mxu0 %v8925_v2  ;;  %12224 = vmatmul.mubr.f32.gmra.mrb[12].mxu1 %v9246_v3  ;;  %v8942_v2 = vld [vmem:[%s19664_s0 + $0x199] sm:$0xff]  ;;  %v9263_v3 = vld [vmem:[%s19664_s0 + $0x349] sm:$0xff] }
 0x1fd   :  { %11506 = vmatprep.mubr.f32.mxu0 %v8926_v4  ;;  %12226 = vmatprep.mubr.f32.mxu1 %v9247_v9  ;;  %v8943_v4 = vld [vmem:[%s19664_s0 + $0x1a1] sm:$0xff]  ;;  %v9264_v9 = vld [vmem:[%s19664_s0 + $0x351] sm:$0xff] }
 0x1fe   :  { %12670 = vmatpush3.bf16.msra.mxu0 %v12667_v59  ;;  %12958 = vmatpush3.bf16.msra.mxu1 %v12667_v59  ;;  %v9261_v59 = vld [vmem:[%s19664_s0 + $0x331] sm:$0xff] }
 0x1ff   :  { %12672 = vmatprep.subr.bf16.mxu0 %v12671_v52  ;;  %12960 = vmatprep.subr.bf16.mxu1 %v12671_v52 }
 0x200   :  { %11507 = vmatmul.mubr.f32.gmra.mrb[14].mxu0 %v8927_v10  ;;  %12227 = vmatmul.mubr.f32.gmra.mrb[14].mxu1 %v9248_v20  ;;  %v9265_v10 = vld [vmem:[%s19664_s0 + $0x1e2] sm:$0xff]  ;;  %v8961_v20 = vld [vmem:[%s19664_s0 + $0x3a] sm:$0xff] }
 0x201   :  { %11509 = vmatprep.mubr.f32.mxu0 %v8928_v21  ;;  %12229 = vmatprep.mubr.f32.mxu1 %v9249_v22  ;;  %v9266_v21 = vld [vmem:[%s19664_s0 + $0x1ea] sm:$0xff] }
 0x202   :  { %12674 = vmatpush3.bf16.msra.mxu0 %v12671_v52  ;;  %12962 = vmatpush3.bf16.msra.mxu1 %v12671_v52  ;;  %v8960_v52 = vld [vmem:[%s19664_s0 + $0x32] sm:$0xff]  ;;  %v8962_v22 = vld [vmem:[%s19664_s0 + $0x4a] sm:$0xff] }
 0x204   :  { %11510 = vmatmul.mubr.f32.gmra.mrb[16].mxu0 %v8929_v26  ;;  %12230 = vmatmul.mubr.f32.gmra.mrb[16].mxu1 %v9250_v27  ;;  %v9267_v26 = vld [vmem:[%s19664_s0 + $0x1fa] sm:$0xff]  ;;  %v8963_v27 = vld [vmem:[%s19664_s0 + $0x52] sm:$0xff] }
 0x205   :  { %11512 = vmatprep.mubr.f32.mxu0 %v8930_v28  ;;  %12232 = vmatprep.mubr.f32.mxu1 %v9251_v29  ;;  %v9268_v28 = vld [vmem:[%s19664_s0 + $0x202] sm:$0xff] }
 0x206   :  { %v8964_v29 = vld [vmem:[%s19664_s0 + $0x62] sm:$0xff] }
 0x208   :  { %11513 = vmatmul.mubr.f32.gmra.mrb[18].mxu0 %v8931_v33  ;;  %12233 = vmatmul.mubr.f32.gmra.mrb[18].mxu1 %v9252_v34  ;;  %v9269_v33 = vld [vmem:[%s19664_s0 + $0x212] sm:$0xff]  ;;  %v8965_v34 = vld [vmem:[%s19664_s0 + $0x6a] sm:$0xff] }
 0x209   :  { %11515 = vmatprep.mubr.f32.mxu0 %v8932_v35  ;;  %12235 = vmatprep.mubr.f32.mxu1 %v9253_v36  ;;  %v9270_v35 = vld [vmem:[%s19664_s0 + $0x21a] sm:$0xff] }
 0x20a   :  { %v8966_v36 = vld [vmem:[%s19664_s0 + $0x7a] sm:$0xff] }
 0x20c   :  { %11516 = vmatmul.mubr.f32.gmra.mrb[20].mxu0 %v8933_v40  ;;  %12236 = vmatmul.mubr.f32.gmra.mrb[20].mxu1 %v9254_v41  ;;  %v9271_v40 = vld [vmem:[%s19664_s0 + $0x22a] sm:$0xff]  ;;  %v8967_v41 = vld [vmem:[%s19664_s0 + $0x82] sm:$0xff] }
 0x20d   :  { %11518 = vmatprep.mubr.f32.mxu0 %v8934_v42  ;;  %12238 = vmatprep.mubr.f32.mxu1 %v9255_v43  ;;  %v9272_v42 = vld [vmem:[%s19664_s0 + $0x232] sm:$0xff] }
 0x20e   :  { %v8968_v43 = vld [vmem:[%s19664_s0 + $0x92] sm:$0xff] }
 0x210   :  { %11519 = vmatmul.mubr.f32.gmra.mrb[22].mxu0 %v8935_v45  ;;  %12239 = vmatmul.mubr.f32.gmra.mrb[22].mxu1 %v9256_v46  ;;  %v9273_v45 = vld [vmem:[%s19664_s0 + $0x242] sm:$0xff]  ;;  %v8969_v46 = vld [vmem:[%s19664_s0 + $0x9a] sm:$0xff] }
 0x211   :  { %11521 = vmatprep.mubr.f32.mxu0 %v8936_v47  ;;  %12241 = vmatprep.mubr.f32.mxu1 %v9257_v48  ;;  %v9274_v47 = vld [vmem:[%s19664_s0 + $0x24a] sm:$0xff] }
 0x212   :  { %v8970_v48 = vld [vmem:[%s19664_s0 + $0xaa] sm:$0xff] }
 0x214   :  { %11522 = vmatmul.mubr.f32.gmra.mrb[24].mxu0 %v8937_v49  ;;  %12242 = vmatmul.mubr.f32.gmra.mrb[24].mxu1 %v9258_v50  ;;  %v9275_v49 = vld [vmem:[%s19664_s0 + $0x25a] sm:$0xff]  ;;  %v8971_v50 = vld [vmem:[%s19664_s0 + $0xb2] sm:$0xff] }
 0x215   :  { %11524 = vmatprep.mubr.f32.mxu0 %v8938_v51  ;;  %12244 = vmatprep.mubr.f32.mxu1 %v9259_v53  ;;  %v9276_v51 = vld [vmem:[%s19664_s0 + $0x262] sm:$0xff] }
 0x216   :  { %v8972_v53 = vld [vmem:[%s19664_s0 + $0xc2] sm:$0xff] }
 0x218   :  { %11525 = vmatmul.mubr.f32.gmra.mrb[26].mxu0 %v8939_v54  ;;  %12245 = vmatmul.mubr.f32.gmra.mrb[26].mxu1 %v9260_v55  ;;  %v9277_v54 = vld [vmem:[%s19664_s0 + $0x272] sm:$0xff]  ;;  %v8973_v55 = vld [vmem:[%s19664_s0 + $0xca] sm:$0xff] }
 0x219   :  { %11527 = vmatprep.mubr.f32.mxu0 %v8940_v56  ;;  %12247 = vmatprep.mubr.f32.mxu1 %v9261_v59  ;;  %v9278_v56 = vld [vmem:[%s19664_s0 + $0x27a] sm:$0xff] }
 0x21a   :  { %v8974_v59 = vld [vmem:[%s19664_s0 + $0xda] sm:$0xff] }
 0x21c   :  { %11528 = vmatmul.mubr.f32.gmra.mrb[28].mxu0 %v8941_v60  ;;  %12248 = vmatmul.mubr.f32.gmra.mrb[28].mxu1 %v9262_v61  ;;  %v9279_v60 = vld [vmem:[%s19664_s0 + $0x28a] sm:$0xff]  ;;  %v8975_v61 = vld [vmem:[%s19664_s0 + $0xe2] sm:$0xff] }
 0x21d   :  { %11530 = vmatprep.mubr.f32.mxu0 %v8942_v2  ;;  %12250 = vmatprep.mubr.f32.mxu1 %v9263_v3 }
 0x220   :  { %11531 = vmatmul.mubr.f32.gmra.mrb[30].mxu0 %v8943_v4  ;;  %12251 = vmatmul.mubr.f32.gmra.mrb[30].mxu1 %v9264_v9 }
 0x221   :  { %11565 = vmatprep.mubr.f32.mxu0 %v8960_v52  ;;  %12285 = vmatprep.mubr.f32.mxu1 %v9265_v10 }
 0x224   :  { %11566 = vmatmul.mubr.f32.vlgmr.msra.gmra.mrb[0].mxu0 %v8961_v20  ;;  %12286 = vmatmul.mubr.f32.vlgmr.msra.gmra.mrb[0].mxu1 %v9266_v21 }
 0x225   :  { %11568 = vmatprep.mubr.f32.mxu0 %v8962_v22  ;;  %12288 = vmatprep.mubr.f32.mxu1 %v9267_v26 }
 0x228   :  { %11569 = vmatmul.mubr.f32.gmra.mrb[2].mxu0 %v8963_v27  ;;  %12289 = vmatmul.mubr.f32.gmra.mrb[2].mxu1 %v9268_v28 }
 0x229   :  { %11571 = vmatprep.mubr.f32.mxu0 %v8964_v29  ;;  %12291 = vmatprep.mubr.f32.mxu1 %v9269_v33 }
 0x22c   :  { %11572 = vmatmul.mubr.f32.gmra.mrb[4].mxu0 %v8965_v34  ;;  %12292 = vmatmul.mubr.f32.gmra.mrb[4].mxu1 %v9270_v35 }
 0x22d   :  { %11574 = vmatprep.mubr.f32.mxu0 %v8966_v36  ;;  %12294 = vmatprep.mubr.f32.mxu1 %v9271_v40 }
 0x230   :  { %11575 = vmatmul.mubr.f32.gmra.mrb[6].mxu0 %v8967_v41  ;;  %12295 = vmatmul.mubr.f32.gmra.mrb[6].mxu1 %v9272_v42 }
 0x231   :  { %11577 = vmatprep.mubr.f32.mxu0 %v8968_v43  ;;  %12297 = vmatprep.mubr.f32.mxu1 %v9273_v45 }
 0x234   :  { %11578 = vmatmul.mubr.f32.gmra.mrb[8].mxu0 %v8969_v46  ;;  %12298 = vmatmul.mubr.f32.gmra.mrb[8].mxu1 %v9274_v47 }
 0x235   :  { %11580 = vmatprep.mubr.f32.mxu0 %v8970_v48  ;;  %12300 = vmatprep.mubr.f32.mxu1 %v9275_v49 }
 0x238   :  { %11581 = vmatmul.mubr.f32.gmra.mrb[10].mxu0 %v8971_v50  ;;  %12301 = vmatmul.mubr.f32.gmra.mrb[10].mxu1 %v9276_v51 }
 0x239   :  { %11583 = vmatprep.mubr.f32.mxu0 %v8972_v53  ;;  %12303 = vmatprep.mubr.f32.mxu1 %v9277_v54 }
 0x23c   :  { %11584 = vmatmul.mubr.f32.gmra.mrb[12].mxu0 %v8973_v55  ;;  %12304 = vmatmul.mubr.f32.gmra.mrb[12].mxu1 %v9278_v56 }
 0x23d   :  { %11586 = vmatprep.mubr.f32.mxu0 %v8974_v59  ;;  %12306 = vmatprep.mubr.f32.mxu1 %v9279_v60 }
 0x240   :  { %11587 = vmatmul.mubr.f32.gmra.mrb[14].mxu0 %v8975_v61  ;;  %12307 = vmatmul.mubr.f32.gmra.mrb[14].mxu1 %v15749_v11  ;;  %v8990_v11 = vld [vmem:[%s19664_s0 + $0x19a] sm:$0xff] }
 0x241   :  { %11589 = vmatprep.mubr.f32.mxu0 %v15754_v16  ;;  %12309 = vmatprep.mubr.f32.mxu1 %v15759_v23  ;;  %v9295_v16 = vld [vmem:[%s19664_s0 + $0x34a] sm:$0xff]  ;;  %v8991_v23 = vld [vmem:[%s19664_s0 + $0x1a2] sm:$0xff] }
 0x244   :  { %11590 = vmatmul.mubr.f32.gmra.mrb[16].mxu0 %v15769_v38  ;;  %12310 = vmatmul.mubr.f32.gmra.mrb[16].mxu1 %v15774_v24  ;;  %v9296_v38 = vld [vmem:[%s19664_s0 + $0x352] sm:$0xff]  ;;  %v16541_v24 = vld [vmem:[%s19666_s2] ss:$0 sm:$0xff] }
 0x245   :  { %11592 = vmatprep.mubr.f32.mxu0 %v15779_v25  ;;  %12312 = vmatprep.mubr.f32.mxu1 %v15784_v17 }
 0x248   :  { %11593 = vmatmul.mubr.f32.gmra.mrb[18].mxu0 %v15793_v32  ;;  %12313 = vmatmul.mubr.f32.gmra.mrb[18].mxu1 %v15798_v18 }
 0x249   :  { %11595 = vmatprep.mubr.f32.mxu0 %v15803_v31  ;;  %12315 = vmatprep.mubr.f32.mxu1 %v15808_v44 }
 0x24c   :  { %11596 = vmatmul.mubr.f32.gmra.mrb[20].mxu0 %v15817_v30  ;;  %12316 = vmatmul.mubr.f32.gmra.mrb[20].mxu1 %v15822_v37 }
 0x24d   :  { %11598 = vmatprep.mubr.f32.mxu0 %v15827_v39  ;;  %12318 = vmatprep.mubr.f32.mxu1 %v15832_v57 }
 0x250   :  { %11599 = vmatmul.mubr.f32.gmra.mrb[22].mxu0 %v15841_v58  ;;  %12319 = vmatmul.mubr.f32.gmra.mrb[22].mxu1 %v15846_v62 }
 0x251   :  { %11601 = vmatprep.mubr.f32.mxu0 %v15851_v63  ;;  %12321 = vmatprep.mubr.f32.mxu1 %v15856_v0 }
 0x254   :  { %11602 = vmatmul.mubr.f32.gmra.mrb[24].mxu0 %v15865_v1  ;;  %12322 = vmatmul.mubr.f32.gmra.mrb[24].mxu1 %v15870_v5 }
 0x255   :  { %11604 = vmatprep.mubr.f32.mxu0 %v15875_v6  ;;  %12324 = vmatprep.mubr.f32.mxu1 %v15880_v7 }
 0x258   :  { %11605 = vmatmul.mubr.f32.gmra.mrb[26].mxu0 %v15889_v8  ;;  %12325 = vmatmul.mubr.f32.gmra.mrb[26].mxu1 %v15894_v12 }
 0x259   :  { %11607 = vmatprep.mubr.f32.mxu0 %v15899_v13  ;;  %12327 = vmatprep.mubr.f32.mxu1 %v15904_v14 }
 0x25c   :  { %11608 = vmatmul.mubr.f32.gmra.mrb[28].mxu0 %v15913_v15  ;;  %12328 = vmatmul.mubr.f32.gmra.mrb[28].mxu1 %v15918_v19 }
 0x25d   :  { %11610 = vmatprep.mubr.f32.mxu0 %v8990_v11  ;;  %12330 = vmatprep.mubr.f32.mxu1 %v9295_v16 }
 0x260   :  { %11611 = vmatmul.mubr.f32.gmra.mrb[30].mxu0 %v8991_v23  ;;  %12331 = vmatmul.mubr.f32.gmra.mrb[30].mxu1 %v9296_v38 }
 0x2f7   :  { %v11567_v25 = vpop.f32.mrb[0].mxu0  ;;  %v12287_v17 = vpop.f32.mrb[0].mxu1 }
 0x2f8   :  { %v2750_v32 = vadd.f32 %v11567_v25, %v16541_v24  ;;  %v5527_v18 = vadd.f32 %v12287_v17, %v16541_v24  ;;  %v2551_v31 = vpop.f32.mrb[1].mxu0  ;;  %v5335_v44 = vpop.f32.mrb[1].mxu1 }
 0x2f9   :  { %v2749_v30 = vadd.f32 %v16541_v24, %v2551_v31  ;;  %v5526_v37 = vadd.f32 %v16541_v24, %v5335_v44 }
 0x2fa   :  { %v16547_v39 = vmax.f32 %v2750_v32, 0.0  ;;  %v16549_v57 = vmax.f32 %v5527_v18, 0.0 }
 0x2fb   :  { %v16551_v58 = vmax.f32 %v2749_v30, 0.0  ;;  %v16553_v62 = vmax.f32 %v5526_v37, 0.0  ;;  %v11570_v63 = vpop.f32.mrb[2].mxu0  ;;  %v12290_v0 = vpop.f32.mrb[2].mxu1 }
 0x2fc   :  { %19747 = vst [vmem:[#allocation6_spill] sm:$0xff] %v16549_v57  ;;  %v2815_v1 = vsel %vm2813_vm0, %v16547_v39, 0.0  ;;  %v2885_v5 = vmul.f32 %v16547_v39, %v16547_v39  ;;  %v5591_v6 = vsel %vm2813_vm0, %v16549_v57, 0.0  ;;  %v5661_v7 = vmul.f32 %v16549_v57, %v16549_v57  ;;  %v2561_v8 = vpop.f32.mrb[3].mxu0  ;;  %v5345_v12 = vpop.f32.mrb[3].mxu1 }
 0x2fd   :  { %19748 = vst [vmem:[#allocation7_spill] sm:$0xff] %v16553_v62  ;;  %v2814_v13 = vsel %vm2813_vm0, %v16551_v58, 0.0  ;;  %v2884_v14 = vmul.f32 %v16551_v58, %v16551_v58  ;;  %v5590_v15 = vsel %vm2813_vm0, %v16553_v62, 0.0  ;;  %v5660_v19 = vmul.f32 %v16553_v62, %v16553_v62 }
 0x2fe   :  { %v2917_v2 = vsel %vm2813_vm0, %v2885_v5, 0.0  ;;  %v5693_v3 = vsel %vm2813_vm0, %v5661_v7, 0.0  ;;  %v2752_v52 = vadd.f32 %v11570_v63, %v16541_v24  ;;  %v5529_v10 = vadd.f32 %v12290_v0, %v16541_v24 }
 0x2ff   :  { %v2916_v4 = vsel %vm2813_vm0, %v2884_v14, 0.0  ;;  %v5692_v9 = vsel %vm2813_vm0, %v5660_v19, 0.0  ;;  %v11573_v20 = vpop.f32.mrb[4].mxu0  ;;  %v12293_v21 = vpop.f32.mrb[4].mxu1  ;;  %v2816_v22 = vadd.f32 %v2815_v1, %v2814_v13  ;;  %v5592_v26 = vadd.f32 %v5591_v6, %v5590_v15 }
 0x300   :  { %v2751_v27 = vadd.f32 %v16541_v24, %v2561_v8  ;;  %v5528_v28 = vadd.f32 %v16541_v24, %v5345_v12  ;;  %v2571_v29 = vpop.f32.mrb[5].mxu0  ;;  %v5355_v33 = vpop.f32.mrb[5].mxu1  ;;  %v2918_v34 = vadd.f32 %v2917_v2, %v2916_v4  ;;  %v5694_v35 = vadd.f32 %v5693_v3, %v5692_v9 }
 0x301   :  { %v16579_v36 = vmax.f32 %v2752_v52, 0.0  ;;  %v16581_v40 = vmax.f32 %v5529_v10, 0.0  ;;  %v2754_v43 = vadd.f32 %v11573_v20, %v16541_v24  ;;  %v5531_v45 = vadd.f32 %v12293_v21, %v16541_v24 }
 0x302   :  { %v16583_v41 = vmax.f32 %v2751_v27, 0.0  ;;  %v16585_v42 = vmax.f32 %v5528_v28, 0.0  ;;  %v2753_v48 = vadd.f32 %v16541_v24, %v2571_v29  ;;  %v5530_v49 = vadd.f32 %v16541_v24, %v5355_v33 }
 0x303   :  { %19749 = vst [vmem:[#allocation8_spill] sm:$0xff] %v16581_v40  ;;  %v2887_v46 = vmul.f32 %v16579_v36, %v16579_v36  ;;  %v5663_v47 = vmul.f32 %v16581_v40, %v16581_v40  ;;  %v11576_v50 = vpop.f32.mrb[6].mxu0  ;;  %v12296_v51 = vpop.f32.mrb[6].mxu1  ;;  %v2819_v61 = vsel %vm2813_vm0, %v16579_v36, 0.0  ;;  %v5595_v11 = vsel %vm2813_vm0, %v16581_v40, 0.0 }
 0x304   :  { %19750 = vst [vmem:[#allocation9_spill] sm:$0xff] %v16585_v42  ;;  %v2817_v53 = vsel %vm2813_vm0, %v16583_v41, 0.0  ;;  %v2886_v54 = vmul.f32 %v16583_v41, %v16583_v41  ;;  %v5593_v55 = vsel %vm2813_vm0, %v16585_v42, 0.0  ;;  %v5662_v56 = vmul.f32 %v16585_v42, %v16585_v42  ;;  %v2581_v59 = vpop.f32.mrb[7].mxu0  ;;  %v5365_v60 = vpop.f32.mrb[7].mxu1 }
 0x305   :  { %v2818_v16 = vadd.f32 %v2817_v53, %v2816_v22  ;;  %v5594_v23 = vadd.f32 %v5593_v55, %v5592_v26  ;;  %v16609_v17 = vmax.f32 %v2754_v43, 0.0  ;;  %v16611_v32 = vmax.f32 %v5531_v45, 0.0 }
 0x306   :  { %v2919_v38 = vsel %vm2813_vm0, %v2886_v54, 0.0  ;;  %v5695_v25 = vsel %vm2813_vm0, %v5662_v56, 0.0  ;;  %v16613_v44 = vmax.f32 %v2753_v48, 0.0  ;;  %v2921_v0 = vsel %vm2813_vm0, %v2887_v46, 0.0 }
 0x307   :  { %19751 = vst [vmem:[#allocation10_spill] sm:$0xff] %v16611_v32  ;;  %v2920_v18 = vadd.f32 %v2919_v38, %v2918_v34  ;;  %v5696_v31 = vadd.f32 %v5695_v25, %v5694_v35  ;;  %v2820_v30 = vadd.f32 %v2819_v61, %v2818_v16  ;;  %v11579_v37 = vpop.f32.mrb[8].mxu0  ;;  %v16615_v63 = vpop.f32.mrb[8].mxu1  ;;  %v5697_v1 = vsel %vm2813_vm0, %v5663_v47, 0.0 }
 0x308   :  { %v2823_v5 = vsel %vm2813_vm0, %v16609_v17, 0.0  ;;  %v2889_v6 = vmul.f32 %v16609_v17, %v16609_v17  ;;  %v2591_v7 = vpop.f32.mrb[9].mxu0  ;;  %v16623_v8 = vpop.f32.mrb[9].mxu1  ;;  %v2821_v12 = vsel %vm2813_vm0, %v16613_v44, 0.0  ;;  %v2888_v13 = vmul.f32 %v16613_v44, %v16613_v44 }
 0x309   :  { %v2922_v14 = vadd.f32 %v2921_v0, %v2920_v18  ;;  %v16629_v15 = vmax.f32 %v5530_v49, 0.0  ;;  %v5599_v19 = vsel %vm2813_vm0, %v16611_v32, 0.0  ;;  %v5665_v2 = vmul.f32 %v16611_v32, %v16611_v32 }
 0x30a   :  { %v2822_v3 = vadd.f32 %v2821_v12, %v2820_v30  ;;  %v5596_v4 = vadd.f32 %v5595_v11, %v5594_v23  ;;  %v2923_v9 = vsel %vm2813_vm0, %v2888_v13, 0.0  ;;  %v5698_v20 = vadd.f32 %v5697_v1, %v5696_v31 }
 0x30b   :  { %19752 = vst [vmem:[#allocation11_spill] sm:$0xff] %v16629_v15  ;;  %v5597_v52 = vsel %vm2813_vm0, %v16629_v15, 0.0  ;;  %v5664_v10 = vmul.f32 %v16629_v15, %v16629_v15  ;;  %v11582_v21 = vpop.f32.mrb[10].mxu0  ;;  %v16640_v22 = vpop.f32.mrb[10].mxu1  ;;  %v2924_v26 = vadd.f32 %v2923_v9, %v2922_v14  ;;  %v2756_v28 = vadd.f32 %v11576_v50, %v16541_v24 }
 0x30c   :  { %v5598_v27 = vadd.f32 %v5597_v52, %v5596_v4  ;;  %v5533_v29 = vadd.f32 %v12296_v51, %v16541_v24  ;;  %v16644_v33 = vpop.f32.mrb[11].mxu0  ;;  %v16646_v34 = vpop.f32.mrb[11].mxu1  ;;  %v2925_v35 = vsel %vm2813_vm0, %v2889_v6, 0.0  ;;  %v2755_v45 = vadd.f32 %v16541_v24, %v2581_v59 }
 0x30d   :  { %v5699_v43 = vsel %vm2813_vm0, %v5664_v10, 0.0  ;;  %v5532_v46 = vadd.f32 %v16541_v24, %v5365_v60  ;;  %v16652_v48 = vmax.f32 %v2756_v28, 0.0  ;;  %v2824_v50 = vadd.f32 %v2823_v5, %v2822_v3 }
 0x30e   :  { %v5700_v47 = vadd.f32 %v5699_v43, %v5698_v20  ;;  %v16654_v49 = vmax.f32 %v5533_v29, 0.0  ;;  %v16656_v53 = vmax.f32 %v2755_v45, 0.0  ;;  %v5600_v54 = vadd.f32 %v5599_v19, %v5598_v27 }
 0x30f   :  { %v16658_v51 = vmax.f32 %v5532_v46, 0.0  ;;  %v2758_v55 = vadd.f32 %v11579_v37, %v16541_v24  ;;  %v16661_v56 = vpop.f32.mrb[12].mxu0  ;;  %v16663_v61 = vpop.f32.mrb[12].mxu1  ;;  %v5701_v59 = vsel %vm2813_vm0, %v5665_v2, 0.0  ;;  %v2891_v60 = vmul.f32 %v16652_v48, %v16652_v48 }
 0x310   :  { %19753 = vst [vmem:[#allocation12_spill] sm:$0xff] %v16654_v49  ;;  %v5667_v11 = vmul.f32 %v16654_v49, %v16654_v49  ;;  %v2926_v16 = vadd.f32 %v2925_v35, %v2924_v26  ;;  %v16670_v23 = vpop.f32.mrb[13].mxu0  ;;  %v16672_v38 = vpop.f32.mrb[13].mxu1  ;;  %v2825_v25 = vsel %vm2813_vm0, %v16656_v53, 0.0  ;;  %v2890_v18 = vmul.f32 %v16656_v53, %v16656_v53 }
 0x311   :  { %19754 = vst [vmem:[#allocation13_spill] sm:$0xff] %v16658_v51  ;;  %v5601_v31 = vsel %vm2813_vm0, %v16658_v51, 0.0  ;;  %v5666_v30 = vmul.f32 %v16658_v51, %v16658_v51  ;;  %v2827_v37 = vsel %vm2813_vm0, %v16652_v48, 0.0  ;;  %v5603_v0 = vsel %vm2813_vm0, %v16654_v49, 0.0 }
 0x312   :  { %v2826_v1 = vadd.f32 %v2825_v25, %v2824_v50  ;;  %v5602_v5 = vadd.f32 %v5601_v31, %v5600_v54  ;;  %v2927_v6 = vsel %vm2813_vm0, %v2890_v18, 0.0  ;;  %v5702_v12 = vadd.f32 %v5701_v59, %v5700_v47 }
 0x313   :  { %v5703_v13 = vsel %vm2813_vm0, %v5666_v30, 0.0  ;;  %v16688_v14 = vmax.f32 %v2758_v55, 0.0  ;;  %v16690_v19 = vpop.f32.mrb[14].mxu0  ;;  %v16692_v2 = vpop.f32.mrb[14].mxu1  ;;  %v2929_v3 = vsel %vm2813_vm0, %v2891_v60, 0.0  ;;  %v2928_v4 = vadd.f32 %v2927_v6, %v2926_v16 }
 0x314   :  { %v5535_v9 = vadd.f32 %v16615_v63, %v16541_v24  ;;  %v2757_v52 = vadd.f32 %v16541_v24, %v2591_v7  ;;  %v16698_v10 = vpop.f32.mrb[15].mxu0  ;;  %v16700_v20 = vpop.f32.mrb[15].mxu1  ;;  %v5705_v26 = vsel %vm2813_vm0, %v5667_v11, 0.0  ;;  %v5704_v27 = vadd.f32 %v5703_v13, %v5702_v12 }
 0x315   :  { %v2828_v28 = vadd.f32 %v2827_v37, %v2826_v1  ;;  %v5534_v29 = vadd.f32 %v16541_v24, %v16623_v8  ;;  %v2893_v35 = vmul.f32 %v16688_v14, %v16688_v14  ;;  %v5604_v63 = vadd.f32 %v5603_v0, %v5602_v5 }
 0x316   :  { %v16707_v43 = vmax.f32 %v5535_v9, 0.0  ;;  %v16709_v45 = vmax.f32 %v2757_v52, 0.0  ;;  %v2831_v7 = vsel %vm2813_vm0, %v16688_v14, 0.0  ;;  %v2930_v46 = vadd.f32 %v2929_v3, %v2928_v4 }
 0x317   :  { %v16713_v47 = vmax.f32 %v5534_v29, 0.0  ;;  %v2760_v50 = vadd.f32 %v11582_v21, %v16541_v24  ;;  %v16716_v54 = vpop.f32.mrb[16].mxu0  ;;  %v16718_v55 = vpop.f32.mrb[16].mxu1  ;;  %v5706_v11 = vadd.f32 %v5705_v26, %v5704_v27  ;;  %v2933_v37 = vsel %vm2813_vm0, %v2893_v35, 0.0 }
 0x318   :  { %19755 = vst [vmem:[#allocation14_spill] sm:$0xff] %v16707_v43  ;;  %v5669_v8 = vmul.f32 %v16707_v43, %v16707_v43  ;;  %v2829_v59 = vsel %vm2813_vm0, %v16709_v45, 0.0  ;;  %v2892_v60 = vmul.f32 %v16709_v45, %v16709_v45  ;;  %v16726_v16 = vpop.f32.mrb[17].mxu0  ;;  %v16728_v25 = vpop.f32.mrb[17].mxu1  ;;  %v5537_v5 = vadd.f32 %v16640_v22, %v16541_v24 }
 0x319   :  { %19756 = vst [vmem:[#allocation15_spill] sm:$0xff] %v16713_v47  ;;  %v2830_v18 = vadd.f32 %v2829_v59, %v2828_v28  ;;  %v5605_v21 = vsel %vm2813_vm0, %v16713_v47, 0.0  ;;  %v5668_v31 = vmul.f32 %v16713_v47, %v16713_v47  ;;  %v16734_v30 = vmax.f32 %v2760_v50, 0.0 }
 0x31a   :  { %v2931_v0 = vsel %vm2813_vm0, %v2892_v60, 0.0  ;;  %v5606_v1 = vadd.f32 %v5605_v21, %v5604_v63  ;;  %v5607_v6 = vsel %vm2813_vm0, %v16707_v43, 0.0  ;;  %v5709_v52 = vsel %vm2813_vm0, %v5669_v8, 0.0 }
 0x31b   :  { %19757 = vst [vmem:[#allocation16_spill] sm:$0xff] %v16734_v30  ;;  %v2932_v12 = vadd.f32 %v2931_v0, %v2930_v46  ;;  %v5707_v13 = vsel %vm2813_vm0, %v5668_v31, 0.0  ;;  %v2895_v3 = vmul.f32 %v16734_v30, %v16734_v30  ;;  %v16745_v4 = vpop.f32.mrb[18].mxu0  ;;  %v16747_v9 = vpop.f32.mrb[18].mxu1  ;;  %v16750_v27 = vmax.f32 %v5537_v5, 0.0 }
 0x31c   :  { %v5708_v26 = vadd.f32 %v5707_v13, %v5706_v11  ;;  %v2759_v22 = vadd.f32 %v16541_v24, %v16644_v33  ;;  %v16754_v28 = vpop.f32.mrb[19].mxu0  ;;  %v16756_v29 = vpop.f32.mrb[19].mxu1  ;;  %v2835_v35 = vsel %vm2813_vm0, %v16734_v30, 0.0  ;;  %v2832_v46 = vadd.f32 %v2831_v7, %v2830_v18 }
 0x31d   :  { %19758 = vst [vmem:[#allocation17_spill] sm:$0xff] %v16750_v27  ;;  %v2937_v63 = vsel %vm2813_vm0, %v2895_v3, 0.0  ;;  %v5536_v50 = vadd.f32 %v16541_v24, %v16646_v34  ;;  %v5671_v8 = vmul.f32 %v16750_v27, %v16750_v27  ;;  %v2934_v60 = vadd.f32 %v2933_v37, %v2932_v12 }
 0x31e   :  { %v16765_v59 = vmax.f32 %v2759_v22, 0.0  ;;  %v5608_v33 = vadd.f32 %v5607_v6, %v5606_v1  ;;  %v2762_v21 = vadd.f32 %v16661_v56, %v16541_v24  ;;  %v5539_v31 = vadd.f32 %v16663_v61, %v16541_v24 }
 0x31f   :  { %v16767_v11 = vmax.f32 %v5536_v50, 0.0  ;;  %v2761_v7 = vadd.f32 %v16541_v24, %v16670_v23  ;;  %v16775_v18 = vpop.f32.mrb[20].mxu0  ;;  %v16777_v34 = vpop.f32.mrb[20].mxu1  ;;  %v5710_v1 = vadd.f32 %v5709_v52, %v5708_v26  ;;  %v5538_v56 = vadd.f32 %v16541_v24, %v16672_v38 }
 0x320   :  { %v2833_v0 = vsel %vm2813_vm0, %v16765_v59, 0.0  ;;  %v2894_v37 = vmul.f32 %v16765_v59, %v16765_v59  ;;  %v16785_v5 = vpop.f32.mrb[21].mxu0  ;;  %v16787_v61 = vpop.f32.mrb[21].mxu1  ;;  %v16793_v13 = vmax.f32 %v2762_v21, 0.0  ;;  %v16796_v52 = vmax.f32 %v5539_v31, 0.0 }
 0x321   :  { %19759 = vst [vmem:[#allocation18_spill] sm:$0xff] %v16767_v11  ;;  %v2834_v6 = vadd.f32 %v2833_v0, %v2832_v46  ;;  %v5609_v23 = vsel %vm2813_vm0, %v16767_v11, 0.0  ;;  %v5670_v12 = vmul.f32 %v16767_v11, %v16767_v11  ;;  %v16798_v26 = vmax.f32 %v2761_v7, 0.0 }
 0x322   :  { %19760 = vst [vmem:[#allocation19_spill] sm:$0xff] %v16793_v13  ;;  %v2935_v3 = vsel %vm2813_vm0, %v2894_v37, 0.0  ;;  %v5610_v22 = vadd.f32 %v5609_v23, %v5608_v33  ;;  %19761 = vst [vmem:[#allocation20_spill] sm:$0xff] %v16796_v52  ;;  %v5611_v38 = vsel %vm2813_vm0, %v16750_v27, 0.0  ;;  %v5713_v46 = vsel %vm2813_vm0, %v5671_v8, 0.0 }
 0x323   :  { %19762 = vst [vmem:[#allocation21_spill] sm:$0xff] %v16798_v26  ;;  %v2936_v50 = vadd.f32 %v2935_v3, %v2934_v60  ;;  %v5711_v0 = vsel %vm2813_vm0, %v5670_v12, 0.0  ;;  %v16804_v43 = vpop.f32.mrb[22].mxu0  ;;  %v16806_v11 = vpop.f32.mrb[22].mxu1  ;;  %v2839_v33 = vsel %vm2813_vm0, %v16793_v13, 0.0  ;;  %v2897_v31 = vmul.f32 %v16793_v13, %v16793_v13 }
 0x324   :  { %v5712_v21 = vadd.f32 %v5711_v0, %v5710_v1  ;;  %v2836_v7 = vadd.f32 %v2835_v35, %v2834_v6  ;;  %v16812_v37 = vpop.f32.mrb[23].mxu0  ;;  %v16814_v23 = vpop.f32.mrb[23].mxu1  ;;  %v5615_v8 = vsel %vm2813_vm0, %v16796_v52, 0.0  ;;  %v2837_v60 = vsel %vm2813_vm0, %v16798_v26, 0.0 }
 0x325   :  { %v2896_v1 = vmul.f32 %v16798_v26, %v16798_v26  ;;  %v2938_v12 = vadd.f32 %v2937_v63, %v2936_v50  ;;  %v5673_v3 = vmul.f32 %v16796_v52, %v16796_v52  ;;  %v16824_v27 = vmax.f32 %v5538_v56, 0.0 }
 0x326   :  { %v2838_v0 = vadd.f32 %v2837_v60, %v2836_v7  ;;  %v5612_v35 = vadd.f32 %v5611_v38, %v5610_v22  ;;  %v5714_v47 = vadd.f32 %v5713_v46, %v5712_v21  ;;  %v2764_v49 = vadd.f32 %v16690_v19, %v16541_v24 }
 0x327   :  { %19763 = vst [vmem:[#allocation22_spill] sm:$0xff] %v16824_v27  ;;  %v2939_v6 = vsel %vm2813_vm0, %v2896_v1, 0.0  ;;  %v5541_v51 = vadd.f32 %v16692_v2, %v16541_v24  ;;  %v16831_v32 = vpop.f32.mrb[24].mxu0  ;;  %v16833_v15 = vpop.f32.mrb[24].mxu1  ;;  %v5613_v50 = vsel %vm2813_vm0, %v16824_v27, 0.0  ;;  %v5672_v56 = vmul.f32 %v16824_v27, %v16824_v27 }
 0x328   :  { %v2940_v63 = vadd.f32 %v2939_v6, %v2938_v12  ;;  %v2763_v22 = vadd.f32 %v16541_v24, %v16698_v10  ;;  %v16841_v38 = vpop.f32.mrb[25].mxu0  ;;  %v16843_v19 = vpop.f32.mrb[25].mxu1  ;;  %v5614_v46 = vadd.f32 %v5613_v50, %v5612_v35  ;;  %v16845_v2 = vmax.f32 %v2764_v49, 0.0 }
 0x329   :  { %v16847_v21 = vmax.f32 %v5541_v51, 0.0  ;;  %v2840_v7 = vadd.f32 %v2839_v33, %v2838_v0  ;;  %v2941_v60 = vsel %vm2813_vm0, %v2897_v31, 0.0  ;;  %v5715_v1 = vsel %vm2813_vm0, %v5672_v56, 0.0 }
 0x32a   :  { %19764 = vst [vmem:[#allocation23_spill] sm:$0xff] %v16845_v2  ;;  %v16851_v12 = vmax.f32 %v2763_v22, 0.0  ;;  %v5540_v6 = vadd.f32 %v16541_v24, %v16700_v20  ;;  %v5717_v10 = vsel %vm2813_vm0, %v5673_v3, 0.0  ;;  %v5716_v52 = vadd.f32 %v5715_v1, %v5714_v47 }
 0x32b   :  { %19765 = vst [vmem:[#allocation24_spill] sm:$0xff] %v16847_v21  ;;  %v2843_v35 = vsel %vm2813_vm0, %v16845_v2, 0.0  ;;  %v2942_v49 = vadd.f32 %v2941_v60, %v2940_v63  ;;  %v16858_v50 = vpop.f32.mrb[26].mxu0  ;;  %v16860_v51 = vpop.f32.mrb[26].mxu1  ;;  %v2899_v33 = vmul.f32 %v16845_v2, %v16845_v2  ;;  %v5619_v63 = vsel %vm2813_vm0, %v16847_v21, 0.0 }
 0x32c   :  { %19766 = vst [vmem:[#allocation25_spill] sm:$0xff] %v16851_v12  ;;  %v2841_v31 = vsel %vm2813_vm0, %v16851_v12, 0.0  ;;  %v2898_v20 = vmul.f32 %v16851_v12, %v16851_v12  ;;  %v16868_v0 = vmax.f32 %v5540_v6, 0.0  ;;  %v16870_v47 = vpop.f32.mrb[27].mxu0  ;;  %v16872_v3 = vpop.f32.mrb[27].mxu1  ;;  %v5616_v22 = vadd.f32 %v5615_v8, %v5614_v46 }
 0x32d   :  { %v2842_v56 = vadd.f32 %v2841_v31, %v2840_v7  ;;  %v5718_v60 = vadd.f32 %v5717_v10, %v5716_v52  ;;  %v5675_v1 = vmul.f32 %v16847_v21, %v16847_v21  ;;  %v2766_v62 = vadd.f32 %v16716_v54, %v16541_v24 }
 0x32e   :  { %19767 = vst [vmem:[#allocation26_spill] sm:$0xff] %v16868_v0  ;;  %v2943_v27 = vsel %vm2813_vm0, %v2898_v20, 0.0  ;;  %v5617_v40 = vsel %vm2813_vm0, %v16868_v0, 0.0  ;;  %v5674_v6 = vmul.f32 %v16868_v0, %v16868_v0  ;;  %v5543_v8 = vadd.f32 %v16718_v55, %v16541_v24 }
 0x32f   :  { %v2944_v42 = vadd.f32 %v2943_v27, %v2942_v49  ;;  %v5618_v57 = vadd.f32 %v5617_v40, %v5616_v22  ;;  %v16887_v52 = vpop.f32.mrb[28].mxu0  ;;  %v16889_v46 = vpop.f32.mrb[28].mxu1  ;;  %v2945_v7 = vsel %vm2813_vm0, %v2899_v33, 0.0  ;;  %v2765_v31 = vadd.f32 %v16541_v24, %v16726_v16 }
 0x330   :  { %v5719_v10 = vsel %vm2813_vm0, %v5674_v6, 0.0  ;;  %v5542_v40 = vadd.f32 %v16541_v24, %v16728_v25  ;;  %v16897_v27 = vpop.f32.mrb[29].mxu0  ;;  %v16899_v54 = vpop.f32.mrb[29].mxu1  ;;  %v16901_v55 = vmax.f32 %v2766_v62, 0.0  ;;  %v16903_v20 = vmax.f32 %v5543_v8, 0.0 }
 0x331   :  { %v5720_v49 = vadd.f32 %v5719_v10, %v5718_v60  ;;  %v2844_v22 = vadd.f32 %v2843_v35, %v2842_v56  ;;  %v16905_v21 = vmax.f32 %v2765_v31, 0.0  ;;  %v5620_v6 = vadd.f32 %v5619_v63, %v5618_v57 }
 0x332   :  { %19768 = vst [vmem:[#allocation27_spill] sm:$0xff] %v16901_v55  ;;  %19769 = vst [vmem:[#allocation28_spill] sm:$0xff] %v16903_v20  ;;  %v16907_v33 = vmax.f32 %v5542_v40, 0.0  ;;  %v2768_v16 = vadd.f32 %v16745_v4, %v16541_v24  ;;  %v5721_v25 = vsel %vm2813_vm0, %v5675_v1, 0.0  ;;  %v2901_v0 = vmul.f32 %v16901_v55, %v16901_v55 }
 0x333   :  { %19770 = vst [vmem:[#allocation29_spill] sm:$0xff] %v16905_v21  ;;  %v5677_v62 = vmul.f32 %v16903_v20, %v16903_v20  ;;  %v2946_v60 = vadd.f32 %v2945_v7, %v2944_v42  ;;  %v16916_v8 = vpop.f32.mrb[30].mxu0  ;;  %v16918_v35 = vpop.f32.mrb[30].mxu1  ;;  %v2845_v56 = vsel %vm2813_vm0, %v16905_v21, 0.0  ;;  %v2900_v57 = vmul.f32 %v16905_v21, %v16905_v21 }
 0x334   :  { %19771 = vst [vmem:[#allocation30_spill] sm:$0xff] %v16907_v33  ;;  %v5621_v4 = vsel %vm2813_vm0, %v16907_v33, 0.0  ;;  %v5676_v63 = vmul.f32 %v16907_v33, %v16907_v33  ;;  %v16928_v1 = vpop.f32.mrb[31].mxu0  ;;  %v16930_v10 = vpop.f32.mrb[31].mxu1  ;;  %v2847_v42 = vsel %vm2813_vm0, %v16901_v55, 0.0  ;;  %v5623_v7 = vsel %vm2813_vm0, %v16903_v20, 0.0 }
 0x335   :  { %v2846_v31 = vadd.f32 %v2845_v56, %v2844_v22  ;;  %v5622_v40 = vadd.f32 %v5621_v4, %v5620_v6  ;;  %v2947_v21 = vsel %vm2813_vm0, %v2900_v57, 0.0  ;;  %v5722_v2 = vadd.f32 %v5721_v25, %v5720_v49 }
 0x336   :  { %v5723_v12 = vsel %vm2813_vm0, %v5676_v63, 0.0  ;;  %v16938_v13 = vmax.f32 %v2768_v16, 0.0  ;;  %v2949_v33 = vsel %vm2813_vm0, %v2901_v0, 0.0  ;;  %v2948_v26 = vadd.f32 %v2947_v21, %v2946_v60 }
 0x337   :  { %v5545_v30 = vadd.f32 %v16747_v9, %v16541_v24  ;;  %v2767_v55 = vadd.f32 %v16541_v24, %v16754_v28  ;;  %v5725_v20 = vsel %vm2813_vm0, %v5677_v62, 0.0  ;;  %v5724_v22 = vadd.f32 %v5723_v12, %v5722_v2 }
 0x338   :  { %v2848_v6 = vadd.f32 %v2847_v42, %v2846_v31  ;;  %v5544_v49 = vadd.f32 %v16541_v24, %v16756_v29  ;;  %v2903_v16 = vmul.f32 %v16938_v13, %v16938_v13  ;;  %v5624_v21 = vadd.f32 %v5623_v7, %v5622_v40 }
 0x339   :  { %v16950_v25 = vmax.f32 %v5545_v30, 0.0  ;;  %v16952_v0 = vmax.f32 %v2767_v55, 0.0  ;;  %v2851_v9 = vsel %vm2813_vm0, %v16938_v13, 0.0  ;;  %v2950_v60 = vadd.f32 %v2949_v33, %v2948_v26 }
 0x33a   :  { %v16956_v28 = vmax.f32 %v5544_v49, 0.0  ;;  %v2770_v2 = vadd.f32 %v16775_v18, %v16541_v24  ;;  %v5726_v55 = vadd.f32 %v5725_v20, %v5724_v22  ;;  %v2953_v18 = vsel %vm2813_vm0, %v2903_v16, 0.0 }
 0x33b   :  { %v5679_v29 = vmul.f32 %v16950_v25, %v16950_v25  ;;  %v2849_v12 = vsel %vm2813_vm0, %v16952_v0, 0.0  ;;  %v2902_v30 = vmul.f32 %v16952_v0, %v16952_v0  ;;  %v5547_v63 = vadd.f32 %v16777_v34, %v16541_v24 }
 0x33c   :  { %v2850_v62 = vadd.f32 %v2849_v12, %v2848_v6  ;;  %v5625_v56 = vsel %vm2813_vm0, %v16956_v28, 0.0  ;;  %v5678_v26 = vmul.f32 %v16956_v28, %v16956_v28  ;;  %v16970_v33 = vmax.f32 %v2770_v2, 0.0 }
 0x33d   :  { %v2951_v57 = vsel %vm2813_vm0, %v2902_v30, 0.0  ;;  %v5626_v4 = vadd.f32 %v5625_v56, %v5624_v21  ;;  %v5627_v20 = vsel %vm2813_vm0, %v16950_v25, 0.0  ;;  %v5729_v40 = vsel %vm2813_vm0, %v5679_v29, 0.0 }
 0x33e   :  { %v2952_v42 = vadd.f32 %v2951_v57, %v2950_v60  ;;  %v5727_v7 = vsel %vm2813_vm0, %v5678_v26, 0.0  ;;  %v2905_v31 = vmul.f32 %v16970_v33, %v16970_v33  ;;  %v16982_v6 = vmax.f32 %v5547_v63, 0.0 }
 0x33f   :  { %v5728_v22 = vadd.f32 %v5727_v7, %v5726_v55  ;;  %v2769_v49 = vadd.f32 %v16541_v24, %v16785_v5  ;;  %v2855_v34 = vsel %vm2813_vm0, %v16970_v33, 0.0  ;;  %v2852_v21 = vadd.f32 %v2851_v9, %v2850_v62 }
 0x340   :  { %v2957_v16 = vsel %vm2813_vm0, %v2905_v31, 0.0  ;;  %v5546_v60 = vadd.f32 %v16541_v24, %v16787_v61  ;;  %v5681_v2 = vmul.f32 %v16982_v6, %v16982_v6  ;;  %v2954_v29 = vadd.f32 %v2953_v18, %v2952_v42 }
 0x341   :  { %v16993_v12 = vmax.f32 %v2769_v49, 0.0  ;;  %v5628_v30 = vadd.f32 %v5627_v20, %v5626_v4  ;;  %v2772_v5 = vadd.f32 %v16804_v43, %v16541_v24  ;;  %v5549_v56 = vadd.f32 %v16806_v11, %v16541_v24 }
 0x342   :  { %v16995_v55 = vmax.f32 %v5546_v60, 0.0  ;;  %v2771_v9 = vadd.f32 %v16541_v24, %v16812_v37  ;;  %v5730_v26 = vadd.f32 %v5729_v40, %v5728_v22  ;;  %v5548_v18 = vadd.f32 %v16541_v24, %v16814_v23 }
 0x343   :  { %v2853_v61 = vsel %vm2813_vm0, %v16993_v12, 0.0  ;;  %v2904_v62 = vmul.f32 %v16993_v12, %v16993_v12  ;;  %v17013_v4 = vmax.f32 %v2772_v5, 0.0  ;;  %v17016_v20 = vmax.f32 %v5549_v56, 0.0 }
 0x344   :  { %v2854_v57 = vadd.f32 %v2853_v61, %v2852_v21  ;;  %v5629_v43 = vsel %vm2813_vm0, %v16995_v55, 0.0  ;;  %v5680_v11 = vmul.f32 %v16995_v55, %v16995_v55  ;;  %v17018_v42 = vmax.f32 %v2771_v9, 0.0 }
 0x345   :  { %v2955_v37 = vsel %vm2813_vm0, %v2904_v62, 0.0  ;;  %v5630_v63 = vadd.f32 %v5629_v43, %v5628_v30  ;;  %v5631_v7 = vsel %vm2813_vm0, %v16982_v6, 0.0  ;;  %v5733_v23 = vsel %vm2813_vm0, %v5681_v2, 0.0 }
 0x346   :  { %v2956_v31 = vadd.f32 %v2955_v37, %v2954_v29  ;;  %v5731_v40 = vsel %vm2813_vm0, %v5680_v11, 0.0  ;;  %v2859_v49 = vsel %vm2813_vm0, %v17013_v4, 0.0  ;;  %v2907_v21 = vmul.f32 %v17013_v4, %v17013_v4 }
 0x347   :  { %v5732_v22 = vadd.f32 %v5731_v40, %v5730_v26  ;;  %v2856_v60 = vadd.f32 %v2855_v34, %v2854_v57  ;;  %v5635_v30 = vsel %vm2813_vm0, %v17016_v20, 0.0  ;;  %v2857_v5 = vsel %vm2813_vm0, %v17018_v42, 0.0 }
 0x348   :  { %v2906_v2 = vmul.f32 %v17018_v42, %v17018_v42  ;;  %v2958_v29 = vadd.f32 %v2957_v16, %v2956_v31  ;;  %v5683_v56 = vmul.f32 %v17016_v20, %v17016_v20  ;;  %v17036_v61 = vmax.f32 %v5548_v18, 0.0 }
 0x349   :  { %v2858_v9 = vadd.f32 %v2857_v5, %v2856_v60  ;;  %v5632_v62 = vadd.f32 %v5631_v7, %v5630_v63  ;;  %v5734_v34 = vadd.f32 %v5733_v23, %v5732_v22  ;;  %v2774_v57 = vadd.f32 %v16831_v32, %v16541_v24 }
 0x34a   :  { %v2959_v26 = vsel %vm2813_vm0, %v2906_v2, 0.0  ;;  %v5551_v43 = vadd.f32 %v16833_v15, %v16541_v24  ;;  %v5633_v16 = vsel %vm2813_vm0, %v17036_v61, 0.0  ;;  %v5682_v37 = vmul.f32 %v17036_v61, %v17036_v61 }
 0x34b   :  { %v2960_v11 = vadd.f32 %v2959_v26, %v2958_v29  ;;  %v2773_v18 = vadd.f32 %v16541_v24, %v16841_v38  ;;  %v5634_v63 = vadd.f32 %v5633_v16, %v5632_v62  ;;  %v17049_v7 = vmax.f32 %v2774_v57, 0.0 }
 0x34c   :  { %v17051_v23 = vmax.f32 %v5551_v43, 0.0  ;;  %v2860_v31 = vadd.f32 %v2859_v49, %v2858_v9  ;;  %v2961_v32 = vsel %vm2813_vm0, %v2907_v21, 0.0  ;;  %v5735_v15 = vsel %vm2813_vm0, %v5682_v37, 0.0 }
 0x34d   :  { %v17055_v40 = vmax.f32 %v2773_v18, 0.0  ;;  %v5550_v22 = vadd.f32 %v16541_v24, %v16843_v19  ;;  %v5737_v60 = vsel %vm2813_vm0, %v5683_v56, 0.0  ;;  %v5736_v5 = vadd.f32 %v5735_v15, %v5734_v34 }
 0x34e   :  { %v2863_v38 = vsel %vm2813_vm0, %v17049_v7, 0.0  ;;  %v2962_v2 = vadd.f32 %v2961_v32, %v2960_v11  ;;  %v2909_v29 = vmul.f32 %v17049_v7, %v17049_v7  ;;  %v5639_v19 = vsel %vm2813_vm0, %v17051_v23, 0.0 }
 0x34f   :  { %v2861_v49 = vsel %vm2813_vm0, %v17055_v40, 0.0  ;;  %v2908_v21 = vmul.f32 %v17055_v40, %v17055_v40  ;;  %v17068_v9 = vmax.f32 %v5550_v22, 0.0  ;;  %v5636_v62 = vadd.f32 %v5635_v30, %v5634_v63 }
 0x350   :  { %v2862_v56 = vadd.f32 %v2861_v49, %v2860_v31  ;;  %v5738_v26 = vadd.f32 %v5737_v60, %v5736_v5  ;;  %v5685_v34 = vmul.f32 %v17051_v23, %v17051_v23  ;;  %v2776_v18 = vadd.f32 %v16858_v50, %v16541_v24 }
 0x351   :  { %v2963_v57 = vsel %vm2813_vm0, %v2908_v21, 0.0  ;;  %v5637_v43 = vsel %vm2813_vm0, %v17068_v9, 0.0  ;;  %v5684_v11 = vmul.f32 %v17068_v9, %v17068_v9  ;;  %v5553_v30 = vadd.f32 %v16860_v51, %v16541_v24 }
 0x352   :  { %v2964_v16 = vadd.f32 %v2963_v57, %v2962_v2  ;;  %v5638_v37 = vadd.f32 %v5637_v43, %v5636_v62  ;;  %v2965_v63 = vsel %vm2813_vm0, %v2909_v29, 0.0  ;;  %v2775_v32 = vadd.f32 %v16541_v24, %v16870_v47 }
 0x353   :  { %v5739_v31 = vsel %vm2813_vm0, %v5684_v11, 0.0  ;;  %v5552_v15 = vadd.f32 %v16541_v24, %v16872_v3  ;;  %v17089_v60 = vmax.f32 %v2776_v18, 0.0  ;;  %v17091_v5 = vmax.f32 %v5553_v30, 0.0 }
 0x354   :  { %v5740_v22 = vadd.f32 %v5739_v31, %v5738_v26  ;;  %v2864_v2 = vadd.f32 %v2863_v38, %v2862_v56  ;;  %v17093_v50 = vmax.f32 %v2775_v32, 0.0  ;;  %v5640_v51 = vadd.f32 %v5639_v19, %v5638_v37 }
 0x355   :  { %v17095_v49 = vmax.f32 %v5552_v15, 0.0  ;;  %v2778_v29 = vadd.f32 %v16887_v52, %v16541_v24  ;;  %v5741_v21 = vsel %vm2813_vm0, %v5685_v34, 0.0  ;;  %v2966_v47 = vadd.f32 %v2965_v63, %v2964_v16 }
 0x356   :  { %v2865_v3 = vsel %vm2813_vm0, %v17093_v50, 0.0  ;;  %v2910_v62 = vmul.f32 %v17093_v50, %v17093_v50  ;;  %v2911_v19 = vmul.f32 %v17089_v60, %v17089_v60  ;;  %v5687_v52 = vmul.f32 %v17091_v5, %v17091_v5 }
 0x357   :  { %v5641_v38 = vsel %vm2813_vm0, %v17095_v49, 0.0  ;;  %v5686_v56 = vmul.f32 %v17095_v49, %v17095_v49  ;;  %v2866_v26 = vadd.f32 %v2865_v3, %v2864_v2  ;;  %v5742_v43 = vadd.f32 %v5741_v21, %v5740_v22 }
 0x358   :  { %v5642_v34 = vadd.f32 %v5641_v38, %v5640_v51  ;;  %v2967_v57 = vsel %vm2813_vm0, %v2910_v62, 0.0  ;;  %v17114_v16 = vmax.f32 %v2778_v29, 0.0  ;;  %v2867_v37 = vsel %vm2813_vm0, %v17089_v60, 0.0 }
 0x359   :  { %v5743_v11 = vsel %vm2813_vm0, %v5686_v56, 0.0  ;;  %v2968_v18 = vadd.f32 %v2967_v57, %v2966_v47  ;;  %v5555_v30 = vadd.f32 %v16889_v46, %v16541_v24  ;;  %v2777_v63 = vadd.f32 %v16541_v24, %v16897_v27 }
 0x35a   :  { %v5643_v31 = vsel %vm2813_vm0, %v17091_v5, 0.0  ;;  %v5744_v32 = vadd.f32 %v5743_v11, %v5742_v43  ;;  %v2868_v15 = vadd.f32 %v2867_v37, %v2866_v26  ;;  %v5554_v22 = vadd.f32 %v16541_v24, %v16899_v54 }
 0x35b   :  { %v2969_v2 = vsel %vm2813_vm0, %v2911_v19, 0.0  ;;  %v5745_v51 = vsel %vm2813_vm0, %v5687_v52, 0.0  ;;  %v17128_v29 = vmax.f32 %v2777_v63, 0.0  ;;  %v5644_v21 = vadd.f32 %v5643_v31, %v5642_v34 }
 0x35c   :  { %v2913_v46 = vmul.f32 %v17114_v16, %v17114_v16  ;;  %v17132_v47 = vmax.f32 %v5555_v30, 0.0  ;;  %v2970_v27 = vadd.f32 %v2969_v2, %v2968_v18  ;;  %v17134_v3 = vmax.f32 %v5554_v22, 0.0 }
 0x35d   :  { %v2869_v62 = vsel %vm2813_vm0, %v17128_v29, 0.0  ;;  %v2912_v54 = vmul.f32 %v17128_v29, %v17128_v29  ;;  %v5746_v38 = vadd.f32 %v5745_v51, %v5744_v32  ;;  %v2780_v56 = vadd.f32 %v16916_v8, %v16541_v24 }
 0x35e   :  { %19772 = vst [vmem:[#allocation31_spill] sm:$0xff] %v17132_v47  ;;  %v2870_v19 = vadd.f32 %v2869_v62, %v2868_v15  ;;  %v5645_v52 = vsel %vm2813_vm0, %v17134_v3, 0.0  ;;  %v5688_v26 = vmul.f32 %v17134_v3, %v17134_v3  ;;  %v2871_v34 = vsel %vm2813_vm0, %v17114_v16, 0.0 }
 0x35f   :  { %v2971_v57 = vsel %vm2813_vm0, %v2912_v54, 0.0  ;;  %v5646_v43 = vadd.f32 %v5645_v52, %v5644_v21  ;;  %v5557_v11 = vadd.f32 %v16918_v35, %v16541_v24  ;;  %v2973_v37 = vsel %vm2813_vm0, %v2913_v46, 0.0 }
 0x360   :  { %v5689_v8 = vmul.f32 %v17132_v47, %v17132_v47  ;;  %v2972_v18 = vadd.f32 %v2971_v57, %v2970_v27  ;;  %v5747_v30 = vsel %vm2813_vm0, %v5688_v26, 0.0  ;;  %v17155_v31 = vmax.f32 %v2780_v56, 0.0 }
 0x361   :  { %v5748_v63 = vadd.f32 %v5747_v30, %v5746_v38  ;;  %v2779_v32 = vadd.f32 %v16541_v24, %v16928_v1  ;;  %v2872_v15 = vadd.f32 %v2871_v34, %v2870_v19  ;;  %v5647_v22 = vsel %vm2813_vm0, %v17132_v47, 0.0 }
 0x362   :  { %v17161_v2 = vmax.f32 %v5557_v11, 0.0  ;;  %v2974_v35 = vadd.f32 %v2973_v37, %v2972_v18  ;;  %v5556_v51 = vadd.f32 %v16541_v24, %v16930_v10  ;;  %v5648_v46 = vadd.f32 %v5647_v22, %v5646_v43 }
 0x363   :  { %v17165_v21 = vmax.f32 %v2779_v32, 0.0  ;;  %v5749_v27 = vsel %vm2813_vm0, %v5689_v8, 0.0  ;;  %v2915_v1 = vmul.f32 %v17155_v31, %v17155_v31  ;;  %v2875_v26 = vsel %vm2813_vm0, %v17155_v31, 0.0 }
 0x364   :  { %19773 = vst [vmem:[#allocation32_spill] sm:$0xff] %v17161_v2  ;;  %v17168_v62 = vmax.f32 %v5556_v51, 0.0  ;;  %v5750_v56 = vadd.f32 %v5749_v27, %v5748_v63  ;;  %v5691_v24 = vmul.f32 %v17161_v2, %v17161_v2  ;;  %v5651_v34 = vsel %vm2813_vm0, %v17161_v2, 0.0 }
 0x365   :  { %v2873_v54 = vsel %vm2813_vm0, %v17165_v21, 0.0  ;;  %v2914_v38 = vmul.f32 %v17165_v21, %v17165_v21  ;;  %v19715_v18 = vlaneseq  ;;  %v2977_v30 = vsel %vm2813_vm0, %v2915_v1, 0.0 }
 0x366   :  { %v2874_v10 = vadd.f32 %v2873_v54, %v2872_v15  ;;  %v5649_v19 = vsel %vm2813_vm0, %v17168_v62, 0.0  ;;  %v5690_v52 = vmul.f32 %v17168_v62, %v17168_v62  ;;  %v5753_v15 = vsel %vm2813_vm0, %v5691_v24, 0.0 }
 0x367   :  { %v2975_v57 = vsel %vm2813_vm0, %v2914_v38, 0.0  ;;  %v5650_v43 = vadd.f32 %v5649_v19, %v5648_v46  ;;  %v17191_v38 = vshrl.u32 %v19715_v18, 7 }
 0x368   :  { %v2876_v11 = vadd.f32 %v2875_v26, %v2874_v10  ;;  %v2976_v37 = vadd.f32 %v2975_v57, %v2974_v35  ;;  %v5751_v8 = vsel %vm2813_vm0, %v5690_v52, 0.0  ;;  %v17194_v10 = vand.u32 127, %v19715_v18 }
 0x369   :  { %v5652_v63 = vadd.f32 %v5651_v34, %v5650_v43  ;;  %v5752_v32 = vadd.f32 %v5751_v8, %v5750_v56  ;;  %19774 = vst [vmem:[#allocation33_spill] sm:$0xff] %v17191_v38  ;;  %v19716_v34 = vmov 0.0  }
 0x36a   :  { %v2877_v22 = vrot.slane %v2876_v11, 4  ;;  %v2978_v51 = vadd.f32 %v2977_v30, %v2976_v37  ;;  %19775 = vst [vmem:[#allocation34_spill] sm:$0xff] %v17194_v10  ;;  %vm5778_vm1 = vcmp.eq.s32.totalorder %v17191_v38, %v17194_v10  ;;  %v19800_v10 = vld [vmem:[#allocation17_spill] sm:$0xff] }
 0x36b   :  { %v5653_v27 = vrot.slane %v5652_v63, 4  ;;  %v5754_v54 = vadd.f32 %v5753_v15, %v5752_v32  ;;  %v17199_v57 = vsel %vm5778_vm1, 1.0, %v19716_v34  ;;  %v19794_v34 = vld [vmem:[#allocation15_spill] sm:$0xff] }
 0x36c   :  { %v2878_v47 = vadd.f32 %v2877_v22, %v2876_v11  ;;  %v2979_v2 = vrot.slane %v2978_v51, 4  ;;  %19776 = vst [vmem:[#allocation35_spill] sm:$0xff] %v17199_v57  ;;  %10267 = vmatprep.mubr.msk.f32.mxu0 %vm2813_vm0, %v17199_v57  ;;  %10303 = vmatprep.mubr.msk.f32.mxu1 %vm2813_vm0, %v17199_v57  ;;  %v19798_v57 = vld [vmem:[#allocation18_spill] sm:$0xff] }
 0x36d   :  { %v5654_v46 = vadd.f32 %v5653_v27, %v5652_v63  ;;  %v5755_v35 = vrot.slane %v5754_v54, 4 }
 0x36e   :  { %v2879_v19 = vrot.slane %v2878_v47, 2  ;;  %v2980_v1 = vadd.f32 %v2979_v2, %v2978_v51 }
 0x36f   :  { %v5655_v52 = vrot.slane %v5654_v46, 2  ;;  %v5756_v56 = vadd.f32 %v5755_v35, %v5754_v54 }
 0x370   :  { %v2880_v24 = vadd.f32 %v2879_v19, %v2878_v47  ;;  %v2981_v26 = vrot.slane %v2980_v1, 2 }
 0x371   :  { %v5656_v43 = vadd.f32 %v5655_v52, %v5654_v46  ;;  %v5757_v11 = vrot.slane %v5756_v56, 2 }
 0x372   :  { %v2881_v2 = vrot.slane %v2880_v24, 1  ;;  %v2982_v37 = vadd.f32 %v2981_v26, %v2980_v1  ;;  %v5766_v1 = vld [vmem:[%s19667_s3] sm:$0x1] }
 0x373   :  { %v5657_v8 = vrot.slane %v5656_v43, 1  ;;  %v5758_v30 = vadd.f32 %v5757_v11, %v5756_v56  ;;  %v17209_v56 = vsub.s32 0, %v17191_v38  ;;  %v19802_v38 = vld [vmem:[#allocation22_spill] sm:$0xff] }
 0x374   :  { %v2882_v63 = vadd.f32 %v2881_v2, %v2880_v24  ;;  %v2983_v32 = vrot.slane %v2982_v37, 1 }
 0x375   :  { %v5658_v47 = vadd.f32 %v5657_v8, %v5656_v43  ;;  %v5759_v15 = vrot.slane %v5758_v30, 1  ;;  %19777 = vst [vmem:[#allocation36_spill] sm:$0xff] %v17209_v56  ;;  %v5770_v43 = vld [vmem:[%s19668_s4] sm:$0x1] }
 0x376   :  { %v2984_v22 = vadd.f32 %v2983_v32, %v2982_v37 }
 0x377   :  { %v5659_v51 = vadd.f32 %v5658_v47, %v2882_v63  ;;  %v5760_v27 = vadd.f32 %v5759_v15, %v5758_v30  ;;  %v19778_v15 = vld [vmem:[#allocation16_spill] sm:$0xff] }
 0x379   :  { %v5761_v54 = vadd.f32 %v5760_v27, %v2984_v22  ;;  %v5762_v46 = vmul.f32 0.001953125, %v5659_v51  ;;  %v19779_v22 = vld [vmem:[#allocation21_spill] sm:$0xff] }
 0x37b   :  { %v5763_v35 = vmul.f32 0.001953125, %v5761_v54  ;;  %v5764_v19 = vmul.f32 %v5762_v46, %v5762_v46 }
 0x37d   :  { %v5765_v52 = vsub.f32 %v5763_v35, %v5764_v19  ;;  %v19784_v35 = vld [vmem:[#allocation29_spill] sm:$0xff] }
 0x37f   :  { %v5767_v18 = vadd.f32 1e-05, %v5765_v52  ;;  %v19785_v52 = vld [vmem:[#allocation27_spill] sm:$0xff] }
 0x381   :  { %14133 = vrsqrt.f32 %v5767_v18 }
 0x38b   :  { %v14134_v24 = vpop.eup %14133 }
 0x38c   :  { %v5769_v26 = vmul.f32 %v14134_v24, %v5766_v1 }
 0x38e   :  { %v5771_v11 = vmul.f32 %v5769_v26, %v5762_v46  ;;  %v17215_v2 = vrot.slane %v5769_v26, %v17209_v56 }
 0x390   :  { %v5772_v37 = vsub.f32 %v5770_v43, %v5771_v11  ;;  %v6224_v18 = vmul.f32 %v17215_v2, %v17168_v62  ;;  %v17221_v8 = vmul.f32 %v17215_v2, %v16551_v58  ;;  %v17225_v30 = vmul.f32 %v17215_v2, %v16547_v39 }
 0x391   :  { %v17229_v63 = vmul.f32 %v17215_v2, %v16583_v41  ;;  %v17233_v32 = vmul.f32 %v17215_v2, %v16579_v36  ;;  %v17237_v47 = vmul.f32 %v17215_v2, %v16613_v44  ;;  %v17241_v58 = vmul.f32 %v17215_v2, %v16609_v17 }
 0x392   :  { %v17244_v62 = vrot.slane %v5772_v37, %v17209_v56  ;;  %v17248_v39 = vmul.f32 %v17215_v2, %v16656_v53  ;;  %v17252_v41 = vmul.f32 %v17215_v2, %v16652_v48  ;;  %v17256_v36 = vmul.f32 %v17215_v2, %v16709_v45  ;;  %v19781_v45 = vld [vmem:[#allocation19_spill] sm:$0xff]  ;;  %v19796_v56 = vld [vmem:[#allocation14_spill] sm:$0xff] }
 0x393   :  { %v17260_v44 = vmul.f32 %v17215_v2, %v16688_v14  ;;  %v17264_v17 = vmul.f32 %v17215_v2, %v16765_v59  ;;  %v17268_v53 = vmul.f32 %v17215_v2, %v19778_v15  ;;  %v17272_v48 = vmul.f32 %v17215_v2, %v19779_v22  ;;  %v19782_v14 = vld [vmem:[#allocation25_spill] sm:$0xff]  ;;  %v19783_v59 = vld [vmem:[#allocation23_spill] sm:$0xff]  ;;  %v19787_v15 = vld [vmem:[#allocation6_spill] sm:$0xff] }
 0x394   :  { %v17275_v51 = vadd.f32 %v6224_v18, %v17244_v62  ;;  %v17279_v27 = vmul.f32 %v17215_v2, %v19781_v45  ;;  %v17283_v54 = vmul.f32 %v17215_v2, %v19782_v14  ;;  %v17287_v46 = vmul.f32 %v17215_v2, %v19783_v59  ;;  %v19786_v18 = vld [vmem:[#allocation7_spill] sm:$0xff]  ;;  %v19788_v22 = vld [vmem:[#allocation9_spill] sm:$0xff]  ;;  %v19789_v45 = vld [vmem:[#allocation8_spill] sm:$0xff] }
 0x395   :  { %v17291_v19 = vmul.f32 %v17215_v2, %v19784_v35  ;;  %v17295_v1 = vmul.f32 %v17215_v2, %v19785_v52  ;;  %v17299_v24 = vmul.f32 %v17215_v2, %v16952_v0  ;;  %v17303_v26 = vmul.f32 %v17215_v2, %v16938_v13  ;;  %v19790_v14 = vld [vmem:[#allocation11_spill] sm:$0xff]  ;;  %v19791_v59 = vld [vmem:[#allocation10_spill] sm:$0xff]  ;;  %v19792_v52 = vld [vmem:[#allocation13_spill] sm:$0xff] }
 0x396   :  { %19780 = vst [vmem:[#allocation16_spill] sm:$0xff] %v17275_v51  ;;  %v17307_v43 = vmul.f32 %v17215_v2, %v16993_v12  ;;  %v17311_v11 = vmul.f32 %v17215_v2, %v16970_v33  ;;  %v17315_v37 = vmul.f32 %v17215_v2, %v17018_v42  ;;  %v17319_v0 = vmul.f32 %v17215_v2, %v17013_v4  ;;  %v19803_v51 = vld [vmem:[#allocation20_spill] sm:$0xff] }
 0x397   :  { %v17323_v13 = vmul.f32 %v17215_v2, %v17055_v40  ;;  %v17327_v12 = vmul.f32 %v17215_v2, %v17049_v7  ;;  %v17331_v33 = vmul.f32 %v17215_v2, %v17093_v50  ;;  %v17335_v42 = vmul.f32 %v17215_v2, %v17089_v60 }
 0x398   :  { %v17339_v4 = vmul.f32 %v17215_v2, %v17128_v29  ;;  %v17343_v40 = vmul.f32 %v17215_v2, %v17114_v16  ;;  %v17347_v7 = vmul.f32 %v17215_v2, %v17165_v21  ;;  %v17351_v50 = vmul.f32 %v17215_v2, %v17155_v31 }
 0x399   :  { %v17355_v60 = vmul.f32 %v17215_v2, %v19786_v18  ;;  %v17359_v29 = vmul.f32 %v17215_v2, %v19787_v15  ;;  %v17363_v16 = vmul.f32 %v17215_v2, %v19788_v22  ;;  %v17367_v21 = vmul.f32 %v17215_v2, %v19789_v45  ;;  %v19793_v15 = vld [vmem:[#allocation12_spill] sm:$0xff] }
 0x39a   :  { %v17371_v31 = vmul.f32 %v17215_v2, %v19790_v14  ;;  %v17375_v35 = vmul.f32 %v17215_v2, %v19791_v59  ;;  %v17379_v18 = vmul.f32 %v17215_v2, %v19792_v52  ;;  %v17383_v22 = vmul.f32 %v17215_v2, %v19793_v15 }
 0x39b   :  { %v17387_v45 = vmul.f32 %v17215_v2, %v19794_v34  ;;  %v17391_v14 = vmul.f32 %v17215_v2, %v19796_v56  ;;  %v17395_v59 = vmul.f32 %v17215_v2, %v19798_v57  ;;  %v17399_v52 = vmul.f32 %v17215_v2, %v19800_v10 }
 0x39c   :  { %v17403_v15 = vmul.f32 %v17215_v2, %v19802_v38  ;;  %v17407_v34 = vmul.f32 %v17215_v2, %v19803_v51  ;;  %v17427_v51 = vmul.f32 %v17215_v2, %v16956_v28  ;;  %v17447_v28 = vmul.f32 %v17215_v2, %v17016_v20 }
 0x39d   :  { %19795 = vst [vmem:[#allocation21_spill] sm:$0xff] %v17387_v45  ;;  %19797 = vst [vmem:[#allocation19_spill] sm:$0xff] %v17391_v14  ;;  %v19804_v45 = vld [vmem:[#allocation26_spill] sm:$0xff]  ;;  %v19805_v14 = vld [vmem:[#allocation24_spill] sm:$0xff]  ;;  %v17467_v20 = vmul.f32 %v17215_v2, %v17134_v3  ;;  %v17487_v3 = vadd.f32 %v17244_v62, %v17233_v32  ;;  %v17511_v32 = vadd.f32 %v17244_v62, %v17260_v44 }
 0x39e   :  { %19799 = vst [vmem:[#allocation25_spill] sm:$0xff] %v17395_v59  ;;  %19801 = vst [vmem:[#allocation23_spill] sm:$0xff] %v17399_v52  ;;  %v17411_v56 = vmul.f32 %v17215_v2, %v19804_v45  ;;  %v17415_v57 = vmul.f32 %v17215_v2, %v19805_v14  ;;  %v19806_v59 = vld [vmem:[#allocation30_spill] sm:$0xff]  ;;  %v19807_v52 = vld [vmem:[#allocation28_spill] sm:$0xff]  ;;  %v17431_v45 = vmul.f32 %v17215_v2, %v16950_v25 }
 0x39f   :  { %v17419_v10 = vmul.f32 %v17215_v2, %v19806_v59  ;;  %v17423_v38 = vmul.f32 %v17215_v2, %v19807_v52  ;;  %v17435_v14 = vmul.f32 %v17215_v2, %v16995_v55  ;;  %v17439_v59 = vmul.f32 %v17215_v2, %v16982_v6  ;;  %19808 = vst [vmem:[#allocation29_spill] sm:$0xff] %v17447_v28  ;;  %v19811_v28 = vld [vmem:[#allocation31_spill] sm:$0xff] }
 0x3a0   :  { %v17443_v52 = vmul.f32 %v17215_v2, %v17036_v61  ;;  %v17451_v25 = vmul.f32 %v17215_v2, %v17068_v9  ;;  %v17455_v55 = vmul.f32 %v17215_v2, %v17051_v23  ;;  %v17459_v6 = vmul.f32 %v17215_v2, %v17095_v49 }
 0x3a1   :  { %v17463_v61 = vmul.f32 %v17215_v2, %v17091_v5  ;;  %v17471_v9 = vmul.f32 %v17215_v2, %v19811_v28  ;;  %v5828_v49 = vadd.f32 %v17244_v62, %v17221_v8  ;;  %v17483_v5 = vadd.f32 %v17244_v62, %v17229_v63 }
 0x3a2   :  { %19809 = vst [vmem:[#allocation27_spill] sm:$0xff] %v17451_v25  ;;  %19810 = vst [vmem:[#allocation7_spill] sm:$0xff] %v17459_v6  ;;  %v19812_v25 = vld [vmem:[#allocation32_spill] sm:$0xff]  ;;  %v5829_v6 = vadd.f32 %v17244_v62, %v17225_v30  ;;  %v17491_v28 = vadd.f32 %v17244_v62, %v17237_v47  ;;  %v17499_v8 = vadd.f32 %v17244_v62, %v17248_v39 }
 0x3a3   :  { %v17475_v23 = vmul.f32 %v17215_v2, %v19812_v25  ;;  %v17495_v2 = vadd.f32 %v17244_v62, %v17241_v58  ;;  %v17503_v30 = vadd.f32 %v17244_v62, %v17252_v41  ;;  %v17507_v63 = vadd.f32 %v17244_v62, %v17256_v36 }
 0x3a4   :  { %v17515_v47 = vadd.f32 %v17244_v62, %v17264_v17  ;;  %v17519_v58 = vadd.f32 %v17244_v62, %v17268_v53  ;;  %v17523_v39 = vadd.f32 %v17244_v62, %v17272_v48  ;;  %v17527_v41 = vadd.f32 %v17244_v62, %v17279_v27 }
 0x3a5   :  { %v17531_v36 = vadd.f32 %v17244_v62, %v17283_v54  ;;  %v17535_v44 = vadd.f32 %v17244_v62, %v17287_v46  ;;  %v5844_v17 = vadd.f32 %v17244_v62, %v17291_v19  ;;  %v5845_v53 = vadd.f32 %v17244_v62, %v17295_v1 }
 0x3a6   :  { %19813 = vst [vmem:[#allocation6_spill] sm:$0xff] %v17515_v47  ;;  %19814 = vst [vmem:[#allocation9_spill] sm:$0xff] %v17519_v58  ;;  %v17543_v48 = vadd.f32 %v17244_v62, %v17299_v24  ;;  %v17547_v27 = vadd.f32 %v17244_v62, %v17303_v26  ;;  %v17551_v54 = vadd.f32 %v17244_v62, %v17307_v43 }
 0x3a7   :  { %19815 = vst [vmem:[#allocation8_spill] sm:$0xff] %v17523_v39  ;;  %19816 = vst [vmem:[#allocation11_spill] sm:$0xff] %v17527_v41  ;;  %v17555_v46 = vadd.f32 %v17244_v62, %v17311_v11  ;;  %v17559_v19 = vadd.f32 %v17244_v62, %v17315_v37  ;;  %v17563_v1 = vadd.f32 %v17244_v62, %v17319_v0  ;;  %v6624_v0 = vld [vmem:[%s19669_s5 + $0x108] sm:$0xff] }
 0x3a8   :  { %19817 = vst [vmem:[#allocation10_spill] sm:$0xff] %v17531_v36  ;;  %19818 = vst [vmem:[#allocation13_spill] sm:$0xff] %v17535_v44  ;;  %v17567_v24 = vadd.f32 %v17244_v62, %v17323_v13  ;;  %v17571_v26 = vadd.f32 %v17244_v62, %v17327_v12  ;;  %v17575_v43 = vadd.f32 %v17244_v62, %v17331_v33 }
 0x3a9   :  { %v17579_v11 = vadd.f32 %v17244_v62, %v17335_v42  ;;  %v17583_v37 = vadd.f32 %v17244_v62, %v17339_v4  ;;  %v17593_v13 = vadd.f32 %v17244_v62, %v17343_v40  ;;  %v17597_v12 = vadd.f32 %v17244_v62, %v17347_v7 }
 0x3aa   :  { %v17601_v33 = vadd.f32 %v17244_v62, %v17351_v50  ;;  %v12963_v42 = vpack.c.bf16 %v5845_v53, %v5844_v17  ;;  %v12966_v4 = vpack.c.bf16 %v5829_v6, %v5828_v49  ;;  %v6226_v17 = vadd.f32 %v17355_v60, %v17244_v62 }
 0x3ab   :  { %19819 = vst [vmem:[#allocation12_spill] sm:$0xff] %v17583_v37  ;;  %v6227_v53 = vadd.f32 %v17359_v29, %v17244_v62  ;;  %v6229_v7 = vadd.f32 %v17367_v21, %v17244_v62  ;;  %v6230_v6 = vadd.f32 %v17371_v31, %v17244_v62  ;;  %v6231_v49 = vadd.f32 %v17375_v35, %v17244_v62  ;;  %v19823_v21 = vld [vmem:[#allocation19_spill] sm:$0xff]  ;;  %v19824_v31 = vld [vmem:[#allocation25_spill] sm:$0xff] }
 0x3ac   :  { %12965 = vmatprep.subr.msk.bf16.mxu0 %vm17587_vm2, %v12963_v42  ;;  %v6228_v42 = vadd.f32 %v17363_v16, %v17244_v62  ;;  %v17635_v60 = vadd.f32 %v17379_v18, %v17244_v62  ;;  %v6233_v29 = vadd.f32 %v17383_v22, %v17244_v62  ;;  %v19822_v16 = vld [vmem:[#allocation21_spill] sm:$0xff]  ;;  %v17649_v40 = vadd.f32 %v19824_v31, %v17244_v62  ;;  %v19825_v35 = vld [vmem:[#allocation23_spill] sm:$0xff] }
 0x3ad   :  { %12968 = vmatpush3.bf16.xpose.msk.msra.mxu0 %vm17587_vm2, %v12966_v4  ;;  %v17641_v50 = vadd.f32 %v19822_v16, %v17244_v62  ;;  %v17645_v4 = vadd.f32 %v19823_v21, %v17244_v62  ;;  %v17653_v37 = vadd.f32 %v19825_v35, %v17244_v62  ;;  %v17657_v18 = vadd.f32 %v17403_v15, %v17244_v62 }
 0x3ae   :  { %v17661_v22 = vadd.f32 %v17407_v34, %v17244_v62  ;;  %v17665_v16 = vadd.f32 %v17411_v56, %v17244_v62  ;;  %v17669_v21 = vadd.f32 %v17415_v57, %v17244_v62  ;;  %v6242_v31 = vadd.f32 %v17419_v10, %v17244_v62  ;;  %v19826_v10 = vld [vmem:[#allocation29_spill] sm:$0xff] }
 0x3af   :  { %v6243_v35 = vadd.f32 %v17423_v38, %v17244_v62  ;;  %v6244_v15 = vadd.f32 %v17427_v51, %v17244_v62  ;;  %v6245_v34 = vadd.f32 %v17431_v45, %v17244_v62  ;;  %v6246_v56 = vadd.f32 %v17435_v14, %v17244_v62  ;;  %v19827_v38 = vld [vmem:[#allocation27_spill] sm:$0xff] }
 0x3b0   :  { %v6247_v25 = vadd.f32 %v17439_v59, %v17244_v62  ;;  %v6248_v57 = vadd.f32 %v17443_v52, %v17244_v62  ;;  %v6249_v36 = vadd.f32 %v19826_v10, %v17244_v62  ;;  %v6250_v44 = vadd.f32 %v19827_v38, %v17244_v62  ;;  %v19828_v45 = vld [vmem:[#allocation7_spill] sm:$0xff] }
 0x3b1   :  { %v6251_v51 = vadd.f32 %v17455_v55, %v17244_v62  ;;  %v6252_v39 = vadd.f32 %v19828_v45, %v17244_v62  ;;  %v6253_v14 = vadd.f32 %v17463_v61, %v17244_v62  ;;  %v6254_v59 = vadd.f32 %v17467_v20, %v17244_v62  ;;  %v6611_v45 = vld [vmem:[%s19669_s5 + $0xa0] sm:$0xff] }
 0x3b2   :  { %v6255_v52 = vadd.f32 %v17471_v9, %v17244_v62  ;;  %v6257_v10 = vadd.f32 %v17475_v23, %v17244_v62  ;;  %v13011_v41 = vpack.c.bf16 %v6243_v35, %v6242_v31  ;;  %v13014_v38 = vpack.c.bf16 %v6227_v53, %v6226_v17  ;;  %v6591_v53 = vld [vmem:[%s19669_s5] sm:$0xff]  ;;  %v6593_v35 = vld [vmem:[%s19669_s5 + $0x10] sm:$0xff] }
 0x3b3   :  { %v13020_v47 = vpack.c.bf16 %v6229_v7, %v6228_v42  ;;  %v13026_v58 = vpack.c.bf16 %v6231_v49, %v6230_v6  ;;  %v13032_v55 = vpack.c.bf16 %v6233_v29, %v17635_v60  ;;  %v13038_v61 = vpack.c.bf16 %v17645_v4, %v17641_v50  ;;  %v6592_v42 = vld [vmem:[%s19669_s5 + $0x8] sm:$0xff]  ;;  %v6609_v4 = vld [vmem:[%s19669_s5 + $0x90] sm:$0xff] }
 0x3b4   :  { %13013 = vmatprep.subr.msk.bf16.mxu1 %vm17587_vm2, %v13011_v41  ;;  %v13044_v20 = vpack.c.bf16 %v17653_v37, %v17649_v40  ;;  %v13050_v9 = vpack.c.bf16 %v17661_v22, %v17657_v18  ;;  %v13056_v62 = vpack.c.bf16 %v17669_v21, %v17665_v16  ;;  %v12969_v23 = vpack.c.bf16 %v17547_v27, %v17543_v48  ;;  %v19845_v60 = vld [vmem:[#allocation34_spill] sm:$0xff]  ;;  %v6610_v18 = vld [vmem:[%s19669_s5 + $0x98] sm:$0xff] }
 0x3b5   :  { %13016 = vmatpush3.bf16.xpose.msk.msra.mxu1 %vm17587_vm2, %v13014_v38  ;;  %v13017_v7 = vpack.c.bf16 %v6245_v34, %v6244_v15  ;;  %v12975_v41 = vpack.c.bf16 %v17555_v46, %v17551_v54  ;;  %v13023_v50 = vpack.c.bf16 %v6247_v25, %v6246_v56  ;;  %v12981_v37 = vpack.c.bf16 %v17563_v1, %v17559_v19  ;;  %v19829_v54 = vld [vmem:[#allocation12_spill] sm:$0xff]  ;;  %v19843_v25 = vld [vmem:[#allocation10_spill] sm:$0xff] }
 0x3b6   :  { %v13029_v40 = vpack.c.bf16 %v6249_v36, %v6248_v57  ;;  %v12987_v6 = vpack.c.bf16 %v17571_v26, %v17567_v24  ;;  %v13035_v49 = vpack.c.bf16 %v6251_v51, %v6250_v44  ;;  %12971 = vmatprep.subr.msk.bf16.mxu0 %vm17587_vm2, %v12969_v23  ;;  %v12993_v48 = vpack.c.bf16 %v17579_v11, %v17575_v43  ;;  %v19831_v1 = vld [vmem:[#allocation16_spill] sm:$0xff]  ;;  %v19841_v43 = vld [vmem:[#allocation33_spill] sm:$0xff]  ;;  %v19847_v57 = vld [vmem:[#allocation35_spill] sm:$0xff] }
 0x3b7   :  { %13019 = vmatprep.subr.msk.bf16.mxu1 %vm17587_vm2, %v13017_v7  ;;  %v13041_v27 = vpack.c.bf16 %v6253_v14, %v6252_v39  ;;  %v12999_v46 = vpack.c.bf16 %v17593_v13, %v19829_v54  ;;  %v19830_v36 = vpack.c.bf16 %v17487_v3, %v17483_v5  ;;  %v13047_v44 = vpack.c.bf16 %v6255_v52, %v6254_v59  ;;  %v6608_v39 = vld [vmem:[%s19669_s5 + $0x88] sm:$0xff]  ;;  %v6639_v13 = vld [vmem:[%s19669_s5 + $0x180] sm:$0xff]  ;;  %v6594_v15 = vld [vmem:[%s19669_s5 + $0x18] sm:$0xff] }
 0x3b8   :  { %v13005_v19 = vpack.c.bf16 %v17601_v33, %v17597_v12  ;;  %v13053_v24 = vpack.c.bf16 %v6257_v10, %v19831_v1  ;;  %v19832_v5 = vpack.c.bf16 %v17495_v2, %v17491_v28  ;;  %v19833_v3 = vpack.c.bf16 %v17503_v30, %v17499_v8  ;;  %v19835_v2 = vld [vmem:[#allocation9_spill] sm:$0xff]  ;;  %v19836_v8 = vld [vmem:[#allocation6_spill] sm:$0xff]  ;;  %v6641_v56 = vld [vmem:[%s19669_s5 + $0x190] sm:$0xff] }
 0x3b9   :  { %12974 = vmatpush3.bf16.xpose.msk.msra.mxu0 %vm17587_vm2, %v19830_v36  ;;  %v19834_v28 = vpack.c.bf16 %v17511_v32, %v17507_v63  ;;  %v19837_v30 = vpack.c.bf16 %v19835_v2, %v19836_v8  ;;  %v19838_v63 = vld [vmem:[#allocation11_spill] sm:$0xff]  ;;  %v19839_v32 = vld [vmem:[#allocation8_spill] sm:$0xff]  ;;  %v5775_v11 = vadd.s32 8, %v19841_v43  ;;  %v19842_v33 = vld [vmem:[#allocation13_spill] sm:$0xff]  ;;  %v13061_v22 = vpack.c.bf16 %v6592_v42, %v6591_v53 }
 0x3ba   :  { %12977 = vmatprep.subr.msk.bf16.mxu0 %vm17587_vm2, %v12975_v41  ;;  %v6640_v12 = vld [vmem:[%s19669_s5 + $0x188] sm:$0xff]  ;;  %v19844_v17 = vpack.c.bf16 %v19842_v33, %v19843_v25  ;;  %v19846_v16 = vmov 0.0   ;;  %v13063_v31 = vpack.c.bf16 %v6610_v18, %v6609_v4  ;;  %v6623_v34 = vld [vmem:[%s19669_s5 + $0x100] sm:$0xff]  ;;  %v6642_v51 = vld [vmem:[%s19669_s5 + $0x198] sm:$0xff]  ;;  %v13065_v59 = vpack.c.bf16 %v6594_v15, %v6593_v35 }
 0x3bb   :  { %vm5779_vm3 = vcmp.eq.s32.totalorder %v5775_v11, %v19845_v60  ;;  %v13091_v29 = vpack.c.bf16 %v6640_v12, %v6639_v13  ;;  %v6612_v14 = vld [vmem:[%s19669_s5 + $0xa8] sm:$0xff]  ;;  %v13093_v52 = vpack.c.bf16 %v6624_v0, %v6623_v34  ;;  %v6595_v10 = vld [vmem:[%s19669_s5 + $0x20] sm:$0xff]  ;;  %v6597_v54 = vld [vmem:[%s19669_s5 + $0x30] sm:$0xff] }
 0x3bc   :  { %v9298_v21 = vsel %vm5779_vm3, 1.0, %v19846_v16  ;;  %v6596_v38 = vld [vmem:[%s19669_s5 + $0x28] sm:$0xff]  ;;  %v6643_v7 = vld [vmem:[%s19669_s5 + $0x1a0] sm:$0xff]  ;;  %v6617_v13 = vld [vmem:[%s19669_s5 + $0xd0] sm:$0xff] }
 0x3bd   :  { %13022 = vmatpush3.bf16.xpose.msk.msra.mxu1 %vm17587_vm2, %v13020_v47  ;;  %v19840_v47 = vpack.c.bf16 %v19838_v63, %v19839_v32  ;;  %v6644_v41 = vld [vmem:[%s19669_s5 + $0x1a8] sm:$0xff]  ;;  %v6618_v33 = vld [vmem:[%s19669_s5 + $0xd8] sm:$0xff]  ;;  %v6601_v25 = vld [vmem:[%s19669_s5 + $0x50] sm:$0xff] }
 0x3be   :  { %13025 = vmatprep.subr.msk.bf16.mxu1 %vm17587_vm2, %v13023_v50  ;;  %v13099_v50 = vpack.c.bf16 %v6644_v41, %v6643_v7  ;;  %v6616_v2 = vld [vmem:[%s19669_s5 + $0xc8] sm:$0xff]  ;;  %v13079_v53 = vpack.c.bf16 %v6618_v33, %v6617_v13  ;;  %v6649_v60 = vld [vmem:[%s19669_s5 + $0x1d0] sm:$0xff]  ;;  %v6603_v34 = vld [vmem:[%s19669_s5 + $0x60] sm:$0xff] }
 0x3bf   :  { %v6600_v63 = vld [vmem:[%s19669_s5 + $0x48] sm:$0xff]  ;;  %v6633_v4 = vld [vmem:[%s19669_s5 + $0x150] sm:$0xff]  ;;  %v6638_v41 = vld [vmem:[%s19669_s5 + $0x178] sm:$0xff] }
 0x3c0   :  { %v6632_v11 = vld [vmem:[%s19669_s5 + $0x148] sm:$0xff]  ;;  %v6637_v7 = vld [vmem:[%s19669_s5 + $0x170] sm:$0xff] }
 0x3c1   :  { %12980 = vmatpush3.bf16.xpose.msk.msra.mxu0 %vm17587_vm2, %v19832_v5  ;;  %v6630_v5 = vld [vmem:[%s19669_s5 + $0x138] sm:$0xff]  ;;  %v6604_v0 = vld [vmem:[%s19669_s5 + $0x68] sm:$0xff] }
 0x3c2   :  { %12983 = vmatprep.subr.msk.bf16.mxu0 %vm17587_vm2, %v12981_v37  ;;  %v6627_v37 = vld [vmem:[%s19669_s5 + $0x120] sm:$0xff] }
 0x3c5   :  { %13028 = vmatpush3.bf16.xpose.msk.msra.mxu1 %vm17587_vm2, %v13026_v58  ;;  %v6607_v58 = vld [vmem:[%s19669_s5 + $0x80] sm:$0xff] }
 0x3c6   :  { %13031 = vmatprep.subr.msk.bf16.mxu1 %vm17587_vm2, %v13029_v40  ;;  %v13059_v26 = vpack.c.bf16 %v6608_v39, %v6607_v58  ;;  %v6628_v40 = vld [vmem:[%s19669_s5 + $0x128] sm:$0xff] }
 0x3c7   :  { %v6648_v58 = vld [vmem:[%s19669_s5 + $0x1c8] sm:$0xff] }
 0x3c9   :  { %12986 = vmatpush3.bf16.xpose.msk.msra.mxu0 %vm17587_vm2, %v19833_v3 }
 0x3ca   :  { %12989 = vmatprep.subr.msk.bf16.mxu0 %vm17587_vm2, %v12987_v6  ;;  %v13101_v6 = vpack.c.bf16 %v6628_v40, %v6627_v37  ;;  %v6671_v37 = vld [vmem:[%s19669_s5 + $0x280] sm:$0xff]  ;;  %v6672_v40 = vld [vmem:[%s19669_s5 + $0x288] sm:$0xff] }
 0x3cd   :  { %13034 = vmatpush3.bf16.xpose.msk.msra.mxu1 %vm17587_vm2, %v13032_v55  ;;  %v13095_v55 = vpack.c.bf16 %v6642_v51, %v6641_v56  ;;  %v6651_v56 = vld [vmem:[%s19669_s5 + $0x1e0] sm:$0xff]  ;;  %v6652_v51 = vld [vmem:[%s19669_s5 + $0x1e8] sm:$0xff] }
 0x3ce   :  { %13037 = vmatprep.subr.msk.bf16.mxu1 %vm17587_vm2, %v13035_v49  ;;  %v6613_v49 = vld [vmem:[%s19669_s5 + $0xb0] sm:$0xff] }
 0x3d1   :  { %12992 = vmatpush3.bf16.xpose.msk.msra.mxu0 %vm17587_vm2, %v19834_v28  ;;  %v6615_v28 = vld [vmem:[%s19669_s5 + $0xc0] sm:$0xff] }
 0x3d2   :  { %12995 = vmatprep.subr.msk.bf16.mxu0 %vm17587_vm2, %v12993_v48  ;;  %v6614_v48 = vld [vmem:[%s19669_s5 + $0xb8] sm:$0xff]  ;;  %v13075_v8 = vpack.c.bf16 %v6616_v2, %v6615_v28 }
 0x3d5   :  { %13040 = vmatpush3.bf16.xpose.msk.msra.mxu1 %vm17587_vm2, %v13038_v61  ;;  %v6625_v61 = vld [vmem:[%s19669_s5 + $0x110] sm:$0xff] }
 0x3d6   :  { %13043 = vmatprep.subr.msk.bf16.mxu1 %vm17587_vm2, %v13041_v27  ;;  %v13071_v27 = vpack.c.bf16 %v6614_v48, %v6613_v49  ;;  %v13123_v49 = vpack.c.bf16 %v6672_v40, %v6671_v37  ;;  %v6703_v48 = vld [vmem:[%s19669_s5 + $0x380] sm:$0xff] }
 0x3d9   :  { %12998 = vmatpush3.bf16.xpose.msk.msra.mxu0 %vm17587_vm2, %v19837_v30  ;;  %v6599_v30 = vld [vmem:[%s19669_s5 + $0x40] sm:$0xff] }
 0x3da   :  { %13001 = vmatprep.subr.msk.bf16.mxu0 %vm17587_vm2, %v12999_v46  ;;  %v6598_v46 = vld [vmem:[%s19669_s5 + $0x38] sm:$0xff]  ;;  %v13077_v32 = vpack.c.bf16 %v6600_v63, %v6599_v30  ;;  %v19848_v63 = vlaneseq }
 0x3db   :  { %v13073_v36 = vpack.c.bf16 %v6598_v46, %v6597_v54  ;;  %v14168_v46 = vmov 1966171168  }
 0x3dc   :  { %vm18027_vm4 = vcmp.lt.s32.totalorder %v19848_v63, 256 }
 0x3dd   :  { %13046 = vmatpush3.bf16.xpose.msk.msra.mxu1 %vm17587_vm2, %v13044_v20  ;;  %v6626_v20 = vld [vmem:[%s19669_s5 + $0x118] sm:$0xff] }
 0x3de   :  { %13049 = vmatprep.subr.msk.bf16.mxu1 %vm17587_vm2, %v13047_v44  ;;  %v13097_v23 = vpack.c.bf16 %v6626_v20, %v6625_v61  ;;  %v6645_v44 = vld [vmem:[%s19669_s5 + $0x1b0] sm:$0xff]  ;;  %v6606_v20 = vld [vmem:[%s19669_s5 + $0x78] sm:$0xff] }
 0x3e1   :  { %13004 = vmatpush3.bf16.xpose.msk.msra.mxu0 %vm17587_vm2, %v19840_v47  ;;  %v6647_v47 = vld [vmem:[%s19669_s5 + $0x1c0] sm:$0xff] }
 0x3e2   :  { %13007 = vmatprep.subr.msk.bf16.mxu0 %vm17587_vm2, %v13005_v19  ;;  %v6646_v19 = vld [vmem:[%s19669_s5 + $0x1b8] sm:$0xff]  ;;  %v13107_v39 = vpack.c.bf16 %v6648_v58, %v6647_v47  ;;  %v14169_v47 = vmov 1983009808  }
 0x3e3   :  { %v13103_v1 = vpack.c.bf16 %v6646_v19, %v6645_v44  ;;  %v18031_v58 = vunpack.c.l.s4 %v14169_v47 }
 0x3e5   :  { %13052 = vmatpush3.bf16.xpose.msk.msra.mxu1 %vm17587_vm2, %v13050_v9  ;;  %v13067_v9 = vpack.c.bf16 %v6612_v14, %v6611_v45  ;;  %v6635_v45 = vld [vmem:[%s19669_s5 + $0x160] sm:$0xff]  ;;  %v6636_v14 = vld [vmem:[%s19669_s5 + $0x168] sm:$0xff] }
 0x3e6   :  { %13055 = vmatprep.subr.msk.bf16.mxu1 %vm17587_vm2, %v13053_v24  ;;  %v6629_v24 = vld [vmem:[%s19669_s5 + $0x130] sm:$0xff] }
 0x3e7   :  { %v13105_v3 = vpack.c.bf16 %v6630_v5, %v6629_v24 }
 0x3e9   :  { %13010 = vmatpush3.bf16.xpose.msk.msra.mxu0 %vm17587_vm2, %v19844_v17  ;;  %v6602_v17 = vld [vmem:[%s19669_s5 + $0x58] sm:$0xff] }
 0x3ea   :  { %13060 = vmatprep.subr.bf16.mxu0 %v13059_v26  ;;  %v6631_v26 = vld [vmem:[%s19669_s5 + $0x140] sm:$0xff]  ;;  %v13081_v42 = vpack.c.bf16 %v6602_v17, %v6601_v25 }
 0x3eb   :  { %v13109_v12 = vpack.c.bf16 %v6632_v11, %v6631_v26 }
 0x3ed   :  { %13058 = vmatpush3.bf16.xpose.msk.msra.mxu1 %vm17587_vm2, %v13056_v62  ;;  %v13069_v62 = vpack.c.bf16 %v6596_v38, %v6595_v10  ;;  %v6622_v10 = vld [vmem:[%s19669_s5 + $0xf8] sm:$0xff]  ;;  %v6605_v38 = vld [vmem:[%s19669_s5 + $0x70] sm:$0xff] }
 0x3ee   :  { %13092 = vmatprep.subr.bf16.mxu1 %v13091_v29  ;;  %v6650_v29 = vld [vmem:[%s19669_s5 + $0x1d8] sm:$0xff] }
 0x3ef   :  { %v13111_v18 = vpack.c.bf16 %v6650_v29, %v6649_v60 }
 0x3f0   :  { %10268 = vmatmul.mubr.msk.f32.vlgmr.msra.gmra.mrb[32].mxu0 %vm2813_vm0, %v19847_v57 }
 0x3f1   :  { %10269 = vmatprep.mubr.msk.f32.mxu0 %vm2813_vm0, %v9298_v21  ;;  %13062 = vmatpush3.bf16.msra.mxu0 %v13061_v22  ;;  %v6634_v22 = vld [vmem:[%s19669_s5 + $0x158] sm:$0xff] }
 0x3f2   :  { %13064 = vmatprep.subr.bf16.mxu0 %v13063_v31  ;;  %v6620_v31 = vld [vmem:[%s19669_s5 + $0xe8] sm:$0xff]  ;;  %v13113_v35 = vpack.c.bf16 %v6634_v22, %v6633_v4 }
 0x3f4   :  { %10270 = vmatmul.mubr.msk.f32.gmra.mrb[34].mxu0 %vm2813_vm0, %v9298_v21  ;;  %10304 = vmatmul.mubr.msk.f32.vlgmr.msra.gmra.mrb[32].mxu1 %vm2813_vm0, %v19847_v57  ;;  %v13085_v57 = vpack.c.bf16 %v6604_v0, %v6603_v34 }
 0x3f5   :  { %13066 = vmatpush3.bf16.msra.mxu0 %v13065_v59  ;;  %10305 = vmatprep.mubr.msk.f32.mxu1 %vm2813_vm0, %v9298_v21  ;;  %v13115_v59 = vpack.c.bf16 %v6652_v51, %v6651_v56  ;;  %v7121_v56 = vunpack.c.0.s8 %v18031_v58 }
 0x3f6   :  { %13094 = vmatpush3.bf16.msra.mxu1 %v13093_v52  ;;  %13068 = vmatprep.subr.bf16.mxu0 %v13067_v9  ;;  %v6621_v52 = vld [vmem:[%s19669_s5 + $0xf0] sm:$0xff] }
 0x3f7   :  { %13096 = vmatprep.subr.bf16.mxu1 %v13095_v55  ;;  %v13117_v55 = vpack.c.bf16 %v6636_v14, %v6635_v45  ;;  %v13087_v61 = vpack.c.bf16 %v6622_v10, %v6621_v52  ;;  %v6653_v9 = vld [vmem:[%s19669_s5 + $0x1f0] sm:$0xff] }
 0x3f8   :  { %10306 = vmatmul.mubr.msk.f32.gmra.mrb[34].mxu1 %vm2813_vm0, %v9298_v21  ;;  %v6619_v21 = vld [vmem:[%s19669_s5 + $0xe0] sm:$0xff] }
 0x3f9   :  { %13070 = vmatpush3.bf16.msra.mxu0 %v13069_v62  ;;  %v13083_v15 = vpack.c.bf16 %v6620_v31, %v6619_v21  ;;  %v6654_v62 = vld [vmem:[%s19669_s5 + $0x1f8] sm:$0xff] }
 0x3fa   :  { %13098 = vmatpush3.bf16.msra.mxu1 %v13097_v23  ;;  %13072 = vmatprep.subr.bf16.mxu0 %v13071_v27  ;;  %v13119_v23 = vpack.c.bf16 %v6654_v62, %v6653_v9  ;;  %v6704_v27 = vld [vmem:[%s19669_s5 + $0x388] sm:$0xff] }
 0x3fb   :  { %13100 = vmatprep.subr.bf16.mxu1 %v13099_v50  ;;  %v13089_v50 = vpack.c.bf16 %v6606_v20, %v6605_v38  ;;  %v13155_v54 = vpack.c.bf16 %v6704_v27, %v6703_v48 }
 0x3fd   :  { %13074 = vmatpush3.bf16.msra.mxu0 %v13073_v36  ;;  %v6043_v36 = vunpack.c.l.s4 %v14168_v46 }
 0x3fe   :  { %13102 = vmatpush3.bf16.msra.mxu1 %v13101_v6  ;;  %13076 = vmatprep.subr.bf16.mxu0 %v13075_v8  ;;  %v13121_v6 = vpack.c.bf16 %v6638_v41, %v6637_v7 }
 0x3ff   :  { %13104 = vmatprep.subr.bf16.mxu1 %v13103_v1  ;;  %v6044_v44 = vunpack.c.0.s8 %v6043_v36  ;;  %v18097_v36 = vsub.s32 %v7121_v56, %v19841_v43  ;;  %v6676_v56 = vld [vmem:[%s19669_s5 + $0x2a8] sm:$0xff] }
 0x401   :  { %13078 = vmatpush3.bf16.msra.mxu0 %v13077_v32  ;;  %v18022_v1 = vsub.s32 %v6044_v44, %v19841_v43  ;;  %v6656_v43 = vld [vmem:[%s19669_s5 + $0x208] sm:$0xff] }
 0x402   :  { %13106 = vmatpush3.bf16.msra.mxu1 %v13105_v3  ;;  %13080 = vmatprep.subr.bf16.mxu0 %v13079_v53 }
 0x403   :  { %13108 = vmatprep.subr.bf16.mxu1 %v13107_v39 }
 0x405   :  { %13082 = vmatpush3.bf16.msra.mxu0 %v13081_v42 }
 0x406   :  { %13110 = vmatpush3.bf16.msra.mxu1 %v13109_v12  ;;  %13084 = vmatprep.subr.bf16.mxu0 %v13083_v15 }
 0x407   :  { %13112 = vmatprep.subr.bf16.mxu1 %v13111_v18 }
 0x409   :  { %13086 = vmatpush3.bf16.msra.mxu0 %v13085_v57 }
 0x40a   :  { %13114 = vmatpush3.bf16.msra.mxu1 %v13113_v35  ;;  %13088 = vmatprep.subr.bf16.mxu0 %v13087_v61 }
 0x40b   :  { %13116 = vmatprep.subr.bf16.mxu1 %v13115_v59 }
 0x40d   :  { %13090 = vmatpush3.bf16.msra.mxu0 %v13089_v50 }
 0x40e   :  { %13118 = vmatpush3.bf16.msra.mxu1 %v13117_v55  ;;  %13124 = vmatprep.subr.bf16.mxu0 %v13123_v49 }
 0x40f   :  { %13120 = vmatprep.subr.bf16.mxu1 %v13119_v23 }
 0x412   :  { %13122 = vmatpush3.bf16.msra.mxu1 %v13121_v6 }
 0x413   :  { %13156 = vmatprep.subr.bf16.mxu1 %v13155_v54 }
 0x4c3   :  { %v6028_v19 = vpop.f32.mrb[32].mxu0 }
 0x4c4   :  { %v6030_v24 = vpop.f32.mrb[33].mxu0 }
 0x4c5   :  { %v6041_v5 = vcombine.low %v6028_v19, %v6030_v24  ;;  %v6081_v3 = vcombine.high %v6028_v19, %v6030_v24 }
 0x4c7   :  { %v6048_v28 = vrot.slane %v6041_v5, %v18022_v1  ;;  %v6088_v2 = vrot.slane %v6081_v3, %v18022_v1  ;;  %v6034_v8 = vpop.f32.mrb[34].mxu0  ;;  %v6420_v30 = vpop.f32.mrb[32].mxu1  ;;  %v6655_v3 = vld [vmem:[%s19669_s5 + $0x200] sm:$0xff] }
 0x4c8   :  { %v6036_v39 = vpop.f32.mrb[35].mxu0  ;;  %v6422_v33 = vpop.f32.mrb[33].mxu1 }
 0x4c9   :  { %v6055_v26 = vrot.slane %v6048_v28, %v18022_v1  ;;  %v6062_v11 = vcombine.high %v6048_v28, %v6048_v28  ;;  %v6095_v13 = vrot.slane %v6088_v2, %v18022_v1  ;;  %v6099_v12 = vcombine.high %v6088_v2, %v6088_v2 }
 0x4ca   :  { %v6433_v25 = vcombine.low %v6420_v30, %v6422_v33  ;;  %v6470_v17 = vcombine.high %v6420_v30, %v6422_v33  ;;  %v6120_v53 = vcombine.low %v6034_v8, %v6036_v39  ;;  %v6157_v42 = vcombine.high %v6034_v8, %v6036_v39  ;;  %v6687_v39 = vld [vmem:[%s19669_s5 + $0x300] sm:$0xff] }
 0x4cb   :  { %6061 = vst.msk [vmem:[#allocation2] ss:$2 sm:$0x3] %vm18027_vm4, %v6055_v26  ;;  %v6069_v60 = vrot.slane %v6062_v11, %v18022_v1  ;;  %v6073_v29 = vcombine.high %v6055_v26, %v6055_v26  ;;  %6098 = vst.msk [vmem:[#allocation2 + $0x10] ss:$2 sm:$0x3] %vm18027_vm4, %v6095_v13  ;;  %v6106_v4 = vrot.slane %v6099_v12, %v18022_v1 }
 0x4cc   :  { %v6110_v18 = vcombine.high %v6095_v13, %v6095_v13  ;;  %v6440_v22 = vrot.slane %v6433_v25, %v18022_v1  ;;  %v6477_v21 = vrot.slane %v6470_v17, %v18022_v1  ;;  %v6426_v31 = vpop.f32.mrb[34].mxu1  ;;  %v6127_v35 = vrot.slane %v6120_v53, %v18022_v1  ;;  %v6688_v26 = vld [vmem:[%s19669_s5 + $0x308] sm:$0xff]  ;;  %v6673_v13 = vld [vmem:[%s19669_s5 + $0x290] sm:$0xff]  ;;  %v6674_v12 = vld [vmem:[%s19669_s5 + $0x298] sm:$0xff] }
 0x4cd   :  { %v6164_v15 = vrot.slane %v6157_v42, %v18022_v1  ;;  %6072 = vst.msk [vmem:[#allocation2 + $0x4] ss:$2 sm:$0x3] %vm18027_vm4, %v6069_v60  ;;  %6076 = vst.msk [vmem:[#allocation2 + $0x8] ss:$2 sm:$0x3] %vm18027_vm4, %v6073_v29  ;;  %v6077_v34 = vcombine.high %v6069_v60, %v6069_v60  ;;  %v6114_v0 = vcombine.high %v6106_v4, %v6106_v4 }
 0x4ce   :  { %6109 = vst.msk [vmem:[#allocation2 + $0x14] ss:$2 sm:$0x3] %vm18027_vm4, %v6106_v4  ;;  %6113 = vst.msk [vmem:[#allocation2 + $0x18] ss:$2 sm:$0x3] %vm18027_vm4, %v6110_v18  ;;  %v6447_v51 = vrot.slane %v6440_v22, %v18022_v1  ;;  %v6451_v45 = vcombine.high %v6440_v22, %v6440_v22  ;;  %v6484_v14 = vrot.slane %v6477_v21, %v18022_v1 }
 0x4cf   :  { %v6428_v57 = vpop.f32.mrb[35].mxu1  ;;  %v6488_v59 = vcombine.high %v6477_v21, %v6477_v21  ;;  %6080 = vst.msk [vmem:[#allocation2 + $0xc] ss:$2 sm:$0x3] %vm18027_vm4, %v6077_v34  ;;  %v6134_v52 = vrot.slane %v6127_v35, %v18022_v1  ;;  %v6138_v10 = vcombine.high %v6127_v35, %v6127_v35  ;;  %v6171_v38 = vrot.slane %v6164_v15, %v18022_v1  ;;  %v6705_v29 = vld [vmem:[%s19669_s5 + $0x390] sm:$0xff]  ;;  %v6706_v4 = vld [vmem:[%s19669_s5 + $0x398] sm:$0xff] }
 0x4d0   :  { %6117 = vst.msk [vmem:[#allocation2 + $0x1c] ss:$2 sm:$0x3] %vm18027_vm4, %v6114_v0  ;;  %v6175_v55 = vcombine.high %v6164_v15, %v6164_v15  ;;  %6450 = vst.msk [vmem:[#allocation2 + $0x1] ss:$2 sm:$0x3] %vm18027_vm4, %v6447_v51  ;;  %v6458_v61 = vrot.slane %v6451_v45, %v18022_v1  ;;  %v6462_v20 = vcombine.high %v6447_v51, %v6447_v51 }
 0x4d1   :  { %6487 = vst.msk [vmem:[#allocation2 + $0x11] ss:$2 sm:$0x3] %vm18027_vm4, %v6484_v14  ;;  %v6495_v9 = vrot.slane %v6488_v59, %v18022_v1  ;;  %v6499_v62 = vcombine.high %v6484_v14, %v6484_v14  ;;  %6137 = vst.msk [vmem:[#allocation2 + $0x20] ss:$2 sm:$0x3] %vm18027_vm4, %v6134_v52  ;;  %v6145_v23 = vrot.slane %v6138_v10, %v18022_v1 }
 0x4d2   :  { %v6149_v7 = vcombine.high %v6134_v52, %v6134_v52  ;;  %6174 = vst.msk [vmem:[#allocation2 + $0x30] ss:$2 sm:$0x3] %vm18027_vm4, %v6171_v38  ;;  %v6182_v41 = vrot.slane %v6175_v55, %v18022_v1  ;;  %v6186_v50 = vcombine.high %v6171_v38, %v6171_v38  ;;  %6461 = vst.msk [vmem:[#allocation2 + $0x5] ss:$2 sm:$0x3] %vm18027_vm4, %v6458_v61 }
 0x4d3   :  { %6465 = vst.msk [vmem:[#allocation2 + $0x9] ss:$2 sm:$0x3] %vm18027_vm4, %v6462_v20  ;;  %v6466_v37 = vcombine.high %v6458_v61, %v6458_v61  ;;  %6498 = vst.msk [vmem:[#allocation2 + $0x15] ss:$2 sm:$0x3] %vm18027_vm4, %v6495_v9  ;;  %v6503_v40 = vcombine.high %v6495_v9, %v6495_v9  ;;  %v6509_v6 = vcombine.low %v6426_v31, %v6428_v57 }
 0x4d4   :  { %6502 = vst.msk [vmem:[#allocation2 + $0x19] ss:$2 sm:$0x3] %vm18027_vm4, %v6499_v62  ;;  %v6546_v49 = vcombine.high %v6426_v31, %v6428_v57  ;;  %6148 = vst.msk [vmem:[#allocation2 + $0x24] ss:$2 sm:$0x3] %vm18027_vm4, %v6145_v23  ;;  %v6153_v48 = vcombine.high %v6145_v23, %v6145_v23  ;;  %v6190_v27 = vcombine.high %v6182_v41, %v6182_v41 }
 0x4d5   :  { %6152 = vst.msk [vmem:[#allocation2 + $0x28] ss:$2 sm:$0x3] %vm18027_vm4, %v6149_v7  ;;  %6185 = vst.msk [vmem:[#allocation2 + $0x34] ss:$2 sm:$0x3] %vm18027_vm4, %v6182_v41  ;;  %v6516_v54 = vrot.slane %v6509_v6, %v18022_v1  ;;  %v13157_v18 = vpack.c.bf16 %v6688_v26, %v6687_v39  ;;  %v13127_v15 = vpack.c.bf16 %v6674_v12, %v6673_v13 }
 0x4d6   :  { %6189 = vst.msk [vmem:[#allocation2 + $0x38] ss:$2 sm:$0x3] %vm18027_vm4, %v6186_v50  ;;  %6469 = vst.msk [vmem:[#allocation2 + $0xd] ss:$2 sm:$0x3] %vm18027_vm4, %v6466_v37  ;;  %v6553_v46 = vrot.slane %v6546_v49, %v18022_v1  ;;  %v13159_v32 = vpack.c.bf16 %v6706_v4, %v6705_v29 }
 0x4d7   :  { %6506 = vst.msk [vmem:[#allocation2 + $0x1d] ss:$2 sm:$0x3] %vm18027_vm4, %v6503_v40  ;;  %6156 = vst.msk [vmem:[#allocation2 + $0x2c] ss:$2 sm:$0x3] %vm18027_vm4, %v6153_v48  ;;  %v6523_v44 = vrot.slane %v6516_v54, %v18022_v1  ;;  %v6527_v19 = vcombine.high %v6516_v54, %v6516_v54 }
 0x4d8   :  { %6193 = vst.msk [vmem:[#allocation2 + $0x3c] ss:$2 sm:$0x3] %vm18027_vm4, %v6190_v27  ;;  %v6560_v24 = vrot.slane %v6553_v46, %v18022_v1  ;;  %v6564_v5 = vcombine.high %v6553_v46, %v6553_v46  ;;  %v6657_v22 = vld [vmem:[%s19669_s5 + $0x210] sm:$0xff]  ;;  %v6658_v21 = vld [vmem:[%s19669_s5 + $0x218] sm:$0xff]  ;;  %v6675_v0 = vld [vmem:[%s19669_s5 + $0x2a0] sm:$0xff] }
 0x4d9   :  { %6526 = vst.msk [vmem:[#allocation2 + $0x21] ss:$2 sm:$0x3] %vm18027_vm4, %v6523_v44  ;;  %v6534_v28 = vrot.slane %v6527_v19, %v18022_v1  ;;  %v6538_v2 = vcombine.high %v6523_v44, %v6523_v44  ;;  %v6583_v63 = vld [vmem:[#allocation2] sm:$0xff]  ;;  %v6689_v57 = vld [vmem:[%s19669_s5 + $0x310] sm:$0xff]  ;;  %v6690_v51 = vld [vmem:[%s19669_s5 + $0x318] sm:$0xff]  ;;  %v13129_v14 = vpack.c.bf16 %v6658_v21, %v6657_v22  ;;  %v13131_v10 = vpack.c.bf16 %v6676_v56, %v6675_v0 }
 0x4da   :  { %6563 = vst.msk [vmem:[#allocation2 + $0x31] ss:$2 sm:$0x3] %vm18027_vm4, %v6560_v24  ;;  %v6571_v8 = vrot.slane %v6564_v5, %v18022_v1  ;;  %v6575_v30 = vcombine.high %v6560_v24, %v6560_v24  ;;  %v7125_v47 = vrot.slane %v6583_v63, %v18097_v36  ;;  %v7118_v58 = vcombine.high %v6583_v63, %v6583_v63  ;;  %v6707_v59 = vld [vmem:[%s19669_s5 + $0x3a0] sm:$0xff]  ;;  %v6708_v52 = vld [vmem:[%s19669_s5 + $0x3a8] sm:$0xff]  ;;  %v6677_v20 = vld [vmem:[%s19669_s5 + $0x2b0] sm:$0xff] }
 0x4db   :  { %6537 = vst.msk [vmem:[#allocation2 + $0x25] ss:$2 sm:$0x3] %vm18027_vm4, %v6534_v28  ;;  %6541 = vst.msk [vmem:[#allocation2 + $0x29] ss:$2 sm:$0x3] %vm18027_vm4, %v6538_v2  ;;  %v13125_v1 = vpack.c.bf16 %v6656_v43, %v6655_v3  ;;  %v6542_v33 = vcombine.high %v6534_v28, %v6534_v28  ;;  %v13161_v61 = vpack.c.bf16 %v6690_v51, %v6689_v57 }
 0x4dc   :  { %6574 = vst.msk [vmem:[#allocation2 + $0x35] ss:$2 sm:$0x3] %vm18027_vm4, %v6571_v8  ;;  %6578 = vst.msk [vmem:[#allocation2 + $0x39] ss:$2 sm:$0x3] %vm18027_vm4, %v6575_v30  ;;  %v6579_v25 = vcombine.high %v6571_v8, %v6571_v8  ;;  %v7133_v17 = vcombine.high %v7125_v47, %v7125_v47  ;;  %v7132_v53 = vrot.slane %v7118_v58, %v18097_v36 }
 0x4dd   :  { %v6584_v11 = vld [vmem:[#allocation2 + $0x8] sm:$0xff]  ;;  %6545 = vst.msk [vmem:[#allocation2 + $0x2d] ss:$2 sm:$0x3] %vm18027_vm4, %v6542_v33  ;;  %v6659_v38 = vld [vmem:[%s19669_s5 + $0x220] sm:$0xff]  ;;  %v6678_v9 = vld [vmem:[%s19669_s5 + $0x2b8] sm:$0xff]  ;;  %v13163_v62 = vpack.c.bf16 %v6708_v52, %v6707_v59 }
 0x4de   :  { %v18140_v42 = vrot.slane %v6584_v11, %v18097_v36  ;;  %v7135_v60 = vcombine.high %v6584_v11, %v6584_v11  ;;  %6582 = vst.msk [vmem:[#allocation2 + $0x3d] ss:$2 sm:$0x3] %vm18027_vm4, %v6579_v25  ;;  %7350 = vmatprep.mubr.f32.mxu0 %v7133_v17  ;;  %v7134_v31 = vcombine.high %v7132_v53, %v7132_v53  ;;  %v6660_v55 = vld [vmem:[%s19669_s5 + $0x228] sm:$0xff]  ;;  %v6691_v23 = vld [vmem:[%s19669_s5 + $0x320] sm:$0xff]  ;;  %v6709_v50 = vld [vmem:[%s19669_s5 + $0x3b0] sm:$0xff] }
 0x4df   :  { %7351 = vmatmul.mubr.f32.vlgmr.msra.gmra.mrb[36].mxu0 %v7125_v47  ;;  %v6692_v7 = vld [vmem:[%s19669_s5 + $0x328] sm:$0xff]  ;;  %v13133_v41 = vpack.c.bf16 %v6660_v55, %v6659_v38  ;;  %v6710_v37 = vld [vmem:[%s19669_s5 + $0x3b8] sm:$0xff]  ;;  %v13135_v40 = vpack.c.bf16 %v6678_v9, %v6677_v20  ;;  %v6661_v6 = vld [vmem:[%s19669_s5 + $0x230] sm:$0xff] }
 0x4e0   :  { %v7150_v35 = vcombine.high %v18140_v42, %v18140_v42  ;;  %v18161_v34 = vrot.slane %v7135_v60, %v18097_v36  ;;  %13126 = vmatpush3.bf16.msra.mxu0 %v13125_v1  ;;  %7420 = vmatprep.mubr.f32.mxu1 %v7134_v31  ;;  %v6662_v49 = vld [vmem:[%s19669_s5 + $0x238] sm:$0xff]  ;;  %v13165_v48 = vpack.c.bf16 %v6692_v7, %v6691_v23  ;;  %v6679_v27 = vld [vmem:[%s19669_s5 + $0x2c0] sm:$0xff]  ;;  %v6680_v54 = vld [vmem:[%s19669_s5 + $0x2c8] sm:$0xff] }
 0x4e1   :  { %7421 = vmatmul.mubr.f32.vlgmr.msra.gmra.mrb[36].mxu1 %v7132_v53  ;;  %13128 = vmatprep.subr.bf16.mxu0 %v13127_v15  ;;  %v13167_v46 = vpack.c.bf16 %v6710_v37, %v6709_v50  ;;  %v6693_v44 = vld [vmem:[%s19669_s5 + $0x330] sm:$0xff]  ;;  %v6694_v19 = vld [vmem:[%s19669_s5 + $0x338] sm:$0xff]  ;;  %v13137_v24 = vpack.c.bf16 %v6662_v49, %v6661_v6  ;;  %v6711_v5 = vld [vmem:[%s19669_s5 + $0x3c0] sm:$0xff]  ;;  %v13139_v43 = vpack.c.bf16 %v6680_v54, %v6679_v27 }
 0x4e2   :  { %v7151_v45 = vcombine.high %v18161_v34, %v18161_v34  ;;  %7490 = vmatprep.mubr.f32.mxu0 %v7150_v35  ;;  %13158 = vmatpush3.bf16.msra.mxu1 %v13157_v18  ;;  %v6712_v3 = vld [vmem:[%s19669_s5 + $0x3c8] sm:$0xff]  ;;  %v6663_v28 = vld [vmem:[%s19669_s5 + $0x240] sm:$0xff]  ;;  %v13169_v8 = vpack.c.bf16 %v6694_v19, %v6693_v44  ;;  %v6681_v30 = vld [vmem:[%s19669_s5 + $0x2d0] sm:$0xff] }
 0x4e3   :  { %13160 = vmatprep.subr.bf16.mxu1 %v13159_v32  ;;  %v6664_v2 = vld [vmem:[%s19669_s5 + $0x248] sm:$0xff]  ;;  %v6682_v63 = vld [vmem:[%s19669_s5 + $0x2d8] sm:$0xff]  ;;  %v13171_v47 = vpack.c.bf16 %v6712_v3, %v6711_v5  ;;  %v6695_v58 = vld [vmem:[%s19669_s5 + $0x340] sm:$0xff] }
 0x4e4   :  { %7560 = vmatprep.mubr.f32.mxu1 %v7151_v45  ;;  %13130 = vmatpush3.bf16.msra.mxu0 %v13129_v14  ;;  %v6696_v39 = vld [vmem:[%s19669_s5 + $0x348] sm:$0xff]  ;;  %v13141_v26 = vpack.c.bf16 %v6664_v2, %v6663_v28  ;;  %v6713_v1 = vld [vmem:[%s19669_s5 + $0x3d0] sm:$0xff]  ;;  %v6714_v11 = vld [vmem:[%s19669_s5 + $0x3d8] sm:$0xff]  ;;  %v13143_v13 = vpack.c.bf16 %v6682_v63, %v6681_v30 }
 0x4e5   :  { %13132 = vmatprep.subr.bf16.mxu0 %v13131_v10  ;;  %v6665_v12 = vld [vmem:[%s19669_s5 + $0x250] sm:$0xff]  ;;  %v6666_v33 = vld [vmem:[%s19669_s5 + $0x258] sm:$0xff]  ;;  %v13173_v25 = vpack.c.bf16 %v6696_v39, %v6695_v58  ;;  %v6683_v17 = vld [vmem:[%s19669_s5 + $0x2e0] sm:$0xff]  ;;  %v13175_v60 = vpack.c.bf16 %v6714_v11, %v6713_v1 }
 0x4e6   :  { %13162 = vmatpush3.bf16.msra.mxu1 %v13161_v61  ;;  %v6684_v53 = vld [vmem:[%s19669_s5 + $0x2e8] sm:$0xff]  ;;  %v6697_v29 = vld [vmem:[%s19669_s5 + $0x350] sm:$0xff]  ;;  %v6698_v4 = vld [vmem:[%s19669_s5 + $0x358] sm:$0xff]  ;;  %v13145_v18 = vpack.c.bf16 %v6666_v33, %v6665_v12 }
 0x4e7   :  { %13164 = vmatprep.subr.bf16.mxu1 %v13163_v62  ;;  %v6715_v22 = vld [vmem:[%s19669_s5 + $0x3e0] sm:$0xff]  ;;  %v6716_v21 = vld [vmem:[%s19669_s5 + $0x3e8] sm:$0xff]  ;;  %v13147_v31 = vpack.c.bf16 %v6684_v53, %v6683_v17  ;;  %v13177_v0 = vpack.c.bf16 %v6698_v4, %v6697_v29  ;;  %v6685_v56 = vld [vmem:[%s19669_s5 + $0x2f0] sm:$0xff] }
 0x4e8   :  { %13134 = vmatpush3.bf16.msra.mxu0 %v13133_v41  ;;  %v6667_v35 = vld [vmem:[%s19669_s5 + $0x260] sm:$0xff]  ;;  %v6668_v15 = vld [vmem:[%s19669_s5 + $0x268] sm:$0xff]  ;;  %v6686_v32 = vld [vmem:[%s19669_s5 + $0x2f8] sm:$0xff]  ;;  %v13179_v57 = vpack.c.bf16 %v6716_v21, %v6715_v22 }
 0x4e9   :  { %13136 = vmatprep.subr.bf16.mxu0 %v13135_v40  ;;  %v6699_v51 = vld [vmem:[%s19669_s5 + $0x360] sm:$0xff]  ;;  %v6700_v45 = vld [vmem:[%s19669_s5 + $0x368] sm:$0xff]  ;;  %v13149_v14 = vpack.c.bf16 %v6668_v15, %v6667_v35  ;;  %v6717_v59 = vld [vmem:[%s19669_s5 + $0x3f0] sm:$0xff]  ;;  %v13151_v10 = vpack.c.bf16 %v6686_v32, %v6685_v56 }
 0x4ea   :  { %13166 = vmatpush3.bf16.msra.mxu1 %v13165_v48  ;;  %v6718_v52 = vld [vmem:[%s19669_s5 + $0x3f8] sm:$0xff]  ;;  %v6669_v38 = vld [vmem:[%s19669_s5 + $0x270] sm:$0xff]  ;;  %v13181_v20 = vpack.c.bf16 %v6700_v45, %v6699_v51  ;;  %v6735_v9 = vld [vmem:[%s19669_s5 + $0x480] sm:$0xff] }
 0x4eb   :  { %13168 = vmatprep.subr.bf16.mxu1 %v13167_v46  ;;  %v6670_v55 = vld [vmem:[%s19669_s5 + $0x278] sm:$0xff]  ;;  %v6585_v61 = vld [vmem:[#allocation2 + $0x10] sm:$0xff]  ;;  %v6736_v62 = vld [vmem:[%s19669_s5 + $0x488] sm:$0xff]  ;;  %v13183_v23 = vpack.c.bf16 %v6718_v52, %v6717_v59 }
 0x4ec   :  { %13138 = vmatpush3.bf16.msra.mxu0 %v13137_v24  ;;  %v6701_v7 = vld [vmem:[%s19669_s5 + $0x370] sm:$0xff]  ;;  %v6702_v41 = vld [vmem:[%s19669_s5 + $0x378] sm:$0xff]  ;;  %v13153_v50 = vpack.c.bf16 %v6670_v55, %v6669_v38  ;;  %v6767_v37 = vld [vmem:[%s19669_s5 + $0x580] sm:$0xff]  ;;  %v7152_v6 = vcombine.high %v6585_v61, %v6585_v61  ;;  %v13187_v49 = vpack.c.bf16 %v6736_v62, %v6735_v9  ;;  %v18334_v46 = vrot.slane %v6585_v61, %v18097_v36 }
 0x4ed   :  { %13140 = vmatprep.subr.bf16.mxu0 %v13139_v43  ;;  %v6768_v40 = vld [vmem:[%s19669_s5 + $0x588] sm:$0xff]  ;;  %v6719_v48 = vld [vmem:[%s19669_s5 + $0x400] sm:$0xff]  ;;  %v13185_v54 = vpack.c.bf16 %v6702_v41, %v6701_v7  ;;  %v6737_v44 = vld [vmem:[%s19669_s5 + $0x490] sm:$0xff] }
 0x4ee   :  { %13170 = vmatpush3.bf16.msra.mxu1 %v13169_v8  ;;  %v6720_v27 = vld [vmem:[%s19669_s5 + $0x408] sm:$0xff]  ;;  %v6738_v19 = vld [vmem:[%s19669_s5 + $0x498] sm:$0xff]  ;;  %v13219_v24 = vpack.c.bf16 %v6768_v40, %v6767_v37  ;;  %v6751_v5 = vld [vmem:[%s19669_s5 + $0x500] sm:$0xff]  ;;  %v18349_v28 = vrot.slane %v7152_v6, %v18097_v36  ;;  %v7167_v58 = vcombine.high %v18334_v46, %v18334_v46 }
 0x4ef   :  { %13172 = vmatprep.subr.bf16.mxu1 %v13171_v47  ;;  %v6752_v3 = vld [vmem:[%s19669_s5 + $0x508] sm:$0xff]  ;;  %v13189_v43 = vpack.c.bf16 %v6720_v27, %v6719_v48  ;;  %v6769_v2 = vld [vmem:[%s19669_s5 + $0x590] sm:$0xff]  ;;  %v6770_v8 = vld [vmem:[%s19669_s5 + $0x598] sm:$0xff]  ;;  %v13191_v30 = vpack.c.bf16 %v6738_v19, %v6737_v44 }
 0x4f0   :  { %13142 = vmatpush3.bf16.msra.mxu0 %v13141_v26  ;;  %v6721_v63 = vld [vmem:[%s19669_s5 + $0x410] sm:$0xff]  ;;  %v6722_v47 = vld [vmem:[%s19669_s5 + $0x418] sm:$0xff]  ;;  %v13221_v39 = vpack.c.bf16 %v6752_v3, %v6751_v5  ;;  %v6739_v26 = vld [vmem:[%s19669_s5 + $0x4a0] sm:$0xff]  ;;  %v13223_v11 = vpack.c.bf16 %v6770_v8, %v6769_v2  ;;  %v7168_v33 = vcombine.high %v18349_v28, %v18349_v28 }
 0x4f1   :  { %13144 = vmatprep.subr.bf16.mxu0 %v13143_v13  ;;  %v6740_v1 = vld [vmem:[%s19669_s5 + $0x4a8] sm:$0xff]  ;;  %v6753_v13 = vld [vmem:[%s19669_s5 + $0x510] sm:$0xff]  ;;  %v6754_v12 = vld [vmem:[%s19669_s5 + $0x518] sm:$0xff] }
 0x4f2   :  { %13174 = vmatpush3.bf16.msra.mxu1 %v13173_v25  ;;  %v13193_v25 = vpack.c.bf16 %v6722_v47, %v6721_v63  ;;  %v6772_v17 = vld [vmem:[%s19669_s5 + $0x5a8] sm:$0xff]  ;;  %v13195_v53 = vpack.c.bf16 %v6740_v1, %v6739_v26  ;;  %v13225_v4 = vpack.c.bf16 %v6754_v12, %v6753_v13  ;;  %v6755_v21 = vld [vmem:[%s19669_s5 + $0x520] sm:$0xff]  ;;  %v6773_v15 = vld [vmem:[%s19669_s5 + $0x5b0] sm:$0xff] }
 0x4f3   :  { %13176 = vmatprep.subr.bf16.mxu1 %v13175_v60  ;;  %v6723_v60 = vld [vmem:[%s19669_s5 + $0x420] sm:$0xff]  ;;  %v6724_v29 = vld [vmem:[%s19669_s5 + $0x428] sm:$0xff]  ;;  %v6725_v32 = vld [vmem:[%s19669_s5 + $0x430] sm:$0xff] }
 0x4f4   :  { %13146 = vmatpush3.bf16.msra.mxu0 %v13145_v18  ;;  %v6741_v18 = vld [vmem:[%s19669_s5 + $0x4b0] sm:$0xff]  ;;  %v13197_v35 = vpack.c.bf16 %v6724_v29, %v6723_v60  ;;  %v6743_v45 = vld [vmem:[%s19669_s5 + $0x4c0] sm:$0xff]  ;;  %v6776_v61 = vld [vmem:[%s19669_s5 + $0x5c8] sm:$0xff] }
 0x4f5   :  { %13148 = vmatprep.subr.bf16.mxu0 %v13147_v31  ;;  %v6756_v31 = vld [vmem:[%s19669_s5 + $0x528] sm:$0xff]  ;;  %v6757_v52 = vld [vmem:[%s19669_s5 + $0x530] sm:$0xff]  ;;  %v6775_v55 = vld [vmem:[%s19669_s5 + $0x5c0] sm:$0xff] }
 0x4f6   :  { %13178 = vmatpush3.bf16.msra.mxu1 %v13177_v0  ;;  %v6774_v0 = vld [vmem:[%s19669_s5 + $0x5b8] sm:$0xff]  ;;  %v13229_v51 = vpack.c.bf16 %v6756_v31, %v6755_v21  ;;  %v6727_v9 = vld [vmem:[%s19669_s5 + $0x440] sm:$0xff]  ;;  %v6728_v62 = vld [vmem:[%s19669_s5 + $0x448] sm:$0xff] }
 0x4f7   :  { %13180 = vmatprep.subr.bf16.mxu1 %v13179_v57  ;;  %v6726_v57 = vld [vmem:[%s19669_s5 + $0x438] sm:$0xff]  ;;  %v13231_v59 = vpack.c.bf16 %v6774_v0, %v6773_v15  ;;  %v6745_v7 = vld [vmem:[%s19669_s5 + $0x4d0] sm:$0xff]  ;;  %v6759_v37 = vld [vmem:[%s19669_s5 + $0x540] sm:$0xff]  ;;  %v13205_v6 = vpack.c.bf16 %v6728_v62, %v6727_v9 }
 0x4f8   :  { %13150 = vmatpush3.bf16.msra.mxu0 %v13149_v14  ;;  %v6744_v14 = vld [vmem:[%s19669_s5 + $0x4c8] sm:$0xff]  ;;  %v13201_v38 = vpack.c.bf16 %v6726_v57, %v6725_v32  ;;  %v6746_v41 = vld [vmem:[%s19669_s5 + $0x4d8] sm:$0xff]  ;;  %v6749_v1 = vld [vmem:[%s19669_s5 + $0x4f0] sm:$0xff] }
 0x4f9   :  { %13152 = vmatprep.subr.bf16.mxu0 %v13151_v10  ;;  %v6758_v10 = vld [vmem:[%s19669_s5 + $0x538] sm:$0xff]  ;;  %v6760_v40 = vld [vmem:[%s19669_s5 + $0x548] sm:$0xff]  ;;  %v13207_v27 = vpack.c.bf16 %v6746_v41, %v6745_v7  ;;  %v6763_v12 = vld [vmem:[%s19669_s5 + $0x560] sm:$0xff] }
 0x4fa   :  { %13182 = vmatpush3.bf16.msra.mxu1 %v13181_v20  ;;  %v13203_v20 = vpack.c.bf16 %v6744_v14, %v6743_v45  ;;  %v6778_v48 = vld [vmem:[%s19669_s5 + $0x5d8] sm:$0xff]  ;;  %v13237_v19 = vpack.c.bf16 %v6760_v40, %v6759_v37  ;;  %v6748_v5 = vld [vmem:[%s19669_s5 + $0x4e8] sm:$0xff]  ;;  %v6733_v60 = vld [vmem:[%s19669_s5 + $0x470] sm:$0xff] }
 0x4fb   :  { %13184 = vmatprep.subr.bf16.mxu1 %v13183_v23  ;;  %v13233_v23 = vpack.c.bf16 %v6758_v10, %v6757_v52  ;;  %v6730_v44 = vld [vmem:[%s19669_s5 + $0x458] sm:$0xff]  ;;  %v6780_v63 = vld [vmem:[%s19669_s5 + $0x5e8] sm:$0xff]  ;;  %v6765_v31 = vld [vmem:[%s19669_s5 + $0x570] sm:$0xff] }
 0x4fc   :  { %13154 = vmatpush3.bf16.msra.mxu0 %v13153_v50  ;;  %v13235_v50 = vpack.c.bf16 %v6776_v61, %v6775_v55  ;;  %v6762_v2 = vld [vmem:[%s19669_s5 + $0x558] sm:$0xff]  ;;  %v6831_v0 = vld [vmem:[%s19669_s5 + $0x780] sm:$0xff]  ;;  %v6784_v45 = vld [vmem:[%s19669_s5 + $0x608] sm:$0xff] }
 0x4fd   :  { %13188 = vmatprep.subr.bf16.mxu0 %v13187_v49  ;;  %v6777_v49 = vld [vmem:[%s19669_s5 + $0x5d0] sm:$0xff]  ;;  %v6734_v29 = vld [vmem:[%s19669_s5 + $0x478] sm:$0xff]  ;;  %v6815_v55 = vld [vmem:[%s19669_s5 + $0x700] sm:$0xff] }
 0x4fe   :  { %13186 = vmatpush3.bf16.msra.mxu1 %v13185_v54  ;;  %v6729_v54 = vld [vmem:[%s19669_s5 + $0x450] sm:$0xff]  ;;  %v13239_v3 = vpack.c.bf16 %v6778_v48, %v6777_v49  ;;  %v13217_v15 = vpack.c.bf16 %v6734_v29, %v6733_v60  ;;  %v6802_v10 = vld [vmem:[%s19669_s5 + $0x698] sm:$0xff]  ;;  %v6816_v61 = vld [vmem:[%s19669_s5 + $0x708] sm:$0xff] }
 0x4ff   :  { %7491 = vmatmul.mubr.f32.vlgmr.msra.gmra.mrb[38].mxu0 %v18140_v42  ;;  %13220 = vmatprep.subr.bf16.mxu1 %v13219_v24  ;;  %v6771_v42 = vld [vmem:[%s19669_s5 + $0x5a0] sm:$0xff]  ;;  %v13209_v8 = vpack.c.bf16 %v6730_v44, %v6729_v54  ;;  %v6801_v52 = vld [vmem:[%s19669_s5 + $0x690] sm:$0xff]  ;;  %v13285_v40 = vpack.c.bf16 %v6816_v61, %v6815_v55  ;;  %v6804_v49 = vld [vmem:[%s19669_s5 + $0x6a8] sm:$0xff] }
 0x500   :  { %13190 = vmatpush3.bf16.msra.mxu0 %v13189_v43  ;;  %7630 = vmatprep.mubr.f32.mxu0 %v7167_v58  ;;  %v13227_v22 = vpack.c.bf16 %v6772_v17, %v6771_v42  ;;  %v6747_v24 = vld [vmem:[%s19669_s5 + $0x4e0] sm:$0xff]  ;;  %v6761_v43 = vld [vmem:[%s19669_s5 + $0x550] sm:$0xff]  ;;  %v6782_v17 = vld [vmem:[%s19669_s5 + $0x5f8] sm:$0xff]  ;;  %v13255_v7 = vpack.c.bf16 %v6802_v10, %v6801_v52 }
 0x501   :  { %7561 = vmatmul.mubr.f32.vlgmr.msra.gmra.mrb[38].mxu1 %v18161_v34  ;;  %13192 = vmatprep.subr.bf16.mxu0 %v13191_v30  ;;  %v6742_v34 = vld [vmem:[%s19669_s5 + $0x4b8] sm:$0xff]  ;;  %v6779_v30 = vld [vmem:[%s19669_s5 + $0x5e0] sm:$0xff]  ;;  %v13211_v47 = vpack.c.bf16 %v6748_v5, %v6747_v24  ;;  %v13241_v26 = vpack.c.bf16 %v6762_v2, %v6761_v43  ;;  %v6781_v42 = vld [vmem:[%s19669_s5 + $0x5f0] sm:$0xff] }
 0x502   :  { %13222 = vmatpush3.bf16.msra.mxu1 %v13221_v39  ;;  %7700 = vmatprep.mubr.f32.mxu1 %v7168_v33  ;;  %v13199_v56 = vpack.c.bf16 %v6742_v34, %v6741_v18  ;;  %v6731_v58 = vld [vmem:[%s19669_s5 + $0x460] sm:$0xff]  ;;  %v6732_v39 = vld [vmem:[%s19669_s5 + $0x468] sm:$0xff]  ;;  %v13243_v13 = vpack.c.bf16 %v6780_v63, %v6779_v30  ;;  %v13247_v21 = vpack.c.bf16 %v6782_v17, %v6781_v42  ;;  %v6833_v62 = vld [vmem:[%s19669_s5 + $0x790] sm:$0xff] }
 0x503   :  { %13224 = vmatprep.subr.bf16.mxu1 %v13223_v11  ;;  %v6750_v11 = vld [vmem:[%s19669_s5 + $0x4f8] sm:$0xff]  ;;  %v6764_v33 = vld [vmem:[%s19669_s5 + $0x568] sm:$0xff]  ;;  %v6799_v34 = vld [vmem:[%s19669_s5 + $0x680] sm:$0xff] }
 0x504   :  { %13194 = vmatpush3.bf16.msra.mxu0 %v13193_v25  ;;  %v13213_v25 = vpack.c.bf16 %v6732_v39, %v6731_v58  ;;  %v13245_v18 = vpack.c.bf16 %v6764_v33, %v6763_v12  ;;  %v6785_v41 = vld [vmem:[%s19669_s5 + $0x610] sm:$0xff]  ;;  %v6818_v54 = vld [vmem:[%s19669_s5 + $0x718] sm:$0xff]  ;;  %v6836_v24 = vld [vmem:[%s19669_s5 + $0x7a8] sm:$0xff] }
 0x505   :  { %13196 = vmatprep.subr.bf16.mxu0 %v13195_v53  ;;  %v13215_v53 = vpack.c.bf16 %v6750_v11, %v6749_v1  ;;  %v6788_v43 = vld [vmem:[%s19669_s5 + $0x628] sm:$0xff]  ;;  %v6819_v63 = vld [vmem:[%s19669_s5 + $0x720] sm:$0xff]  ;;  %v6837_v39 = vld [vmem:[%s19669_s5 + $0x7b0] sm:$0xff] }
 0x506   :  { %13226 = vmatpush3.bf16.msra.mxu1 %v13225_v4  ;;  %v6586_v4 = vld [vmem:[#allocation2 + $0x18] sm:$0xff]  ;;  %v6789_v11 = vld [vmem:[%s19669_s5 + $0x630] sm:$0xff]  ;;  %v6807_v33 = vld [vmem:[%s19669_s5 + $0x6c0] sm:$0xff] }
 0x507   :  { %13228 = vmatprep.subr.bf16.mxu1 %v13227_v22  ;;  %v6800_v22 = vld [vmem:[%s19669_s5 + $0x688] sm:$0xff]  ;;  %v7169_v32 = vcombine.high %v6586_v4, %v6586_v4  ;;  %v6821_v17 = vld [vmem:[%s19669_s5 + $0x730] sm:$0xff]  ;;  %v6839_v29 = vld [vmem:[%s19669_s5 + $0x7c0] sm:$0xff] }
 0x508   :  { %13198 = vmatpush3.bf16.msra.mxu0 %v13197_v35  ;;  %v6766_v35 = vld [vmem:[%s19669_s5 + $0x578] sm:$0xff]  ;;  %v13251_v57 = vpack.c.bf16 %v6800_v22, %v6799_v34  ;;  %v6791_v34 = vld [vmem:[%s19669_s5 + $0x640] sm:$0xff]  ;;  %v6792_v22 = vld [vmem:[%s19669_s5 + $0x648] sm:$0xff] }
 0x509   :  { %13200 = vmatprep.subr.bf16.mxu0 %v13199_v56  ;;  %v6832_v56 = vld [vmem:[%s19669_s5 + $0x788] sm:$0xff]  ;;  %v13249_v14 = vpack.c.bf16 %v6766_v35, %v6765_v31  ;;  %v18553_v9 = vrot.slane %v7169_v32, %v18097_v36  ;;  %v6809_v31 = vld [vmem:[%s19669_s5 + $0x6d0] sm:$0xff]  ;;  %v6810_v35 = vld [vmem:[%s19669_s5 + $0x6d8] sm:$0xff]  ;;  %v13269_v32 = vpack.c.bf16 %v6792_v22, %v6791_v34 }
 0x50a   :  { %13230 = vmatpush3.bf16.msra.mxu1 %v13229_v51  ;;  %v6783_v51 = vld [vmem:[%s19669_s5 + $0x600] sm:$0xff]  ;;  %v6794_v52 = vld [vmem:[%s19669_s5 + $0x658] sm:$0xff]  ;;  %v6812_v55 = vld [vmem:[%s19669_s5 + $0x6e8] sm:$0xff] }
 0x50b   :  { %13232 = vmatprep.subr.bf16.mxu1 %v13231_v59  ;;  %v18538_v59 = vrot.slane %v6586_v4, %v18097_v36  ;;  %v7185_v44 = vcombine.high %v18553_v9, %v18553_v9  ;;  %v6840_v4 = vld [vmem:[%s19669_s5 + $0x7c8] sm:$0xff]  ;;  %v6897_v22 = vld [vmem:[%s19669_s5 + $0x990] sm:$0xff] }
 0x50c   :  { %13202 = vmatpush3.bf16.msra.mxu0 %v13201_v38  ;;  %v13283_v38 = vpack.c.bf16 %v6832_v56, %v6831_v0  ;;  %v6823_v0 = vld [vmem:[%s19669_s5 + $0x740] sm:$0xff]  ;;  %v6824_v56 = vld [vmem:[%s19669_s5 + $0x748] sm:$0xff] }
 0x50d   :  { %13204 = vmatprep.subr.bf16.mxu0 %v13203_v20  ;;  %v13253_v20 = vpack.c.bf16 %v6784_v45, %v6783_v51  ;;  %v7184_v37 = vcombine.high %v18538_v59, %v18538_v59  ;;  %v6842_v51 = vld [vmem:[%s19669_s5 + $0x7d8] sm:$0xff]  ;;  %v13271_v45 = vpack.c.bf16 %v6810_v35, %v6809_v31  ;;  %v13301_v10 = vpack.c.bf16 %v6824_v56, %v6823_v0 }
 0x50e   :  { %13234 = vmatpush3.bf16.msra.mxu1 %v13233_v23  ;;  %v6834_v23 = vld [vmem:[%s19669_s5 + $0x798] sm:$0xff] }
 0x50f   :  { %13236 = vmatprep.subr.bf16.mxu1 %v13235_v50  ;;  %v6786_v50 = vld [vmem:[%s19669_s5 + $0x618] sm:$0xff]  ;;  %v13287_v48 = vpack.c.bf16 %v6834_v23, %v6833_v62 }
 0x510   :  { %13206 = vmatpush3.bf16.msra.mxu0 %v13205_v6  ;;  %v6803_v6 = vld [vmem:[%s19669_s5 + $0x6a0] sm:$0xff]  ;;  %v6826_v62 = vld [vmem:[%s19669_s5 + $0x758] sm:$0xff] }
 0x511   :  { %13208 = vmatprep.subr.bf16.mxu0 %v13207_v27  ;;  %v6817_v27 = vld [vmem:[%s19669_s5 + $0x710] sm:$0xff]  ;;  %v13259_v5 = vpack.c.bf16 %v6804_v49, %v6803_v6  ;;  %v6850_v0 = vld [vmem:[%s19669_s5 + $0x818] sm:$0xff] }
 0x512   :  { %13238 = vmatpush3.bf16.msra.mxu1 %v13237_v19  ;;  %v13257_v19 = vpack.c.bf16 %v6786_v50, %v6785_v41  ;;  %v13289_v2 = vpack.c.bf16 %v6818_v54, %v6817_v27  ;;  %v6844_v41 = vld [vmem:[%s19669_s5 + $0x7e8] sm:$0xff]  ;;  %v6813_v49 = vld [vmem:[%s19669_s5 + $0x6f0] sm:$0xff]  ;;  %v6827_v54 = vld [vmem:[%s19669_s5 + $0x760] sm:$0xff] }
 0x513   :  { %13240 = vmatprep.subr.bf16.mxu1 %v13239_v3  ;;  %v6787_v3 = vld [vmem:[%s19669_s5 + $0x620] sm:$0xff] }
 0x514   :  { %13210 = vmatpush3.bf16.msra.mxu0 %v13209_v8  ;;  %v6805_v8 = vld [vmem:[%s19669_s5 + $0x6b0] sm:$0xff]  ;;  %v13261_v58 = vpack.c.bf16 %v6788_v43, %v6787_v3 }
 0x515   :  { %13212 = vmatprep.subr.bf16.mxu0 %v13211_v47  ;;  %v6820_v47 = vld [vmem:[%s19669_s5 + $0x728] sm:$0xff]  ;;  %v6797_v43 = vld [vmem:[%s19669_s5 + $0x670] sm:$0xff] }
 0x516   :  { %13242 = vmatpush3.bf16.msra.mxu1 %v13241_v26  ;;  %v6838_v26 = vld [vmem:[%s19669_s5 + $0x7b8] sm:$0xff]  ;;  %v13293_v12 = vpack.c.bf16 %v6820_v47, %v6819_v63 }
 0x517   :  { %13244 = vmatprep.subr.bf16.mxu1 %v13243_v13  ;;  %v6790_v13 = vld [vmem:[%s19669_s5 + $0x638] sm:$0xff]  ;;  %v13295_v42 = vpack.c.bf16 %v6838_v26, %v6837_v39 }
 0x518   :  { %13214 = vmatpush3.bf16.msra.mxu0 %v13213_v25  ;;  %v6808_v25 = vld [vmem:[%s19669_s5 + $0x6c8] sm:$0xff]  ;;  %v13265_v60 = vpack.c.bf16 %v6790_v13, %v6789_v11  ;;  %v6830_v39 = vld [vmem:[%s19669_s5 + $0x778] sm:$0xff] }
 0x519   :  { %13216 = vmatprep.subr.bf16.mxu0 %v13215_v53  ;;  %v6822_v53 = vld [vmem:[%s19669_s5 + $0x738] sm:$0xff]  ;;  %v6896_v11 = vld [vmem:[%s19669_s5 + $0x988] sm:$0xff] }
 0x51a   :  { %13246 = vmatpush3.bf16.msra.mxu1 %v13245_v18  ;;  %v13267_v18 = vpack.c.bf16 %v6808_v25, %v6807_v33  ;;  %v6847_v33 = vld [vmem:[%s19669_s5 + $0x800] sm:$0xff]  ;;  %v6848_v25 = vld [vmem:[%s19669_s5 + $0x808] sm:$0xff] }
 0x51b   :  { %13248 = vmatprep.subr.bf16.mxu1 %v13247_v21  ;;  %v13297_v21 = vpack.c.bf16 %v6822_v53, %v6821_v17  ;;  %v6865_v17 = vld [vmem:[%s19669_s5 + $0x890] sm:$0xff]  ;;  %v6866_v53 = vld [vmem:[%s19669_s5 + $0x898] sm:$0xff]  ;;  %v13317_v34 = vpack.c.bf16 %v6848_v25, %v6847_v33 }
 0x51c   :  { %13218 = vmatpush3.bf16.msra.mxu0 %v13217_v15  ;;  %v13299_v15 = vpack.c.bf16 %v6840_v4, %v6839_v29  ;;  %v6879_v4 = vld [vmem:[%s19669_s5 + $0x900] sm:$0xff]  ;;  %v13319_v35 = vpack.c.bf16 %v6866_v53, %v6865_v17  ;;  %v6906_v33 = vld [vmem:[%s19669_s5 + $0x9d8] sm:$0xff] }
 0x51d   :  { %13252 = vmatprep.subr.bf16.mxu0 %v13251_v57  ;;  %v6841_v57 = vld [vmem:[%s19669_s5 + $0x7d0] sm:$0xff]  ;;  %v6858_v17 = vld [vmem:[%s19669_s5 + $0x858] sm:$0xff] }
 0x51e   :  { %13250 = vmatpush3.bf16.msra.mxu1 %v13249_v14  ;;  %v6793_v14 = vld [vmem:[%s19669_s5 + $0x650] sm:$0xff]  ;;  %v13303_v61 = vpack.c.bf16 %v6842_v51, %v6841_v57  ;;  %v6868_v57 = vld [vmem:[%s19669_s5 + $0x8a8] sm:$0xff] }
 0x51f   :  { %7631 = vmatmul.mubr.f32.vlgmr.msra.gmra.mrb[40].mxu0 %v18334_v46  ;;  %13284 = vmatprep.subr.bf16.mxu1 %v13283_v38  ;;  %v6835_v46 = vld [vmem:[%s19669_s5 + $0x7a0] sm:$0xff]  ;;  %v13273_v23 = vpack.c.bf16 %v6794_v52, %v6793_v14  ;;  %v6881_v14 = vld [vmem:[%s19669_s5 + $0x910] sm:$0xff]  ;;  %v6882_v52 = vld [vmem:[%s19669_s5 + $0x918] sm:$0xff] }
 0x520   :  { %13254 = vmatpush3.bf16.msra.mxu0 %v13253_v20  ;;  %7770 = vmatprep.mubr.f32.mxu0 %v7184_v37  ;;  %v13291_v30 = vpack.c.bf16 %v6836_v24, %v6835_v46  ;;  %v6811_v38 = vld [vmem:[%s19669_s5 + $0x6e0] sm:$0xff]  ;;  %v6825_v20 = vld [vmem:[%s19669_s5 + $0x750] sm:$0xff] }
 0x521   :  { %7701 = vmatmul.mubr.f32.vlgmr.msra.gmra.mrb[40].mxu1 %v18349_v28  ;;  %13256 = vmatprep.subr.bf16.mxu0 %v13255_v7  ;;  %v6806_v28 = vld [vmem:[%s19669_s5 + $0x6b8] sm:$0xff]  ;;  %v6843_v7 = vld [vmem:[%s19669_s5 + $0x7e0] sm:$0xff]  ;;  %v13275_v50 = vpack.c.bf16 %v6812_v55, %v6811_v38  ;;  %v13305_v6 = vpack.c.bf16 %v6826_v62, %v6825_v20  ;;  %v6845_v24 = vld [vmem:[%s19669_s5 + $0x7f0] sm:$0xff]  ;;  %v13353_v62 = vpack.c.bf16 %v6882_v52, %v6881_v14 }
 0x522   :  { %13286 = vmatpush3.bf16.msra.mxu1 %v13285_v40  ;;  %7840 = vmatprep.mubr.f32.mxu1 %v7185_v44  ;;  %v13263_v1 = vpack.c.bf16 %v6806_v28, %v6805_v8  ;;  %v6795_v37 = vld [vmem:[%s19669_s5 + $0x660] sm:$0xff]  ;;  %v6796_v40 = vld [vmem:[%s19669_s5 + $0x668] sm:$0xff]  ;;  %v13307_v27 = vpack.c.bf16 %v6844_v41, %v6843_v7 }
 0x523   :  { %13288 = vmatprep.subr.bf16.mxu1 %v13287_v48  ;;  %v6814_v48 = vld [vmem:[%s19669_s5 + $0x6f8] sm:$0xff]  ;;  %v6828_v44 = vld [vmem:[%s19669_s5 + $0x768] sm:$0xff]  ;;  %v13277_v46 = vpack.c.bf16 %v6796_v40, %v6795_v37  ;;  %v6863_v28 = vld [vmem:[%s19669_s5 + $0x880] sm:$0xff] }
 0x524   :  { %13258 = vmatpush3.bf16.msra.mxu0 %v13257_v19  ;;  %v6587_v19 = vld [vmem:[#allocation2 + $0x20] sm:$0xff]  ;;  %v13279_v3 = vpack.c.bf16 %v6814_v48, %v6813_v49  ;;  %v13309_v8 = vpack.c.bf16 %v6828_v44, %v6827_v54  ;;  %v6852_v20 = vld [vmem:[%s19669_s5 + $0x828] sm:$0xff]  ;;  %v6901_v40 = vld [vmem:[%s19669_s5 + $0x9b0] sm:$0xff] }
 0x525   :  { %13260 = vmatprep.subr.bf16.mxu0 %v13259_v5  ;;  %v6846_v5 = vld [vmem:[%s19669_s5 + $0x7f8] sm:$0xff]  ;;  %v7186_v63 = vcombine.high %v6587_v19, %v6587_v19  ;;  %v18736_v13 = vrot.slane %v6587_v19, %v18097_v36  ;;  %v6899_v38 = vld [vmem:[%s19669_s5 + $0x9a0] sm:$0xff]  ;;  %v6853_v48 = vld [vmem:[%s19669_s5 + $0x830] sm:$0xff] }
 0x526   :  { %13290 = vmatpush3.bf16.msra.mxu1 %v13289_v2  ;;  %v6798_v2 = vld [vmem:[%s19669_s5 + $0x678] sm:$0xff]  ;;  %v13311_v47 = vpack.c.bf16 %v6846_v5, %v6845_v24  ;;  %v6883_v41 = vld [vmem:[%s19669_s5 + $0x920] sm:$0xff]  ;;  %v6872_v19 = vld [vmem:[%s19669_s5 + $0x8c8] sm:$0xff] }
 0x527   :  { %13292 = vmatprep.subr.bf16.mxu1 %v13291_v30  ;;  %v6864_v30 = vld [vmem:[%s19669_s5 + $0x888] sm:$0xff]  ;;  %v13281_v26 = vpack.c.bf16 %v6798_v2, %v6797_v43  ;;  %v7201_v31 = vcombine.high %v18736_v13, %v18736_v13  ;;  %v6871_v44 = vld [vmem:[%s19669_s5 + $0x8c0] sm:$0xff]  ;;  %v6885_v24 = vld [vmem:[%s19669_s5 + $0x930] sm:$0xff] }
 0x528   :  { %13262 = vmatpush3.bf16.msra.mxu0 %v13261_v58  ;;  %v6829_v58 = vld [vmem:[%s19669_s5 + $0x770] sm:$0xff]  ;;  %v6886_v5 = vld [vmem:[%s19669_s5 + $0x938] sm:$0xff]  ;;  %v6903_v43 = vld [vmem:[%s19669_s5 + $0x9c0] sm:$0xff] }
 0x529   :  { %13264 = vmatprep.subr.bf16.mxu0 %v13263_v1  ;;  %v6895_v1 = vld [vmem:[%s19669_s5 + $0x980] sm:$0xff]  ;;  %v6904_v2 = vld [vmem:[%s19669_s5 + $0x9c8] sm:$0xff] }
 0x52a   :  { %13294 = vmatpush3.bf16.msra.mxu1 %v13293_v12  ;;  %v13315_v12 = vpack.c.bf16 %v6864_v30, %v6863_v28  ;;  %v13347_v29 = vpack.c.bf16 %v6896_v11, %v6895_v1  ;;  %v6855_v28 = vld [vmem:[%s19669_s5 + $0x840] sm:$0xff]  ;;  %v6856_v30 = vld [vmem:[%s19669_s5 + $0x848] sm:$0xff] }
 0x52b   :  { %13296 = vmatprep.subr.bf16.mxu1 %v13295_v42  ;;  %v13313_v42 = vpack.c.bf16 %v6830_v39, %v6829_v58  ;;  %v6874_v58 = vld [vmem:[%s19669_s5 + $0x8d8] sm:$0xff]  ;;  %v13363_v39 = vpack.c.bf16 %v6904_v2, %v6903_v43  ;;  %v6888_v1 = vld [vmem:[%s19669_s5 + $0x948] sm:$0xff]  ;;  %v13333_v11 = vpack.c.bf16 %v6856_v30, %v6855_v28  ;;  %v6891_v14 = vld [vmem:[%s19669_s5 + $0x960] sm:$0xff] }
 0x52c   :  { %13266 = vmatpush3.bf16.msra.mxu0 %v13265_v60  ;;  %v18751_v60 = vrot.slane %v7186_v63, %v18097_v36  ;;  %v13361_v63 = vpack.c.bf16 %v6886_v5, %v6885_v24  ;;  %v6892_v52 = vld [vmem:[%s19669_s5 + $0x968] sm:$0xff]  ;;  %v6929_v24 = vld [vmem:[%s19669_s5 + $0xa90] sm:$0xff]  ;;  %v6930_v5 = vld [vmem:[%s19669_s5 + $0xa98] sm:$0xff] }
 0x52d   :  { %13268 = vmatprep.subr.bf16.mxu0 %v13267_v18  ;;  %v6880_v18 = vld [vmem:[%s19669_s5 + $0x908] sm:$0xff]  ;;  %v6943_v43 = vld [vmem:[%s19669_s5 + $0xb00] sm:$0xff]  ;;  %v6961_v30 = vld [vmem:[%s19669_s5 + $0xb90] sm:$0xff] }
 0x52e   :  { %13298 = vmatpush3.bf16.msra.mxu1 %v13297_v21  ;;  %v6898_v21 = vld [vmem:[%s19669_s5 + $0x998] sm:$0xff]  ;;  %v13349_v56 = vpack.c.bf16 %v6880_v18, %v6879_v4  ;;  %v7202_v51 = vcombine.high %v18751_v60, %v18751_v60  ;;  %v6876_v4 = vld [vmem:[%s19669_s5 + $0x8e8] sm:$0xff] }
 0x52f   :  { %13300 = vmatprep.subr.bf16.mxu1 %v13299_v15  ;;  %v6849_v15 = vld [vmem:[%s19669_s5 + $0x810] sm:$0xff]  ;;  %v6944_v2 = vld [vmem:[%s19669_s5 + $0xb08] sm:$0xff] }
 0x530   :  { %13270 = vmatpush3.bf16.msra.mxu0 %v13269_v32  ;;  %v6867_v32 = vld [vmem:[%s19669_s5 + $0x8a0] sm:$0xff] }
 0x531   :  { %13272 = vmatprep.subr.bf16.mxu0 %v13271_v45  ;;  %v13351_v45 = vpack.c.bf16 %v6898_v21, %v6897_v22  ;;  %v13323_v55 = vpack.c.bf16 %v6868_v57, %v6867_v32  ;;  %v6890_v22 = vld [vmem:[%s19669_s5 + $0x958] sm:$0xff]  ;;  %v6877_v57 = vld [vmem:[%s19669_s5 + $0x8f0] sm:$0xff] }
 0x532   :  { %13302 = vmatpush3.bf16.msra.mxu1 %v13301_v10  ;;  %v13321_v10 = vpack.c.bf16 %v6850_v0, %v6849_v15  ;;  %v6859_v0 = vld [vmem:[%s19669_s5 + $0x860] sm:$0xff] }
 0x533   :  { %13304 = vmatprep.subr.bf16.mxu1 %v13303_v61  ;;  %v6851_v61 = vld [vmem:[%s19669_s5 + $0x820] sm:$0xff] }
 0x534   :  { %13274 = vmatpush3.bf16.msra.mxu0 %v13273_v23  ;;  %v6869_v23 = vld [vmem:[%s19669_s5 + $0x8b0] sm:$0xff]  ;;  %v13325_v37 = vpack.c.bf16 %v6852_v20, %v6851_v61  ;;  %v6862_v20 = vld [vmem:[%s19669_s5 + $0x878] sm:$0xff] }
 0x535   :  { %13276 = vmatprep.subr.bf16.mxu0 %v13275_v50  ;;  %v6884_v50 = vld [vmem:[%s19669_s5 + $0x928] sm:$0xff]  ;;  %v6861_v61 = vld [vmem:[%s19669_s5 + $0x870] sm:$0xff] }
 0x536   :  { %13306 = vmatpush3.bf16.msra.mxu1 %v13305_v6  ;;  %v6902_v6 = vld [vmem:[%s19669_s5 + $0x9b8] sm:$0xff]  ;;  %v13357_v54 = vpack.c.bf16 %v6884_v50, %v6883_v41  ;;  %v6893_v50 = vld [vmem:[%s19669_s5 + $0x970] sm:$0xff] }
 0x537   :  { %13308 = vmatprep.subr.bf16.mxu1 %v13307_v27  ;;  %v6854_v27 = vld [vmem:[%s19669_s5 + $0x838] sm:$0xff] }
 0x538   :  { %13278 = vmatpush3.bf16.msra.mxu0 %v13277_v46  ;;  %v13359_v46 = vpack.c.bf16 %v6902_v6, %v6901_v40  ;;  %v13345_v40 = vpack.c.bf16 %v6862_v20, %v6861_v61  ;;  %v6959_v6 = vld [vmem:[%s19669_s5 + $0xb80] sm:$0xff] }
 0x539   :  { %13280 = vmatprep.subr.bf16.mxu0 %v13279_v3  ;;  %v13329_v3 = vpack.c.bf16 %v6854_v27, %v6853_v48  ;;  %v6967_v20 = vld [vmem:[%s19669_s5 + $0xbc0] sm:$0xff] }
 0x53a   :  { %13310 = vmatpush3.bf16.msra.mxu1 %v13309_v8  ;;  %v13331_v8 = vpack.c.bf16 %v6872_v19, %v6871_v44  ;;  %v6912_v44 = vld [vmem:[%s19669_s5 + $0xa08] sm:$0xff] }
 0x53b   :  { %13312 = vmatprep.subr.bf16.mxu1 %v13311_v47  ;;  %v6873_v47 = vld [vmem:[%s19669_s5 + $0x8d0] sm:$0xff] }
 0x53c   :  { %13282 = vmatpush3.bf16.msra.mxu0 %v13281_v26  ;;  %v6887_v26 = vld [vmem:[%s19669_s5 + $0x940] sm:$0xff]  ;;  %v13335_v25 = vpack.c.bf16 %v6874_v58, %v6873_v47  ;;  %v13383_v47 = vpack.c.bf16 %v6930_v5, %v6929_v24  ;;  %v6913_v58 = vld [vmem:[%s19669_s5 + $0xa10] sm:$0xff]  ;;  %v6922_v24 = vld [vmem:[%s19669_s5 + $0xa58] sm:$0xff] }
 0x53d   :  { %13316 = vmatprep.subr.bf16.mxu0 %v13315_v12  ;;  %v6905_v12 = vld [vmem:[%s19669_s5 + $0x9d0] sm:$0xff]  ;;  %v13365_v53 = vpack.c.bf16 %v6888_v1, %v6887_v26  ;;  %v13413_v1 = vpack.c.bf16 %v6944_v2, %v6943_v43  ;;  %v6940_v43 = vld [vmem:[%s19669_s5 + $0xae8] sm:$0xff] }
 0x53e   :  { %13314 = vmatpush3.bf16.msra.mxu1 %v13313_v42  ;;  %v6857_v42 = vld [vmem:[%s19669_s5 + $0x850] sm:$0xff]  ;;  %v13367_v18 = vpack.c.bf16 %v6906_v33, %v6905_v12  ;;  %v6932_v12 = vld [vmem:[%s19669_s5 + $0xaa8] sm:$0xff] }
 0x53f   :  { %7771 = vmatmul.mubr.f32.vlgmr.msra.gmra.mrb[42].mxu0 %v18538_v59  ;;  %13348 = vmatprep.subr.bf16.mxu1 %v13347_v29  ;;  %v6900_v59 = vld [vmem:[%s19669_s5 + $0x9a8] sm:$0xff]  ;;  %v6875_v29 = vld [vmem:[%s19669_s5 + $0x8e0] sm:$0xff]  ;;  %v13337_v21 = vpack.c.bf16 %v6858_v17, %v6857_v42  ;;  %v6946_v42 = vld [vmem:[%s19669_s5 + $0xb18] sm:$0xff] }
 0x540   :  { %13318 = vmatpush3.bf16.msra.mxu0 %v13317_v34  ;;  %7910 = vmatprep.mubr.f32.mxu0 %v7201_v31  ;;  %v13355_v7 = vpack.c.bf16 %v6900_v59, %v6899_v38  ;;  %v6889_v34 = vld [vmem:[%s19669_s5 + $0x950] sm:$0xff]  ;;  %v6907_v31 = vld [vmem:[%s19669_s5 + $0x9e0] sm:$0xff]  ;;  %v13339_v15 = vpack.c.bf16 %v6876_v4, %v6875_v29  ;;  %v6910_v59 = vld [vmem:[%s19669_s5 + $0x9f8] sm:$0xff] }
 0x541   :  { %7841 = vmatmul.mubr.f32.vlgmr.msra.gmra.mrb[42].mxu1 %v18553_v9  ;;  %13320 = vmatprep.subr.bf16.mxu0 %v13319_v35  ;;  %v6870_v9 = vld [vmem:[%s19669_s5 + $0x8b8] sm:$0xff]  ;;  %v6908_v35 = vld [vmem:[%s19669_s5 + $0x9e8] sm:$0xff]  ;;  %v13369_v32 = vpack.c.bf16 %v6890_v22, %v6889_v34  ;;  %v6909_v38 = vld [vmem:[%s19669_s5 + $0x9f0] sm:$0xff] }
 0x542   :  { %13350 = vmatpush3.bf16.msra.mxu1 %v13349_v56  ;;  %7980 = vmatprep.mubr.f32.mxu1 %v7202_v51  ;;  %v13327_v49 = vpack.c.bf16 %v6870_v9, %v6869_v23  ;;  %v6860_v56 = vld [vmem:[%s19669_s5 + $0x868] sm:$0xff]  ;;  %v6878_v51 = vld [vmem:[%s19669_s5 + $0x8f8] sm:$0xff]  ;;  %v13373_v23 = vpack.c.bf16 %v6892_v52, %v6891_v14  ;;  %v6927_v9 = vld [vmem:[%s19669_s5 + $0xa80] sm:$0xff]  ;;  %v13375_v41 = vpack.c.bf16 %v6910_v59, %v6909_v38 }
 0x543   :  { %13352 = vmatprep.subr.bf16.mxu1 %v13351_v45  ;;  %v13371_v45 = vpack.c.bf16 %v6908_v35, %v6907_v31  ;;  %v6964_v29 = vld [vmem:[%s19669_s5 + $0xba8] sm:$0xff]  ;;  %v6947_v35 = vld [vmem:[%s19669_s5 + $0xb20] sm:$0xff]  ;;  %v6949_v59 = vld [vmem:[%s19669_s5 + $0xb30] sm:$0xff] }
 0x544   :  { %13322 = vmatpush3.bf16.msra.mxu0 %v13321_v10  ;;  %v13341_v10 = vpack.c.bf16 %v6860_v56, %v6859_v0  ;;  %v6916_v34 = vld [vmem:[%s19669_s5 + $0xa28] sm:$0xff]  ;;  %v6965_v56 = vld [vmem:[%s19669_s5 + $0xbb0] sm:$0xff]  ;;  %v6935_v52 = vld [vmem:[%s19669_s5 + $0xac0] sm:$0xff] }
 0x545   :  { %13324 = vmatprep.subr.bf16.mxu0 %v13323_v55  ;;  %v13343_v55 = vpack.c.bf16 %v6878_v51, %v6877_v57  ;;  %v6917_v51 = vld [vmem:[%s19669_s5 + $0xa30] sm:$0xff] }
 0x546   :  { %13354 = vmatpush3.bf16.msra.mxu1 %v13353_v62  ;;  %v6588_v62 = vld [vmem:[#allocation2 + $0x28] sm:$0xff] }
 0x547   :  { %13356 = vmatprep.subr.bf16.mxu1 %v13355_v7  ;;  %v6928_v7 = vld [vmem:[%s19669_s5 + $0xa88] sm:$0xff]  ;;  %v7203_v48 = vcombine.high %v6588_v62, %v6588_v62 }
 0x548   :  { %13326 = vmatpush3.bf16.msra.mxu0 %v13325_v37  ;;  %v6894_v37 = vld [vmem:[%s19669_s5 + $0x978] sm:$0xff]  ;;  %v13379_v27 = vpack.c.bf16 %v6928_v7, %v6927_v9  ;;  %v6919_v9 = vld [vmem:[%s19669_s5 + $0xa40] sm:$0xff]  ;;  %v6920_v7 = vld [vmem:[%s19669_s5 + $0xa48] sm:$0xff] }
 0x549   :  { %13328 = vmatprep.subr.bf16.mxu0 %v13327_v49  ;;  %v6960_v49 = vld [vmem:[%s19669_s5 + $0xb88] sm:$0xff]  ;;  %v13377_v19 = vpack.c.bf16 %v6894_v37, %v6893_v50  ;;  %v18961_v28 = vrot.slane %v7203_v48, %v18097_v36  ;;  %v6937_v50 = vld [vmem:[%s19669_s5 + $0xad0] sm:$0xff]  ;;  %v6938_v37 = vld [vmem:[%s19669_s5 + $0xad8] sm:$0xff]  ;;  %v13397_v48 = vpack.c.bf16 %v6920_v7, %v6919_v9 }
 0x54a   :  { %13358 = vmatpush3.bf16.msra.mxu1 %v13357_v54  ;;  %v6911_v54 = vld [vmem:[%s19669_s5 + $0xa00] sm:$0xff]  ;;  %v7025_v7 = vld [vmem:[%s19669_s5 + $0xd90] sm:$0xff] }
 0x54b   :  { %13360 = vmatprep.subr.bf16.mxu1 %v13359_v46  ;;  %v18946_v46 = vrot.slane %v6588_v62, %v18097_v36  ;;  %v7219_v17 = vcombine.high %v18961_v28, %v18961_v28  ;;  %v6968_v62 = vld [vmem:[%s19669_s5 + $0xbc8] sm:$0xff] }
 0x54c   :  { %13330 = vmatpush3.bf16.msra.mxu0 %v13329_v3  ;;  %v13411_v3 = vpack.c.bf16 %v6960_v49, %v6959_v6  ;;  %v6951_v6 = vld [vmem:[%s19669_s5 + $0xb40] sm:$0xff]  ;;  %v6952_v49 = vld [vmem:[%s19669_s5 + $0xb48] sm:$0xff] }
 0x54d   :  { %13332 = vmatprep.subr.bf16.mxu0 %v13331_v8  ;;  %v13381_v8 = vpack.c.bf16 %v6912_v44, %v6911_v54  ;;  %v7218_v26 = vcombine.high %v18946_v46, %v18946_v46  ;;  %v6970_v54 = vld [vmem:[%s19669_s5 + $0xbd8] sm:$0xff]  ;;  %v13399_v44 = vpack.c.bf16 %v6938_v37, %v6937_v50  ;;  %v13429_v5 = vpack.c.bf16 %v6952_v49, %v6951_v6  ;;  %v6977_v37 = vld [vmem:[%s19669_s5 + $0xc10] sm:$0xff] }
 0x54e   :  { %13362 = vmatpush3.bf16.msra.mxu1 %v13361_v63  ;;  %v6962_v63 = vld [vmem:[%s19669_s5 + $0xb98] sm:$0xff] }
 0x54f   :  { %13364 = vmatprep.subr.bf16.mxu1 %v13363_v39  ;;  %v6914_v39 = vld [vmem:[%s19669_s5 + $0xa18] sm:$0xff]  ;;  %v13415_v33 = vpack.c.bf16 %v6962_v63, %v6961_v30 }
 0x550   :  { %13334 = vmatpush3.bf16.msra.mxu0 %v13333_v11  ;;  %v6931_v11 = vld [vmem:[%s19669_s5 + $0xaa0] sm:$0xff]  ;;  %v6954_v30 = vld [vmem:[%s19669_s5 + $0xb58] sm:$0xff] }
 0x551   :  { %13336 = vmatprep.subr.bf16.mxu0 %v13335_v25  ;;  %v6945_v25 = vld [vmem:[%s19669_s5 + $0xb10] sm:$0xff]  ;;  %v13387_v4 = vpack.c.bf16 %v6932_v12, %v6931_v11 }
 0x552   :  { %13366 = vmatpush3.bf16.msra.mxu1 %v13365_v53  ;;  %v13385_v53 = vpack.c.bf16 %v6914_v39, %v6913_v58  ;;  %v13417_v22 = vpack.c.bf16 %v6946_v42, %v6945_v25  ;;  %v6972_v58 = vld [vmem:[%s19669_s5 + $0xbe8] sm:$0xff]  ;;  %v6941_v12 = vld [vmem:[%s19669_s5 + $0xaf0] sm:$0xff]  ;;  %v6955_v42 = vld [vmem:[%s19669_s5 + $0xb60] sm:$0xff] }
 0x553   :  { %13368 = vmatprep.subr.bf16.mxu1 %v13367_v18  ;;  %v6915_v18 = vld [vmem:[%s19669_s5 + $0xa20] sm:$0xff] }
 0x554   :  { %13338 = vmatpush3.bf16.msra.mxu0 %v13337_v21  ;;  %v6933_v21 = vld [vmem:[%s19669_s5 + $0xab0] sm:$0xff]  ;;  %v13389_v0 = vpack.c.bf16 %v6916_v34, %v6915_v18  ;;  %v6926_v34 = vld [vmem:[%s19669_s5 + $0xa78] sm:$0xff] }
 0x555   :  { %13340 = vmatprep.subr.bf16.mxu0 %v13339_v15  ;;  %v6948_v15 = vld [vmem:[%s19669_s5 + $0xb28] sm:$0xff]  ;;  %v6925_v18 = vld [vmem:[%s19669_s5 + $0xa70] sm:$0xff] }
 0x556   :  { %13370 = vmatpush3.bf16.msra.mxu1 %v13369_v32  ;;  %v6966_v32 = vld [vmem:[%s19669_s5 + $0xbb8] sm:$0xff]  ;;  %v13421_v14 = vpack.c.bf16 %v6948_v15, %v6947_v35  ;;  %v6957_v15 = vld [vmem:[%s19669_s5 + $0xb70] sm:$0xff] }
 0x557   :  { %13372 = vmatprep.subr.bf16.mxu1 %v13371_v45  ;;  %v6918_v45 = vld [vmem:[%s19669_s5 + $0xa38] sm:$0xff]  ;;  %v13423_v38 = vpack.c.bf16 %v6966_v32, %v6965_v56  ;;  %v13409_v56 = vpack.c.bf16 %v6926_v34, %v6925_v18  ;;  %v7023_v32 = vld [vmem:[%s19669_s5 + $0xd80] sm:$0xff] }
 0x558   :  { %13342 = vmatpush3.bf16.msra.mxu0 %v13341_v10  ;;  %v6936_v10 = vld [vmem:[%s19669_s5 + $0xac8] sm:$0xff]  ;;  %v13393_v61 = vpack.c.bf16 %v6918_v45, %v6917_v51  ;;  %v7031_v34 = vld [vmem:[%s19669_s5 + $0xdc0] sm:$0xff] }
 0x559   :  { %13344 = vmatprep.subr.bf16.mxu0 %v13343_v55  ;;  %v6950_v55 = vld [vmem:[%s19669_s5 + $0xb38] sm:$0xff] }
 0x55a   :  { %13374 = vmatpush3.bf16.msra.mxu1 %v13373_v23  ;;  %v13395_v23 = vpack.c.bf16 %v6936_v10, %v6935_v52  ;;  %v6976_v52 = vld [vmem:[%s19669_s5 + $0xc08] sm:$0xff] }
 0x55b   :  { %13376 = vmatprep.subr.bf16.mxu1 %v13375_v41  ;;  %v13425_v41 = vpack.c.bf16 %v6950_v55, %v6949_v59  ;;  %v6993_v59 = vld [vmem:[%s19669_s5 + $0xc90] sm:$0xff]  ;;  %v6994_v55 = vld [vmem:[%s19669_s5 + $0xc98] sm:$0xff] }
 0x55c   :  { %13346 = vmatpush3.bf16.msra.mxu0 %v13345_v40  ;;  %v13427_v40 = vpack.c.bf16 %v6968_v62, %v6967_v20  ;;  %v7007_v20 = vld [vmem:[%s19669_s5 + $0xd00] sm:$0xff]  ;;  %v7008_v62 = vld [vmem:[%s19669_s5 + $0xd08] sm:$0xff]  ;;  %v13447_v50 = vpack.c.bf16 %v6994_v55, %v6993_v59  ;;  %v6986_v59 = vld [vmem:[%s19669_s5 + $0xc58] sm:$0xff] }
 0x55d   :  { %13380 = vmatprep.subr.bf16.mxu0 %v13379_v27  ;;  %v6969_v27 = vld [vmem:[%s19669_s5 + $0xbd0] sm:$0xff]  ;;  %v13477_v49 = vpack.c.bf16 %v7008_v62, %v7007_v20  ;;  %v7004_v20 = vld [vmem:[%s19669_s5 + $0xce8] sm:$0xff] }
 0x55e   :  { %13378 = vmatpush3.bf16.msra.mxu1 %v13377_v19  ;;  %v6921_v19 = vld [vmem:[%s19669_s5 + $0xa50] sm:$0xff]  ;;  %v13431_v2 = vpack.c.bf16 %v6970_v54, %v6969_v27  ;;  %v6996_v27 = vld [vmem:[%s19669_s5 + $0xca8] sm:$0xff] }
 0x55f   :  { %7911 = vmatmul.mubr.f32.vlgmr.msra.gmra.mrb[44].mxu0 %v18736_v13  ;;  %13412 = vmatprep.subr.bf16.mxu1 %v13411_v3  ;;  %v6963_v13 = vld [vmem:[%s19669_s5 + $0xba0] sm:$0xff]  ;;  %v13401_v63 = vpack.c.bf16 %v6922_v24, %v6921_v19  ;;  %v7010_v19 = vld [vmem:[%s19669_s5 + $0xd18] sm:$0xff] }
 0x560   :  { %13382 = vmatpush3.bf16.msra.mxu0 %v13381_v8  ;;  %8050 = vmatprep.mubr.f32.mxu0 %v7218_v26  ;;  %v13419_v31 = vpack.c.bf16 %v6964_v29, %v6963_v13  ;;  %v6939_v3 = vld [vmem:[%s19669_s5 + $0xae0] sm:$0xff]  ;;  %v6953_v8 = vld [vmem:[%s19669_s5 + $0xb50] sm:$0xff]  ;;  %v6974_v29 = vld [vmem:[%s19669_s5 + $0xbf8] sm:$0xff] }
 0x561   :  { %7981 = vmatmul.mubr.f32.vlgmr.msra.gmra.mrb[44].mxu1 %v18751_v60  ;;  %13384 = vmatprep.subr.bf16.mxu0 %v13383_v47  ;;  %v6934_v60 = vld [vmem:[%s19669_s5 + $0xab8] sm:$0xff]  ;;  %v6971_v47 = vld [vmem:[%s19669_s5 + $0xbe0] sm:$0xff]  ;;  %v13403_v39 = vpack.c.bf16 %v6940_v43, %v6939_v3  ;;  %v13433_v11 = vpack.c.bf16 %v6954_v30, %v6953_v8  ;;  %v6973_v13 = vld [vmem:[%s19669_s5 + $0xbf0] sm:$0xff] }
 0x562   :  { %13414 = vmatpush3.bf16.msra.mxu1 %v13413_v1  ;;  %8120 = vmatprep.mubr.f32.mxu1 %v7219_v17  ;;  %v13391_v57 = vpack.c.bf16 %v6934_v60, %v6933_v21  ;;  %v6923_v26 = vld [vmem:[%s19669_s5 + $0xa60] sm:$0xff]  ;;  %v6924_v1 = vld [vmem:[%s19669_s5 + $0xa68] sm:$0xff]  ;;  %v13435_v25 = vpack.c.bf16 %v6972_v58, %v6971_v47  ;;  %v13439_v35 = vpack.c.bf16 %v6974_v29, %v6973_v13  ;;  %v7013_v29 = vld [vmem:[%s19669_s5 + $0xd30] sm:$0xff] }
 0x563   :  { %13416 = vmatprep.subr.bf16.mxu1 %v13415_v33  ;;  %v6942_v33 = vld [vmem:[%s19669_s5 + $0xaf8] sm:$0xff]  ;;  %v6956_v17 = vld [vmem:[%s19669_s5 + $0xb68] sm:$0xff]  ;;  %v6991_v60 = vld [vmem:[%s19669_s5 + $0xc80] sm:$0xff] }
 0x564   :  { %13386 = vmatpush3.bf16.msra.mxu0 %v13385_v53  ;;  %v13405_v53 = vpack.c.bf16 %v6924_v1, %v6923_v26  ;;  %v13437_v21 = vpack.c.bf16 %v6956_v17, %v6955_v42  ;;  %v7028_v3 = vld [vmem:[%s19669_s5 + $0xda8] sm:$0xff]  ;;  %v7011_v58 = vld [vmem:[%s19669_s5 + $0xd20] sm:$0xff]  ;;  %v7029_v1 = vld [vmem:[%s19669_s5 + $0xdb0] sm:$0xff] }
 0x565   :  { %13388 = vmatprep.subr.bf16.mxu0 %v13387_v4  ;;  %v13407_v4 = vpack.c.bf16 %v6942_v33, %v6941_v12  ;;  %v6980_v8 = vld [vmem:[%s19669_s5 + $0xc28] sm:$0xff]  ;;  %v6981_v33 = vld [vmem:[%s19669_s5 + $0xc30] sm:$0xff]  ;;  %v6999_v17 = vld [vmem:[%s19669_s5 + $0xcc0] sm:$0xff] }
 0x566   :  { %13418 = vmatpush3.bf16.msra.mxu1 %v13417_v22  ;;  %v6589_v22 = vld [vmem:[#allocation2 + $0x30] sm:$0xff] }
 0x567   :  { %13420 = vmatprep.subr.bf16.mxu1 %v13419_v31  ;;  %v6992_v31 = vld [vmem:[%s19669_s5 + $0xc88] sm:$0xff]  ;;  %v7220_v51 = vcombine.high %v6589_v22, %v6589_v22 }
 0x568   :  { %13390 = vmatpush3.bf16.msra.mxu0 %v13389_v0  ;;  %v6958_v0 = vld [vmem:[%s19669_s5 + $0xb78] sm:$0xff]  ;;  %v13443_v45 = vpack.c.bf16 %v6992_v31, %v6991_v60  ;;  %v6983_v60 = vld [vmem:[%s19669_s5 + $0xc40] sm:$0xff]  ;;  %v6984_v31 = vld [vmem:[%s19669_s5 + $0xc48] sm:$0xff] }
 0x569   :  { %13392 = vmatprep.subr.bf16.mxu0 %v13391_v57  ;;  %v7024_v57 = vld [vmem:[%s19669_s5 + $0xd88] sm:$0xff]  ;;  %v13441_v10 = vpack.c.bf16 %v6958_v0, %v6957_v15  ;;  %v19165_v9 = vrot.slane %v7220_v51, %v18097_v36  ;;  %v7001_v15 = vld [vmem:[%s19669_s5 + $0xcd0] sm:$0xff]  ;;  %v7002_v0 = vld [vmem:[%s19669_s5 + $0xcd8] sm:$0xff]  ;;  %v13461_v51 = vpack.c.bf16 %v6984_v31, %v6983_v60 }
 0x56a   :  { %13422 = vmatpush3.bf16.msra.mxu1 %v13421_v14  ;;  %v6975_v14 = vld [vmem:[%s19669_s5 + $0xc00] sm:$0xff]  ;;  %v7089_v31 = vld [vmem:[%s19669_s5 + $0xf90] sm:$0xff] }
 0x56b   :  { %13424 = vmatprep.subr.bf16.mxu1 %v13423_v38  ;;  %v19150_v38 = vrot.slane %v6589_v22, %v18097_v36  ;;  %v7236_v24 = vcombine.high %v19165_v9, %v19165_v9  ;;  %v7032_v22 = vld [vmem:[%s19669_s5 + $0xdc8] sm:$0xff] }
 0x56c   :  { %13394 = vmatpush3.bf16.msra.mxu0 %v13393_v61  ;;  %v13475_v61 = vpack.c.bf16 %v7024_v57, %v7023_v32  ;;  %v7015_v32 = vld [vmem:[%s19669_s5 + $0xd40] sm:$0xff]  ;;  %v7016_v57 = vld [vmem:[%s19669_s5 + $0xd48] sm:$0xff] }
 0x56d   :  { %13396 = vmatprep.subr.bf16.mxu0 %v13395_v23  ;;  %v13445_v23 = vpack.c.bf16 %v6976_v52, %v6975_v14  ;;  %v7235_v6 = vcombine.high %v19150_v38, %v19150_v38  ;;  %v7034_v14 = vld [vmem:[%s19669_s5 + $0xdd8] sm:$0xff]  ;;  %v13463_v52 = vpack.c.bf16 %v7002_v0, %v7001_v15  ;;  %v13493_v55 = vpack.c.bf16 %v7016_v57, %v7015_v32  ;;  %v7041_v0 = vld [vmem:[%s19669_s5 + $0xe10] sm:$0xff]  ;;  %v7059_v57 = vld [vmem:[%s19669_s5 + $0xea0] sm:$0xff] }
 0x56e   :  { %13426 = vmatpush3.bf16.msra.mxu1 %v13425_v41  ;;  %v7026_v41 = vld [vmem:[%s19669_s5 + $0xd98] sm:$0xff] }
 0x56f   :  { %13428 = vmatprep.subr.bf16.mxu1 %v13427_v40  ;;  %v6978_v40 = vld [vmem:[%s19669_s5 + $0xc18] sm:$0xff]  ;;  %v13479_v54 = vpack.c.bf16 %v7026_v41, %v7025_v7 }
 0x570   :  { %13398 = vmatpush3.bf16.msra.mxu0 %v13397_v48  ;;  %v6995_v48 = vld [vmem:[%s19669_s5 + $0xca0] sm:$0xff]  ;;  %v7018_v7 = vld [vmem:[%s19669_s5 + $0xd58] sm:$0xff] }
 0x571   :  { %13400 = vmatprep.subr.bf16.mxu0 %v13399_v44  ;;  %v7009_v44 = vld [vmem:[%s19669_s5 + $0xd10] sm:$0xff]  ;;  %v13451_v43 = vpack.c.bf16 %v6996_v27, %v6995_v48 }
 0x572   :  { %13430 = vmatpush3.bf16.msra.mxu1 %v13429_v5  ;;  %v13449_v5 = vpack.c.bf16 %v6978_v40, %v6977_v37  ;;  %v13481_v30 = vpack.c.bf16 %v7010_v19, %v7009_v44  ;;  %v7036_v37 = vld [vmem:[%s19669_s5 + $0xde8] sm:$0xff]  ;;  %v7005_v27 = vld [vmem:[%s19669_s5 + $0xcf0] sm:$0xff]  ;;  %v7019_v19 = vld [vmem:[%s19669_s5 + $0xd60] sm:$0xff] }
 0x573   :  { %13432 = vmatprep.subr.bf16.mxu1 %v13431_v2  ;;  %v6979_v2 = vld [vmem:[%s19669_s5 + $0xc20] sm:$0xff] }
 0x574   :  { %13402 = vmatpush3.bf16.msra.mxu0 %v13401_v63  ;;  %v6997_v63 = vld [vmem:[%s19669_s5 + $0xcb0] sm:$0xff]  ;;  %v13453_v26 = vpack.c.bf16 %v6980_v8, %v6979_v2  ;;  %v6990_v8 = vld [vmem:[%s19669_s5 + $0xc78] sm:$0xff] }
 0x575   :  { %13404 = vmatprep.subr.bf16.mxu0 %v13403_v39  ;;  %v7012_v39 = vld [vmem:[%s19669_s5 + $0xd28] sm:$0xff]  ;;  %v6989_v2 = vld [vmem:[%s19669_s5 + $0xc70] sm:$0xff] }
 0x576   :  { %13434 = vmatpush3.bf16.msra.mxu1 %v13433_v11  ;;  %v7030_v11 = vld [vmem:[%s19669_s5 + $0xdb8] sm:$0xff]  ;;  %v13485_v42 = vpack.c.bf16 %v7012_v39, %v7011_v58  ;;  %v7021_v39 = vld [vmem:[%s19669_s5 + $0xd70] sm:$0xff] }
 0x577   :  { %13436 = vmatprep.subr.bf16.mxu1 %v13435_v25  ;;  %v6982_v25 = vld [vmem:[%s19669_s5 + $0xc38] sm:$0xff]  ;;  %v13487_v13 = vpack.c.bf16 %v7030_v11, %v7029_v1  ;;  %v13473_v1 = vpack.c.bf16 %v6990_v8, %v6989_v2  ;;  %v7087_v11 = vld [vmem:[%s19669_s5 + $0xf80] sm:$0xff]  ;;  %v7096_v8 = vld [vmem:[%s19669_s5 + $0xfc8] sm:$0xff] }
 0x578   :  { %13406 = vmatpush3.bf16.msra.mxu0 %v13405_v53  ;;  %v7000_v53 = vld [vmem:[%s19669_s5 + $0xcc8] sm:$0xff]  ;;  %v13457_v18 = vpack.c.bf16 %v6982_v25, %v6981_v33  ;;  %v7095_v2 = vld [vmem:[%s19669_s5 + $0xfc0] sm:$0xff] }
 0x579   :  { %13408 = vmatprep.subr.bf16.mxu0 %v13407_v4  ;;  %v7014_v4 = vld [vmem:[%s19669_s5 + $0xd38] sm:$0xff] }
 0x57a   :  { %13438 = vmatpush3.bf16.msra.mxu1 %v13437_v21  ;;  %v13459_v21 = vpack.c.bf16 %v7000_v53, %v6999_v17  ;;  %v7040_v17 = vld [vmem:[%s19669_s5 + $0xe08] sm:$0xff] }
 0x57b   :  { %13440 = vmatprep.subr.bf16.mxu1 %v13439_v35  ;;  %v13489_v35 = vpack.c.bf16 %v7014_v4, %v7013_v29  ;;  %v7057_v29 = vld [vmem:[%s19669_s5 + $0xe90] sm:$0xff]  ;;  %v7058_v4 = vld [vmem:[%s19669_s5 + $0xe98] sm:$0xff] }
 0x57c   :  { %13410 = vmatpush3.bf16.msra.mxu0 %v13409_v56  ;;  %v13491_v56 = vpack.c.bf16 %v7032_v22, %v7031_v34  ;;  %v7071_v34 = vld [vmem:[%s19669_s5 + $0xf00] sm:$0xff]  ;;  %v7072_v22 = vld [vmem:[%s19669_s5 + $0xf08] sm:$0xff]  ;;  %v13511_v15 = vpack.c.bf16 %v7058_v4, %v7057_v29 }
 0x57d   :  { %13444 = vmatprep.subr.bf16.mxu0 %v13443_v45  ;;  %v7033_v45 = vld [vmem:[%s19669_s5 + $0xdd0] sm:$0xff]  ;;  %v13541_v32 = vpack.c.bf16 %v7072_v22, %v7071_v34  ;;  %v7067_v4 = vld [vmem:[%s19669_s5 + $0xee0] sm:$0xff] }
 0x57e   :  { %13442 = vmatpush3.bf16.msra.mxu1 %v13441_v10  ;;  %v6985_v10 = vld [vmem:[%s19669_s5 + $0xc50] sm:$0xff]  ;;  %v13495_v62 = vpack.c.bf16 %v7034_v14, %v7033_v45 }
 0x57f   :  { %8051 = vmatmul.mubr.f32.vlgmr.msra.gmra.mrb[46].mxu0 %v18946_v46  ;;  %13476 = vmatprep.subr.bf16.mxu1 %v13475_v61  ;;  %v7027_v46 = vld [vmem:[%s19669_s5 + $0xda0] sm:$0xff]  ;;  %v13465_v41 = vpack.c.bf16 %v6986_v59, %v6985_v10  ;;  %v7073_v14 = vld [vmem:[%s19669_s5 + $0xf10] sm:$0xff] }
 0x580   :  { %13446 = vmatpush3.bf16.msra.mxu0 %v13445_v23  ;;  %8190 = vmatprep.mubr.f32.mxu0 %v7235_v6  ;;  %v13483_v47 = vpack.c.bf16 %v7028_v3, %v7027_v46  ;;  %v7003_v61 = vld [vmem:[%s19669_s5 + $0xce0] sm:$0xff]  ;;  %v7017_v23 = vld [vmem:[%s19669_s5 + $0xd50] sm:$0xff]  ;;  %v7038_v3 = vld [vmem:[%s19669_s5 + $0xdf8] sm:$0xff] }
 0x581   :  { %8121 = vmatmul.mubr.f32.vlgmr.msra.gmra.mrb[46].mxu1 %v18961_v28  ;;  %13448 = vmatprep.subr.bf16.mxu0 %v13447_v50  ;;  %v6998_v28 = vld [vmem:[%s19669_s5 + $0xcb8] sm:$0xff]  ;;  %v7035_v50 = vld [vmem:[%s19669_s5 + $0xde0] sm:$0xff]  ;;  %v13467_v40 = vpack.c.bf16 %v7004_v20, %v7003_v61  ;;  %v13497_v48 = vpack.c.bf16 %v7018_v7, %v7017_v23  ;;  %v7037_v46 = vld [vmem:[%s19669_s5 + $0xdf0] sm:$0xff] }
 0x582   :  { %13478 = vmatpush3.bf16.msra.mxu1 %v13477_v49  ;;  %8260 = vmatprep.mubr.f32.mxu1 %v7236_v24  ;;  %v13455_v12 = vpack.c.bf16 %v6998_v28, %v6997_v63  ;;  %v6987_v6 = vld [vmem:[%s19669_s5 + $0xc60] sm:$0xff]  ;;  %v6988_v49 = vld [vmem:[%s19669_s5 + $0xc68] sm:$0xff]  ;;  %v13499_v44 = vpack.c.bf16 %v7036_v37, %v7035_v50  ;;  %v13503_v58 = vpack.c.bf16 %v7038_v3, %v7037_v46  ;;  %v7061_v7 = vld [vmem:[%s19669_s5 + $0xeb0] sm:$0xff] }
 0x583   :  { %13480 = vmatprep.subr.bf16.mxu1 %v13479_v54  ;;  %v7006_v54 = vld [vmem:[%s19669_s5 + $0xcf8] sm:$0xff]  ;;  %v7020_v24 = vld [vmem:[%s19669_s5 + $0xd68] sm:$0xff]  ;;  %v7055_v28 = vld [vmem:[%s19669_s5 + $0xe80] sm:$0xff] }
 0x584   :  { %13450 = vmatpush3.bf16.msra.mxu0 %v13449_v5  ;;  %v13469_v5 = vpack.c.bf16 %v6988_v49, %v6987_v6  ;;  %v13501_v63 = vpack.c.bf16 %v7020_v24, %v7019_v19  ;;  %v7043_v20 = vld [vmem:[%s19669_s5 + $0xe20] sm:$0xff]  ;;  %v7076_v37 = vld [vmem:[%s19669_s5 + $0xf28] sm:$0xff]  ;;  %v7093_v6 = vld [vmem:[%s19669_s5 + $0xfb0] sm:$0xff] }
 0x585   :  { %13452 = vmatprep.subr.bf16.mxu0 %v13451_v43  ;;  %v13471_v43 = vpack.c.bf16 %v7006_v54, %v7005_v27  ;;  %v7075_v50 = vld [vmem:[%s19669_s5 + $0xf20] sm:$0xff]  ;;  %v7094_v49 = vld [vmem:[%s19669_s5 + $0xfb8] sm:$0xff]  ;;  %v7045_v27 = vld [vmem:[%s19669_s5 + $0xe30] sm:$0xff] }
 0x586   :  { %13482 = vmatpush3.bf16.msra.mxu1 %v13481_v30  ;;  %v6590_v30 = vld [vmem:[#allocation2 + $0x38] sm:$0xff]  ;;  %v7063_v19 = vld [vmem:[%s19669_s5 + $0xec0] sm:$0xff]  ;;  %v7064_v24 = vld [vmem:[%s19669_s5 + $0xec8] sm:$0xff] }
 0x587   :  { %13484 = vmatprep.subr.bf16.mxu1 %v13483_v47  ;;  %v7056_v47 = vld [vmem:[%s19669_s5 + $0xe88] sm:$0xff]  ;;  %v7237_v33 = vcombine.high %v6590_v30, %v6590_v30  ;;  %v7046_v54 = vld [vmem:[%s19669_s5 + $0xe38] sm:$0xff]  ;;  %v7077_v46 = vld [vmem:[%s19669_s5 + $0xf30] sm:$0xff] }
 0x588   :  { %13454 = vmatpush3.bf16.msra.mxu0 %v13453_v26  ;;  %v7022_v26 = vld [vmem:[%s19669_s5 + $0xd78] sm:$0xff]  ;;  %v13507_v25 = vpack.c.bf16 %v7056_v47, %v7055_v28  ;;  %v7048_v28 = vld [vmem:[%s19669_s5 + $0xe48] sm:$0xff]  ;;  %v7081_v22 = vld [vmem:[%s19669_s5 + $0xf50] sm:$0xff] }
 0x589   :  { %13456 = vmatprep.subr.bf16.mxu0 %v13455_v12  ;;  %v7088_v12 = vld [vmem:[%s19669_s5 + $0xf88] sm:$0xff]  ;;  %v13505_v53 = vpack.c.bf16 %v7022_v26, %v7021_v39  ;;  %v19369_v60 = vrot.slane %v7237_v33, %v18097_v36  ;;  %v7078_v3 = vld [vmem:[%s19669_s5 + $0xf38] sm:$0xff]  ;;  %v13555_v26 = vpack.c.bf16 %v7096_v8, %v7095_v2  ;;  %v7097_v33 = vld [vmem:[%s19669_s5 + $0xfd0] sm:$0xff] }
 0x58a   :  { %13486 = vmatpush3.bf16.msra.mxu1 %v13485_v42  ;;  %v7039_v42 = vld [vmem:[%s19669_s5 + $0xe00] sm:$0xff]  ;;  %v13553_v47 = vpack.c.bf16 %v7078_v3, %v7077_v46  ;;  %v7066_v39 = vld [vmem:[%s19669_s5 + $0xed8] sm:$0xff] }
 0x58b   :  { %13488 = vmatprep.subr.bf16.mxu1 %v13487_v13  ;;  %v19354_v13 = vrot.slane %v6590_v30, %v18097_v36  ;;  %v7253_v10 = vcombine.high %v19369_v60, %v19369_v60  ;;  %v13523_v30 = vpack.c.bf16 %v7064_v24, %v7063_v19 }
 0x58c   :  { %13458 = vmatpush3.bf16.msra.mxu0 %v13457_v18  ;;  %v13539_v18 = vpack.c.bf16 %v7088_v12, %v7087_v11  ;;  %v7080_v11 = vld [vmem:[%s19669_s5 + $0xf48] sm:$0xff] }
 0x58d   :  { %13460 = vmatprep.subr.bf16.mxu0 %v13459_v21  ;;  %v13509_v21 = vpack.c.bf16 %v7040_v17, %v7039_v42  ;;  %v7252_v36 = vcombine.high %v19354_v13, %v19354_v13  ;;  %v7049_v17 = vld [vmem:[%s19669_s5 + $0xe50] sm:$0xff] }
 0x58e   :  { %13490 = vmatpush3.bf16.msra.mxu1 %v13489_v35  ;;  %v7090_v35 = vld [vmem:[%s19669_s5 + $0xf98] sm:$0xff] }
 0x58f   :  { %13492 = vmatprep.subr.bf16.mxu1 %v13491_v56  ;;  %v7042_v56 = vld [vmem:[%s19669_s5 + $0xe18] sm:$0xff]  ;;  %v13543_v45 = vpack.c.bf16 %v7090_v35, %v7089_v31  ;;  %v7099_v35 = vld [vmem:[%s19669_s5 + $0xfe0] sm:$0xff] }
 0x590   :  { %13462 = vmatpush3.bf16.msra.mxu0 %v13461_v51  ;;  %v7060_v51 = vld [vmem:[%s19669_s5 + $0xea8] sm:$0xff]  ;;  %v13513_v59 = vpack.c.bf16 %v7042_v56, %v7041_v0  ;;  %v7051_v56 = vld [vmem:[%s19669_s5 + $0xe60] sm:$0xff] }
 0x591   :  { %13464 = vmatprep.subr.bf16.mxu0 %v13463_v52  ;;  %v7074_v52 = vld [vmem:[%s19669_s5 + $0xf18] sm:$0xff]  ;;  %v13515_v61 = vpack.c.bf16 %v7060_v51, %v7059_v57  ;;  %v7069_v51 = vld [vmem:[%s19669_s5 + $0xef0] sm:$0xff] }
 0x592   :  { %13494 = vmatpush3.bf16.msra.mxu1 %v13493_v55  ;;  %v7092_v55 = vld [vmem:[%s19669_s5 + $0xfa8] sm:$0xff]  ;;  %v13545_v23 = vpack.c.bf16 %v7074_v52, %v7073_v14  ;;  %v9367_v14 = vld [vmem:[%s19670_s6] ss:$0 sm:$0xff] }
 0x593   :  { %13496 = vmatprep.subr.bf16.mxu1 %v13495_v62  ;;  %v7044_v62 = vld [vmem:[%s19669_s5 + $0xe28] sm:$0xff] }
 0x594   :  { %13466 = vmatpush3.bf16.msra.mxu0 %v13465_v41 }
 0x595   :  { %13468 = vmatprep.subr.bf16.mxu0 %v13467_v40  ;;  %v13517_v40 = vpack.c.bf16 %v7044_v62, %v7043_v20  ;;  %v7101_v62 = vld [vmem:[%s19669_s5 + $0xff0] sm:$0xff] }
 0x596   :  { %13498 = vmatpush3.bf16.msra.mxu1 %v13497_v48 }
 0x597   :  { %13500 = vmatprep.subr.bf16.mxu1 %v13499_v44  ;;  %v13549_v44 = vpack.c.bf16 %v7076_v37, %v7075_v50  ;;  %v7054_v50 = vld [vmem:[%s19669_s5 + $0xe78] sm:$0xff] }
 0x598   :  { %13470 = vmatpush3.bf16.msra.mxu0 %v13469_v5  ;;  %v13551_v5 = vpack.c.bf16 %v7094_v49, %v7093_v6 }
 0x599   :  { %13472 = vmatprep.subr.bf16.mxu0 %v13471_v43  ;;  %v13521_v43 = vpack.c.bf16 %v7046_v54, %v7045_v27  ;;  %v7086_v27 = vld [vmem:[%s19669_s5 + $0xf78] sm:$0xff] }
 0x59a   :  { %13502 = vmatpush3.bf16.msra.mxu1 %v13501_v63  ;;  %v7047_v63 = vld [vmem:[%s19669_s5 + $0xe40] sm:$0xff] }
 0x59b   :  { %13504 = vmatprep.subr.bf16.mxu1 %v13503_v58  ;;  %v7065_v58 = vld [vmem:[%s19669_s5 + $0xed0] sm:$0xff]  ;;  %v13525_v12 = vpack.c.bf16 %v7048_v28, %v7047_v63 }
 0x59c   :  { %13474 = vmatpush3.bf16.msra.mxu0 %v13473_v1  ;;  %v7079_v1 = vld [vmem:[%s19669_s5 + $0xf40] sm:$0xff]  ;;  %v13527_v42 = vpack.c.bf16 %v7066_v39, %v7065_v58 }
 0x59d   :  { %13508 = vmatprep.subr.bf16.mxu0 %v13507_v25  ;;  %v7098_v25 = vld [vmem:[%s19669_s5 + $0xfd8] sm:$0xff]  ;;  %v13557_v29 = vpack.c.bf16 %v7080_v11, %v7079_v1 }
 0x59e   :  { %13506 = vmatpush3.bf16.msra.mxu1 %v13505_v53  ;;  %v7050_v53 = vld [vmem:[%s19669_s5 + $0xe58] sm:$0xff]  ;;  %v13559_v34 = vpack.c.bf16 %v7098_v25, %v7097_v33 }
 0x59f   :  { %8191 = vmatmul.mubr.f32.vlgmr.msra.gmra.mrb[48].mxu0 %v19150_v38  ;;  %13540 = vmatprep.subr.bf16.mxu1 %v13539_v18  ;;  %v7091_v38 = vld [vmem:[%s19669_s5 + $0xfa0] sm:$0xff]  ;;  %v7068_v18 = vld [vmem:[%s19669_s5 + $0xee8] sm:$0xff]  ;;  %v13529_v31 = vpack.c.bf16 %v7050_v53, %v7049_v17 }
 0x5a0   :  { %13510 = vmatpush3.bf16.msra.mxu0 %v13509_v21  ;;  %8330 = vmatprep.mubr.f32.mxu0 %v7252_v36  ;;  %v13547_v41 = vpack.c.bf16 %v7092_v55, %v7091_v38  ;;  %v7082_v21 = vld [vmem:[%s19669_s5 + $0xf58] sm:$0xff]  ;;  %v13531_v0 = vpack.c.bf16 %v7068_v18, %v7067_v4  ;;  %v7052_v36 = vld [vmem:[%s19669_s5 + $0xe68] sm:$0xff]  ;;  %v8450_v18 = vld [vmem:[%s19673_s9 + $0x10] sm:$0xff] }
 0x5a1   :  { %8261 = vmatmul.mubr.f32.vlgmr.msra.gmra.mrb[48].mxu1 %v19165_v9  ;;  %13512 = vmatprep.subr.bf16.mxu0 %v13511_v15  ;;  %v7062_v9 = vld [vmem:[%s19669_s5 + $0xeb8] sm:$0xff]  ;;  %v7100_v15 = vld [vmem:[%s19669_s5 + $0xfe8] sm:$0xff]  ;;  %v13561_v57 = vpack.c.bf16 %v7082_v21, %v7081_v22  ;;  %v13533_v20 = vpack.c.bf16 %v7052_v36, %v7051_v56 }
 0x5a2   :  { %13542 = vmatpush3.bf16.msra.mxu1 %v13541_v32  ;;  %8400 = vmatprep.mubr.f32.mxu1 %v7253_v10  ;;  %v13519_v48 = vpack.c.bf16 %v7062_v9, %v7061_v7  ;;  %v13563_v10 = vpack.c.bf16 %v7100_v15, %v7099_v35  ;;  %v7084_v38 = vld [vmem:[%s19669_s5 + $0xf68] sm:$0xff]  ;;  %v8451_v21 = vld [vmem:[%s19673_s9 + $0x18] sm:$0xff]  ;;  %v8452_v35 = vld [vmem:[%s19673_s9 + $0x20] sm:$0xff] }
 0x5a3   :  { %13544 = vmatprep.subr.bf16.mxu1 %v13543_v45  ;;  %v7070_v45 = vld [vmem:[%s19669_s5 + $0xef8] sm:$0xff]  ;;  %v8449_v4 = vld [vmem:[%s19673_s9 + $0x8] sm:$0xff] }
 0x5a4   :  { %13514 = vmatpush3.bf16.msra.mxu0 %v13513_v59  ;;  %v7083_v59 = vld [vmem:[%s19669_s5 + $0xf60] sm:$0xff]  ;;  %v13535_v9 = vpack.c.bf16 %v7070_v45, %v7069_v51  ;;  %v8453_v15 = vld [vmem:[%s19673_s9 + $0x28] sm:$0xff]  ;;  %v8455_v56 = vld [vmem:[%s19673_s9 + $0x38] sm:$0xff] }
 0x5a5   :  { %13516 = vmatprep.subr.bf16.mxu0 %v13515_v61  ;;  %v13565_v6 = vpack.c.bf16 %v7084_v38, %v7083_v59  ;;  %v8458_v45 = vld [vmem:[%s19673_s9 + $0x50] sm:$0xff]  ;;  %v8461_v59 = vld [vmem:[%s19673_s9 + $0x68] sm:$0xff] }
 0x5a6   :  { %13546 = vmatpush3.bf16.msra.mxu1 %v13545_v23  ;;  %v7102_v23 = vld [vmem:[%s19669_s5 + $0xff8] sm:$0xff] }
 0x5a7   :  { %13548 = vmatprep.subr.bf16.mxu1 %v13547_v41  ;;  %v7053_v41 = vld [vmem:[%s19669_s5 + $0xe70] sm:$0xff]  ;;  %v13567_v49 = vpack.c.bf16 %v7102_v23, %v7101_v62 }
 0x5a8   :  { %13518 = vmatpush3.bf16.msra.mxu0 %v13517_v40 }
 0x5a9   :  { %13520 = vmatprep.subr.bf16.mxu0 %v13519_v48  ;;  %v7085_v48 = vld [vmem:[%s19669_s5 + $0xf70] sm:$0xff] }
 0x5aa   :  { %13550 = vmatpush3.bf16.msra.mxu1 %v13549_v44  ;;  %v13537_v44 = vpack.c.bf16 %v7054_v50, %v7053_v41  ;;  %v13569_v19 = vpack.c.bf16 %v7086_v27, %v7085_v48 }
 0x5ab   :  { %13552 = vmatprep.subr.bf16.mxu1 %v13551_v5 }
 0x5ac   :  { %13522 = vmatpush3.bf16.msra.mxu0 %v13521_v43 }
 0x5ad   :  { %13524 = vmatprep.subr.bf16.mxu0 %v13523_v30 }
 0x5ae   :  { %13554 = vmatpush3.bf16.msra.mxu1 %v13553_v47 }
 0x5af   :  { %13556 = vmatprep.subr.bf16.mxu1 %v13555_v26 }
 0x5b0   :  { %13526 = vmatpush3.bf16.msra.mxu0 %v13525_v12 }
 0x5b1   :  { %13528 = vmatprep.subr.bf16.mxu0 %v13527_v42 }
 0x5b2   :  { %13558 = vmatpush3.bf16.msra.mxu1 %v13557_v29  ;;  %v10339_v32 = vpop.f32.mrb[36].mxu0  ;;  %v8448_v29 = vld [vmem:[%s19673_s9] sm:$0xff] }
 0x5b3   :  { %v10340_v52 = vpop.f32.mrb[37].mxu0  ;;  %13560 = vmatprep.subr.bf16.mxu1 %v13559_v34  ;;  %v14170_v34 = vmov 0.0|0.0   ;;  %v13572_v22 = vpack.c.bf16 %v8449_v4, %v8448_v29 }
 0x5b4   :  { %v10341_v55 = vadd.f32 %v10340_v52, %v10339_v32  ;;  %13530 = vmatpush3.bf16.msra.mxu0 %v13529_v31  ;;  %v10374_v61 = vpop.f32.mrb[36].mxu1  ;;  %v13575_v31 = vpack.c.bf16 %v8451_v21, %v8450_v18  ;;  %v8456_v32 = vld [vmem:[%s19673_s9 + $0x40] sm:$0xff] }
 0x5b5   :  { %v10375_v7 = vpop.f32.mrb[37].mxu1  ;;  %13532 = vmatprep.subr.bf16.mxu0 %v13531_v0  ;;  %v13578_v0 = vpack.c.bf16 %v8453_v15, %v8452_v35 }
 0x5b6   :  { %v7353_v37 = vadd.f32 %v10341_v55, %v9367_v14  ;;  %v10376_v40 = vadd.f32 %v10375_v7, %v10374_v61  ;;  %13562 = vmatpush3.bf16.msra.mxu1 %v13561_v57  ;;  %v8457_v57 = vld [vmem:[%s19673_s9 + $0x48] sm:$0xff]  ;;  %v8459_v14 = vld [vmem:[%s19673_s9 + $0x58] sm:$0xff]  ;;  %v8462_v61 = vld [vmem:[%s19673_s9 + $0x70] sm:$0xff] }
 0x5b7   :  { %13564 = vmatprep.subr.bf16.mxu1 %v13563_v10  ;;  %v13584_v51 = vpack.c.bf16 %v8457_v57, %v8456_v32  ;;  %v13587_v52 = vpack.c.bf16 %v8459_v14, %v8458_v45  ;;  %v8460_v10 = vld [vmem:[%s19673_s9 + $0x60] sm:$0xff] }
 0x5b8   :  { %v7423_v54 = vadd.f32 %v10376_v40, %v7353_v37  ;;  %13534 = vmatpush3.bf16.msra.mxu0 %v13533_v20  ;;  %v13590_v38 = vpack.c.bf16 %v8461_v59, %v8460_v10  ;;  %v8463_v20 = vld [vmem:[%s19673_s9 + $0x78] sm:$0xff] }
 0x5b9   :  { %13536 = vmatprep.subr.bf16.mxu0 %v13535_v9  ;;  %v13593_v41 = vpack.c.bf16 %v8463_v20, %v8462_v61  ;;  %v19851_v59 = vld [vmem:[#allocation36_spill] sm:$0xff] }
 0x5ba   :  { %13566 = vmatpush3.bf16.msra.mxu1 %v13565_v6 }
 0x5bb   :  { %13568 = vmatprep.subr.bf16.mxu1 %v13567_v49 }
 0x5bc   :  { %13538 = vmatpush3.bf16.msra.mxu0 %v13537_v44 }
 0x5bd   :  { %13571 = vmatprep.subr.bf16.mxu0 %v14170_v34 }
 0x5be   :  { %13570 = vmatpush3.bf16.msra.mxu1 %v13569_v19 }
 0x5bf   :  { %8331 = vmatmul.mubr.f32.vlgmr.msra.gmra.mrb[50].mxu0 %v19354_v13  ;;  %13595 = vmatprep.subr.bf16.mxu1 %v14170_v34 }
 0x5c0   :  { %12365 = vmatprep.mubr.msk.f32.mxu0 %vm14171_vm5, %v19846_v16  ;;  %13573 = vmatpush3.bf16.msra.mxu0 %v13572_v22 }
 0x5c1   :  { %8401 = vmatmul.mubr.f32.vlgmr.msra.gmra.mrb[50].mxu1 %v19369_v60  ;;  %13574 = vmatprep.subr.bf16.mxu0 %v14170_v34 }
 0x5c2   :  { %12384 = vmatprep.mubr.msk.f32.mxu1 %vm14171_vm5, %v19846_v16  ;;  %v8454_v16 = vld [vmem:[%s19673_s9 + $0x30] sm:$0xff] }
 0x5c3   :  { %v13581_v36 = vpack.c.bf16 %v8455_v56, %v8454_v16 }
 0x5c4   :  { %13576 = vmatpush3.bf16.msra.mxu0 %v13575_v31 }
 0x5c5   :  { %13577 = vmatprep.subr.bf16.mxu0 %v14170_v34 }
 0x5c8   :  { %13579 = vmatpush3.bf16.msra.mxu0 %v13578_v0 }
 0x5c9   :  { %13580 = vmatprep.subr.bf16.mxu0 %v14170_v34 }
 0x5cc   :  { %13582 = vmatpush3.bf16.msra.mxu0 %v13581_v36 }
 0x5cd   :  { %13583 = vmatprep.subr.bf16.mxu0 %v14170_v34 }
 0x5d0   :  { %13585 = vmatpush3.bf16.msra.mxu0 %v13584_v51  ;;  %v8407_v51 = vld [vmem:[%s19671_s7] sm:$0x1] }
 0x5d1   :  { %13586 = vmatprep.subr.bf16.mxu0 %v14170_v34 }
 0x5d2   :  { %v10409_v24 = vpop.f32.mrb[38].mxu0 }
 0x5d3   :  { %v10410_v5 = vpop.f32.mrb[39].mxu0 }
 0x5d4   :  { %v10411_v46 = vadd.f32 %v10410_v5, %v10409_v24  ;;  %v10444_v3 = vpop.f32.mrb[38].mxu1  ;;  %13588 = vmatpush3.bf16.msra.mxu0 %v13587_v52  ;;  %v8408_v52 = vld [vmem:[%s19672_s8] sm:$0x1] }
 0x5d5   :  { %v10445_v43 = vpop.f32.mrb[39].mxu1  ;;  %13589 = vmatprep.subr.bf16.mxu0 %v14170_v34 }
 0x5d6   :  { %v7493_v2 = vadd.f32 %v10411_v46, %v7423_v54  ;;  %v10446_v8 = vadd.f32 %v10445_v43, %v10444_v3 }
 0x5d8   :  { %v7563_v30 = vadd.f32 %v10446_v8, %v7493_v2  ;;  %13591 = vmatpush3.bf16.msra.mxu0 %v13590_v38 }
 0x5d9   :  { %13592 = vmatprep.subr.bf16.mxu0 %v14170_v34 }
 0x5dc   :  { %13594 = vmatpush3.bf16.msra.mxu0 %v13593_v41 }
 0x5f2   :  { %v10479_v63 = vpop.f32.mrb[40].mxu0 }
 0x5f3   :  { %v10480_v28 = vpop.f32.mrb[41].mxu0 }
 0x5f4   :  { %v10481_v47 = vadd.f32 %v10480_v28, %v10479_v63  ;;  %v10514_v58 = vpop.f32.mrb[40].mxu1 }
 0x5f5   :  { %v10515_v39 = vpop.f32.mrb[41].mxu1 }
 0x5f6   :  { %v7633_v26 = vadd.f32 %v10481_v47, %v7563_v30  ;;  %v10516_v1 = vadd.f32 %v10515_v39, %v10514_v58 }
 0x5f8   :  { %v7703_v11 = vadd.f32 %v10516_v1, %v7633_v26 }
 0x612   :  { %v10549_v12 = vpop.f32.mrb[42].mxu0 }
 0x613   :  { %v10550_v13 = vpop.f32.mrb[43].mxu0 }
 0x614   :  { %v10551_v33 = vadd.f32 %v10550_v13, %v10549_v12  ;;  %v10584_v60 = vpop.f32.mrb[42].mxu1 }
 0x615   :  { %v10585_v25 = vpop.f32.mrb[43].mxu1 }
 0x616   :  { %v7773_v42 = vadd.f32 %v10551_v33, %v7703_v11  ;;  %v10586_v17 = vadd.f32 %v10585_v25, %v10584_v60 }
 0x618   :  { %v7843_v53 = vadd.f32 %v10586_v17, %v7773_v42 }
 0x632   :  { %v10619_v55 = vpop.f32.mrb[44].mxu0 }
 0x633   :  { %v10620_v62 = vpop.f32.mrb[45].mxu0 }
 0x634   :  { %v10621_v23 = vadd.f32 %v10620_v62, %v10619_v55  ;;  %v10654_v7 = vpop.f32.mrb[44].mxu1 }
 0x635   :  { %v10655_v9 = vpop.f32.mrb[45].mxu1 }
 0x636   :  { %v7913_v50 = vadd.f32 %v10621_v23, %v7843_v53  ;;  %v10656_v37 = vadd.f32 %v10655_v9, %v10654_v7  ;;  %v8583_v23 = vld [vmem:[%s19677_s13] sm:$0xff]  ;;  %v8584_v7 = vld [vmem:[%s19677_s13 + $0x8] sm:$0xff]  ;;  %v8585_v9 = vld [vmem:[%s19677_s13 + $0x10] sm:$0xff] }
 0x637   :  { %v13596_v41 = vpack.c.bf16 %v8584_v7, %v8583_v23 }
 0x638   :  { %v7983_v40 = vadd.f32 %v10656_v37, %v7913_v50  ;;  %v8586_v50 = vld [vmem:[%s19677_s13 + $0x18] sm:$0xff] }
 0x639   :  { %13597 = vmatpush3.bf16.msra.mxu1 %v13596_v41  ;;  %v13599_v37 = vpack.c.bf16 %v8586_v50, %v8585_v9 }
 0x63a   :  { %13598 = vmatprep.subr.bf16.mxu1 %v14170_v34 }
 0x63d   :  { %13600 = vmatpush3.bf16.msra.mxu1 %v13599_v37 }
 0x63e   :  { %13601 = vmatprep.subr.bf16.mxu1 %v14170_v34 }
 0x652   :  { %v10689_v6 = vpop.f32.mrb[46].mxu0 }
 0x653   :  { %v10690_v49 = vpop.f32.mrb[47].mxu0 }
 0x654   :  { %v10691_v48 = vadd.f32 %v10690_v49, %v10689_v6  ;;  %v10724_v27 = vpop.f32.mrb[46].mxu1  ;;  %v8588_v6 = vld [vmem:[%s19677_s13 + $0x28] sm:$0xff] }
 0x655   :  { %v10725_v54 = vpop.f32.mrb[47].mxu1 }
 0x656   :  { %v8053_v44 = vadd.f32 %v10691_v48, %v7983_v40  ;;  %v10726_v19 = vadd.f32 %v10725_v54, %v10724_v27  ;;  %v8587_v40 = vld [vmem:[%s19677_s13 + $0x20] sm:$0xff]  ;;  %v8589_v48 = vld [vmem:[%s19677_s13 + $0x30] sm:$0xff]  ;;  %v8590_v27 = vld [vmem:[%s19677_s13 + $0x38] sm:$0xff] }
 0x657   :  { %v13602_v49 = vpack.c.bf16 %v8588_v6, %v8587_v40  ;;  %v13605_v54 = vpack.c.bf16 %v8590_v27, %v8589_v48 }
 0x658   :  { %v8123_v24 = vadd.f32 %v10726_v19, %v8053_v44  ;;  %v9368_v44 = vld [vmem:[%s19674_s10] ss:$0 sm:$0xff] }
 0x659   :  { %13603 = vmatpush3.bf16.msra.mxu1 %v13602_v49 }
 0x65a   :  { %13604 = vmatprep.subr.bf16.mxu1 %v14170_v34 }
 0x65d   :  { %13606 = vmatpush3.bf16.msra.mxu1 %v13605_v54 }
 0x672   :  { %v10759_v5 = vpop.f32.mrb[48].mxu0 }
 0x673   :  { %v10760_v46 = vpop.f32.mrb[49].mxu0 }
 0x674   :  { %v10761_v3 = vadd.f32 %v10760_v46, %v10759_v5  ;;  %v10794_v43 = vpop.f32.mrb[48].mxu1 }
 0x675   :  { %v10795_v2 = vpop.f32.mrb[49].mxu1 }
 0x676   :  { %v8193_v8 = vadd.f32 %v10761_v3, %v8123_v24  ;;  %v10796_v30 = vadd.f32 %v10795_v2, %v10794_v43 }
 0x678   :  { %v8263_v63 = vadd.f32 %v10796_v30, %v8193_v8 }
 0x692   :  { %v10829_v28 = vpop.f32.mrb[50].mxu0 }
 0x693   :  { %v10830_v47 = vpop.f32.mrb[51].mxu0 }
 0x694   :  { %v10831_v58 = vadd.f32 %v10830_v47, %v10829_v28  ;;  %v10864_v39 = vpop.f32.mrb[50].mxu1 }
 0x695   :  { %v10865_v26 = vpop.f32.mrb[51].mxu1 }
 0x696   :  { %v8333_v1 = vadd.f32 %v10831_v58, %v8263_v63  ;;  %v10866_v11 = vadd.f32 %v10865_v26, %v10864_v39 }
 0x698   :  { %v8403_v12 = vadd.f32 %v10866_v11, %v8333_v1 }
 0x69a   :  { %14135 = vtanh.f32 %v8403_v12 }
 0x6a4   :  { %v14136_v13 = vpop.eup %14135 }
 0x6a5   :  { %v8410_v33 = vsel %vm8409_vm6, %v14136_v13, 0.0  ;;  %v8418_v60 = vmul.f32 %v14136_v13, %v14136_v13 }
 0x6a6   :  { %v8411_v25 = vrot.slane %v8410_v33, 4 }
 0x6a7   :  { %v8419_v42 = vsel %vm8409_vm6, %v8418_v60, 0.0 }
 0x6a8   :  { %v8412_v17 = vadd.f32 %v8411_v25, %v8410_v33  ;;  %v8420_v53 = vrot.slane %v8419_v42, 4 }
 0x6aa   :  { %v8413_v29 = vrot.slane %v8412_v17, 2  ;;  %v8421_v4 = vadd.f32 %v8420_v53, %v8419_v42 }
 0x6ac   :  { %v8414_v18 = vadd.f32 %v8413_v29, %v8412_v17  ;;  %v8422_v22 = vrot.slane %v8421_v4, 2  ;;  %v8542_v17 = vld [vmem:[%s19675_s11] sm:$0x1]  ;;  %s14172_s11 = smov [#allocation3]  }
 0x6ad   :  { %s8680_s26 = sshll.u32 %s14172_s11, 4  ;;  %s8681_s26 = int_to_ptr.vmem [resolvable:$true] %s8680_s26 }
 0x6ae   :  { %v8415_v21 = vrot.slane %v8414_v18, 1  ;;  %v8423_v31 = vadd.f32 %v8422_v22, %v8421_v4  ;;  %v8543_v4 = vld [vmem:[%s19676_s12] sm:$0x1]  ;;  %s14143_s12 = scalar_lea.vmem %s8681_s26, 32  ;;  %p14148_p1 = scmp.lt.s32.totalorder %s8681_s26, %s8681_s26 }
 0x6af   :  { %p14144_p0 = scmp.ne.s32.totalorder %s8681_s26, %s14143_s12  ;;  %p14149_p2 = scmp.lt.s32.totalorder %s14143_s12, %s14143_s12 }
 0x6b0   :  { %v8416_v35 = vadd.f32 %v8415_v21, %v8414_v18  ;;  %v8424_v15 = vrot.slane %v8423_v31, 1 }
 0x6b1   :  { %p14150_p3 = por %p14149_p2, %p14148_p1 }
 0x6b2   :  { %v8417_v0 = vmul.f32 0.5, %v8416_v35  ;;  %v8425_v16 = vadd.f32 %v8424_v15, %v8423_v31 }
 0x6b3   :  { %p14151_p4 = pnand %p14150_p3, %p14144_p0 }
 0x6b4   :  { %v8426_v56 = vmul.f32 0.5, %v8425_v16  ;;  %v8427_v36 = vmul.f32 %v8417_v0, %v8417_v0 }
 0x6b6   :  { %v8428_v32 = vsub.f32 %v8426_v56, %v8427_v36 }
 0x6b8   :  { %v8429_v57 = vadd.f32 1e-05, %v8428_v32 }
 0x6ba   :  { %14137 = vrsqrt.f32 %v8429_v57 }
 0x6c4   :  { %v14138_v45 = vpop.eup %14137 }
 0x6c5   :  { %v8431_v14 = vmul.f32 %v14138_v45, %v8407_v51 }
 0x6c7   :  { %v8432_v10 = vmul.f32 %v8431_v14, %v8417_v0  ;;  %v8438_v38 = vrot.slane %v8431_v14, %v19851_v59  ;;  %v9369_v0 = vld [vmem:[%s19678_s14] ss:$0 sm:$0xff] }
 0x6c9   :  { %v8433_v55 = vsub.f32 %v8408_v52, %v8432_v10  ;;  %v8440_v61 = vmul.f32 %v14136_v13, %v8438_v38 }
 0x6cb   :  { %v8445_v20 = vrot.slane %v8433_v55, %v19851_v59 }
 0x6cd   :  { %v8447_v62 = vadd.f32 %v8445_v20, %v8440_v61 }
 0x6cf   :  { %12366 = vmatmul.mubr.f32.vlgmr.msra.gmra.mrb[52].mxu0 %v8447_v62 }
 0x7a2   :  { %v8537_v19 = vpop.f32.mrb[52].mxu0 }
 0x7a3   :  { %v8538_v24 = vadd.f32 %v9368_v44, %v8537_v19  ;;  %v12367_v5 = vpop.f32.mrb[53].mxu0 }
 0x7a5   :  { %14139 = vtanh.f32 %v8538_v24 }
 0x7af   :  { %v14140_v46 = vpop.eup %14139 }
 0x7b0   :  { %v8553_v3 = vmul.f32 %v14140_v46, %v14140_v46  ;;  %v8545_v43 = vsel %vm8544_vm7, %v14140_v46, 0.0 }
 0x7b1   :  { %v8546_v2 = vrot.slane %v8545_v43, 4 }
 0x7b2   :  { %v8554_v8 = vsel %vm8544_vm7, %v8553_v3, 0.0 }
 0x7b3   :  { %v8547_v30 = vadd.f32 %v8546_v2, %v8545_v43  ;;  %v8555_v63 = vrot.slane %v8554_v8, 4 }
 0x7b5   :  { %v8548_v28 = vrot.slane %v8547_v30, 2  ;;  %v8556_v47 = vadd.f32 %v8555_v63, %v8554_v8 }
 0x7b7   :  { %v8549_v34 = vadd.f32 %v8548_v28, %v8547_v30  ;;  %v8557_v58 = vrot.slane %v8556_v47, 2 }
 0x7b9   :  { %v8550_v39 = vrot.slane %v8549_v34, 1  ;;  %v8558_v26 = vadd.f32 %v8557_v58, %v8556_v47 }
 0x7bb   :  { %v8551_v1 = vadd.f32 %v8550_v39, %v8549_v34  ;;  %v8559_v11 = vrot.slane %v8558_v26, 1 }
 0x7bd   :  { %v8552_v12 = vmul.f32 0.5, %v8551_v1  ;;  %v8560_v13 = vadd.f32 %v8559_v11, %v8558_v26 }
 0x7bf   :  { %v8561_v33 = vmul.f32 0.5, %v8560_v13  ;;  %v8562_v60 = vmul.f32 %v8552_v12, %v8552_v12 }
 0x7c1   :  { %v8563_v25 = vsub.f32 %v8561_v33, %v8562_v60 }
 0x7c3   :  { %v8564_v42 = vadd.f32 1e-05, %v8563_v25 }
 0x7c5   :  { %14141 = vrsqrt.f32 %v8564_v42 }
 0x7cf   :  { %v14142_v53 = vpop.eup %14141 }
 0x7d0   :  { %v8566_v29 = vmul.f32 %v14142_v53, %v8542_v17 }
 0x7d2   :  { %v8567_v18 = vmul.f32 %v8566_v29, %v8552_v12  ;;  %v8573_v22 = vrot.slane %v8566_v29, %v19851_v59 }
 0x7d4   :  { %v8568_v21 = vsub.f32 %v8543_v4, %v8567_v18  ;;  %v8575_v31 = vmul.f32 %v14140_v46, %v8573_v22 }
 0x7d6   :  { %v8580_v35 = vrot.slane %v8568_v21, %v19851_v59 }
 0x7d8   :  { %v8582_v15 = vadd.f32 %v8580_v35, %v8575_v31 }
 0x7da   :  { %12385 = vmatmul.mubr.msk.f32.vlgmr.msra.gmra.mrb[52].mxu1 %vm8598_vm8, %v8582_v15 }
 0x8ad   :  { %v8668_v16 = vpop.f32.mrb[52].mxu1 }
 0x8ae   :  { %v8669_v56 = vadd.f32 %v9369_v0, %v8668_v16  ;;  %v12386_v36 = vpop.f32.mrb[53].mxu1 }
 0x8b0   :  { %8673 = vst.msk [vmem:[#allocation3] sm:$0x3] %vm8672_vm9, %v8669_v56 }
 0x8b1   :  { %14154 = shalt.err (!%p14151_p4)
}
 0x8b2   :  { %s14155_s0 = scalar_lea.hbm %s19679_s15, 32 }
 0x8b3   :  { %p14156_p5 = scmp.ne.s32.totalorder %s19679_s15, %s14155_s0  ;;  %p14159_p6 = scmp.lt.u32.totalorder %s14155_s0, %s19679_s15 }
 0x8b5   :  { %p14161_p7 = pnand %p14159_p6, %p14156_p5 }
 0x8b7   :  { %14164 = shalt.err (!%p14161_p7)
}
 0x8b8   :  { %8683 = dma.vmem_to_hbm [thread:$0]  %s8681_s26, 32, %s19679_s15, [#allocation4]  }
 0x8b9   :  { %14165 = dma.done.wait [#allocation4], 32  }
 0x8ba   :  { %14166 = vsyncadd [#allocation4], 4294967264 }
 0x8bb   :  { %8687 = vsyncpa [#allocation4], 1 }

</bundles_post_ra>
